<compile_context>
chip_gen: v6e
topology: v6e:2x2x1
jax: 0.10.0
libtpu: 0.0.40
codegen_flags: <defaults>
</compile_context>

<pallas_src>
import functools
import math

import numpy as np
import jax
import jax.numpy as jnp
from jax.experimental import pallas as pl
from jax.experimental.pallas import tpu as pltpu

VMEM = pltpu.MemorySpace.VMEM
SMEM = pltpu.MemorySpace.SMEM

# ----------------------- configuration (small shapes) -----------------------
BATCH = 2
SEQ_LEN = 8
NUM_FEATURES = 6          # raw input features
NUM_HIDDEN = 32           # num_hidden
NUM_OUTPUTS = 4           # action dim
NUM_STEPS = 5             # num action steps
NUM_HEADS = 8             # transformer-block heads
DD_HEADS = 4              # diffusion-decoder heads (irrelevant for key-len-1 attn)
DIFF_STEPS = 4            # diffusion steps
VQ_HIDDEN = 16
VQ_EMB = 16               # vqvae.encoder.fc2.out_features
VQ_CODES = 32
FEAT_AUG = NUM_FEATURES + VQ_EMB  # GRN input size


def cosine_beta_schedule(timesteps, s=0.008):
    steps = timesteps + 1
    x = np.linspace(0.0, timesteps, steps)
    ac = np.cos((x / timesteps + s) / (1 + s) * math.pi * 0.5) ** 2
    ac = ac / ac[0]
    betas = 1.0 - ac[1:] / ac[:-1]
    return np.clip(betas, 0.0001, 0.9999)


BETAS = cosine_beta_schedule(DIFF_STEPS)
ALPHA_BARS = np.cumprod(1.0 - BETAS)


# ------------------------- in-kernel building blocks -------------------------


def _lin(x, w, b):
    return jnp.dot(x, w, preferred_element_type=jnp.float32) + b


def _ln(x, g, b, eps=1e-5):
    mu = jnp.mean(x, axis=-1, keepdims=True)
    var = jnp.mean(jnp.square(x - mu), axis=-1, keepdims=True)
    return (x - mu) * jax.lax.rsqrt(var + eps) * g + b


def _tblock(h, tp, num_heads, B, S):
    """Pre-norm transformer block on (B*S, H) values, all in vregs/VMEM."""
    H = tp["wo"].shape[0]
    dh = H // num_heads
    scale = 1.0 / math.sqrt(dh)

    x2 = h
    xn = _ln(h, tp["n1_g"], tp["n1_b"])
    qkv = _lin(xn, tp["wqkv"], tp["bqkv"])          # fused QKV: (B*S, 3H)

    outs = []
    for hd in range(num_heads):                     # head split done in-kernel
        q = qkv[:, hd * dh:(hd + 1) * dh].reshape(B, S, dh)
        k = qkv[:, H + hd * dh:H + (hd + 1) * dh].reshape(B, S, dh)
        v = qkv[:, 2 * H + hd * dh:2 * H + (hd + 1) * dh].reshape(B, S, dh)
        s = jnp.einsum("bqd,bkd->bqk", q, k,
                       preferred_element_type=jnp.float32) * scale
        s = s - jnp.max(s, axis=-1, keepdims=True)
        p = jnp.exp(s)
        p = p * pl.reciprocal(jnp.sum(p, axis=-1, keepdims=True), approx=True)
        o = jnp.einsum("bqk,bkd->bqd", p, v,
                       preferred_element_type=jnp.float32)
        outs.append(o.reshape(B * S, dh))
    att = _lin(jnp.concatenate(outs, axis=-1), tp["wo"], tp["bo"])
    h = att + x2

    x2 = h
    xn = _ln(h, tp["n2_g"], tp["n2_b"])
    ff = jnp.maximum(_lin(xn, tp["ff_w1"], tp["ff_b1"]), 0.0)
    ff = _lin(ff, tp["ff_w2"], tp["ff_b2"])
    return ff + x2


# ------------------------------ fused kernels --------------------------------


def _encoder_kernel(x_ref, *rest, treedef, n_weights):
    """VQ-VAE encode+quantize -> GRN -> 2 transformer blocks -> cond proj ->
    per-decoder-block cross-attention context.  One pallas_call."""
    w_refs = rest[:n_weights]
    ctx1_ref, ctx2_ref, loss_ref, perp_ref = rest[n_weights:]
    W = jax.tree_util.tree_map(lambda r: r[...],
                               jax.tree_util.tree_unflatten(treedef, w_refs))
    B, S, H = BATCH, SEQ_LEN, NUM_HIDDEN
    x = x_ref[...]                                       # (B*S, F)

    # ---- VQ-VAE encoder + nearest-codebook quantizer ----
    V = W["vq"]
    h1 = jnp.maximum(_lin(x, V["enc_w1"], V["enc_b1"]), 0.0)
    z = _lin(h1, V["enc_w2"], V["enc_b2"])               # (N, D)
    cb = V["codebook"]                                   # (K, D)
    N, D = z.shape
    K = cb.shape[0]
    zdot = jax.lax.dot_general(z, cb, (((1,), (1,)), ((), ())),
                               preferred_element_type=jnp.float32)   # (N, K)
    z2 = jnp.sum(z * z, axis=-1, keepdims=True)                       # (N, 1)
    e2 = jax.lax.dot_general(jnp.ones((1, D), jnp.float32), cb * cb,
                             (((1,), (1,)), ((), ())),
                             preferred_element_type=jnp.float32)      # (1, K)
    dist = z2 - 2.0 * zdot + e2
    col = jax.lax.broadcasted_iota(jnp.int32, (N, K), 1)
    minval = jnp.min(dist, axis=-1, keepdims=True)
    idx = jnp.min(jnp.where(dist <= minval, col, K), axis=-1, keepdims=True)
    onehot = (col == idx).astype(jnp.float32)                          # (N, K)
    q = jnp.dot(onehot, cb, preferred_element_type=jnp.float32)        # (N, D)
    mse = jnp.mean(jnp.square(q - z))
    loss_ref[...] = mse * 1.25 * jnp.ones((1, 1), jnp.float32)   # (1+commitment)*mse
    avg = jnp.mean(onehot, axis=0, keepdims=True)
    perp_ref[...] = jnp.exp(-jnp.sum(avg * jnp.log(avg + 1e-10))) * \
        jnp.ones((1, 1), jnp.float32)
    # TODO(synk): VQ-VAE decoder reconstruction is unused in the influence path.

    # ---- Gated residual network ----
    G = W["grn"]
    xcat = jnp.concatenate([x, q], axis=-1)              # (N, F + D)
    hh = xcat
    for i in range(3):
        hh = jnp.maximum(_lin(hh, G[f"lw{i}"], G[f"lb{i}"]), 0.0)
        hh = _ln(hh, G[f"ng{i}"], G[f"nb{i}"])
    gf = _lin(hh, G["gf_w"], G["gf_b"])                  # fused gate|fc2: (N, 2H)
    gate = jax.nn.sigmoid(gf[:, :H])
    x2v = gf[:, H:]
    henc = _lin(xcat, G["fc3_w"], G["fc3_b"]) + gate * x2v   # (N, H)

    # ---- transformer blocks (self-attention over the sequence per batch) ----
    henc = _tblock(henc, W["tb1"], NUM_HEADS, B, S)
    henc = _tblock(henc, W["tb2"], NUM_HEADS, B, S)

    # ---- conditioning: last timestep per batch element, projected ----
    cond_last = jnp.concatenate(
        [henc[(b + 1) * S - 1:(b + 1) * S, :] for b in range(B)], axis=0)  # (B, H)
    cond = _lin(cond_last, W["cond_w"], W["cond_b"])                        # (B, H)

    # ---- cross-attention context per decoder block.
    # Key/value length is 1 => softmax == 1 => attn_out = out_proj(v_proj(cond)),
    # constant across queries and across diffusion steps (exact).
    DA = W["dd_attn"]
    ctx1_ref[...] = _lin(_lin(cond, DA["wv0"], DA["bv0"]), DA["wo0"], DA["bo0"])
    ctx2_ref[...] = _lin(_lin(cond, DA["wv1"], DA["bv1"]), DA["wo1"], DA["bo1"])


def _decoder_step_kernel(coef_ref, x_ref, temb_ref, noise_ref, ctx1_ref, ctx2_ref,
                         *rest, treedef, n_weights):
    """One reverse-diffusion step: eps-prediction network + DDPM update, fused."""
    w_refs = rest[:n_weights]
    o_ref = rest[n_weights]
    W = jax.tree_util.tree_map(lambda r: r[...],
                               jax.tree_util.tree_unflatten(treedef, w_refs))
    B, Sa, H = BATCH, NUM_STEPS, NUM_HIDDEN

    x = x_ref[...]                                       # (B*Sa, A)
    temb = temb_ref[...]                                 # (1, H), same t for all rows
    xin = jnp.concatenate([x, jnp.broadcast_to(temb, (B * Sa, H))], axis=-1)
    h = _lin(xin, W["in_w"], W["in_b"])                  # (B*Sa, H)

    for blk, ctx in zip(W["blocks"], (ctx1_ref[...], ctx2_ref[...])):
        # precomputed cross-attention output, broadcast over the Sa query rows
        ctx_rows = jnp.concatenate(
            [jnp.broadcast_to(ctx[b:b + 1, :], (Sa, H)) for b in range(B)], axis=0)
        h = h + ctx_rows
        h = _ln(h, blk["n1_g"], blk["n1_b"])
        m = jax.nn.gelu(_lin(h, blk["mlp_w1"], blk["mlp_b1"]), approximate=True)
        m = _lin(m, blk["mlp_w2"], blk["mlp_b2"])
        h = h + m
        h = _ln(h, blk["n2_g"], blk["n2_b"])

    eps = _lin(h, W["out_w"], W["out_b"])                # (B*Sa, A)

    # DDPM update with per-step scalars from SMEM: one compiled kernel for all t.
    c0 = coef_ref[0]
    c1 = coef_ref[1]
    c2 = coef_ref[2]
    o_ref[...] = c0 * (x - c1 * eps) + c2 * noise_ref[...]


# ------------------------------ kernel wrappers -------------------------------


def encoder_forward(enc_params, x_flat):
    leaves, treedef = jax.tree_util.tree_flatten(enc_params)
    kernel = functools.partial(_encoder_kernel, treedef=treedef,
                               n_weights=len(leaves))
    out_shape = (jax.ShapeDtypeStruct((BATCH, NUM_HIDDEN), jnp.float32),  # ctx1
                 jax.ShapeDtypeStruct((BATCH, NUM_HIDDEN), jnp.float32),  # ctx2
                 jax.ShapeDtypeStruct((1, 1), jnp.float32),               # vq_loss
                 jax.ShapeDtypeStruct((1, 1), jnp.float32))               # perplexity
    return pl.pallas_call(
        kernel,
        out_shape=out_shape,
        in_specs=[pl.BlockSpec(memory_space=VMEM)] * (1 + len(leaves)),
        out_specs=(pl.BlockSpec(memory_space=VMEM),) * 4,
    )(x_flat, *leaves)


def decoder_step(dec_params, coefs, x, temb, noise, ctx1, ctx2):
    leaves, treedef = jax.tree_util.tree_flatten(dec_params)
    kernel = functools.partial(_decoder_step_kernel, treedef=treedef,
                               n_weights=len(leaves))
    return pl.pallas_call(
        kernel,
        out_shape=jax.ShapeDtypeStruct((BATCH * NUM_STEPS, NUM_OUTPUTS),
                                       jnp.float32),
        in_specs=[pl.BlockSpec(memory_space=SMEM)] +
                 [pl.BlockSpec(memory_space=VMEM)] * (5 + len(leaves)),
        out_specs=pl.BlockSpec(memory_space=VMEM),
    )(coefs, x, temb, noise, ctx1, ctx2, *leaves)


# --------------------------------- model --------------------------------------


def sinusoidal_time_embedding(t, dim):
    half = dim // 2
    factor = math.log(10000.0) / (half - 1)
    dims = jnp.arange(half, dtype=jnp.float32)
    emb = t[:, None] * jnp.exp(-dims * factor)[None, :]
    emb = jnp.concatenate([jnp.sin(emb), jnp.cos(emb)], axis=1)
    if dim % 2 == 1:
        emb = jnp.pad(emb, ((0, 0), (0, 1)))
    return emb


def tft_forward_influence(params, x, key):
    """forward(x, influence=True): returns the final denoised trajectory."""
    B, S, F = x.shape
    x_flat = x.reshape(B * S, F)

    # Fused encoder kernel: conditioning contexts + VQ statistics.
    ctx1, ctx2, vq_loss, perp = encoder_forward(params["encoder"], x_flat)

    # Reverse-diffusion schedule tables (loop step i  <->  t = DIFF_STEPS-1-i).
    ts = np.arange(DIFF_STEPS - 1, -1, -1)
    betas = BETAS[ts]
    alphas = 1.0 - betas
    abars = ALPHA_BARS[ts]
    c0 = 1.0 / np.sqrt(alphas)
    c1 = betas / np.sqrt(1.0 - abars)
    c2 = np.where(ts > 0, np.sqrt(betas), 0.0)           # no noise at t == 0
    coef_table = jnp.asarray(np.stack([c0, c1, c2], axis=1), jnp.float32)   # (T, 3)
    temb_table = sinusoidal_time_embedding(
        jnp.asarray(ts, jnp.float32), NUM_HIDDEN)                            # (T, H)

    key, k0, k1 = jax.random.split(key, 3)
    x0 = jax.random.normal(k0, (B * NUM_STEPS, NUM_OUTPUTS), jnp.float32)
    noise_all = jax.random.normal(
        k1, (DIFF_STEPS, B * NUM_STEPS, NUM_OUTPUTS), jnp.float32)

    dec_params = params["decoder"]

    def body(i, xcur):
        coefs = jax.lax.dynamic_slice_in_dim(coef_table, i, 1, 0).reshape(3)
        temb = jax.lax.dynamic_slice_in_dim(temb_table, i, 1, 0)         # (1, H)
        nz = jax.lax.dynamic_slice_in_dim(noise_all, i, 1, 0)[0]         # (B*Sa, A)
        return decoder_step(dec_params, coefs, xcur, temb, nz, ctx1, ctx2)

    xT = jax.lax.fori_loop(0, DIFF_STEPS, body, x0)
    traj = xT.reshape(B, NUM_STEPS, NUM_OUTPUTS)
    return traj, vq_loss[0, 0], perp[0, 0]


# ------------------------------ parameters ------------------------------------


def init_params(key):
    keys = iter(jax.random.split(key, 128))

    def w(shape, scale=0.1):
        return jax.random.normal(next(keys), shape, jnp.float32) * scale

    def zeros(n):
        return jnp.zeros((1, n), jnp.float32)

    def ones(n):
        return jnp.ones((1, n), jnp.float32)

    H = NUM_HIDDEN

    def tb_params():
        return dict(n1_g=ones(H), n1_b=zeros(H), n2_g=ones(H), n2_b=zeros(H),
                    wqkv=w((H, 3 * H)), bqkv=zeros(3 * H),
                    wo=w((H, H)), bo=zeros(H),
                    ff_w1=w((H, 4 * H)), ff_b1=zeros(4 * H),
                    ff_w2=w((4 * H, H)), ff_b2=zeros(H))

    def dd_block():
        return dict(n1_g=ones(H), n1_b=zeros(H), n2_g=ones(H), n2_b=zeros(H),
                    mlp_w1=w((H, 4 * H)), mlp_b1=zeros(4 * H),
                    mlp_w2=w((4 * H, H)), mlp_b2=zeros(H))

    encoder = dict(
        vq=dict(enc_w1=w((NUM_FEATURES, VQ_HIDDEN)), enc_b1=zeros(VQ_HIDDEN),
                enc_w2=w((VQ_HIDDEN, VQ_EMB)), enc_b2=zeros(VQ_EMB),
                codebook=w((VQ_CODES, VQ_EMB), 0.5)),
        grn=dict(lw0=w((FEAT_AUG, H)), lb0=zeros(H),
                 lw1=w((H, H)), lb1=zeros(H),
                 lw2=w((H, H)), lb2=zeros(H),
                 ng0=ones(H), nb0=zeros(H),
                 ng1=ones(H), nb1=zeros(H),
                 ng2=ones(H), nb2=zeros(H),
                 fc3_w=w((FEAT_AUG, H)), fc3_b=zeros(H),
                 gf_w=w((H, 2 * H)), gf_b=zeros(2 * H)),     # fused gate | fc2
        tb1=tb_params(), tb2=tb_params(),
        cond_w=w((H, H)), cond_b=zeros(H),
        # Diffusion-decoder cross-attention V/out projections (Q/K projections
        # do not affect the output for key length 1 and are omitted).
        dd_attn=dict(wv0=w((H, H)), bv0=zeros(H), wo0=w((H, H)), bo0=zeros(H),
                     wv1=w((H, H)), bv1=zeros(H), wo1=w((H, H)), bo1=zeros(H)),
    )
    decoder = dict(in_w=w((NUM_OUTPUTS + H, H)), in_b=zeros(H),
                   blocks=[dd_block() for _ in range(2)],
                   out_w=w((H, NUM_OUTPUTS)), out_b=zeros(NUM_OUTPUTS))
    return dict(encoder=encoder, decoder=decoder)


# --------------------------------- main ----------------------------------------

if __name__ == "__main__":
    root = jax.random.PRNGKey(0)
    k_x, k_param, k_sample = jax.random.split(root, 3)

    x = jax.random.normal(k_x, (BATCH, SEQ_LEN, NUM_FEATURES), jnp.float32)
    params = init_params(k_param)

    fwd = jax.jit(tft_forward_influence)
    traj, vq_loss, perplexity = fwd(params, x, k_sample)
    jax.block_until_ready((traj, vq_loss, perplexity))

    assert traj.shape == (BATCH, NUM_STEPS, NUM_OUTPUTS)
    assert bool(jnp.all(jnp.isfinite(traj)))
    assert bool(jnp.isfinite(vq_loss)) and bool(jnp.isfinite(perplexity))
    print("KERNEL_OK")
</pallas_src>

<mosaic_0001>
module attributes {stable_mosaic.version = 11 : i64} {
  func.func @_decoder_step_kernel(%arg0: memref<3xf32, #tpu.memory_space<smem>>, %arg1: memref<10x4xf32, #tpu.memory_space<vmem>>, %arg2: memref<1x32xf32, #tpu.memory_space<vmem>>, %arg3: memref<10x4xf32, #tpu.memory_space<vmem>>, %arg4: memref<2x32xf32, #tpu.memory_space<vmem>>, %arg5: memref<2x32xf32, #tpu.memory_space<vmem>>, %arg6: memref<1x128xf32, #tpu.memory_space<vmem>>, %arg7: memref<1x32xf32, #tpu.memory_space<vmem>>, %arg8: memref<32x128xf32, #tpu.memory_space<vmem>>, %arg9: memref<128x32xf32, #tpu.memory_space<vmem>>, %arg10: memref<1x32xf32, #tpu.memory_space<vmem>>, %arg11: memref<1x32xf32, #tpu.memory_space<vmem>>, %arg12: memref<1x32xf32, #tpu.memory_space<vmem>>, %arg13: memref<1x32xf32, #tpu.memory_space<vmem>>, %arg14: memref<1x128xf32, #tpu.memory_space<vmem>>, %arg15: memref<1x32xf32, #tpu.memory_space<vmem>>, %arg16: memref<32x128xf32, #tpu.memory_space<vmem>>, %arg17: memref<128x32xf32, #tpu.memory_space<vmem>>, %arg18: memref<1x32xf32, #tpu.memory_space<vmem>>, %arg19: memref<1x32xf32, #tpu.memory_space<vmem>>, %arg20: memref<1x32xf32, #tpu.memory_space<vmem>>, %arg21: memref<1x32xf32, #tpu.memory_space<vmem>>, %arg22: memref<1x32xf32, #tpu.memory_space<vmem>>, %arg23: memref<36x32xf32, #tpu.memory_space<vmem>>, %arg24: memref<1x4xf32, #tpu.memory_space<vmem>>, %arg25: memref<32x4xf32, #tpu.memory_space<vmem>>, %arg26: memref<10x4xf32, #tpu.memory_space<vmem>>) attributes {dimension_semantics = [], scalar_prefetch = 0 : i64, scratch_operands = 0 : i64, tpu.core_type = #tpu.core_type<tc>} {
    %c0 = arith.constant 0 : index
    %c0_0 = arith.constant 0 : index
    %0 = vector.load %arg6[%c0, %c0_0] : memref<1x128xf32, #tpu.memory_space<vmem>>, vector<1x128xf32>
    %c0_1 = arith.constant 0 : index
    %c0_2 = arith.constant 0 : index
    %1 = vector.load %arg7[%c0_1, %c0_2] : memref<1x32xf32, #tpu.memory_space<vmem>>, vector<1x32xf32>
    %c0_3 = arith.constant 0 : index
    %c0_4 = arith.constant 0 : index
    %2 = vector.load %arg8[%c0_3, %c0_4] : memref<32x128xf32, #tpu.memory_space<vmem>>, vector<32x128xf32>
    %c0_5 = arith.constant 0 : index
    %c0_6 = arith.constant 0 : index
    %3 = vector.load %arg9[%c0_5, %c0_6] : memref<128x32xf32, #tpu.memory_space<vmem>>, vector<128x32xf32>
    %c0_7 = arith.constant 0 : index
    %c0_8 = arith.constant 0 : index
    %4 = vector.load %arg10[%c0_7, %c0_8] : memref<1x32xf32, #tpu.memory_space<vmem>>, vector<1x32xf32>
    %c0_9 = arith.constant 0 : index
    %c0_10 = arith.constant 0 : index
    %5 = vector.load %arg11[%c0_9, %c0_10] : memref<1x32xf32, #tpu.memory_space<vmem>>, vector<1x32xf32>
    %c0_11 = arith.constant 0 : index
    %c0_12 = arith.constant 0 : index
    %6 = vector.load %arg12[%c0_11, %c0_12] : memref<1x32xf32, #tpu.memory_space<vmem>>, vector<1x32xf32>
    %c0_13 = arith.constant 0 : index
    %c0_14 = arith.constant 0 : index
    %7 = vector.load %arg13[%c0_13, %c0_14] : memref<1x32xf32, #tpu.memory_space<vmem>>, vector<1x32xf32>
    %c0_15 = arith.constant 0 : index
    %c0_16 = arith.constant 0 : index
    %8 = vector.load %arg14[%c0_15, %c0_16] : memref<1x128xf32, #tpu.memory_space<vmem>>, vector<1x128xf32>
    %c0_17 = arith.constant 0 : index
    %c0_18 = arith.constant 0 : index
    %9 = vector.load %arg15[%c0_17, %c0_18] : memref<1x32xf32, #tpu.memory_space<vmem>>, vector<1x32xf32>
    %c0_19 = arith.constant 0 : index
    %c0_20 = arith.constant 0 : index
    %10 = vector.load %arg16[%c0_19, %c0_20] : memref<32x128xf32, #tpu.memory_space<vmem>>, vector<32x128xf32>
    %c0_21 = arith.constant 0 : index
    %c0_22 = arith.constant 0 : index
    %11 = vector.load %arg17[%c0_21, %c0_22] : memref<128x32xf32, #tpu.memory_space<vmem>>, vector<128x32xf32>
    %c0_23 = arith.constant 0 : index
    %c0_24 = arith.constant 0 : index
    %12 = vector.load %arg18[%c0_23, %c0_24] : memref<1x32xf32, #tpu.memory_space<vmem>>, vector<1x32xf32>
    %c0_25 = arith.constant 0 : index
    %c0_26 = arith.constant 0 : index
    %13 = vector.load %arg19[%c0_25, %c0_26] : memref<1x32xf32, #tpu.memory_space<vmem>>, vector<1x32xf32>
    %c0_27 = arith.constant 0 : index
    %c0_28 = arith.constant 0 : index
    %14 = vector.load %arg20[%c0_27, %c0_28] : memref<1x32xf32, #tpu.memory_space<vmem>>, vector<1x32xf32>
    %c0_29 = arith.constant 0 : index
    %c0_30 = arith.constant 0 : index
    %15 = vector.load %arg21[%c0_29, %c0_30] : memref<1x32xf32, #tpu.memory_space<vmem>>, vector<1x32xf32>
    %c0_31 = arith.constant 0 : index
    %c0_32 = arith.constant 0 : index
    %16 = vector.load %arg22[%c0_31, %c0_32] : memref<1x32xf32, #tpu.memory_space<vmem>>, vector<1x32xf32>
    %c0_33 = arith.constant 0 : index
    %c0_34 = arith.constant 0 : index
    %17 = vector.load %arg23[%c0_33, %c0_34] : memref<36x32xf32, #tpu.memory_space<vmem>>, vector<36x32xf32>
    %c0_35 = arith.constant 0 : index
    %c0_36 = arith.constant 0 : index
    %18 = vector.load %arg24[%c0_35, %c0_36] : memref<1x4xf32, #tpu.memory_space<vmem>>, vector<1x4xf32>
    %c0_37 = arith.constant 0 : index
    %c0_38 = arith.constant 0 : index
    %19 = vector.load %arg25[%c0_37, %c0_38] : memref<32x4xf32, #tpu.memory_space<vmem>>, vector<32x4xf32>
    %c0_39 = arith.constant 0 : index
    %c0_40 = arith.constant 0 : index
    %20 = vector.load %arg1[%c0_39, %c0_40] : memref<10x4xf32, #tpu.memory_space<vmem>>, vector<10x4xf32>
    %c0_41 = arith.constant 0 : index
    %c0_42 = arith.constant 0 : index
    %21 = vector.load %arg2[%c0_41, %c0_42] : memref<1x32xf32, #tpu.memory_space<vmem>>, vector<1x32xf32>
    %22 = vector.shape_cast %21 : vector<1x32xf32> to vector<1x32xf32>
    %23 = vector.broadcast %22 : vector<1x32xf32> to vector<10x32xf32>
    %24 = tpu.concatenate %20, %23 in 1 : vector<10x4xf32>, vector<10x32xf32> -> vector<10x36xf32>
    %cst = arith.constant dense<0.000000e+00> : vector<10x32xf32>
    %25 = tpu.matmul %24, %17, %cst {dimension_numbers = #tpu.dot_dimension_numbers<[1], [0], [0], [1], [0, 0, 1, 1], [], []>} : vector<10x36xf32>, vector<36x32xf32>, vector<10x32xf32> -> vector<10x32xf32>
    %26 = vector.broadcast %16 : vector<1x32xf32> to vector<10x32xf32>
    %27 = arith.addf %25, %26 : vector<10x32xf32>
    %c0_43 = arith.constant 0 : index
    %c0_44 = arith.constant 0 : index
    %28 = vector.load %arg4[%c0_43, %c0_44] : memref<2x32xf32, #tpu.memory_space<vmem>>, vector<2x32xf32>
    %c0_45 = arith.constant 0 : index
    %c0_46 = arith.constant 0 : index
    %29 = vector.load %arg5[%c0_45, %c0_46] : memref<2x32xf32, #tpu.memory_space<vmem>>, vector<2x32xf32>
    %30 = vector.extract_strided_slice %28 {offsets = [0, 0], sizes = [1, 32], strides = [1, 1]} : vector<2x32xf32> to vector<1x32xf32>
    %31 = vector.shape_cast %30 : vector<1x32xf32> to vector<1x32xf32>
    %32 = vector.broadcast %31 : vector<1x32xf32> to vector<5x32xf32>
    %33 = vector.extract_strided_slice %28 {offsets = [1, 0], sizes = [1, 32], strides = [1, 1]} : vector<2x32xf32> to vector<1x32xf32>
    %34 = vector.shape_cast %33 : vector<1x32xf32> to vector<1x32xf32>
    %35 = vector.broadcast %34 : vector<1x32xf32> to vector<5x32xf32>
    %36 = tpu.concatenate %32, %35 in 0 : vector<5x32xf32>, vector<5x32xf32> -> vector<10x32xf32>
    %37 = arith.addf %27, %36 : vector<10x32xf32>
    %cst_47 = arith.constant dense<0.000000e+00> : vector<10xf32>
    %38 = vector.multi_reduction <add>, %37, %cst_47 [1] : vector<10x32xf32> to vector<10xf32>
    %39 = vector.shape_cast %38 : vector<10xf32> to vector<10x1xf32>
    %cst_48 = arith.constant 3.200000e+01 : f32
    %40 = vector.broadcast %cst_48 : f32 to vector<10x1xf32>
    %41 = arith.divf %39, %40 : vector<10x1xf32>
    %42 = vector.broadcast %41 : vector<10x1xf32> to vector<10x32xf32>
    %43 = arith.subf %37, %42 : vector<10x32xf32>
    %44 = arith.mulf %43, %43 : vector<10x32xf32>
    %cst_49 = arith.constant dense<0.000000e+00> : vector<10xf32>
    %45 = vector.multi_reduction <add>, %44, %cst_49 [1] : vector<10x32xf32> to vector<10xf32>
    %46 = vector.shape_cast %45 : vector<10xf32> to vector<10x1xf32>
    %cst_50 = arith.constant 3.200000e+01 : f32
    %47 = vector.broadcast %cst_50 : f32 to vector<10x1xf32>
    %48 = arith.divf %46, %47 : vector<10x1xf32>
    %49 = vector.broadcast %41 : vector<10x1xf32> to vector<10x32xf32>
    %50 = arith.subf %37, %49 : vector<10x32xf32>
    %cst_51 = arith.constant 9.99999974E-6 : f32
    %51 = vector.broadcast %cst_51 : f32 to vector<10x1xf32>
    %52 = arith.addf %48, %51 : vector<10x1xf32>
    %53 = math.rsqrt %52 : vector<10x1xf32>
    %54 = vector.broadcast %53 : vector<10x1xf32> to vector<10x32xf32>
    %55 = arith.mulf %50, %54 : vector<10x32xf32>
    %56 = vector.broadcast %5 : vector<1x32xf32> to vector<10x32xf32>
    %57 = arith.mulf %55, %56 : vector<10x32xf32>
    %58 = vector.broadcast %4 : vector<1x32xf32> to vector<10x32xf32>
    %59 = arith.addf %57, %58 : vector<10x32xf32>
    %cst_52 = arith.constant dense<0.000000e+00> : vector<10x128xf32>
    %60 = tpu.matmul %59, %2, %cst_52 {dimension_numbers = #tpu.dot_dimension_numbers<[1], [0], [0], [1], [0, 0, 1, 1], [], []>} : vector<10x32xf32>, vector<32x128xf32>, vector<10x128xf32> -> vector<10x128xf32>
    %61 = vector.broadcast %0 : vector<1x128xf32> to vector<10x128xf32>
    %62 = arith.addf %60, %61 : vector<10x128xf32>
    %63 = arith.mulf %62, %62 : vector<10x128xf32>
    %64 = arith.mulf %62, %63 : vector<10x128xf32>
    %cst_53 = arith.constant 4.471500e-02 : f32
    %65 = vector.broadcast %cst_53 : f32 to vector<10x128xf32>
    %66 = arith.mulf %65, %64 : vector<10x128xf32>
    %67 = arith.addf %62, %66 : vector<10x128xf32>
    %cst_54 = arith.constant 0.797884583 : f32
    %68 = vector.broadcast %cst_54 : f32 to vector<10x128xf32>
    %69 = arith.mulf %68, %67 : vector<10x128xf32>
    %70 = math.tanh %69 : vector<10x128xf32>
    %cst_55 = arith.constant 1.000000e+00 : f32
    %71 = vector.broadcast %cst_55 : f32 to vector<10x128xf32>
    %72 = arith.addf %71, %70 : vector<10x128xf32>
    %cst_56 = arith.constant 5.000000e-01 : f32
    %73 = vector.broadcast %cst_56 : f32 to vector<10x128xf32>
    %74 = arith.mulf %73, %72 : vector<10x128xf32>
    %75 = arith.mulf %62, %74 : vector<10x128xf32>
    %cst_57 = arith.constant dense<0.000000e+00> : vector<10x32xf32>
    %76 = tpu.matmul %75, %3, %cst_57 {dimension_numbers = #tpu.dot_dimension_numbers<[1], [0], [0], [1], [0, 0, 1, 1], [], []>} : vector<10x128xf32>, vector<128x32xf32>, vector<10x32xf32> -> vector<10x32xf32>
    %77 = vector.broadcast %1 : vector<1x32xf32> to vector<10x32xf32>
    %78 = arith.addf %76, %77 : vector<10x32xf32>
    %79 = arith.addf %59, %78 : vector<10x32xf32>
    %cst_58 = arith.constant dense<0.000000e+00> : vector<10xf32>
    %80 = vector.multi_reduction <add>, %79, %cst_58 [1] : vector<10x32xf32> to vector<10xf32>
    %81 = vector.shape_cast %80 : vector<10xf32> to vector<10x1xf32>
    %cst_59 = arith.constant 3.200000e+01 : f32
    %82 = vector.broadcast %cst_59 : f32 to vector<10x1xf32>
    %83 = arith.divf %81, %82 : vector<10x1xf32>
    %84 = vector.broadcast %83 : vector<10x1xf32> to vector<10x32xf32>
    %85 = arith.subf %79, %84 : vector<10x32xf32>
    %86 = arith.mulf %85, %85 : vector<10x32xf32>
    %cst_60 = arith.constant dense<0.000000e+00> : vector<10xf32>
    %87 = vector.multi_reduction <add>, %86, %cst_60 [1] : vector<10x32xf32> to vector<10xf32>
    %88 = vector.shape_cast %87 : vector<10xf32> to vector<10x1xf32>
    %cst_61 = arith.constant 3.200000e+01 : f32
    %89 = vector.broadcast %cst_61 : f32 to vector<10x1xf32>
    %90 = arith.divf %88, %89 : vector<10x1xf32>
    %91 = vector.broadcast %83 : vector<10x1xf32> to vector<10x32xf32>
    %92 = arith.subf %79, %91 : vector<10x32xf32>
    %cst_62 = arith.constant 9.99999974E-6 : f32
    %93 = vector.broadcast %cst_62 : f32 to vector<10x1xf32>
    %94 = arith.addf %90, %93 : vector<10x1xf32>
    %95 = math.rsqrt %94 : vector<10x1xf32>
    %96 = vector.broadcast %95 : vector<10x1xf32> to vector<10x32xf32>
    %97 = arith.mulf %92, %96 : vector<10x32xf32>
    %98 = vector.broadcast %7 : vector<1x32xf32> to vector<10x32xf32>
    %99 = arith.mulf %97, %98 : vector<10x32xf32>
    %100 = vector.broadcast %6 : vector<1x32xf32> to vector<10x32xf32>
    %101 = arith.addf %99, %100 : vector<10x32xf32>
    %102 = vector.extract_strided_slice %29 {offsets = [0, 0], sizes = [1, 32], strides = [1, 1]} : vector<2x32xf32> to vector<1x32xf32>
    %103 = vector.shape_cast %102 : vector<1x32xf32> to vector<1x32xf32>
    %104 = vector.broadcast %103 : vector<1x32xf32> to vector<5x32xf32>
    %105 = vector.extract_strided_slice %29 {offsets = [1, 0], sizes = [1, 32], strides = [1, 1]} : vector<2x32xf32> to vector<1x32xf32>
    %106 = vector.shape_cast %105 : vector<1x32xf32> to vector<1x32xf32>
    %107 = vector.broadcast %106 : vector<1x32xf32> to vector<5x32xf32>
    %108 = tpu.concatenate %104, %107 in 0 : vector<5x32xf32>, vector<5x32xf32> -> vector<10x32xf32>
    %109 = arith.addf %101, %108 : vector<10x32xf32>
    %cst_63 = arith.constant dense<0.000000e+00> : vector<10xf32>
    %110 = vector.multi_reduction <add>, %109, %cst_63 [1] : vector<10x32xf32> to vector<10xf32>
    %111 = vector.shape_cast %110 : vector<10xf32> to vector<10x1xf32>
    %cst_64 = arith.constant 3.200000e+01 : f32
    %112 = vector.broadcast %cst_64 : f32 to vector<10x1xf32>
    %113 = arith.divf %111, %112 : vector<10x1xf32>
    %114 = vector.broadcast %113 : vector<10x1xf32> to vector<10x32xf32>
    %115 = arith.subf %109, %114 : vector<10x32xf32>
    %116 = arith.mulf %115, %115 : vector<10x32xf32>
    %cst_65 = arith.constant dense<0.000000e+00> : vector<10xf32>
    %117 = vector.multi_reduction <add>, %116, %cst_65 [1] : vector<10x32xf32> to vector<10xf32>
    %118 = vector.shape_cast %117 : vector<10xf32> to vector<10x1xf32>
    %cst_66 = arith.constant 3.200000e+01 : f32
    %119 = vector.broadcast %cst_66 : f32 to vector<10x1xf32>
    %120 = arith.divf %118, %119 : vector<10x1xf32>
    %121 = vector.broadcast %113 : vector<10x1xf32> to vector<10x32xf32>
    %122 = arith.subf %109, %121 : vector<10x32xf32>
    %cst_67 = arith.constant 9.99999974E-6 : f32
    %123 = vector.broadcast %cst_67 : f32 to vector<10x1xf32>
    %124 = arith.addf %120, %123 : vector<10x1xf32>
    %125 = math.rsqrt %124 : vector<10x1xf32>
    %126 = vector.broadcast %125 : vector<10x1xf32> to vector<10x32xf32>
    %127 = arith.mulf %122, %126 : vector<10x32xf32>
    %128 = vector.broadcast %13 : vector<1x32xf32> to vector<10x32xf32>
    %129 = arith.mulf %127, %128 : vector<10x32xf32>
    %130 = vector.broadcast %12 : vector<1x32xf32> to vector<10x32xf32>
    %131 = arith.addf %129, %130 : vector<10x32xf32>
    %cst_68 = arith.constant dense<0.000000e+00> : vector<10x128xf32>
    %132 = tpu.matmul %131, %10, %cst_68 {dimension_numbers = #tpu.dot_dimension_numbers<[1], [0], [0], [1], [0, 0, 1, 1], [], []>} : vector<10x32xf32>, vector<32x128xf32>, vector<10x128xf32> -> vector<10x128xf32>
    %133 = vector.broadcast %8 : vector<1x128xf32> to vector<10x128xf32>
    %134 = arith.addf %132, %133 : vector<10x128xf32>
    %135 = arith.mulf %134, %134 : vector<10x128xf32>
    %136 = arith.mulf %134, %135 : vector<10x128xf32>
    %cst_69 = arith.constant 4.471500e-02 : f32
    %137 = vector.broadcast %cst_69 : f32 to vector<10x128xf32>
    %138 = arith.mulf %137, %136 : vector<10x128xf32>
    %139 = arith.addf %134, %138 : vector<10x128xf32>
    %cst_70 = arith.constant 0.797884583 : f32
    %140 = vector.broadcast %cst_70 : f32 to vector<10x128xf32>
    %141 = arith.mulf %140, %139 : vector<10x128xf32>
    %142 = math.tanh %141 : vector<10x128xf32>
    %cst_71 = arith.constant 1.000000e+00 : f32
    %143 = vector.broadcast %cst_71 : f32 to vector<10x128xf32>
    %144 = arith.addf %143, %142 : vector<10x128xf32>
    %cst_72 = arith.constant 5.000000e-01 : f32
    %145 = vector.broadcast %cst_72 : f32 to vector<10x128xf32>
    %146 = arith.mulf %145, %144 : vector<10x128xf32>
    %147 = arith.mulf %134, %146 : vector<10x128xf32>
    %cst_73 = arith.constant dense<0.000000e+00> : vector<10x32xf32>
    %148 = tpu.matmul %147, %11, %cst_73 {dimension_numbers = #tpu.dot_dimension_numbers<[1], [0], [0], [1], [0, 0, 1, 1], [], []>} : vector<10x128xf32>, vector<128x32xf32>, vector<10x32xf32> -> vector<10x32xf32>
    %149 = vector.broadcast %9 : vector<1x32xf32> to vector<10x32xf32>
    %150 = arith.addf %148, %149 : vector<10x32xf32>
    %151 = arith.addf %131, %150 : vector<10x32xf32>
    %cst_74 = arith.constant dense<0.000000e+00> : vector<10xf32>
    %152 = vector.multi_reduction <add>, %151, %cst_74 [1] : vector<10x32xf32> to vector<10xf32>
    %153 = vector.shape_cast %152 : vector<10xf32> to vector<10x1xf32>
    %cst_75 = arith.constant 3.200000e+01 : f32
    %154 = vector.broadcast %cst_75 : f32 to vector<10x1xf32>
    %155 = arith.divf %153, %154 : vector<10x1xf32>
    %156 = vector.broadcast %155 : vector<10x1xf32> to vector<10x32xf32>
    %157 = arith.subf %151, %156 : vector<10x32xf32>
    %158 = arith.mulf %157, %157 : vector<10x32xf32>
    %cst_76 = arith.constant dense<0.000000e+00> : vector<10xf32>
    %159 = vector.multi_reduction <add>, %158, %cst_76 [1] : vector<10x32xf32> to vector<10xf32>
    %160 = vector.shape_cast %159 : vector<10xf32> to vector<10x1xf32>
    %cst_77 = arith.constant 3.200000e+01 : f32
    %161 = vector.broadcast %cst_77 : f32 to vector<10x1xf32>
    %162 = arith.divf %160, %161 : vector<10x1xf32>
    %163 = vector.broadcast %155 : vector<10x1xf32> to vector<10x32xf32>
    %164 = arith.subf %151, %163 : vector<10x32xf32>
    %cst_78 = arith.constant 9.99999974E-6 : f32
    %165 = vector.broadcast %cst_78 : f32 to vector<10x1xf32>
    %166 = arith.addf %162, %165 : vector<10x1xf32>
    %167 = math.rsqrt %166 : vector<10x1xf32>
    %168 = vector.broadcast %167 : vector<10x1xf32> to vector<10x32xf32>
    %169 = arith.mulf %164, %168 : vector<10x32xf32>
    %170 = vector.broadcast %15 : vector<1x32xf32> to vector<10x32xf32>
    %171 = arith.mulf %169, %170 : vector<10x32xf32>
    %172 = vector.broadcast %14 : vector<1x32xf32> to vector<10x32xf32>
    %173 = arith.addf %171, %172 : vector<10x32xf32>
    %cst_79 = arith.constant dense<0.000000e+00> : vector<10x4xf32>
    %174 = tpu.matmul %173, %19, %cst_79 {dimension_numbers = #tpu.dot_dimension_numbers<[1], [0], [0], [1], [0, 0, 1, 1], [], []>} : vector<10x32xf32>, vector<32x4xf32>, vector<10x4xf32> -> vector<10x4xf32>
    %175 = vector.broadcast %18 : vector<1x4xf32> to vector<10x4xf32>
    %176 = arith.addf %174, %175 : vector<10x4xf32>
    %c0_80 = arith.constant 0 : index
    %177 = memref.load %arg0[%c0_80] : memref<3xf32, #tpu.memory_space<smem>>
    %c1 = arith.constant 1 : index
    %178 = memref.load %arg0[%c1] : memref<3xf32, #tpu.memory_space<smem>>
    %c2 = arith.constant 2 : index
    %179 = memref.load %arg0[%c2] : memref<3xf32, #tpu.memory_space<smem>>
    %180 = vector.broadcast %178 : f32 to vector<10x4xf32>
    %181 = arith.mulf %180, %176 : vector<10x4xf32>
    %182 = arith.subf %20, %181 : vector<10x4xf32>
    %183 = vector.broadcast %177 : f32 to vector<10x4xf32>
    %184 = arith.mulf %183, %182 : vector<10x4xf32>
    %c0_81 = arith.constant 0 : index
    %c0_82 = arith.constant 0 : index
    %185 = vector.load %arg3[%c0_81, %c0_82] : memref<10x4xf32, #tpu.memory_space<vmem>>, vector<10x4xf32>
    %186 = vector.broadcast %179 : f32 to vector<10x4xf32>
    %187 = arith.mulf %186, %185 : vector<10x4xf32>
    %188 = arith.addf %184, %187 : vector<10x4xf32>
    %c0_83 = arith.constant 0 : index
    %c0_84 = arith.constant 0 : index
    %189 = vector.load %arg26[%c0_83, %c0_84] : memref<10x4xf32, #tpu.memory_space<vmem>>, vector<10x4xf32>
    tpu.vector_store %arg26[%c0_83, %c0_84], %188 {strides = array<i32>} : memref<10x4xf32, #tpu.memory_space<vmem>>, vector<10x4xf32>,
    return
  }
}

module attributes {stable_mosaic.version = 11 : i64} {
  func.func @_encoder_kernel(%arg0: memref<16x6xf32, #tpu.memory_space<vmem>>, %arg1: memref<1x32xf32, #tpu.memory_space<vmem>>, %arg2: memref<32x32xf32, #tpu.memory_space<vmem>>, %arg3: memref<1x32xf32, #tpu.memory_space<vmem>>, %arg4: memref<1x32xf32, #tpu.memory_space<vmem>>, %arg5: memref<1x32xf32, #tpu.memory_space<vmem>>, %arg6: memref<1x32xf32, #tpu.memory_space<vmem>>, %arg7: memref<32x32xf32, #tpu.memory_space<vmem>>, %arg8: memref<32x32xf32, #tpu.memory_space<vmem>>, %arg9: memref<32x32xf32, #tpu.memory_space<vmem>>, %arg10: memref<32x32xf32, #tpu.memory_space<vmem>>, %arg11: memref<1x32xf32, #tpu.memory_space<vmem>>, %arg12: memref<22x32xf32, #tpu.memory_space<vmem>>, %arg13: memref<1x64xf32, #tpu.memory_space<vmem>>, %arg14: memref<32x64xf32, #tpu.memory_space<vmem>>, %arg15: memref<1x32xf32, #tpu.memory_space<vmem>>, %arg16: memref<1x32xf32, #tpu.memory_space<vmem>>, %arg17: memref<1x32xf32, #tpu.memory_space<vmem>>, %arg18: memref<22x32xf32, #tpu.memory_space<vmem>>, %arg19: memref<32x32xf32, #tpu.memory_space<vmem>>, %arg20: memref<32x32xf32, #tpu.memory_space<vmem>>, %arg21: memref<1x32xf32, #tpu.memory_space<vmem>>, %arg22: memref<1x32xf32, #tpu.memory_space<vmem>>, %arg23: memref<1x32xf32, #tpu.memory_space<vmem>>, %arg24: memref<1x32xf32, #tpu.memory_space<vmem>>, %arg25: memref<1x32xf32, #tpu.memory_space<vmem>>, %arg26: memref<1x32xf32, #tpu.memory_space<vmem>>, %arg27: memref<1x32xf32, #tpu.memory_space<vmem>>, %arg28: memref<1x96xf32, #tpu.memory_space<vmem>>, %arg29: memref<1x128xf32, #tpu.memory_space<vmem>>, %arg30: memref<1x32xf32, #tpu.memory_space<vmem>>, %arg31: memref<32x128xf32, #tpu.memory_space<vmem>>, %arg32: memref<128x32xf32, #tpu.memory_space<vmem>>, %arg33: memref<1x32xf32, #tpu.memory_space<vmem>>, %arg34: memref<1x32xf32, #tpu.memory_space<vmem>>, %arg35: memref<1x32xf32, #tpu.memory_space<vmem>>, %arg36: memref<1x32xf32, #tpu.memory_space<vmem>>, %arg37: memref<32x32xf32, #tpu.memory_space<vmem>>, %arg38: memref<32x96xf32, #tpu.memory_space<vmem>>, %arg39: memref<1x32xf32, #tpu.memory_space<vmem>>, %arg40: memref<1x96xf32, #tpu.memory_space<vmem>>, %arg41: memref<1x128xf32, #tpu.memory_space<vmem>>, %arg42: memref<1x32xf32, #tpu.memory_space<vmem>>, %arg43: memref<32x128xf32, #tpu.memory_space<vmem>>, %arg44: memref<128x32xf32, #tpu.memory_space<vmem>>, %arg45: memref<1x32xf32, #tpu.memory_space<vmem>>, %arg46: memref<1x32xf32, #tpu.memory_space<vmem>>, %arg47: memref<1x32xf32, #tpu.memory_space<vmem>>, %arg48: memref<1x32xf32, #tpu.memory_space<vmem>>, %arg49: memref<32x32xf32, #tpu.memory_space<vmem>>, %arg50: memref<32x96xf32, #tpu.memory_space<vmem>>, %arg51: memref<32x16xf32, #tpu.memory_space<vmem>>, %arg52: memref<1x16xf32, #tpu.memory_space<vmem>>, %arg53: memref<1x16xf32, #tpu.memory_space<vmem>>, %arg54: memref<6x16xf32, #tpu.memory_space<vmem>>, %arg55: memref<16x16xf32, #tpu.memory_space<vmem>>, %arg56: memref<2x32xf32, #tpu.memory_space<vmem>>, %arg57: memref<2x32xf32, #tpu.memory_space<vmem>>, %arg58: memref<1x1xf32, #tpu.memory_space<vmem>>, %arg59: memref<1x1xf32, #tpu.memory_space<vmem>>) attributes {dimension_semantics = [], scalar_prefetch = 0 : i64, scratch_operands = 0 : i64, tpu.core_type = #tpu.core_type<tc>} {
    %c0 = arith.constant 0 : index
    %c0_0 = arith.constant 0 : index
    %0 = vector.load %arg1[%c0, %c0_0] : memref<1x32xf32, #tpu.memory_space<vmem>>, vector<1x32xf32>
    %c0_1 = arith.constant 0 : index
    %c0_2 = arith.constant 0 : index
    %1 = vector.load %arg2[%c0_1, %c0_2] : memref<32x32xf32, #tpu.memory_space<vmem>>, vector<32x32xf32>
    %c0_3 = arith.constant 0 : index
    %c0_4 = arith.constant 0 : index
    %2 = vector.load %arg3[%c0_3, %c0_4] : memref<1x32xf32, #tpu.memory_space<vmem>>, vector<1x32xf32>
    %c0_5 = arith.constant 0 : index
    %c0_6 = arith.constant 0 : index
    %3 = vector.load %arg4[%c0_5, %c0_6] : memref<1x32xf32, #tpu.memory_space<vmem>>, vector<1x32xf32>
    %c0_7 = arith.constant 0 : index
    %c0_8 = arith.constant 0 : index
    %4 = vector.load %arg5[%c0_7, %c0_8] : memref<1x32xf32, #tpu.memory_space<vmem>>, vector<1x32xf32>
    %c0_9 = arith.constant 0 : index
    %c0_10 = arith.constant 0 : index
    %5 = vector.load %arg6[%c0_9, %c0_10] : memref<1x32xf32, #tpu.memory_space<vmem>>, vector<1x32xf32>
    %c0_11 = arith.constant 0 : index
    %c0_12 = arith.constant 0 : index
    %6 = vector.load %arg7[%c0_11, %c0_12] : memref<32x32xf32, #tpu.memory_space<vmem>>, vector<32x32xf32>
    %c0_13 = arith.constant 0 : index
    %c0_14 = arith.constant 0 : index
    %7 = vector.load %arg8[%c0_13, %c0_14] : memref<32x32xf32, #tpu.memory_space<vmem>>, vector<32x32xf32>
    %c0_15 = arith.constant 0 : index
    %c0_16 = arith.constant 0 : index
    %8 = vector.load %arg9[%c0_15, %c0_16] : memref<32x32xf32, #tpu.memory_space<vmem>>, vector<32x32xf32>
    %c0_17 = arith.constant 0 : index
    %c0_18 = arith.constant 0 : index
    %9 = vector.load %arg10[%c0_17, %c0_18] : memref<32x32xf32, #tpu.memory_space<vmem>>, vector<32x32xf32>
    %c0_19 = arith.constant 0 : index
    %c0_20 = arith.constant 0 : index
    %10 = vector.load %arg11[%c0_19, %c0_20] : memref<1x32xf32, #tpu.memory_space<vmem>>, vector<1x32xf32>
    %c0_21 = arith.constant 0 : index
    %c0_22 = arith.constant 0 : index
    %11 = vector.load %arg12[%c0_21, %c0_22] : memref<22x32xf32, #tpu.memory_space<vmem>>, vector<22x32xf32>
    %c0_23 = arith.constant 0 : index
    %c0_24 = arith.constant 0 : index
    %12 = vector.load %arg13[%c0_23, %c0_24] : memref<1x64xf32, #tpu.memory_space<vmem>>, vector<1x64xf32>
    %c0_25 = arith.constant 0 : index
    %c0_26 = arith.constant 0 : index
    %13 = vector.load %arg14[%c0_25, %c0_26] : memref<32x64xf32, #tpu.memory_space<vmem>>, vector<32x64xf32>
    %c0_27 = arith.constant 0 : index
    %c0_28 = arith.constant 0 : index
    %14 = vector.load %arg15[%c0_27, %c0_28] : memref<1x32xf32, #tpu.memory_space<vmem>>, vector<1x32xf32>
    %c0_29 = arith.constant 0 : index
    %c0_30 = arith.constant 0 : index
    %15 = vector.load %arg16[%c0_29, %c0_30] : memref<1x32xf32, #tpu.memory_space<vmem>>, vector<1x32xf32>
    %c0_31 = arith.constant 0 : index
    %c0_32 = arith.constant 0 : index
    %16 = vector.load %arg17[%c0_31, %c0_32] : memref<1x32xf32, #tpu.memory_space<vmem>>, vector<1x32xf32>
    %c0_33 = arith.constant 0 : index
    %c0_34 = arith.constant 0 : index
    %17 = vector.load %arg18[%c0_33, %c0_34] : memref<22x32xf32, #tpu.memory_space<vmem>>, vector<22x32xf32>
    %c0_35 = arith.constant 0 : index
    %c0_36 = arith.constant 0 : index
    %18 = vector.load %arg19[%c0_35, %c0_36] : memref<32x32xf32, #tpu.memory_space<vmem>>, vector<32x32xf32>
    %c0_37 = arith.constant 0 : index
    %c0_38 = arith.constant 0 : index
    %19 = vector.load %arg20[%c0_37, %c0_38] : memref<32x32xf32, #tpu.memory_space<vmem>>, vector<32x32xf32>
    %c0_39 = arith.constant 0 : index
    %c0_40 = arith.constant 0 : index
    %20 = vector.load %arg21[%c0_39, %c0_40] : memref<1x32xf32, #tpu.memory_space<vmem>>, vector<1x32xf32>
    %c0_41 = arith.constant 0 : index
    %c0_42 = arith.constant 0 : index
    %21 = vector.load %arg22[%c0_41, %c0_42] : memref<1x32xf32, #tpu.memory_space<vmem>>, vector<1x32xf32>
    %c0_43 = arith.constant 0 : index
    %c0_44 = arith.constant 0 : index
    %22 = vector.load %arg23[%c0_43, %c0_44] : memref<1x32xf32, #tpu.memory_space<vmem>>, vector<1x32xf32>
    %c0_45 = arith.constant 0 : index
    %c0_46 = arith.constant 0 : index
    %23 = vector.load %arg24[%c0_45, %c0_46] : memref<1x32xf32, #tpu.memory_space<vmem>>, vector<1x32xf32>
    %c0_47 = arith.constant 0 : index
    %c0_48 = arith.constant 0 : index
    %24 = vector.load %arg25[%c0_47, %c0_48] : memref<1x32xf32, #tpu.memory_space<vmem>>, vector<1x32xf32>
    %c0_49 = arith.constant 0 : index
    %c0_50 = arith.constant 0 : index
    %25 = vector.load %arg26[%c0_49, %c0_50] : memref<1x32xf32, #tpu.memory_space<vmem>>, vector<1x32xf32>
    %c0_51 = arith.constant 0 : index
    %c0_52 = arith.constant 0 : index
    %26 = vector.load %arg27[%c0_51, %c0_52] : memref<1x32xf32, #tpu.memory_space<vmem>>, vector<1x32xf32>
    %c0_53 = arith.constant 0 : index
    %c0_54 = arith.constant 0 : index
    %27 = vector.load %arg28[%c0_53, %c0_54] : memref<1x96xf32, #tpu.memory_space<vmem>>, vector<1x96xf32>
    %c0_55 = arith.constant 0 : index
    %c0_56 = arith.constant 0 : index
    %28 = vector.load %arg29[%c0_55, %c0_56] : memref<1x128xf32, #tpu.memory_space<vmem>>, vector<1x128xf32>
    %c0_57 = arith.constant 0 : index
    %c0_58 = arith.constant 0 : index
    %29 = vector.load %arg30[%c0_57, %c0_58] : memref<1x32xf32, #tpu.memory_space<vmem>>, vector<1x32xf32>
    %c0_59 = arith.constant 0 : index
    %c0_60 = arith.constant 0 : index
    %30 = vector.load %arg31[%c0_59, %c0_60] : memref<32x128xf32, #tpu.memory_space<vmem>>, vector<32x128xf32>
    %c0_61 = arith.constant 0 : index
    %c0_62 = arith.constant 0 : index
    %31 = vector.load %arg32[%c0_61, %c0_62] : memref<128x32xf32, #tpu.memory_space<vmem>>, vector<128x32xf32>
    %c0_63 = arith.constant 0 : index
    %c0_64 = arith.constant 0 : index
    %32 = vector.load %arg33[%c0_63, %c0_64] : memref<1x32xf32, #tpu.memory_space<vmem>>, vector<1x32xf32>
    %c0_65 = arith.constant 0 : index
    %c0_66 = arith.constant 0 : index
    %33 = vector.load %arg34[%c0_65, %c0_66] : memref<1x32xf32, #tpu.memory_space<vmem>>, vector<1x32xf32>
    %c0_67 = arith.constant 0 : index
    %c0_68 = arith.constant 0 : index
    %34 = vector.load %arg35[%c0_67, %c0_68] : memref<1x32xf32, #tpu.memory_space<vmem>>, vector<1x32xf32>
    %c0_69 = arith.constant 0 : index
    %c0_70 = arith.constant 0 : index
    %35 = vector.load %arg36[%c0_69, %c0_70] : memref<1x32xf32, #tpu.memory_space<vmem>>, vector<1x32xf32>
    %c0_71 = arith.constant 0 : index
    %c0_72 = arith.constant 0 : index
    %36 = vector.load %arg37[%c0_71, %c0_72] : memref<32x32xf32, #tpu.memory_space<vmem>>, vector<32x32xf32>
    %c0_73 = arith.constant 0 : index
    %c0_74 = arith.constant 0 : index
    %37 = vector.load %arg38[%c0_73, %c0_74] : memref<32x96xf32, #tpu.memory_space<vmem>>, vector<32x96xf32>
    %c0_75 = arith.constant 0 : index
    %c0_76 = arith.constant 0 : index
    %38 = vector.load %arg39[%c0_75, %c0_76] : memref<1x32xf32, #tpu.memory_space<vmem>>, vector<1x32xf32>
    %c0_77 = arith.constant 0 : index
    %c0_78 = arith.constant 0 : index
    %39 = vector.load %arg40[%c0_77, %c0_78] : memref<1x96xf32, #tpu.memory_space<vmem>>, vector<1x96xf32>
    %c0_79 = arith.constant 0 : index
    %c0_80 = arith.constant 0 : index
    %40 = vector.load %arg41[%c0_79, %c0_80] : memref<1x128xf32, #tpu.memory_space<vmem>>, vector<1x128xf32>
    %c0_81 = arith.constant 0 : index
    %c0_82 = arith.constant 0 : index
    %41 = vector.load %arg42[%c0_81, %c0_82] : memref<1x32xf32, #tpu.memory_space<vmem>>, vector<1x32xf32>
    %c0_83 = arith.constant 0 : index
    %c0_84 = arith.constant 0 : index
    %42 = vector.load %arg43[%c0_83, %c0_84] : memref<32x128xf32, #tpu.memory_space<vmem>>, vector<32x128xf32>
    %c0_85 = arith.constant 0 : index
    %c0_86 = arith.constant 0 : index
    %43 = vector.load %arg44[%c0_85, %c0_86] : memref<128x32xf32, #tpu.memory_space<vmem>>, vector<128x32xf32>
    %c0_87 = arith.constant 0 : index
    %c0_88 = arith.constant 0 : index
    %44 = vector.load %arg45[%c0_87, %c0_88] : memref<1x32xf32, #tpu.memory_space<vmem>>, vector<1x32xf32>
    %c0_89 = arith.constant 0 : index
    %c0_90 = arith.constant 0 : index
    %45 = vector.load %arg46[%c0_89, %c0_90] : memref<1x32xf32, #tpu.memory_space<vmem>>, vector<1x32xf32>
    %c0_91 = arith.constant 0 : index
    %c0_92 = arith.constant 0 : index
    %46 = vector.load %arg47[%c0_91, %c0_92] : memref<1x32xf32, #tpu.memory_space<vmem>>, vector<1x32xf32>
    %c0_93 = arith.constant 0 : index
    %c0_94 = arith.constant 0 : index
    %47 = vector.load %arg48[%c0_93, %c0_94] : memref<1x32xf32, #tpu.memory_space<vmem>>, vector<1x32xf32>
    %c0_95 = arith.constant 0 : index
    %c0_96 = arith.constant 0 : index
    %48 = vector.load %arg49[%c0_95, %c0_96] : memref<32x32xf32, #tpu.memory_space<vmem>>, vector<32x32xf32>
    %c0_97 = arith.constant 0 : index
    %c0_98 = arith.constant 0 : index
    %49 = vector.load %arg50[%c0_97, %c0_98] : memref<32x96xf32, #tpu.memory_space<vmem>>, vector<32x96xf32>
    %c0_99 = arith.constant 0 : index
    %c0_100 = arith.constant 0 : index
    %50 = vector.load %arg51[%c0_99, %c0_100] : memref<32x16xf32, #tpu.memory_space<vmem>>, vector<32x16xf32>
    %c0_101 = arith.constant 0 : index
    %c0_102 = arith.constant 0 : index
    %51 = vector.load %arg52[%c0_101, %c0_102] : memref<1x16xf32, #tpu.memory_space<vmem>>, vector<1x16xf32>
    %c0_103 = arith.constant 0 : index
    %c0_104 = arith.constant 0 : index
    %52 = vector.load %arg53[%c0_103, %c0_104] : memref<1x16xf32, #tpu.memory_space<vmem>>, vector<1x16xf32>
    %c0_105 = arith.constant 0 : index
    %c0_106 = arith.constant 0 : index
    %53 = vector.load %arg54[%c0_105, %c0_106] : memref<6x16xf32, #tpu.memory_space<vmem>>, vector<6x16xf32>
    %c0_107 = arith.constant 0 : index
    %c0_108 = arith.constant 0 : index
    %54 = vector.load %arg55[%c0_107, %c0_108] : memref<16x16xf32, #tpu.memory_space<vmem>>, vector<16x16xf32>
    %c0_109 = arith.constant 0 : index
    %c0_110 = arith.constant 0 : index
    %55 = vector.load %arg0[%c0_109, %c0_110] : memref<16x6xf32, #tpu.memory_space<vmem>>, vector<16x6xf32>
    %cst = arith.constant dense<0.000000e+00> : vector<16x16xf32>
    %56 = tpu.matmul %55, %53, %cst {dimension_numbers = #tpu.dot_dimension_numbers<[1], [0], [0], [1], [0, 0, 1, 1], [], []>} : vector<16x6xf32>, vector<6x16xf32>, vector<16x16xf32> -> vector<16x16xf32>
    %57 = vector.broadcast %51 : vector<1x16xf32> to vector<16x16xf32>
    %58 = arith.addf %56, %57 : vector<16x16xf32>
    %cst_111 = arith.constant 0.000000e+00 : f32
    %59 = vector.broadcast %cst_111 : f32 to vector<16x16xf32>
    %60 = arith.maximumf %58, %59 : vector<16x16xf32>
    %cst_112 = arith.constant dense<0.000000e+00> : vector<16x16xf32>
    %61 = tpu.matmul %60, %54, %cst_112 {dimension_numbers = #tpu.dot_dimension_numbers<[1], [0], [0], [1], [0, 0, 1, 1], [], []>} : vector<16x16xf32>, vector<16x16xf32>, vector<16x16xf32> -> vector<16x16xf32>
    %62 = vector.broadcast %52 : vector<1x16xf32> to vector<16x16xf32>
    %63 = arith.addf %61, %62 : vector<16x16xf32>
    %cst_113 = arith.constant dense<0.000000e+00> : vector<16x32xf32>
    %64 = tpu.matmul %63, %50, %cst_113 {dimension_numbers = #tpu.dot_dimension_numbers<[1], [1], [0], [0], [0, 0, 1, 0], [], []>} : vector<16x16xf32>, vector<32x16xf32>, vector<16x32xf32> -> vector<16x32xf32>
    %65 = arith.mulf %63, %63 : vector<16x16xf32>
    %cst_114 = arith.constant dense<0.000000e+00> : vector<16xf32>
    %66 = vector.multi_reduction <add>, %65, %cst_114 [1] : vector<16x16xf32> to vector<16xf32>
    %67 = vector.shape_cast %66 : vector<16xf32> to vector<16x1xf32>
    %cst_115 = arith.constant 1.000000e+00 : f32
    %68 = vector.broadcast %cst_115 : f32 to vector<1x16xf32>
    %69 = arith.mulf %50, %50 : vector<32x16xf32>
    %cst_116 = arith.constant dense<0.000000e+00> : vector<1x32xf32>
    %70 = tpu.matmul %68, %69, %cst_116 {dimension_numbers = #tpu.dot_dimension_numbers<[1], [1], [0], [0], [0, 0, 1, 0], [], []>} : vector<1x16xf32>, vector<32x16xf32>, vector<1x32xf32> -> vector<1x32xf32>
    %cst_117 = arith.constant 2.000000e+00 : f32
    %71 = vector.broadcast %cst_117 : f32 to vector<16x32xf32>
    %72 = arith.mulf %71, %64 : vector<16x32xf32>
    %73 = vector.broadcast %67 : vector<16x1xf32> to vector<16x32xf32>
    %74 = arith.subf %73, %72 : vector<16x32xf32>
    %75 = vector.broadcast %70 : vector<1x32xf32> to vector<16x32xf32>
    %76 = arith.addf %74, %75 : vector<16x32xf32>
    %77 = tpu.iota {dimensions = array<i32: 1>} : vector<16x32xi32>
    %cst_118 = arith.constant dense<0x7F800000> : vector<16xf32>
    %78 = vector.multi_reduction <minimumf>, %76, %cst_118 [1] : vector<16x32xf32> to vector<16xf32>
    %79 = vector.shape_cast %78 : vector<16xf32> to vector<16x1xf32>
    %80 = vector.broadcast %79 : vector<16x1xf32> to vector<16x32xf32>
    %81 = arith.cmpf ole, %76, %80 : vector<16x32xf32>
    %c32_i32 = arith.constant 32 : i32
    %82 = vector.broadcast %c32_i32 : i32 to vector<16x32xi32>
    %83 = arith.select %81, %77, %82 : vector<16x32xi1>, vector<16x32xi32>
    %cst_119 = arith.constant dense<2147483647> : vector<16xi32>
    %84 = vector.multi_reduction <minsi>, %83, %cst_119 [1] : vector<16x32xi32> to vector<16xi32>
    %85 = vector.shape_cast %84 : vector<16xi32> to vector<16x1xi32>
    %86 = vector.broadcast %85 : vector<16x1xi32> to vector<16x32xi32>
    %87 = arith.cmpi eq, %77, %86 : vector<16x32xi32>
    %88 = arith.extui %87 : vector<16x32xi1> to vector<16x32xi32>
    %89 = arith.sitofp %88 : vector<16x32xi32> to vector<16x32xf32>
    %cst_120 = arith.constant dense<0.000000e+00> : vector<16x16xf32>
    %90 = tpu.matmul %89, %50, %cst_120 {dimension_numbers = #tpu.dot_dimension_numbers<[1], [0], [0], [1], [0, 0, 1, 1], [], []>} : vector<16x32xf32>, vector<32x16xf32>, vector<16x16xf32> -> vector<16x16xf32>
    %91 = arith.subf %90, %63 : vector<16x16xf32>
    %92 = arith.mulf %91, %91 : vector<16x16xf32>
    %93 = vector.shape_cast %92 : vector<16x16xf32> to vector<1x16x16xf32>
    %cst_121 = arith.constant dense<0.000000e+00> : vector<1xf32>
    %94 = vector.multi_reduction <add>, %93, %cst_121 [1, 2] : vector<1x16x16xf32> to vector<1xf32>
    %95 = vector.shape_cast %94 : vector<1xf32> to vector<1x1x1xf32>
    %96 = vector.extract %95[0, 0, 0] : f32 from vector<1x1x1xf32>
    %cst_122 = arith.constant 2.560000e+02 : f32
    %97 = arith.divf %96, %cst_122 : f32
    %cst_123 = arith.constant 1.250000e+00 : f32
    %98 = arith.mulf %97, %cst_123 : f32
    %cst_124 = arith.constant 1.000000e+00 : f32
    %99 = vector.broadcast %cst_124 : f32 to vector<1x1xf32>
    %100 = vector.broadcast %98 : f32 to vector<1x1xf32>
    %101 = arith.mulf %100, %99 : vector<1x1xf32>
    %c0_125 = arith.constant 0 : index
    %c0_126 = arith.constant 0 : index
    %102 = vector.load %arg58[%c0_125, %c0_126] : memref<1x1xf32, #tpu.memory_space<vmem>>, vector<1x1xf32>
    tpu.vector_store %arg58[%c0_125, %c0_126], %101 {strides = array<i32>} : memref<1x1xf32, #tpu.memory_space<vmem>>, vector<1x1xf32>,
    %cst_127 = arith.constant dense<0.000000e+00> : vector<32xf32>
    %103 = vector.multi_reduction <add>, %89, %cst_127 [0] : vector<16x32xf32> to vector<32xf32>
    %104 = vector.shape_cast %103 : vector<32xf32> to vector<1x32xf32>
    %cst_128 = arith.constant 1.600000e+01 : f32
    %105 = vector.broadcast %cst_128 : f32 to vector<1x32xf32>
    %106 = arith.divf %104, %105 : vector<1x32xf32>
    %cst_129 = arith.constant 1.000000e-10 : f32
    %107 = vector.broadcast %cst_129 : f32 to vector<1x32xf32>
    %108 = arith.addf %106, %107 : vector<1x32xf32>
    %109 = math.log %108 : vector<1x32xf32>
    %110 = arith.mulf %106, %109 : vector<1x32xf32>
    %111 = vector.shape_cast %110 : vector<1x32xf32> to vector<1x1x32xf32>
    %cst_130 = arith.constant dense<0.000000e+00> : vector<1xf32>
    %112 = vector.multi_reduction <add>, %111, %cst_130 [1, 2] : vector<1x1x32xf32> to vector<1xf32>
    %113 = vector.shape_cast %112 : vector<1xf32> to vector<1x1x1xf32>
    %114 = vector.extract %113[0, 0, 0] : f32 from vector<1x1x1xf32>
    %cst_131 = arith.constant 0.000000e+00 : f32
    %115 = arith.subf %cst_131, %114 : f32
    %116 = math.exp %115 : f32
    %cst_132 = arith.constant 1.000000e+00 : f32
    %117 = vector.broadcast %cst_132 : f32 to vector<1x1xf32>
    %118 = vector.broadcast %116 : f32 to vector<1x1xf32>
    %119 = arith.mulf %118, %117 : vector<1x1xf32>
    %c0_133 = arith.constant 0 : index
    %c0_134 = arith.constant 0 : index
    %120 = vector.load %arg59[%c0_133, %c0_134] : memref<1x1xf32, #tpu.memory_space<vmem>>, vector<1x1xf32>
    tpu.vector_store %arg59[%c0_133, %c0_134], %119 {strides = array<i32>} : memref<1x1xf32, #tpu.memory_space<vmem>>, vector<1x1xf32>,
    %121 = tpu.concatenate %55, %90 in 1 : vector<16x6xf32>, vector<16x16xf32> -> vector<16x22xf32>
    %cst_135 = arith.constant dense<0.000000e+00> : vector<16x32xf32>
    %122 = tpu.matmul %121, %17, %cst_135 {dimension_numbers = #tpu.dot_dimension_numbers<[1], [0], [0], [1], [0, 0, 1, 1], [], []>} : vector<16x22xf32>, vector<22x32xf32>, vector<16x32xf32> -> vector<16x32xf32>
    %123 = vector.broadcast %14 : vector<1x32xf32> to vector<16x32xf32>
    %124 = arith.addf %122, %123 : vector<16x32xf32>
    %cst_136 = arith.constant 0.000000e+00 : f32
    %125 = vector.broadcast %cst_136 : f32 to vector<16x32xf32>
    %126 = arith.maximumf %124, %125 : vector<16x32xf32>
    %cst_137 = arith.constant dense<0.000000e+00> : vector<16xf32>
    %127 = vector.multi_reduction <add>, %126, %cst_137 [1] : vector<16x32xf32> to vector<16xf32>
    %128 = vector.shape_cast %127 : vector<16xf32> to vector<16x1xf32>
    %cst_138 = arith.constant 3.200000e+01 : f32
    %129 = vector.broadcast %cst_138 : f32 to vector<16x1xf32>
    %130 = arith.divf %128, %129 : vector<16x1xf32>
    %131 = vector.broadcast %130 : vector<16x1xf32> to vector<16x32xf32>
    %132 = arith.subf %126, %131 : vector<16x32xf32>
    %133 = arith.mulf %132, %132 : vector<16x32xf32>
    %cst_139 = arith.constant dense<0.000000e+00> : vector<16xf32>
    %134 = vector.multi_reduction <add>, %133, %cst_139 [1] : vector<16x32xf32> to vector<16xf32>
    %135 = vector.shape_cast %134 : vector<16xf32> to vector<16x1xf32>
    %cst_140 = arith.constant 3.200000e+01 : f32
    %136 = vector.broadcast %cst_140 : f32 to vector<16x1xf32>
    %137 = arith.divf %135, %136 : vector<16x1xf32>
    %138 = vector.broadcast %130 : vector<16x1xf32> to vector<16x32xf32>
    %139 = arith.subf %126, %138 : vector<16x32xf32>
    %cst_141 = arith.constant 9.99999974E-6 : f32
    %140 = vector.broadcast %cst_141 : f32 to vector<16x1xf32>
    %141 = arith.addf %137, %140 : vector<16x1xf32>
    %142 = math.rsqrt %141 : vector<16x1xf32>
    %143 = vector.broadcast %142 : vector<16x1xf32> to vector<16x32xf32>
    %144 = arith.mulf %139, %143 : vector<16x32xf32>
    %145 = vector.broadcast %23 : vector<1x32xf32> to vector<16x32xf32>
    %146 = arith.mulf %144, %145 : vector<16x32xf32>
    %147 = vector.broadcast %20 : vector<1x32xf32> to vector<16x32xf32>
    %148 = arith.addf %146, %147 : vector<16x32xf32>
    %cst_142 = arith.constant dense<0.000000e+00> : vector<16x32xf32>
    %149 = tpu.matmul %148, %18, %cst_142 {dimension_numbers = #tpu.dot_dimension_numbers<[1], [0], [0], [1], [0, 0, 1, 1], [], []>} : vector<16x32xf32>, vector<32x32xf32>, vector<16x32xf32> -> vector<16x32xf32>
    %150 = vector.broadcast %15 : vector<1x32xf32> to vector<16x32xf32>
    %151 = arith.addf %149, %150 : vector<16x32xf32>
    %cst_143 = arith.constant 0.000000e+00 : f32
    %152 = vector.broadcast %cst_143 : f32 to vector<16x32xf32>
    %153 = arith.maximumf %151, %152 : vector<16x32xf32>
    %cst_144 = arith.constant dense<0.000000e+00> : vector<16xf32>
    %154 = vector.multi_reduction <add>, %153, %cst_144 [1] : vector<16x32xf32> to vector<16xf32>
    %155 = vector.shape_cast %154 : vector<16xf32> to vector<16x1xf32>
    %cst_145 = arith.constant 3.200000e+01 : f32
    %156 = vector.broadcast %cst_145 : f32 to vector<16x1xf32>
    %157 = arith.divf %155, %156 : vector<16x1xf32>
    %158 = vector.broadcast %157 : vector<16x1xf32> to vector<16x32xf32>
    %159 = arith.subf %153, %158 : vector<16x32xf32>
    %160 = arith.mulf %159, %159 : vector<16x32xf32>
    %cst_146 = arith.constant dense<0.000000e+00> : vector<16xf32>
    %161 = vector.multi_reduction <add>, %160, %cst_146 [1] : vector<16x32xf32> to vector<16xf32>
    %162 = vector.shape_cast %161 : vector<16xf32> to vector<16x1xf32>
    %cst_147 = arith.constant 3.200000e+01 : f32
    %163 = vector.broadcast %cst_147 : f32 to vector<16x1xf32>
    %164 = arith.divf %162, %163 : vector<16x1xf32>
    %165 = vector.broadcast %157 : vector<16x1xf32> to vector<16x32xf32>
    %166 = arith.subf %153, %165 : vector<16x32xf32>
    %cst_148 = arith.constant 9.99999974E-6 : f32
    %167 = vector.broadcast %cst_148 : f32 to vector<16x1xf32>
    %168 = arith.addf %164, %167 : vector<16x1xf32>
    %169 = math.rsqrt %168 : vector<16x1xf32>
    %170 = vector.broadcast %169 : vector<16x1xf32> to vector<16x32xf32>
    %171 = arith.mulf %166, %170 : vector<16x32xf32>
    %172 = vector.broadcast %24 : vector<1x32xf32> to vector<16x32xf32>
    %173 = arith.mulf %171, %172 : vector<16x32xf32>
    %174 = vector.broadcast %21 : vector<1x32xf32> to vector<16x32xf32>
    %175 = arith.addf %173, %174 : vector<16x32xf32>
    %cst_149 = arith.constant dense<0.000000e+00> : vector<16x32xf32>
    %176 = tpu.matmul %175, %19, %cst_149 {dimension_numbers = #tpu.dot_dimension_numbers<[1], [0], [0], [1], [0, 0, 1, 1], [], []>} : vector<16x32xf32>, vector<32x32xf32>, vector<16x32xf32> -> vector<16x32xf32>
    %177 = vector.broadcast %16 : vector<1x32xf32> to vector<16x32xf32>
    %178 = arith.addf %176, %177 : vector<16x32xf32>
    %cst_150 = arith.constant 0.000000e+00 : f32
    %179 = vector.broadcast %cst_150 : f32 to vector<16x32xf32>
    %180 = arith.maximumf %178, %179 : vector<16x32xf32>
    %cst_151 = arith.constant dense<0.000000e+00> : vector<16xf32>
    %181 = vector.multi_reduction <add>, %180, %cst_151 [1] : vector<16x32xf32> to vector<16xf32>
    %182 = vector.shape_cast %181 : vector<16xf32> to vector<16x1xf32>
    %cst_152 = arith.constant 3.200000e+01 : f32
    %183 = vector.broadcast %cst_152 : f32 to vector<16x1xf32>
    %184 = arith.divf %182, %183 : vector<16x1xf32>
    %185 = vector.broadcast %184 : vector<16x1xf32> to vector<16x32xf32>
    %186 = arith.subf %180, %185 : vector<16x32xf32>
    %187 = arith.mulf %186, %186 : vector<16x32xf32>
    %cst_153 = arith.constant dense<0.000000e+00> : vector<16xf32>
    %188 = vector.multi_reduction <add>, %187, %cst_153 [1] : vector<16x32xf32> to vector<16xf32>
    %189 = vector.shape_cast %188 : vector<16xf32> to vector<16x1xf32>
    %cst_154 = arith.constant 3.200000e+01 : f32
    %190 = vector.broadcast %cst_154 : f32 to vector<16x1xf32>
    %191 = arith.divf %189, %190 : vector<16x1xf32>
    %192 = vector.broadcast %184 : vector<16x1xf32> to vector<16x32xf32>
    %193 = arith.subf %180, %192 : vector<16x32xf32>
    %cst_155 = arith.constant 9.99999974E-6 : f32
    %194 = vector.broadcast %cst_155 : f32 to vector<16x1xf32>
    %195 = arith.addf %191, %194 : vector<16x1xf32>
    %196 = math.rsqrt %195 : vector<16x1xf32>
    %197 = vector.broadcast %196 : vector<16x1xf32> to vector<16x32xf32>
    %198 = arith.mulf %193, %197 : vector<16x32xf32>
    %199 = vector.broadcast %25 : vector<1x32xf32> to vector<16x32xf32>
    %200 = arith.mulf %198, %199 : vector<16x32xf32>
    %201 = vector.broadcast %22 : vector<1x32xf32> to vector<16x32xf32>
    %202 = arith.addf %200, %201 : vector<16x32xf32>
    %cst_156 = arith.constant dense<0.000000e+00> : vector<16x64xf32>
    %203 = tpu.matmul %202, %13, %cst_156 {dimension_numbers = #tpu.dot_dimension_numbers<[1], [0], [0], [1], [0, 0, 1, 1], [], []>} : vector<16x32xf32>, vector<32x64xf32>, vector<16x64xf32> -> vector<16x64xf32>
    %204 = vector.broadcast %12 : vector<1x64xf32> to vector<16x64xf32>
    %205 = arith.addf %203, %204 : vector<16x64xf32>
    %206 = vector.extract_strided_slice %205 {offsets = [0, 0], sizes = [16, 32], strides = [1, 1]} : vector<16x64xf32> to vector<16x32xf32>
    %207 = arith.negf %206 : vector<16x32xf32>
    %208 = math.exp %207 : vector<16x32xf32>
    %cst_157 = arith.constant 1.000000e+00 : f32
    %209 = vector.broadcast %cst_157 : f32 to vector<16x32xf32>
    %210 = arith.addf %209, %208 : vector<16x32xf32>
    %211 = arith.divf %209, %210 : vector<16x32xf32>
    %212 = vector.extract_strided_slice %205 {offsets = [0, 32], sizes = [16, 32], strides = [1, 1]} : vector<16x64xf32> to vector<16x32xf32>
    %cst_158 = arith.constant dense<0.000000e+00> : vector<16x32xf32>
    %213 = tpu.matmul %121, %11, %cst_158 {dimension_numbers = #tpu.dot_dimension_numbers<[1], [0], [0], [1], [0, 0, 1, 1], [], []>} : vector<16x22xf32>, vector<22x32xf32>, vector<16x32xf32> -> vector<16x32xf32>
    %214 = vector.broadcast %10 : vector<1x32xf32> to vector<16x32xf32>
    %215 = arith.addf %213, %214 : vector<16x32xf32>
    %216 = arith.mulf %211, %212 : vector<16x32xf32>
    %217 = arith.addf %215, %216 : vector<16x32xf32>
    %cst_159 = arith.constant dense<0.000000e+00> : vector<16xf32>
    %218 = vector.multi_reduction <add>, %217, %cst_159 [1] : vector<16x32xf32> to vector<16xf32>
    %219 = vector.shape_cast %218 : vector<16xf32> to vector<16x1xf32>
    %cst_160 = arith.constant 3.200000e+01 : f32
    %220 = vector.broadcast %cst_160 : f32 to vector<16x1xf32>
    %221 = arith.divf %219, %220 : vector<16x1xf32>
    %222 = vector.broadcast %221 : vector<16x1xf32> to vector<16x32xf32>
    %223 = arith.subf %217, %222 : vector<16x32xf32>
    %224 = arith.mulf %223, %223 : vector<16x32xf32>
    %cst_161 = arith.constant dense<0.000000e+00> : vector<16xf32>
    %225 = vector.multi_reduction <add>, %224, %cst_161 [1] : vector<16x32xf32> to vector<16xf32>
    %226 = vector.shape_cast %225 : vector<16xf32> to vector<16x1xf32>
    %cst_162 = arith.constant 3.200000e+01 : f32
    %227 = vector.broadcast %cst_162 : f32 to vector<16x1xf32>
    %228 = arith.divf %226, %227 : vector<16x1xf32>
    %229 = vector.broadcast %221 : vector<16x1xf32> to vector<16x32xf32>
    %230 = arith.subf %217, %229 : vector<16x32xf32>
    %cst_163 = arith.constant 9.99999974E-6 : f32
    %231 = vector.broadcast %cst_163 : f32 to vector<16x1xf32>
    %232 = arith.addf %228, %231 : vector<16x1xf32>
    %233 = math.rsqrt %232 : vector<16x1xf32>
    %234 = vector.broadcast %233 : vector<16x1xf32> to vector<16x32xf32>
    %235 = arith.mulf %230, %234 : vector<16x32xf32>
    %236 = vector.broadcast %33 : vector<1x32xf32> to vector<16x32xf32>
    %237 = arith.mulf %235, %236 : vector<16x32xf32>
    %238 = vector.broadcast %32 : vector<1x32xf32> to vector<16x32xf32>
    %239 = arith.addf %237, %238 : vector<16x32xf32>
    %cst_164 = arith.constant dense<0.000000e+00> : vector<16x96xf32>
    %240 = tpu.matmul %239, %37, %cst_164 {dimension_numbers = #tpu.dot_dimension_numbers<[1], [0], [0], [1], [0, 0, 1, 1], [], []>} : vector<16x32xf32>, vector<32x96xf32>, vector<16x96xf32> -> vector<16x96xf32>
    %241 = vector.broadcast %27 : vector<1x96xf32> to vector<16x96xf32>
    %242 = arith.addf %240, %241 : vector<16x96xf32>
    %243 = vector.extract_strided_slice %242 {offsets = [0, 0], sizes = [16, 4], strides = [1, 1]} : vector<16x96xf32> to vector<16x4xf32>
    %244 = vector.shape_cast %243 : vector<16x4xf32> to vector<2x8x4xf32>
    %245 = vector.extract_strided_slice %242 {offsets = [0, 32], sizes = [16, 4], strides = [1, 1]} : vector<16x96xf32> to vector<16x4xf32>
    %246 = vector.shape_cast %245 : vector<16x4xf32> to vector<2x8x4xf32>
    %247 = vector.extract_strided_slice %242 {offsets = [0, 64], sizes = [16, 4], strides = [1, 1]} : vector<16x96xf32> to vector<16x4xf32>
    %248 = vector.shape_cast %247 : vector<16x4xf32> to vector<2x8x4xf32>
    "tpu.trace_start"() <{level = 10 : i32, message = "bqd,bkd->bqk"}> : () -> ()
    %cst_165 = arith.constant dense<0.000000e+00> : vector<2x8x8xf32>
    %249 = tpu.matmul %244, %246, %cst_165 {dimension_numbers = #tpu.dot_dimension_numbers<[2], [2], [1], [1], [0, 0, 0, 1, 1, 1], [0], [0]>} : vector<2x8x4xf32>, vector<2x8x4xf32>, vector<2x8x8xf32> -> vector<2x8x8xf32>
    "tpu.trace_stop"() : () -> ()
    %cst_166 = arith.constant 5.000000e-01 : f32
    %250 = vector.broadcast %cst_166 : f32 to vector<2x8x8xf32>
    %251 = arith.mulf %249, %250 : vector<2x8x8xf32>
    %cst_167 = arith.constant dense<0xFF800000> : vector<2x8xf32>
    %252 = vector.multi_reduction <maximumf>, %251, %cst_167 [2] : vector<2x8x8xf32> to vector<2x8xf32>
    %253 = vector.shape_cast %252 : vector<2x8xf32> to vector<2x8x1xf32>
    %254 = vector.broadcast %253 : vector<2x8x1xf32> to vector<2x8x8xf32>
    %255 = arith.subf %251, %254 : vector<2x8x8xf32>
    %256 = math.exp %255 : vector<2x8x8xf32>
    %cst_168 = arith.constant dense<0.000000e+00> : vector<2x8xf32>
    %257 = vector.multi_reduction <add>, %256, %cst_168 [2] : vector<2x8x8xf32> to vector<2x8xf32>
    %258 = vector.shape_cast %257 : vector<2x8xf32> to vector<2x8x1xf32>
    %259 = tpu.reciprocal %258 {approx = true} : vector<2x8x1xf32> -> vector<2x8x1xf32>
    %260 = vector.broadcast %259 : vector<2x8x1xf32> to vector<2x8x8xf32>
    %261 = arith.mulf %256, %260 : vector<2x8x8xf32>
    "tpu.trace_start"() <{level = 10 : i32, message = "bqk,bkd->bqd"}> : () -> ()
    %cst_169 = arith.constant dense<0.000000e+00> : vector<2x8x4xf32>
    %262 = tpu.matmul %261, %248, %cst_169 {dimension_numbers = #tpu.dot_dimension_numbers<[2], [1], [1], [2], [0, 0, 0, 1, 1, 2], [0], [0]>} : vector<2x8x8xf32>, vector<2x8x4xf32>, vector<2x8x4xf32> -> vector<2x8x4xf32>
    "tpu.trace_stop"() : () -> ()
    %263 = vector.shape_cast %262 : vector<2x8x4xf32> to vector<16x4xf32>
    %264 = vector.extract_strided_slice %242 {offsets = [0, 4], sizes = [16, 4], strides = [1, 1]} : vector<16x96xf32> to vector<16x4xf32>
    %265 = vector.shape_cast %264 : vector<16x4xf32> to vector<2x8x4xf32>
    %266 = vector.extract_strided_slice %242 {offsets = [0, 36], sizes = [16, 4], strides = [1, 1]} : vector<16x96xf32> to vector<16x4xf32>
    %267 = vector.shape_cast %266 : vector<16x4xf32> to vector<2x8x4xf32>
    %268 = vector.extract_strided_slice %242 {offsets = [0, 68], sizes = [16, 4], strides = [1, 1]} : vector<16x96xf32> to vector<16x4xf32>
    %269 = vector.shape_cast %268 : vector<16x4xf32> to vector<2x8x4xf32>
    "tpu.trace_start"() <{level = 10 : i32, message = "bqd,bkd->bqk"}> : () -> ()
    %cst_170 = arith.constant dense<0.000000e+00> : vector<2x8x8xf32>
    %270 = tpu.matmul %265, %267, %cst_170 {dimension_numbers = #tpu.dot_dimension_numbers<[2], [2], [1], [1], [0, 0, 0, 1, 1, 1], [0], [0]>} : vector<2x8x4xf32>, vector<2x8x4xf32>, vector<2x8x8xf32> -> vector<2x8x8xf32>
    "tpu.trace_stop"() : () -> ()
    %cst_171 = arith.constant 5.000000e-01 : f32
    %271 = vector.broadcast %cst_171 : f32 to vector<2x8x8xf32>
    %272 = arith.mulf %270, %271 : vector<2x8x8xf32>
    %cst_172 = arith.constant dense<0xFF800000> : vector<2x8xf32>
    %273 = vector.multi_reduction <maximumf>, %272, %cst_172 [2] : vector<2x8x8xf32> to vector<2x8xf32>
    %274 = vector.shape_cast %273 : vector<2x8xf32> to vector<2x8x1xf32>
    %275 = vector.broadcast %274 : vector<2x8x1xf32> to vector<2x8x8xf32>
    %276 = arith.subf %272, %275 : vector<2x8x8xf32>
    %277 = math.exp %276 : vector<2x8x8xf32>
    %cst_173 = arith.constant dense<0.000000e+00> : vector<2x8xf32>
    %278 = vector.multi_reduction <add>, %277, %cst_173 [2] : vector<2x8x8xf32> to vector<2x8xf32>
    %279 = vector.shape_cast %278 : vector<2x8xf32> to vector<2x8x1xf32>
    %280 = tpu.reciprocal %279 {approx = true} : vector<2x8x1xf32> -> vector<2x8x1xf32>
    %281 = vector.broadcast %280 : vector<2x8x1xf32> to vector<2x8x8xf32>
    %282 = arith.mulf %277, %281 : vector<2x8x8xf32>
    "tpu.trace_start"() <{level = 10 : i32, message = "bqk,bkd->bqd"}> : () -> ()
    %cst_174 = arith.constant dense<0.000000e+00> : vector<2x8x4xf32>
    %283 = tpu.matmul %282, %269, %cst_174 {dimension_numbers = #tpu.dot_dimension_numbers<[2], [1], [1], [2], [0, 0, 0, 1, 1, 2], [0], [0]>} : vector<2x8x8xf32>, vector<2x8x4xf32>, vector<2x8x4xf32> -> vector<2x8x4xf32>
    "tpu.trace_stop"() : () -> ()
    %284 = vector.shape_cast %283 : vector<2x8x4xf32> to vector<16x4xf32>
    %285 = vector.extract_strided_slice %242 {offsets = [0, 8], sizes = [16, 4], strides = [1, 1]} : vector<16x96xf32> to vector<16x4xf32>
    %286 = vector.shape_cast %285 : vector<16x4xf32> to vector<2x8x4xf32>
    %287 = vector.extract_strided_slice %242 {offsets = [0, 40], sizes = [16, 4], strides = [1, 1]} : vector<16x96xf32> to vector<16x4xf32>
    %288 = vector.shape_cast %287 : vector<16x4xf32> to vector<2x8x4xf32>
    %289 = vector.extract_strided_slice %242 {offsets = [0, 72], sizes = [16, 4], strides = [1, 1]} : vector<16x96xf32> to vector<16x4xf32>
    %290 = vector.shape_cast %289 : vector<16x4xf32> to vector<2x8x4xf32>
    "tpu.trace_start"() <{level = 10 : i32, message = "bqd,bkd->bqk"}> : () -> ()
    %cst_175 = arith.constant dense<0.000000e+00> : vector<2x8x8xf32>
    %291 = tpu.matmul %286, %288, %cst_175 {dimension_numbers = #tpu.dot_dimension_numbers<[2], [2], [1], [1], [0, 0, 0, 1, 1, 1], [0], [0]>} : vector<2x8x4xf32>, vector<2x8x4xf32>, vector<2x8x8xf32> -> vector<2x8x8xf32>
    "tpu.trace_stop"() : () -> ()
    %cst_176 = arith.constant 5.000000e-01 : f32
    %292 = vector.broadcast %cst_176 : f32 to vector<2x8x8xf32>
    %293 = arith.mulf %291, %292 : vector<2x8x8xf32>
    %cst_177 = arith.constant dense<0xFF800000> : vector<2x8xf32>
    %294 = vector.multi_reduction <maximumf>, %293, %cst_177 [2] : vector<2x8x8xf32> to vector<2x8xf32>
    %295 = vector.shape_cast %294 : vector<2x8xf32> to vector<2x8x1xf32>
    %296 = vector.broadcast %295 : vector<2x8x1xf32> to vector<2x8x8xf32>
    %297 = arith.subf %293, %296 : vector<2x8x8xf32>
    %298 = math.exp %297 : vector<2x8x8xf32>
    %cst_178 = arith.constant dense<0.000000e+00> : vector<2x8xf32>
    %299 = vector.multi_reduction <add>, %298, %cst_178 [2] : vector<2x8x8xf32> to vector<2x8xf32>
    %300 = vector.shape_cast %299 : vector<2x8xf32> to vector<2x8x1xf32>
    %301 = tpu.reciprocal %300 {approx = true} : vector<2x8x1xf32> -> vector<2x8x1xf32>
    %302 = vector.broadcast %301 : vector<2x8x1xf32> to vector<2x8x8xf32>
    %303 = arith.mulf %298, %302 : vector<2x8x8xf32>
    "tpu.trace_start"() <{level = 10 : i32, message = "bqk,bkd->bqd"}> : () -> ()
    %cst_179 = arith.constant dense<0.000000e+00> : vector<2x8x4xf32>
    %304 = tpu.matmul %303, %290, %cst_179 {dimension_numbers = #tpu.dot_dimension_numbers<[2], [1], [1], [2], [0, 0, 0, 1, 1, 2], [0], [0]>} : vector<2x8x8xf32>, vector<2x8x4xf32>, vector<2x8x4xf32> -> vector<2x8x4xf32>
    "tpu.trace_stop"() : () -> ()
    %305 = vector.shape_cast %304 : vector<2x8x4xf32> to vector<16x4xf32>
    %306 = vector.extract_strided_slice %242 {offsets = [0, 12], sizes = [16, 4], strides = [1, 1]} : vector<16x96xf32> to vector<16x4xf32>
    %307 = vector.shape_cast %306 : vector<16x4xf32> to vector<2x8x4xf32>
    %308 = vector.extract_strided_slice %242 {offsets = [0, 44], sizes = [16, 4], strides = [1, 1]} : vector<16x96xf32> to vector<16x4xf32>
    %309 = vector.shape_cast %308 : vector<16x4xf32> to vector<2x8x4xf32>
    %310 = vector.extract_strided_slice %242 {offsets = [0, 76], sizes = [16, 4], strides = [1, 1]} : vector<16x96xf32> to vector<16x4xf32>
    %311 = vector.shape_cast %310 : vector<16x4xf32> to vector<2x8x4xf32>
    "tpu.trace_start"() <{level = 10 : i32, message = "bqd,bkd->bqk"}> : () -> ()
    %cst_180 = arith.constant dense<0.000000e+00> : vector<2x8x8xf32>
    %312 = tpu.matmul %307, %309, %cst_180 {dimension_numbers = #tpu.dot_dimension_numbers<[2], [2], [1], [1], [0, 0, 0, 1, 1, 1], [0], [0]>} : vector<2x8x4xf32>, vector<2x8x4xf32>, vector<2x8x8xf32> -> vector<2x8x8xf32>
    "tpu.trace_stop"() : () -> ()
    %cst_181 = arith.constant 5.000000e-01 : f32
    %313 = vector.broadcast %cst_181 : f32 to vector<2x8x8xf32>
    %314 = arith.mulf %312, %313 : vector<2x8x8xf32>
    %cst_182 = arith.constant dense<0xFF800000> : vector<2x8xf32>
    %315 = vector.multi_reduction <maximumf>, %314, %cst_182 [2] : vector<2x8x8xf32> to vector<2x8xf32>
    %316 = vector.shape_cast %315 : vector<2x8xf32> to vector<2x8x1xf32>
    %317 = vector.broadcast %316 : vector<2x8x1xf32> to vector<2x8x8xf32>
    %318 = arith.subf %314, %317 : vector<2x8x8xf32>
    %319 = math.exp %318 : vector<2x8x8xf32>
    %cst_183 = arith.constant dense<0.000000e+00> : vector<2x8xf32>
    %320 = vector.multi_reduction <add>, %319, %cst_183 [2] : vector<2x8x8xf32> to vector<2x8xf32>
    %321 = vector.shape_cast %320 : vector<2x8xf32> to vector<2x8x1xf32>
    %322 = tpu.reciprocal %321 {approx = true} : vector<2x8x1xf32> -> vector<2x8x1xf32>
    %323 = vector.broadcast %322 : vector<2x8x1xf32> to vector<2x8x8xf32>
    %324 = arith.mulf %319, %323 : vector<2x8x8xf32>
    "tpu.trace_start"() <{level = 10 : i32, message = "bqk,bkd->bqd"}> : () -> ()
    %cst_184 = arith.constant dense<0.000000e+00> : vector<2x8x4xf32>
    %325 = tpu.matmul %324, %311, %cst_184 {dimension_numbers = #tpu.dot_dimension_numbers<[2], [1], [1], [2], [0, 0, 0, 1, 1, 2], [0], [0]>} : vector<2x8x8xf32>, vector<2x8x4xf32>, vector<2x8x4xf32> -> vector<2x8x4xf32>
    "tpu.trace_stop"() : () -> ()
    %326 = vector.shape_cast %325 : vector<2x8x4xf32> to vector<16x4xf32>
    %327 = vector.extract_strided_slice %242 {offsets = [0, 16], sizes = [16, 4], strides = [1, 1]} : vector<16x96xf32> to vector<16x4xf32>
    %328 = vector.shape_cast %327 : vector<16x4xf32> to vector<2x8x4xf32>
    %329 = vector.extract_strided_slice %242 {offsets = [0, 48], sizes = [16, 4], strides = [1, 1]} : vector<16x96xf32> to vector<16x4xf32>
    %330 = vector.shape_cast %329 : vector<16x4xf32> to vector<2x8x4xf32>
    %331 = vector.extract_strided_slice %242 {offsets = [0, 80], sizes = [16, 4], strides = [1, 1]} : vector<16x96xf32> to vector<16x4xf32>
    %332 = vector.shape_cast %331 : vector<16x4xf32> to vector<2x8x4xf32>
    "tpu.trace_start"() <{level = 10 : i32, message = "bqd,bkd->bqk"}> : () -> ()
    %cst_185 = arith.constant dense<0.000000e+00> : vector<2x8x8xf32>
    %333 = tpu.matmul %328, %330, %cst_185 {dimension_numbers = #tpu.dot_dimension_numbers<[2], [2], [1], [1], [0, 0, 0, 1, 1, 1], [0], [0]>} : vector<2x8x4xf32>, vector<2x8x4xf32>, vector<2x8x8xf32> -> vector<2x8x8xf32>
    "tpu.trace_stop"() : () -> ()
    %cst_186 = arith.constant 5.000000e-01 : f32
    %334 = vector.broadcast %cst_186 : f32 to vector<2x8x8xf32>
    %335 = arith.mulf %333, %334 : vector<2x8x8xf32>
    %cst_187 = arith.constant dense<0xFF800000> : vector<2x8xf32>
    %336 = vector.multi_reduction <maximumf>, %335, %cst_187 [2] : vector<2x8x8xf32> to vector<2x8xf32>
    %337 = vector.shape_cast %336 : vector<2x8xf32> to vector<2x8x1xf32>
    %338 = vector.broadcast %337 : vector<2x8x1xf32> to vector<2x8x8xf32>
    %339 = arith.subf %335, %338 : vector<2x8x8xf32>
    %340 = math.exp %339 : vector<2x8x8xf32>
    %cst_188 = arith.constant dense<0.000000e+00> : vector<2x8xf32>
    %341 = vector.multi_reduction <add>, %340, %cst_188 [2] : vector<2x8x8xf32> to vector<2x8xf32>
    %342 = vector.shape_cast %341 : vector<2x8xf32> to vector<2x8x1xf32>
    %343 = tpu.reciprocal %342 {approx = true} : vector<2x8x1xf32> -> vector<2x8x1xf32>
    %344 = vector.broadcast %343 : vector<2x8x1xf32> to vector<2x8x8xf32>
    %345 = arith.mulf %340, %344 : vector<2x8x8xf32>
    "tpu.trace_start"() <{level = 10 : i32, message = "bqk,bkd->bqd"}> : () -> ()
    %cst_189 = arith.constant dense<0.000000e+00> : vector<2x8x4xf32>
    %346 = tpu.matmul %345, %332, %cst_189 {dimension_numbers = #tpu.dot_dimension_numbers<[2], [1], [1], [2], [0, 0, 0, 1, 1, 2], [0], [0]>} : vector<2x8x8xf32>, vector<2x8x4xf32>, vector<2x8x4xf32> -> vector<2x8x4xf32>
    "tpu.trace_stop"() : () -> ()
    %347 = vector.shape_cast %346 : vector<2x8x4xf32> to vector<16x4xf32>
    %348 = vector.extract_strided_slice %242 {offsets = [0, 20], sizes = [16, 4], strides = [1, 1]} : vector<16x96xf32> to vector<16x4xf32>
    %349 = vector.shape_cast %348 : vector<16x4xf32> to vector<2x8x4xf32>
    %350 = vector.extract_strided_slice %242 {offsets = [0, 52], sizes = [16, 4], strides = [1, 1]} : vector<16x96xf32> to vector<16x4xf32>
    %351 = vector.shape_cast %350 : vector<16x4xf32> to vector<2x8x4xf32>
    %352 = vector.extract_strided_slice %242 {offsets = [0, 84], sizes = [16, 4], strides = [1, 1]} : vector<16x96xf32> to vector<16x4xf32>
    %353 = vector.shape_cast %352 : vector<16x4xf32> to vector<2x8x4xf32>
    "tpu.trace_start"() <{level = 10 : i32, message = "bqd,bkd->bqk"}> : () -> ()
    %cst_190 = arith.constant dense<0.000000e+00> : vector<2x8x8xf32>
    %354 = tpu.matmul %349, %351, %cst_190 {dimension_numbers = #tpu.dot_dimension_numbers<[2], [2], [1], [1], [0, 0, 0, 1, 1, 1], [0], [0]>} : vector<2x8x4xf32>, vector<2x8x4xf32>, vector<2x8x8xf32> -> vector<2x8x8xf32>
    "tpu.trace_stop"() : () -> ()
    %cst_191 = arith.constant 5.000000e-01 : f32
    %355 = vector.broadcast %cst_191 : f32 to vector<2x8x8xf32>
    %356 = arith.mulf %354, %355 : vector<2x8x8xf32>
    %cst_192 = arith.constant dense<0xFF800000> : vector<2x8xf32>
    %357 = vector.multi_reduction <maximumf>, %356, %cst_192 [2] : vector<2x8x8xf32> to vector<2x8xf32>
    %358 = vector.shape_cast %357 : vector<2x8xf32> to vector<2x8x1xf32>
    %359 = vector.broadcast %358 : vector<2x8x1xf32> to vector<2x8x8xf32>
    %360 = arith.subf %356, %359 : vector<2x8x8xf32>
    %361 = math.exp %360 : vector<2x8x8xf32>
    %cst_193 = arith.constant dense<0.000000e+00> : vector<2x8xf32>
    %362 = vector.multi_reduction <add>, %361, %cst_193 [2] : vector<2x8x8xf32> to vector<2x8xf32>
    %363 = vector.shape_cast %362 : vector<2x8xf32> to vector<2x8x1xf32>
    %364 = tpu.reciprocal %363 {approx = true} : vector<2x8x1xf32> -> vector<2x8x1xf32>
    %365 = vector.broadcast %364 : vector<2x8x1xf32> to vector<2x8x8xf32>
    %366 = arith.mulf %361, %365 : vector<2x8x8xf32>
    "tpu.trace_start"() <{level = 10 : i32, message = "bqk,bkd->bqd"}> : () -> ()
    %cst_194 = arith.constant dense<0.000000e+00> : vector<2x8x4xf32>
    %367 = tpu.matmul %366, %353, %cst_194 {dimension_numbers = #tpu.dot_dimension_numbers<[2], [1], [1], [2], [0, 0, 0, 1, 1, 2], [0], [0]>} : vector<2x8x8xf32>, vector<2x8x4xf32>, vector<2x8x4xf32> -> vector<2x8x4xf32>
    "tpu.trace_stop"() : () -> ()
    %368 = vector.shape_cast %367 : vector<2x8x4xf32> to vector<16x4xf32>
    %369 = vector.extract_strided_slice %242 {offsets = [0, 24], sizes = [16, 4], strides = [1, 1]} : vector<16x96xf32> to vector<16x4xf32>
    %370 = vector.shape_cast %369 : vector<16x4xf32> to vector<2x8x4xf32>
    %371 = vector.extract_strided_slice %242 {offsets = [0, 56], sizes = [16, 4], strides = [1, 1]} : vector<16x96xf32> to vector<16x4xf32>
    %372 = vector.shape_cast %371 : vector<16x4xf32> to vector<2x8x4xf32>
    %373 = vector.extract_strided_slice %242 {offsets = [0, 88], sizes = [16, 4], strides = [1, 1]} : vector<16x96xf32> to vector<16x4xf32>
    %374 = vector.shape_cast %373 : vector<16x4xf32> to vector<2x8x4xf32>
    "tpu.trace_start"() <{level = 10 : i32, message = "bqd,bkd->bqk"}> : () -> ()
    %cst_195 = arith.constant dense<0.000000e+00> : vector<2x8x8xf32>
    %375 = tpu.matmul %370, %372, %cst_195 {dimension_numbers = #tpu.dot_dimension_numbers<[2], [2], [1], [1], [0, 0, 0, 1, 1, 1], [0], [0]>} : vector<2x8x4xf32>, vector<2x8x4xf32>, vector<2x8x8xf32> -> vector<2x8x8xf32>
    "tpu.trace_stop"() : () -> ()
    %cst_196 = arith.constant 5.000000e-01 : f32
    %376 = vector.broadcast %cst_196 : f32 to vector<2x8x8xf32>
    %377 = arith.mulf %375, %376 : vector<2x8x8xf32>
    %cst_197 = arith.constant dense<0xFF800000> : vector<2x8xf32>
    %378 = vector.multi_reduction <maximumf>, %377, %cst_197 [2] : vector<2x8x8xf32> to vector<2x8xf32>
    %379 = vector.shape_cast %378 : vector<2x8xf32> to vector<2x8x1xf32>
    %380 = vector.broadcast %379 : vector<2x8x1xf32> to vector<2x8x8xf32>
    %381 = arith.subf %377, %380 : vector<2x8x8xf32>
    %382 = math.exp %381 : vector<2x8x8xf32>
    %cst_198 = arith.constant dense<0.000000e+00> : vector<2x8xf32>
    %383 = vector.multi_reduction <add>, %382, %cst_198 [2] : vector<2x8x8xf32> to vector<2x8xf32>
    %384 = vector.shape_cast %383 : vector<2x8xf32> to vector<2x8x1xf32>
    %385 = tpu.reciprocal %384 {approx = true} : vector<2x8x1xf32> -> vector<2x8x1xf32>
    %386 = vector.broadcast %385 : vector<2x8x1xf32> to vector<2x8x8xf32>
    %387 = arith.mulf %382, %386 : vector<2x8x8xf32>
    "tpu.trace_start"() <{level = 10 : i32, message = "bqk,bkd->bqd"}> : () -> ()
    %cst_199 = arith.constant dense<0.000000e+00> : vector<2x8x4xf32>
    %388 = tpu.matmul %387, %374, %cst_199 {dimension_numbers = #tpu.dot_dimension_numbers<[2], [1], [1], [2], [0, 0, 0, 1, 1, 2], [0], [0]>} : vector<2x8x8xf32>, vector<2x8x4xf32>, vector<2x8x4xf32> -> vector<2x8x4xf32>
    "tpu.trace_stop"() : () -> ()
    %389 = vector.shape_cast %388 : vector<2x8x4xf32> to vector<16x4xf32>
    %390 = vector.extract_strided_slice %242 {offsets = [0, 28], sizes = [16, 4], strides = [1, 1]} : vector<16x96xf32> to vector<16x4xf32>
    %391 = vector.shape_cast %390 : vector<16x4xf32> to vector<2x8x4xf32>
    %392 = vector.extract_strided_slice %242 {offsets = [0, 60], sizes = [16, 4], strides = [1, 1]} : vector<16x96xf32> to vector<16x4xf32>
    %393 = vector.shape_cast %392 : vector<16x4xf32> to vector<2x8x4xf32>
    %394 = vector.extract_strided_slice %242 {offsets = [0, 92], sizes = [16, 4], strides = [1, 1]} : vector<16x96xf32> to vector<16x4xf32>
    %395 = vector.shape_cast %394 : vector<16x4xf32> to vector<2x8x4xf32>
    "tpu.trace_start"() <{level = 10 : i32, message = "bqd,bkd->bqk"}> : () -> ()
    %cst_200 = arith.constant dense<0.000000e+00> : vector<2x8x8xf32>
    %396 = tpu.matmul %391, %393, %cst_200 {dimension_numbers = #tpu.dot_dimension_numbers<[2], [2], [1], [1], [0, 0, 0, 1, 1, 1], [0], [0]>} : vector<2x8x4xf32>, vector<2x8x4xf32>, vector<2x8x8xf32> -> vector<2x8x8xf32>
    "tpu.trace_stop"() : () -> ()
    %cst_201 = arith.constant 5.000000e-01 : f32
    %397 = vector.broadcast %cst_201 : f32 to vector<2x8x8xf32>
    %398 = arith.mulf %396, %397 : vector<2x8x8xf32>
    %cst_202 = arith.constant dense<0xFF800000> : vector<2x8xf32>
    %399 = vector.multi_reduction <maximumf>, %398, %cst_202 [2] : vector<2x8x8xf32> to vector<2x8xf32>
    %400 = vector.shape_cast %399 : vector<2x8xf32> to vector<2x8x1xf32>
    %401 = vector.broadcast %400 : vector<2x8x1xf32> to vector<2x8x8xf32>
    %402 = arith.subf %398, %401 : vector<2x8x8xf32>
    %403 = math.exp %402 : vector<2x8x8xf32>
    %cst_203 = arith.constant dense<0.000000e+00> : vector<2x8xf32>
    %404 = vector.multi_reduction <add>, %403, %cst_203 [2] : vector<2x8x8xf32> to vector<2x8xf32>
    %405 = vector.shape_cast %404 : vector<2x8xf32> to vector<2x8x1xf32>
    %406 = tpu.reciprocal %405 {approx = true} : vector<2x8x1xf32> -> vector<2x8x1xf32>
    %407 = vector.broadcast %406 : vector<2x8x1xf32> to vector<2x8x8xf32>
    %408 = arith.mulf %403, %407 : vector<2x8x8xf32>
    "tpu.trace_start"() <{level = 10 : i32, message = "bqk,bkd->bqd"}> : () -> ()
    %cst_204 = arith.constant dense<0.000000e+00> : vector<2x8x4xf32>
    %409 = tpu.matmul %408, %395, %cst_204 {dimension_numbers = #tpu.dot_dimension_numbers<[2], [1], [1], [2], [0, 0, 0, 1, 1, 2], [0], [0]>} : vector<2x8x8xf32>, vector<2x8x4xf32>, vector<2x8x4xf32> -> vector<2x8x4xf32>
    "tpu.trace_stop"() : () -> ()
    %410 = vector.shape_cast %409 : vector<2x8x4xf32> to vector<16x4xf32>
    %411 = tpu.concatenate %263, %284, %305, %326, %347, %368, %389, %410 in 1 : vector<16x4xf32>, vector<16x4xf32>, vector<16x4xf32>, vector<16x4xf32>, vector<16x4xf32>, vector<16x4xf32>, vector<16x4xf32>, vector<16x4xf32> -> vector<16x32xf32>
    %cst_205 = arith.constant dense<0.000000e+00> : vector<16x32xf32>
    %412 = tpu.matmul %411, %36, %cst_205 {dimension_numbers = #tpu.dot_dimension_numbers<[1], [0], [0], [1], [0, 0, 1, 1], [], []>} : vector<16x32xf32>, vector<32x32xf32>, vector<16x32xf32> -> vector<16x32xf32>
    %413 = vector.broadcast %26 : vector<1x32xf32> to vector<16x32xf32>
    %414 = arith.addf %412, %413 : vector<16x32xf32>
    %415 = arith.addf %414, %217 : vector<16x32xf32>
    %cst_206 = arith.constant dense<0.000000e+00> : vector<16xf32>
    %416 = vector.multi_reduction <add>, %415, %cst_206 [1] : vector<16x32xf32> to vector<16xf32>
    %417 = vector.shape_cast %416 : vector<16xf32> to vector<16x1xf32>
    %cst_207 = arith.constant 3.200000e+01 : f32
    %418 = vector.broadcast %cst_207 : f32 to vector<16x1xf32>
    %419 = arith.divf %417, %418 : vector<16x1xf32>
    %420 = vector.broadcast %419 : vector<16x1xf32> to vector<16x32xf32>
    %421 = arith.subf %415, %420 : vector<16x32xf32>
    %422 = arith.mulf %421, %421 : vector<16x32xf32>
    %cst_208 = arith.constant dense<0.000000e+00> : vector<16xf32>
    %423 = vector.multi_reduction <add>, %422, %cst_208 [1] : vector<16x32xf32> to vector<16xf32>
    %424 = vector.shape_cast %423 : vector<16xf32> to vector<16x1xf32>
    %cst_209 = arith.constant 3.200000e+01 : f32
    %425 = vector.broadcast %cst_209 : f32 to vector<16x1xf32>
    %426 = arith.divf %424, %425 : vector<16x1xf32>
    %427 = vector.broadcast %419 : vector<16x1xf32> to vector<16x32xf32>
    %428 = arith.subf %415, %427 : vector<16x32xf32>
    %cst_210 = arith.constant 9.99999974E-6 : f32
    %429 = vector.broadcast %cst_210 : f32 to vector<16x1xf32>
    %430 = arith.addf %426, %429 : vector<16x1xf32>
    %431 = math.rsqrt %430 : vector<16x1xf32>
    %432 = vector.broadcast %431 : vector<16x1xf32> to vector<16x32xf32>
    %433 = arith.mulf %428, %432 : vector<16x32xf32>
    %434 = vector.broadcast %35 : vector<1x32xf32> to vector<16x32xf32>
    %435 = arith.mulf %433, %434 : vector<16x32xf32>
    %436 = vector.broadcast %34 : vector<1x32xf32> to vector<16x32xf32>
    %437 = arith.addf %435, %436 : vector<16x32xf32>
    %cst_211 = arith.constant dense<0.000000e+00> : vector<16x128xf32>
    %438 = tpu.matmul %437, %30, %cst_211 {dimension_numbers = #tpu.dot_dimension_numbers<[1], [0], [0], [1], [0, 0, 1, 1], [], []>} : vector<16x32xf32>, vector<32x128xf32>, vector<16x128xf32> -> vector<16x128xf32>
    %439 = vector.broadcast %28 : vector<1x128xf32> to vector<16x128xf32>
    %440 = arith.addf %438, %439 : vector<16x128xf32>
    %cst_212 = arith.constant 0.000000e+00 : f32
    %441 = vector.broadcast %cst_212 : f32 to vector<16x128xf32>
    %442 = arith.maximumf %440, %441 : vector<16x128xf32>
    %cst_213 = arith.constant dense<0.000000e+00> : vector<16x32xf32>
    %443 = tpu.matmul %442, %31, %cst_213 {dimension_numbers = #tpu.dot_dimension_numbers<[1], [0], [0], [1], [0, 0, 1, 1], [], []>} : vector<16x128xf32>, vector<128x32xf32>, vector<16x32xf32> -> vector<16x32xf32>
    %444 = vector.broadcast %29 : vector<1x32xf32> to vector<16x32xf32>
    %445 = arith.addf %443, %444 : vector<16x32xf32>
    %446 = arith.addf %445, %415 : vector<16x32xf32>
    %cst_214 = arith.constant dense<0.000000e+00> : vector<16xf32>
    %447 = vector.multi_reduction <add>, %446, %cst_214 [1] : vector<16x32xf32> to vector<16xf32>
    %448 = vector.shape_cast %447 : vector<16xf32> to vector<16x1xf32>
    %cst_215 = arith.constant 3.200000e+01 : f32
    %449 = vector.broadcast %cst_215 : f32 to vector<16x1xf32>
    %450 = arith.divf %448, %449 : vector<16x1xf32>
    %451 = vector.broadcast %450 : vector<16x1xf32> to vector<16x32xf32>
    %452 = arith.subf %446, %451 : vector<16x32xf32>
    %453 = arith.mulf %452, %452 : vector<16x32xf32>
    %cst_216 = arith.constant dense<0.000000e+00> : vector<16xf32>
    %454 = vector.multi_reduction <add>, %453, %cst_216 [1] : vector<16x32xf32> to vector<16xf32>
    %455 = vector.shape_cast %454 : vector<16xf32> to vector<16x1xf32>
    %cst_217 = arith.constant 3.200000e+01 : f32
    %456 = vector.broadcast %cst_217 : f32 to vector<16x1xf32>
    %457 = arith.divf %455, %456 : vector<16x1xf32>
    %458 = vector.broadcast %450 : vector<16x1xf32> to vector<16x32xf32>
    %459 = arith.subf %446, %458 : vector<16x32xf32>
    %cst_218 = arith.constant 9.99999974E-6 : f32
    %460 = vector.broadcast %cst_218 : f32 to vector<16x1xf32>
    %461 = arith.addf %457, %460 : vector<16x1xf32>
    %462 = math.rsqrt %461 : vector<16x1xf32>
    %463 = vector.broadcast %462 : vector<16x1xf32> to vector<16x32xf32>
    %464 = arith.mulf %459, %463 : vector<16x32xf32>
    %465 = vector.broadcast %45 : vector<1x32xf32> to vector<16x32xf32>
    %466 = arith.mulf %464, %465 : vector<16x32xf32>
    %467 = vector.broadcast %44 : vector<1x32xf32> to vector<16x32xf32>
    %468 = arith.addf %466, %467 : vector<16x32xf32>
    %cst_219 = arith.constant dense<0.000000e+00> : vector<16x96xf32>
    %469 = tpu.matmul %468, %49, %cst_219 {dimension_numbers = #tpu.dot_dimension_numbers<[1], [0], [0], [1], [0, 0, 1, 1], [], []>} : vector<16x32xf32>, vector<32x96xf32>, vector<16x96xf32> -> vector<16x96xf32>
    %470 = vector.broadcast %39 : vector<1x96xf32> to vector<16x96xf32>
    %471 = arith.addf %469, %470 : vector<16x96xf32>
    %472 = vector.extract_strided_slice %471 {offsets = [0, 0], sizes = [16, 4], strides = [1, 1]} : vector<16x96xf32> to vector<16x4xf32>
    %473 = vector.shape_cast %472 : vector<16x4xf32> to vector<2x8x4xf32>
    %474 = vector.extract_strided_slice %471 {offsets = [0, 32], sizes = [16, 4], strides = [1, 1]} : vector<16x96xf32> to vector<16x4xf32>
    %475 = vector.shape_cast %474 : vector<16x4xf32> to vector<2x8x4xf32>
    %476 = vector.extract_strided_slice %471 {offsets = [0, 64], sizes = [16, 4], strides = [1, 1]} : vector<16x96xf32> to vector<16x4xf32>
    %477 = vector.shape_cast %476 : vector<16x4xf32> to vector<2x8x4xf32>
    "tpu.trace_start"() <{level = 10 : i32, message = "bqd,bkd->bqk"}> : () -> ()
    %cst_220 = arith.constant dense<0.000000e+00> : vector<2x8x8xf32>
    %478 = tpu.matmul %473, %475, %cst_220 {dimension_numbers = #tpu.dot_dimension_numbers<[2], [2], [1], [1], [0, 0, 0, 1, 1, 1], [0], [0]>} : vector<2x8x4xf32>, vector<2x8x4xf32>, vector<2x8x8xf32> -> vector<2x8x8xf32>
    "tpu.trace_stop"() : () -> ()
    %cst_221 = arith.constant 5.000000e-01 : f32
    %479 = vector.broadcast %cst_221 : f32 to vector<2x8x8xf32>
    %480 = arith.mulf %478, %479 : vector<2x8x8xf32>
    %cst_222 = arith.constant dense<0xFF800000> : vector<2x8xf32>
    %481 = vector.multi_reduction <maximumf>, %480, %cst_222 [2] : vector<2x8x8xf32> to vector<2x8xf32>
    %482 = vector.shape_cast %481 : vector<2x8xf32> to vector<2x8x1xf32>
    %483 = vector.broadcast %482 : vector<2x8x1xf32> to vector<2x8x8xf32>
    %484 = arith.subf %480, %483 : vector<2x8x8xf32>
    %485 = math.exp %484 : vector<2x8x8xf32>
    %cst_223 = arith.constant dense<0.000000e+00> : vector<2x8xf32>
    %486 = vector.multi_reduction <add>, %485, %cst_223 [2] : vector<2x8x8xf32> to vector<2x8xf32>
    %487 = vector.shape_cast %486 : vector<2x8xf32> to vector<2x8x1xf32>
    %488 = tpu.reciprocal %487 {approx = true} : vector<2x8x1xf32> -> vector<2x8x1xf32>
    %489 = vector.broadcast %488 : vector<2x8x1xf32> to vector<2x8x8xf32>
    %490 = arith.mulf %485, %489 : vector<2x8x8xf32>
    "tpu.trace_start"() <{level = 10 : i32, message = "bqk,bkd->bqd"}> : () -> ()
    %cst_224 = arith.constant dense<0.000000e+00> : vector<2x8x4xf32>
    %491 = tpu.matmul %490, %477, %cst_224 {dimension_numbers = #tpu.dot_dimension_numbers<[2], [1], [1], [2], [0, 0, 0, 1, 1, 2], [0], [0]>} : vector<2x8x8xf32>, vector<2x8x4xf32>, vector<2x8x4xf32> -> vector<2x8x4xf32>
    "tpu.trace_stop"() : () -> ()
    %492 = vector.shape_cast %491 : vector<2x8x4xf32> to vector<16x4xf32>
    %493 = vector.extract_strided_slice %471 {offsets = [0, 4], sizes = [16, 4], strides = [1, 1]} : vector<16x96xf32> to vector<16x4xf32>
    %494 = vector.shape_cast %493 : vector<16x4xf32> to vector<2x8x4xf32>
    %495 = vector.extract_strided_slice %471 {offsets = [0, 36], sizes = [16, 4], strides = [1, 1]} : vector<16x96xf32> to vector<16x4xf32>
    %496 = vector.shape_cast %495 : vector<16x4xf32> to vector<2x8x4xf32>
    %497 = vector.extract_strided_slice %471 {offsets = [0, 68], sizes = [16, 4], strides = [1, 1]} : vector<16x96xf32> to vector<16x4xf32>
    %498 = vector.shape_cast %497 : vector<16x4xf32> to vector<2x8x4xf32>
    "tpu.trace_start"() <{level = 10 : i32, message = "bqd,bkd->bqk"}> : () -> ()
    %cst_225 = arith.constant dense<0.000000e+00> : vector<2x8x8xf32>
    %499 = tpu.matmul %494, %496, %cst_225 {dimension_numbers = #tpu.dot_dimension_numbers<[2], [2], [1], [1], [0, 0, 0, 1, 1, 1], [0], [0]>} : vector<2x8x4xf32>, vector<2x8x4xf32>, vector<2x8x8xf32> -> vector<2x8x8xf32>
    "tpu.trace_stop"() : () -> ()
    %cst_226 = arith.constant 5.000000e-01 : f32
    %500 = vector.broadcast %cst_226 : f32 to vector<2x8x8xf32>
    %501 = arith.mulf %499, %500 : vector<2x8x8xf32>
    %cst_227 = arith.constant dense<0xFF800000> : vector<2x8xf32>
    %502 = vector.multi_reduction <maximumf>, %501, %cst_227 [2] : vector<2x8x8xf32> to vector<2x8xf32>
    %503 = vector.shape_cast %502 : vector<2x8xf32> to vector<2x8x1xf32>
    %504 = vector.broadcast %503 : vector<2x8x1xf32> to vector<2x8x8xf32>
    %505 = arith.subf %501, %504 : vector<2x8x8xf32>
    %506 = math.exp %505 : vector<2x8x8xf32>
    %cst_228 = arith.constant dense<0.000000e+00> : vector<2x8xf32>
    %507 = vector.multi_reduction <add>, %506, %cst_228 [2] : vector<2x8x8xf32> to vector<2x8xf32>
    %508 = vector.shape_cast %507 : vector<2x8xf32> to vector<2x8x1xf32>
    %509 = tpu.reciprocal %508 {approx = true} : vector<2x8x1xf32> -> vector<2x8x1xf32>
    %510 = vector.broadcast %509 : vector<2x8x1xf32> to vector<2x8x8xf32>
    %511 = arith.mulf %506, %510 : vector<2x8x8xf32>
    "tpu.trace_start"() <{level = 10 : i32, message = "bqk,bkd->bqd"}> : () -> ()
    %cst_229 = arith.constant dense<0.000000e+00> : vector<2x8x4xf32>
    %512 = tpu.matmul %511, %498, %cst_229 {dimension_numbers = #tpu.dot_dimension_numbers<[2], [1], [1], [2], [0, 0, 0, 1, 1, 2], [0], [0]>} : vector<2x8x8xf32>, vector<2x8x4xf32>, vector<2x8x4xf32> -> vector<2x8x4xf32>
    "tpu.trace_stop"() : () -> ()
    %513 = vector.shape_cast %512 : vector<2x8x4xf32> to vector<16x4xf32>
    %514 = vector.extract_strided_slice %471 {offsets = [0, 8], sizes = [16, 4], strides = [1, 1]} : vector<16x96xf32> to vector<16x4xf32>
    %515 = vector.shape_cast %514 : vector<16x4xf32> to vector<2x8x4xf32>
    %516 = vector.extract_strided_slice %471 {offsets = [0, 40], sizes = [16, 4], strides = [1, 1]} : vector<16x96xf32> to vector<16x4xf32>
    %517 = vector.shape_cast %516 : vector<16x4xf32> to vector<2x8x4xf32>
    %518 = vector.extract_strided_slice %471 {offsets = [0, 72], sizes = [16, 4], strides = [1, 1]} : vector<16x96xf32> to vector<16x4xf32>
    %519 = vector.shape_cast %518 : vector<16x4xf32> to vector<2x8x4xf32>
    "tpu.trace_start"() <{level = 10 : i32, message = "bqd,bkd->bqk"}> : () -> ()
    %cst_230 = arith.constant dense<0.000000e+00> : vector<2x8x8xf32>
    %520 = tpu.matmul %515, %517, %cst_230 {dimension_numbers = #tpu.dot_dimension_numbers<[2], [2], [1], [1], [0, 0, 0, 1, 1, 1], [0], [0]>} : vector<2x8x4xf32>, vector<2x8x4xf32>, vector<2x8x8xf32> -> vector<2x8x8xf32>
    "tpu.trace_stop"() : () -> ()
    %cst_231 = arith.constant 5.000000e-01 : f32
    %521 = vector.broadcast %cst_231 : f32 to vector<2x8x8xf32>
    %522 = arith.mulf %520, %521 : vector<2x8x8xf32>
    %cst_232 = arith.constant dense<0xFF800000> : vector<2x8xf32>
    %523 = vector.multi_reduction <maximumf>, %522, %cst_232 [2] : vector<2x8x8xf32> to vector<2x8xf32>
    %524 = vector.shape_cast %523 : vector<2x8xf32> to vector<2x8x1xf32>
    %525 = vector.broadcast %524 : vector<2x8x1xf32> to vector<2x8x8xf32>
    %526 = arith.subf %522, %525 : vector<2x8x8xf32>
    %527 = math.exp %526 : vector<2x8x8xf32>
    %cst_233 = arith.constant dense<0.000000e+00> : vector<2x8xf32>
    %528 = vector.multi_reduction <add>, %527, %cst_233 [2] : vector<2x8x8xf32> to vector<2x8xf32>
    %529 = vector.shape_cast %528 : vector<2x8xf32> to vector<2x8x1xf32>
    %530 = tpu.reciprocal %529 {approx = true} : vector<2x8x1xf32> -> vector<2x8x1xf32>
    %531 = vector.broadcast %530 : vector<2x8x1xf32> to vector<2x8x8xf32>
    %532 = arith.mulf %527, %531 : vector<2x8x8xf32>
    "tpu.trace_start"() <{level = 10 : i32, message = "bqk,bkd->bqd"}> : () -> ()
    %cst_234 = arith.constant dense<0.000000e+00> : vector<2x8x4xf32>
    %533 = tpu.matmul %532, %519, %cst_234 {dimension_numbers = #tpu.dot_dimension_numbers<[2], [1], [1], [2], [0, 0, 0, 1, 1, 2], [0], [0]>} : vector<2x8x8xf32>, vector<2x8x4xf32>, vector<2x8x4xf32> -> vector<2x8x4xf32>
    "tpu.trace_stop"() : () -> ()
    %534 = vector.shape_cast %533 : vector<2x8x4xf32> to vector<16x4xf32>
    %535 = vector.extract_strided_slice %471 {offsets = [0, 12], sizes = [16, 4], strides = [1, 1]} : vector<16x96xf32> to vector<16x4xf32>
    %536 = vector.shape_cast %535 : vector<16x4xf32> to vector<2x8x4xf32>
    %537 = vector.extract_strided_slice %471 {offsets = [0, 44], sizes = [16, 4], strides = [1, 1]} : vector<16x96xf32> to vector<16x4xf32>
    %538 = vector.shape_cast %537 : vector<16x4xf32> to vector<2x8x4xf32>
    %539 = vector.extract_strided_slice %471 {offsets = [0, 76], sizes = [16, 4], strides = [1, 1]} : vector<16x96xf32> to vector<16x4xf32>
    %540 = vector.shape_cast %539 : vector<16x4xf32> to vector<2x8x4xf32>
    "tpu.trace_start"() <{level = 10 : i32, message = "bqd,bkd->bqk"}> : () -> ()
    %cst_235 = arith.constant dense<0.000000e+00> : vector<2x8x8xf32>
    %541 = tpu.matmul %536, %538, %cst_235 {dimension_numbers = #tpu.dot_dimension_numbers<[2], [2], [1], [1], [0, 0, 0, 1, 1, 1], [0], [0]>} : vector<2x8x4xf32>, vector<2x8x4xf32>, vector<2x8x8xf32> -> vector<2x8x8xf32>
    "tpu.trace_stop"() : () -> ()
    %cst_236 = arith.constant 5.000000e-01 : f32
    %542 = vector.broadcast %cst_236 : f32 to vector<2x8x8xf32>
    %543 = arith.mulf %541, %542 : vector<2x8x8xf32>
    %cst_237 = arith.constant dense<0xFF800000> : vector<2x8xf32>
    %544 = vector.multi_reduction <maximumf>, %543, %cst_237 [2] : vector<2x8x8xf32> to vector<2x8xf32>
    %545 = vector.shape_cast %544 : vector<2x8xf32> to vector<2x8x1xf32>
    %546 = vector.broadcast %545 : vector<2x8x1xf32> to vector<2x8x8xf32>
    %547 = arith.subf %543, %546 : vector<2x8x8xf32>
    %548 = math.exp %547 : vector<2x8x8xf32>
    %cst_238 = arith.constant dense<0.000000e+00> : vector<2x8xf32>
    %549 = vector.multi_reduction <add>, %548, %cst_238 [2] : vector<2x8x8xf32> to vector<2x8xf32>
    %550 = vector.shape_cast %549 : vector<2x8xf32> to vector<2x8x1xf32>
    %551 = tpu.reciprocal %550 {approx = true} : vector<2x8x1xf32> -> vector<2x8x1xf32>
    %552 = vector.broadcast %551 : vector<2x8x1xf32> to vector<2x8x8xf32>
    %553 = arith.mulf %548, %552 : vector<2x8x8xf32>
    "tpu.trace_start"() <{level = 10 : i32, message = "bqk,bkd->bqd"}> : () -> ()
    %cst_239 = arith.constant dense<0.000000e+00> : vector<2x8x4xf32>
    %554 = tpu.matmul %553, %540, %cst_239 {dimension_numbers = #tpu.dot_dimension_numbers<[2], [1], [1], [2], [0, 0, 0, 1, 1, 2], [0], [0]>} : vector<2x8x8xf32>, vector<2x8x4xf32>, vector<2x8x4xf32> -> vector<2x8x4xf32>
    "tpu.trace_stop"() : () -> ()
    %555 = vector.shape_cast %554 : vector<2x8x4xf32> to vector<16x4xf32>
    %556 = vector.extract_strided_slice %471 {offsets = [0, 16], sizes = [16, 4], strides = [1, 1]} : vector<16x96xf32> to vector<16x4xf32>
    %557 = vector.shape_cast %556 : vector<16x4xf32> to vector<2x8x4xf32>
    %558 = vector.extract_strided_slice %471 {offsets = [0, 48], sizes = [16, 4], strides = [1, 1]} : vector<16x96xf32> to vector<16x4xf32>
    %559 = vector.shape_cast %558 : vector<16x4xf32> to vector<2x8x4xf32>
    %560 = vector.extract_strided_slice %471 {offsets = [0, 80], sizes = [16, 4], strides = [1, 1]} : vector<16x96xf32> to vector<16x4xf32>
    %561 = vector.shape_cast %560 : vector<16x4xf32> to vector<2x8x4xf32>
    "tpu.trace_start"() <{level = 10 : i32, message = "bqd,bkd->bqk"}> : () -> ()
    %cst_240 = arith.constant dense<0.000000e+00> : vector<2x8x8xf32>
    %562 = tpu.matmul %557, %559, %cst_240 {dimension_numbers = #tpu.dot_dimension_numbers<[2], [2], [1], [1], [0, 0, 0, 1, 1, 1], [0], [0]>} : vector<2x8x4xf32>, vector<2x8x4xf32>, vector<2x8x8xf32> -> vector<2x8x8xf32>
    "tpu.trace_stop"() : () -> ()
    %cst_241 = arith.constant 5.000000e-01 : f32
    %563 = vector.broadcast %cst_241 : f32 to vector<2x8x8xf32>
    %564 = arith.mulf %562, %563 : vector<2x8x8xf32>
    %cst_242 = arith.constant dense<0xFF800000> : vector<2x8xf32>
    %565 = vector.multi_reduction <maximumf>, %564, %cst_242 [2] : vector<2x8x8xf32> to vector<2x8xf32>
    %566 = vector.shape_cast %565 : vector<2x8xf32> to vector<2x8x1xf32>
    %567 = vector.broadcast %566 : vector<2x8x1xf32> to vector<2x8x8xf32>
    %568 = arith.subf %564, %567 : vector<2x8x8xf32>
    %569 = math.exp %568 : vector<2x8x8xf32>
    %cst_243 = arith.constant dense<0.000000e+00> : vector<2x8xf32>
    %570 = vector.multi_reduction <add>, %569, %cst_243 [2] : vector<2x8x8xf32> to vector<2x8xf32>
    %571 = vector.shape_cast %570 : vector<2x8xf32> to vector<2x8x1xf32>
    %572 = tpu.reciprocal %571 {approx = true} : vector<2x8x1xf32> -> vector<2x8x1xf32>
    %573 = vector.broadcast %572 : vector<2x8x1xf32> to vector<2x8x8xf32>
    %574 = arith.mulf %569, %573 : vector<2x8x8xf32>
    "tpu.trace_start"() <{level = 10 : i32, message = "bqk,bkd->bqd"}> : () -> ()
    %cst_244 = arith.constant dense<0.000000e+00> : vector<2x8x4xf32>
    %575 = tpu.matmul %574, %561, %cst_244 {dimension_numbers = #tpu.dot_dimension_numbers<[2], [1], [1], [2], [0, 0, 0, 1, 1, 2], [0], [0]>} : vector<2x8x8xf32>, vector<2x8x4xf32>, vector<2x8x4xf32> -> vector<2x8x4xf32>
    "tpu.trace_stop"() : () -> ()
    %576 = vector.shape_cast %575 : vector<2x8x4xf32> to vector<16x4xf32>
    %577 = vector.extract_strided_slice %471 {offsets = [0, 20], sizes = [16, 4], strides = [1, 1]} : vector<16x96xf32> to vector<16x4xf32>
    %578 = vector.shape_cast %577 : vector<16x4xf32> to vector<2x8x4xf32>
    %579 = vector.extract_strided_slice %471 {offsets = [0, 52], sizes = [16, 4], strides = [1, 1]} : vector<16x96xf32> to vector<16x4xf32>
    %580 = vector.shape_cast %579 : vector<16x4xf32> to vector<2x8x4xf32>
    %581 = vector.extract_strided_slice %471 {offsets = [0, 84], sizes = [16, 4], strides = [1, 1]} : vector<16x96xf32> to vector<16x4xf32>
    %582 = vector.shape_cast %581 : vector<16x4xf32> to vector<2x8x4xf32>
    "tpu.trace_start"() <{level = 10 : i32, message = "bqd,bkd->bqk"}> : () -> ()
    %cst_245 = arith.constant dense<0.000000e+00> : vector<2x8x8xf32>
    %583 = tpu.matmul %578, %580, %cst_245 {dimension_numbers = #tpu.dot_dimension_numbers<[2], [2], [1], [1], [0, 0, 0, 1, 1, 1], [0], [0]>} : vector<2x8x4xf32>, vector<2x8x4xf32>, vector<2x8x8xf32> -> vector<2x8x8xf32>
    "tpu.trace_stop"() : () -> ()
    %cst_246 = arith.constant 5.000000e-01 : f32
    %584 = vector.broadcast %cst_246 : f32 to vector<2x8x8xf32>
    %585 = arith.mulf %583, %584 : vector<2x8x8xf32>
    %cst_247 = arith.constant dense<0xFF800000> : vector<2x8xf32>
    %586 = vector.multi_reduction <maximumf>, %585, %cst_247 [2] : vector<2x8x8xf32> to vector<2x8xf32>
    %587 = vector.shape_cast %586 : vector<2x8xf32> to vector<2x8x1xf32>
    %588 = vector.broadcast %587 : vector<2x8x1xf32> to vector<2x8x8xf32>
    %589 = arith.subf %585, %588 : vector<2x8x8xf32>
    %590 = math.exp %589 : vector<2x8x8xf32>
    %cst_248 = arith.constant dense<0.000000e+00> : vector<2x8xf32>
    %591 = vector.multi_reduction <add>, %590, %cst_248 [2] : vector<2x8x8xf32> to vector<2x8xf32>
    %592 = vector.shape_cast %591 : vector<2x8xf32> to vector<2x8x1xf32>
    %593 = tpu.reciprocal %592 {approx = true} : vector<2x8x1xf32> -> vector<2x8x1xf32>
    %594 = vector.broadcast %593 : vector<2x8x1xf32> to vector<2x8x8xf32>
    %595 = arith.mulf %590, %594 : vector<2x8x8xf32>
    "tpu.trace_start"() <{level = 10 : i32, message = "bqk,bkd->bqd"}> : () -> ()
    %cst_249 = arith.constant dense<0.000000e+00> : vector<2x8x4xf32>
    %596 = tpu.matmul %595, %582, %cst_249 {dimension_numbers = #tpu.dot_dimension_numbers<[2], [1], [1], [2], [0, 0, 0, 1, 1, 2], [0], [0]>} : vector<2x8x8xf32>, vector<2x8x4xf32>, vector<2x8x4xf32> -> vector<2x8x4xf32>
    "tpu.trace_stop"() : () -> ()
    %597 = vector.shape_cast %596 : vector<2x8x4xf32> to vector<16x4xf32>
    %598 = vector.extract_strided_slice %471 {offsets = [0, 24], sizes = [16, 4], strides = [1, 1]} : vector<16x96xf32> to vector<16x4xf32>
    %599 = vector.shape_cast %598 : vector<16x4xf32> to vector<2x8x4xf32>
    %600 = vector.extract_strided_slice %471 {offsets = [0, 56], sizes = [16, 4], strides = [1, 1]} : vector<16x96xf32> to vector<16x4xf32>
    %601 = vector.shape_cast %600 : vector<16x4xf32> to vector<2x8x4xf32>
    %602 = vector.extract_strided_slice %471 {offsets = [0, 88], sizes = [16, 4], strides = [1, 1]} : vector<16x96xf32> to vector<16x4xf32>
    %603 = vector.shape_cast %602 : vector<16x4xf32> to vector<2x8x4xf32>
    "tpu.trace_start"() <{level = 10 : i32, message = "bqd,bkd->bqk"}> : () -> ()
    %cst_250 = arith.constant dense<0.000000e+00> : vector<2x8x8xf32>
    %604 = tpu.matmul %599, %601, %cst_250 {dimension_numbers = #tpu.dot_dimension_numbers<[2], [2], [1], [1], [0, 0, 0, 1, 1, 1], [0], [0]>} : vector<2x8x4xf32>, vector<2x8x4xf32>, vector<2x8x8xf32> -> vector<2x8x8xf32>
    "tpu.trace_stop"() : () -> ()
    %cst_251 = arith.constant 5.000000e-01 : f32
    %605 = vector.broadcast %cst_251 : f32 to vector<2x8x8xf32>
    %606 = arith.mulf %604, %605 : vector<2x8x8xf32>
    %cst_252 = arith.constant dense<0xFF800000> : vector<2x8xf32>
    %607 = vector.multi_reduction <maximumf>, %606, %cst_252 [2] : vector<2x8x8xf32> to vector<2x8xf32>
    %608 = vector.shape_cast %607 : vector<2x8xf32> to vector<2x8x1xf32>
    %609 = vector.broadcast %608 : vector<2x8x1xf32> to vector<2x8x8xf32>
    %610 = arith.subf %606, %609 : vector<2x8x8xf32>
    %611 = math.exp %610 : vector<2x8x8xf32>
    %cst_253 = arith.constant dense<0.000000e+00> : vector<2x8xf32>
    %612 = vector.multi_reduction <add>, %611, %cst_253 [2] : vector<2x8x8xf32> to vector<2x8xf32>
    %613 = vector.shape_cast %612 : vector<2x8xf32> to vector<2x8x1xf32>
    %614 = tpu.reciprocal %613 {approx = true} : vector<2x8x1xf32> -> vector<2x8x1xf32>
    %615 = vector.broadcast %614 : vector<2x8x1xf32> to vector<2x8x8xf32>
    %616 = arith.mulf %611, %615 : vector<2x8x8xf32>
    "tpu.trace_start"() <{level = 10 : i32, message = "bqk,bkd->bqd"}> : () -> ()
    %cst_254 = arith.constant dense<0.000000e+00> : vector<2x8x4xf32>
    %617 = tpu.matmul %616, %603, %cst_254 {dimension_numbers = #tpu.dot_dimension_numbers<[2], [1], [1], [2], [0, 0, 0, 1, 1, 2], [0], [0]>} : vector<2x8x8xf32>, vector<2x8x4xf32>, vector<2x8x4xf32> -> vector<2x8x4xf32>
    "tpu.trace_stop"() : () -> ()
    %618 = vector.shape_cast %617 : vector<2x8x4xf32> to vector<16x4xf32>
    %619 = vector.extract_strided_slice %471 {offsets = [0, 28], sizes = [16, 4], strides = [1, 1]} : vector<16x96xf32> to vector<16x4xf32>
    %620 = vector.shape_cast %619 : vector<16x4xf32> to vector<2x8x4xf32>
    %621 = vector.extract_strided_slice %471 {offsets = [0, 60], sizes = [16, 4], strides = [1, 1]} : vector<16x96xf32> to vector<16x4xf32>
    %622 = vector.shape_cast %621 : vector<16x4xf32> to vector<2x8x4xf32>
    %623 = vector.extract_strided_slice %471 {offsets = [0, 92], sizes = [16, 4], strides = [1, 1]} : vector<16x96xf32> to vector<16x4xf32>
    %624 = vector.shape_cast %623 : vector<16x4xf32> to vector<2x8x4xf32>
    "tpu.trace_start"() <{level = 10 : i32, message = "bqd,bkd->bqk"}> : () -> ()
    %cst_255 = arith.constant dense<0.000000e+00> : vector<2x8x8xf32>
    %625 = tpu.matmul %620, %622, %cst_255 {dimension_numbers = #tpu.dot_dimension_numbers<[2], [2], [1], [1], [0, 0, 0, 1, 1, 1], [0], [0]>} : vector<2x8x4xf32>, vector<2x8x4xf32>, vector<2x8x8xf32> -> vector<2x8x8xf32>
    "tpu.trace_stop"() : () -> ()
    %cst_256 = arith.constant 5.000000e-01 : f32
    %626 = vector.broadcast %cst_256 : f32 to vector<2x8x8xf32>
    %627 = arith.mulf %625, %626 : vector<2x8x8xf32>
    %cst_257 = arith.constant dense<0xFF800000> : vector<2x8xf32>
    %628 = vector.multi_reduction <maximumf>, %627, %cst_257 [2] : vector<2x8x8xf32> to vector<2x8xf32>
    %629 = vector.shape_cast %628 : vector<2x8xf32> to vector<2x8x1xf32>
    %630 = vector.broadcast %629 : vector<2x8x1xf32> to vector<2x8x8xf32>
    %631 = arith.subf %627, %630 : vector<2x8x8xf32>
    %632 = math.exp %631 : vector<2x8x8xf32>
    %cst_258 = arith.constant dense<0.000000e+00> : vector<2x8xf32>
    %633 = vector.multi_reduction <add>, %632, %cst_258 [2] : vector<2x8x8xf32> to vector<2x8xf32>
    %634 = vector.shape_cast %633 : vector<2x8xf32> to vector<2x8x1xf32>
    %635 = tpu.reciprocal %634 {approx = true} : vector<2x8x1xf32> -> vector<2x8x1xf32>
    %636 = vector.broadcast %635 : vector<2x8x1xf32> to vector<2x8x8xf32>
    %637 = arith.mulf %632, %636 : vector<2x8x8xf32>
    "tpu.trace_start"() <{level = 10 : i32, message = "bqk,bkd->bqd"}> : () -> ()
    %cst_259 = arith.constant dense<0.000000e+00> : vector<2x8x4xf32>
    %638 = tpu.matmul %637, %624, %cst_259 {dimension_numbers = #tpu.dot_dimension_numbers<[2], [1], [1], [2], [0, 0, 0, 1, 1, 2], [0], [0]>} : vector<2x8x8xf32>, vector<2x8x4xf32>, vector<2x8x4xf32> -> vector<2x8x4xf32>
    "tpu.trace_stop"() : () -> ()
    %639 = vector.shape_cast %638 : vector<2x8x4xf32> to vector<16x4xf32>
    %640 = tpu.concatenate %492, %513, %534, %555, %576, %597, %618, %639 in 1 : vector<16x4xf32>, vector<16x4xf32>, vector<16x4xf32>, vector<16x4xf32>, vector<16x4xf32>, vector<16x4xf32>, vector<16x4xf32>, vector<16x4xf32> -> vector<16x32xf32>
    %cst_260 = arith.constant dense<0.000000e+00> : vector<16x32xf32>
    %641 = tpu.matmul %640, %48, %cst_260 {dimension_numbers = #tpu.dot_dimension_numbers<[1], [0], [0], [1], [0, 0, 1, 1], [], []>} : vector<16x32xf32>, vector<32x32xf32>, vector<16x32xf32> -> vector<16x32xf32>
    %642 = vector.broadcast %38 : vector<1x32xf32> to vector<16x32xf32>
    %643 = arith.addf %641, %642 : vector<16x32xf32>
    %644 = arith.addf %643, %446 : vector<16x32xf32>
    %cst_261 = arith.constant dense<0.000000e+00> : vector<16xf32>
    %645 = vector.multi_reduction <add>, %644, %cst_261 [1] : vector<16x32xf32> to vector<16xf32>
    %646 = vector.shape_cast %645 : vector<16xf32> to vector<16x1xf32>
    %cst_262 = arith.constant 3.200000e+01 : f32
    %647 = vector.broadcast %cst_262 : f32 to vector<16x1xf32>
    %648 = arith.divf %646, %647 : vector<16x1xf32>
    %649 = vector.broadcast %648 : vector<16x1xf32> to vector<16x32xf32>
    %650 = arith.subf %644, %649 : vector<16x32xf32>
    %651 = arith.mulf %650, %650 : vector<16x32xf32>
    %cst_263 = arith.constant dense<0.000000e+00> : vector<16xf32>
    %652 = vector.multi_reduction <add>, %651, %cst_263 [1] : vector<16x32xf32> to vector<16xf32>
    %653 = vector.shape_cast %652 : vector<16xf32> to vector<16x1xf32>
    %cst_264 = arith.constant 3.200000e+01 : f32
    %654 = vector.broadcast %cst_264 : f32 to vector<16x1xf32>
    %655 = arith.divf %653, %654 : vector<16x1xf32>
    %656 = vector.broadcast %648 : vector<16x1xf32> to vector<16x32xf32>
    %657 = arith.subf %644, %656 : vector<16x32xf32>
    %cst_265 = arith.constant 9.99999974E-6 : f32
    %658 = vector.broadcast %cst_265 : f32 to vector<16x1xf32>
    %659 = arith.addf %655, %658 : vector<16x1xf32>
    %660 = math.rsqrt %659 : vector<16x1xf32>
    %661 = vector.broadcast %660 : vector<16x1xf32> to vector<16x32xf32>
    %662 = arith.mulf %657, %661 : vector<16x32xf32>
    %663 = vector.broadcast %47 : vector<1x32xf32> to vector<16x32xf32>
    %664 = arith.mulf %662, %663 : vector<16x32xf32>
    %665 = vector.broadcast %46 : vector<1x32xf32> to vector<16x32xf32>
    %666 = arith.addf %664, %665 : vector<16x32xf32>
    %cst_266 = arith.constant dense<0.000000e+00> : vector<16x128xf32>
    %667 = tpu.matmul %666, %42, %cst_266 {dimension_numbers = #tpu.dot_dimension_numbers<[1], [0], [0], [1], [0, 0, 1, 1], [], []>} : vector<16x32xf32>, vector<32x128xf32>, vector<16x128xf32> -> vector<16x128xf32>
    %668 = vector.broadcast %40 : vector<1x128xf32> to vector<16x128xf32>
    %669 = arith.addf %667, %668 : vector<16x128xf32>
    %cst_267 = arith.constant 0.000000e+00 : f32
    %670 = vector.broadcast %cst_267 : f32 to vector<16x128xf32>
    %671 = arith.maximumf %669, %670 : vector<16x128xf32>
    %cst_268 = arith.constant dense<0.000000e+00> : vector<16x32xf32>
    %672 = tpu.matmul %671, %43, %cst_268 {dimension_numbers = #tpu.dot_dimension_numbers<[1], [0], [0], [1], [0, 0, 1, 1], [], []>} : vector<16x128xf32>, vector<128x32xf32>, vector<16x32xf32> -> vector<16x32xf32>
    %673 = vector.broadcast %41 : vector<1x32xf32> to vector<16x32xf32>
    %674 = arith.addf %672, %673 : vector<16x32xf32>
    %675 = arith.addf %674, %644 : vector<16x32xf32>
    %676 = vector.extract_strided_slice %675 {offsets = [7, 0], sizes = [1, 32], strides = [1, 1]} : vector<16x32xf32> to vector<1x32xf32>
    %677 = vector.extract_strided_slice %675 {offsets = [15, 0], sizes = [1, 32], strides = [1, 1]} : vector<16x32xf32> to vector<1x32xf32>
    %678 = tpu.concatenate %676, %677 in 0 : vector<1x32xf32>, vector<1x32xf32> -> vector<2x32xf32>
    %cst_269 = arith.constant dense<0.000000e+00> : vector<2x32xf32>
    %679 = tpu.matmul %678, %1, %cst_269 {dimension_numbers = #tpu.dot_dimension_numbers<[1], [0], [0], [1], [0, 0, 1, 1], [], []>} : vector<2x32xf32>, vector<32x32xf32>, vector<2x32xf32> -> vector<2x32xf32>
    %680 = vector.broadcast %0 : vector<1x32xf32> to vector<2x32xf32>
    %681 = arith.addf %679, %680 : vector<2x32xf32>
    %cst_270 = arith.constant dense<0.000000e+00> : vector<2x32xf32>
    %682 = tpu.matmul %681, %8, %cst_270 {dimension_numbers = #tpu.dot_dimension_numbers<[1], [0], [0], [1], [0, 0, 1, 1], [], []>} : vector<2x32xf32>, vector<32x32xf32>, vector<2x32xf32> -> vector<2x32xf32>
    %683 = vector.broadcast %4 : vector<1x32xf32> to vector<2x32xf32>
    %684 = arith.addf %682, %683 : vector<2x32xf32>
    %cst_271 = arith.constant dense<0.000000e+00> : vector<2x32xf32>
    %685 = tpu.matmul %684, %6, %cst_271 {dimension_numbers = #tpu.dot_dimension_numbers<[1], [0], [0], [1], [0, 0, 1, 1], [], []>} : vector<2x32xf32>, vector<32x32xf32>, vector<2x32xf32> -> vector<2x32xf32>
    %686 = vector.broadcast %2 : vector<1x32xf32> to vector<2x32xf32>
    %687 = arith.addf %685, %686 : vector<2x32xf32>
    %c0_272 = arith.constant 0 : index
    %c0_273 = arith.constant 0 : index
    %688 = vector.load %arg56[%c0_272, %c0_273] : memref<2x32xf32, #tpu.memory_space<vmem>>, vector<2x32xf32>
    tpu.vector_store %arg56[%c0_272, %c0_273], %687 {strides = array<i32>} : memref<2x32xf32, #tpu.memory_space<vmem>>, vector<2x32xf32>,
    %cst_274 = arith.constant dense<0.000000e+00> : vector<2x32xf32>
    %689 = tpu.matmul %681, %9, %cst_274 {dimension_numbers = #tpu.dot_dimension_numbers<[1], [0], [0], [1], [0, 0, 1, 1], [], []>} : vector<2x32xf32>, vector<32x32xf32>, vector<2x32xf32> -> vector<2x32xf32>
    %690 = vector.broadcast %5 : vector<1x32xf32> to vector<2x32xf32>
    %691 = arith.addf %689, %690 : vector<2x32xf32>
    %cst_275 = arith.constant dense<0.000000e+00> : vector<2x32xf32>
    %692 = tpu.matmul %691, %7, %cst_275 {dimension_numbers = #tpu.dot_dimension_numbers<[1], [0], [0], [1], [0, 0, 1, 1], [], []>} : vector<2x32xf32>, vector<32x32xf32>, vector<2x32xf32> -> vector<2x32xf32>
    %693 = vector.broadcast %3 : vector<1x32xf32> to vector<2x32xf32>
    %694 = arith.addf %692, %693 : vector<2x32xf32>
    %c0_276 = arith.constant 0 : index
    %c0_277 = arith.constant 0 : index
    %695 = vector.load %arg57[%c0_276, %c0_277] : memref<2x32xf32, #tpu.memory_space<vmem>>, vector<2x32xf32>
    tpu.vector_store %arg57[%c0_276, %c0_277], %694 {strides = array<i32>} : memref<2x32xf32, #tpu.memory_space<vmem>>, vector<2x32xf32>,
    return
  }
}

</mosaic_0001>

<bundles_post_ra>
// kernel: closed_call.9
= control target key start
LH: loop header
LB: loop body
LE: loop exit
PB: predicated region body
PF: predicated region fallthrough
CT: control target
= control target key end

     0   :  { %s1612_s0 = inlined_call_operand.vmem [shape: f32[3], index: 0, kind: input, shape index: {}]   ;;  %s1613_s1 = inlined_call_operand.vmem [shape: f32[10,4], index: 1, kind: input, shape index: {}]   ;;  %s1614_s2 = inlined_call_operand.vmem [shape: f32[1,32], index: 2, kind: input, shape index: {}]   ;;  %s1615_s3 = inlined_call_operand.vmem [shape: f32[10,4], index: 3, kind: input, shape index: {}]   ;;  %s1616_s4 = inlined_call_operand.vmem [shape: f32[2,32], index: 4, kind: input, shape index: {}]   ;;  %s1617_s5 = inlined_call_operand.vmem [shape: f32[2,32], index: 5, kind: input, shape index: {}]   ;;  %s1618_s6 = inlined_call_operand.vmem [shape: f32[1,128], index: 6, kind: input, shape index: {}]   ;;  %s1619_s7 = inlined_call_operand.vmem [shape: f32[1,32], index: 7, kind: input, shape index: {}]   ;;  %s1620_s8 = inlined_call_operand.vmem [shape: f32[32,128], index: 8, kind: input, shape index: {}]   ;;  %s1621_s9 = inlined_call_operand.vmem [shape: f32[128,32], index: 9, kind: input, shape index: {}]   ;;  %s1622_s10 = inlined_call_operand.vmem [shape: f32[1,32], index: 10, kind: input, shape index: {}]   ;;  %s1623_s11 = inlined_call_operand.vmem [shape: f32[1,32], index: 11, kind: input, shape index: {}]   ;;  %s1624_s12 = inlined_call_operand.vmem [shape: f32[1,32], index: 12, kind: input, shape index: {}]   ;;  %s1625_s13 = inlined_call_operand.vmem [shape: f32[1,32], index: 13, kind: input, shape index: {}]   ;;  %s1626_s14 = inlined_call_operand.vmem [shape: f32[1,128], index: 14, kind: input, shape index: {}]   ;;  %s1627_s15 = inlined_call_operand.vmem [shape: f32[1,32], index: 15, kind: input, shape index: {}]   ;;  %s1628_s16 = inlined_call_operand.vmem [shape: f32[32,128], index: 16, kind: input, shape index: {}]   ;;  %s1629_s17 = inlined_call_operand.vmem [shape: f32[128,32], index: 17, kind: input, shape index: {}]   ;;  %s1630_s18 = inlined_call_operand.vmem [shape: f32[1,32], index: 18, kind: input, shape index: {}]   ;;  %s1631_s19 = inlined_call_operand.vmem [shape: f32[1,32], index: 19, kind: input, shape index: {}]   ;;  %s1632_s20 = inlined_call_operand.vmem [shape: f32[1,32], index: 20, kind: input, shape index: {}]   ;;  %s1633_s21 = inlined_call_operand.vmem [shape: f32[1,32], index: 21, kind: input, shape index: {}]   ;;  %s1634_s22 = inlined_call_operand.vmem [shape: f32[1,32], index: 22, kind: input, shape index: {}]   ;;  %s1635_s23 = inlined_call_operand.vmem [shape: f32[36,32], index: 23, kind: input, shape index: {}]   ;;  %s1636_s24 = inlined_call_operand.vmem [shape: f32[1,4], index: 24, kind: input, shape index: {}]   ;;  %s1637_s25 = inlined_call_operand.vmem [shape: f32[32,4], index: 25, kind: input, shape index: {}]   ;;  %s1638_s26 = inlined_call_operand.vmem [shape: f32[10,4], index: 26, kind: output, shape index: {}]  }
   0x1   :  { %1643 = sst [smem:[#allocation5_spill]] %s1612_s0 }
   0x2   :  { %1644 = sst [smem:[#allocation6_spill]] %s1613_s1 }
   0x3   :  { %1645 = sst [smem:[#allocation7_spill]] %s1614_s2 }
   0x4   :  { %1646 = sst [smem:[#allocation8_spill]] %s1615_s3 }
   0x5   :  { %1647 = sst [smem:[#allocation9_spill]] %s1616_s4 }
   0x6   :  { %1648 = sst [smem:[#allocation10_spill]] %s1617_s5 }
   0x7   :  { %1649 = sst [smem:[#allocation11_spill]] %s1618_s6 }
   0x8   :  { %1650 = sst [smem:[#allocation12_spill]] %s1619_s7 }
   0x9   :  { %1651 = sst [smem:[#allocation13_spill]] %s1620_s8 }
   0xa   :  { %1652 = sst [smem:[#allocation14_spill]] %s1621_s9 }
   0xb   :  { %1653 = sst [smem:[#allocation15_spill]] %s1622_s10 }
   0xc   :  { %31 = vsyncpa [#allocation3], 0  ;;  %s1654_s7 = sld [smem:[#allocation5_spill]] }
  0x12   :  { %s38_s28 = sshll.u32 %s1654_s7, 4  ;;  %s39_s28 = int_to_ptr.vmem [resolvable:$true] %s38_s28 }
  0x13   :  { %s1179_s8 = scalar_lea.vmem %s39_s28, 16  ;;  %p1184_p1 = scmp.lt.s32.totalorder %s39_s28, %s39_s28 }
  0x14   :  { %p1180_p0 = scmp.ne.s32.totalorder %s39_s28, %s1179_s8  ;;  %p1185_p2 = scmp.lt.s32.totalorder %s1179_s8, %s1179_s8 }
  0x16   :  { %p1186_p3 = por %p1185_p2, %p1184_p1 }
  0x18   :  { %p1187_p4 = pnand %p1186_p3, %p1180_p0 }
  0x1a   :  { %1190 = shalt.err (!%p1187_p4)
}
  0x1b   :  { %s1193_s4 = smov [#allocation2]  }
  0x1c   :  { %41 = dma.vmem_to_smem %s39_s28, 16, %s1193_s4, [#allocation3]  }
  0x1d   :  { %1191 = dma.done.wait [#allocation3], 16  }
  0x1e   :  { %1192 = vsyncadd [#allocation3], 4294967280 }
  0x1f   :  { %95 = sfence }
  0x20   :  { %s1655_s9 = sld [smem:[#allocation7_spill]]  ;;  %v153_v1 = vld [vmem:[%s1635_s23 + $0x20] sm:$0xf]  ;;  %vm186_vm0 = vcmask 1043456   ;;  %s1194_s5 = smov 4   ;;  %v152_v2 = vld [vmem:[%s1635_s23 + $0x18] sm:$0xff]  ;;  %v267_v11 = vlaneseq }
  0x21   :  { %1037 = vmatprep.subr.msk.mxu0 %vm186_vm0, %v153_v1  ;;  %v151_v3 = vld [vmem:[%s1635_s23 + $0x10] sm:$0xff]  ;;  %v150_v4 = vld [vmem:[%s1635_s23 + $0x8] sm:$0xff]  ;;  %v149_v5 = vld [vmem:[%s1635_s23] sm:$0xff]  ;;  %vm170_vm1 = vcmask 31744   ;;  %s1656_s0 = sld [smem:[#allocation6_spill]]  ;;  %vm179_vm2 = vcmask 293888  }
  0x22   :  { %1038 = vmatpush3.msk.msra.mxu0 %vm186_vm0, %v153_v1  ;;  %v1365_v12 = vshrl.u32 %v267_v11, 7  ;;  %v951_v16 = vld [vmem:[%s1634_s22] ss:$0 sm:$0xff]  ;;  %vm275_vm3 = vcmask 1044480   ;;  %vm283_vm4 = vcmask 254976   ;;  %vm279_vm5 = vcmask 261120  }
  0x23   :  { %1039 = vmatprep.subr.mxu0 %v152_v2  ;;  %s1658_s27 = sld [smem:[#allocation13_spill]]  ;;  %v955_v49 = vld [vmem:[%s1623_s11] ss:$0 sm:$0xff]  ;;  %vm943_vm6 = vcmask 25600  }
  0x24   :  { %1040 = vmatpush3.msra.mxu0 %v152_v2  ;;  %v269_v13 = vsub.s32 0, %v1365_v12  ;;  %v273_v14 = vsub.s32 1, %v1365_v12  ;;  %s1659_s2 = sld [smem:[#allocation15_spill]] }
  0x25   :  { %1041 = vmatprep.subr.mxu0 %v151_v3  ;;  %s1660_s10 = sld [smem:[#allocation14_spill]] }
  0x26   :  { %v950_v0 = vld [vmem:[%s1655_s9] ss:$0 sm:$0xff]  ;;  %1042 = vmatpush3.msra.mxu0 %v151_v3  ;;  %s1661_s11 = sld [smem:[#allocation11_spill]] }
  0x27   :  { %167 = vrot.lane.b32.xlu0 %v950_v0, %s1194_s5  ;;  %1043 = vmatprep.subr.mxu0 %v150_v4  ;;  %v1354_v6 = vld [vmem:[%s1656_s0 + $0x8] sm:$0x3]  ;;  %v1359_v7 = vld [vmem:[%s1656_s0] sm:$0xff]  ;;  %s1657_s5 = sld [smem:[#allocation9_spill]] }
  0x28   :  { %1044 = vmatpush3.msra.mxu0 %v150_v4  ;;  %s1662_s6 = sld [smem:[#allocation12_spill]] }
  0x29   :  { %1045 = vmatprep.subr.mxu0 %v149_v5  ;;  %v101_v38 = vld [vmem:[%s1658_s27 + $0x18] sm:$0xff]  ;;  %v100_v39 = vld [vmem:[%s1658_s27 + $0x10] sm:$0xff]  ;;  %v99_v40 = vld [vmem:[%s1658_s27 + $0x8] sm:$0xff] }
  0x2a   :  { %1046 = vmatpush3.msra.mxu0 %v149_v5  ;;  %1050 = vmatprep.subr.mxu1 %v101_v38  ;;  %v98_v41 = vld [vmem:[%s1658_s27] sm:$0xff]  ;;  %s1663_s27 = sld [smem:[#allocation10_spill]] }
  0x2b   :  { %1051 = vmatpush3.msra.mxu1 %v101_v38  ;;  %v956_v51 = vld [vmem:[%s1659_s2] ss:$0 sm:$0xff]  ;;  %v117_v58 = vld [vmem:[%s1660_s10 + $0x78] sm:$0xff]  ;;  %v116_v59 = vld [vmem:[%s1660_s10 + $0x70] sm:$0xff] }
  0x2c   :  { %1052 = vmatprep.subr.mxu1 %v100_v39  ;;  %v115_v60 = vld [vmem:[%s1660_s10 + $0x68] sm:$0xff]  ;;  %v114_v61 = vld [vmem:[%s1660_s10 + $0x60] sm:$0xff]  ;;  %v113_v62 = vld [vmem:[%s1660_s10 + $0x58] sm:$0xff] }
  0x2d   :  { %v265_v15 = vld [vmem:[%s1657_s5] sm:$0x3]  ;;  %1053 = vmatpush3.msra.mxu1 %v100_v39  ;;  %v112_v63 = vld [vmem:[%s1660_s10 + $0x50] sm:$0xff]  ;;  %v111_v0 = vld [vmem:[%s1660_s10 + $0x48] sm:$0xff]  ;;  %s975_s5 = sld [smem:[#allocation2 + $0x2]] }
  0x2e   :  { %v270_v17 = vrot.slane %v265_v15, %v269_v13  ;;  %v274_v18 = vrot.slane %v265_v15, %v273_v14  ;;  %1054 = vmatprep.subr.mxu1 %v99_v40  ;;  %v110_v1 = vld [vmem:[%s1660_s10 + $0x40] sm:$0xff]  ;;  %v109_v2 = vld [vmem:[%s1660_s10 + $0x38] sm:$0xff]  ;;  %v108_v3 = vld [vmem:[%s1660_s10 + $0x30] sm:$0xff] }
  0x2f   :  { %1055 = vmatpush3.msra.mxu1 %v99_v40  ;;  %v107_v4 = vld [vmem:[%s1660_s10 + $0x28] sm:$0xff]  ;;  %v106_v5 = vld [vmem:[%s1660_s10 + $0x20] sm:$0xff] }
  0x30   :  { %v276_v22 = vsel %vm275_vm3, %v270_v17, %v274_v18  ;;  %1056 = vmatprep.subr.mxu1 %v98_v41  ;;  %v102_v11 = vld [vmem:[%s1660_s10] sm:$0xff] }
  0x31   :  { %1057 = vmatpush3.msra.mxu1 %v98_v41  ;;  %v957_v15 = vld [vmem:[%s1661_s11] ss:$0 sm:$0xff] }
  0x32   :  { %1061 = vmatprep.subr.mxu1 %v117_v58  ;;  %v960_v39 = vld [vmem:[%s1662_s6] ss:$0 sm:$0xff] }
  0x99   :  { %v168_v8 = vpop.permute.xlu0 %167 }
  0x9a   :  { %v172_v9 = vsel %vm170_vm1, %v1354_v6, %v168_v8  ;;  %v171_v10 = vsel %vm170_vm1, %v1359_v7, %v168_v8  ;;  %v105_v8 = vld [vmem:[%s1660_s10 + $0x18] sm:$0xff] }
  0x9b   :  { %1047 = vmatprep.mubr.msk.f32.mxu0 %vm179_vm2, %v171_v10  ;;  %v103_v10 = vld [vmem:[%s1660_s10 + $0x8] sm:$0xff] }
  0x9c   :  { %1048 = vmatmul.mubr.msk.f32.vlgmr.msra.gmra.mxu0 %vm179_vm2, %v172_v9  ;;  %v104_v9 = vld [vmem:[%s1660_s10 + $0x10] sm:$0xff]  ;;  %s974_s10 = sld [smem:[#allocation2 + $0x1]] }
 0x15c   :  { %v1049_v19 = vpop.f32.mrf.mxu0 }
 0x15d   :  { %v262_v20 = vadd.f32 %v1049_v19, %v951_v16 }
 0x15e   :  { %v256_v21 = vpop.f32.mrf.mxu0 }
 0x15f   :  { %v257_v23 = vadd.f32 %v951_v16, %v256_v21  ;;  %v278_v24 = vadd.f32 %v274_v18, %v262_v20 }
 0x161   :  { %v284_v25 = vsel %vm283_vm4, %v278_v24, 0.0  ;;  %v277_v26 = vadd.f32 %v276_v22, %v257_v23 }
 0x162   :  { %285 = vadd.xlane.f32.xlu1 %v284_v25 }
 0x163   :  { %v280_v27 = vsel %vm279_vm5, %v277_v26, 0.0 }
 0x164   :  { %281 = vadd.xlane.f32.xlu0 %v280_v27 }
 0x1eb   :  { %v286_v28 = vpop.xlane.xlu1 %285 }
 0x1ec   :  { %v289_v29 = vmul.f32 0.03125, %v286_v28 }
 0x1ed   :  { %v282_v30 = vpop.xlane.xlu0 %281 }
 0x1ee   :  { %v288_v31 = vmul.f32 0.03125, %v282_v30  ;;  %v291_v32 = vsub.f32 %v278_v24, %v289_v29 }
 0x1f0   :  { %v290_v33 = vsub.f32 %v277_v26, %v288_v31  ;;  %v293_v36 = vmul.f32 %v291_v32, %v291_v32 }
 0x1f2   :  { %v292_v34 = vmul.f32 %v290_v33, %v290_v33  ;;  %v297_v37 = vsel %vm283_vm4, %v293_v36, 0.0 }
 0x1f4   :  { %v294_v35 = vsel %vm279_vm5, %v292_v34, 0.0 }
 0x1f5   :  { %295 = vadd.xlane.f32.xlu1 %v294_v35 }
 0x1f9   :  { %298 = vadd.xlane.f32.xlu1 %v297_v37 }
 0x27e   :  { %v296_v42 = vpop.xlane.xlu1 %295 }
 0x27f   :  { %v300_v43 = vmul.f32 0.03125, %v296_v42 }
 0x281   :  { %v302_v44 = vadd.f32 1e-05, %v300_v43 }
 0x282   :  { %v299_v45 = vpop.xlane.xlu1 %298 }
 0x283   :  { %1155 = vrsqrt.f32 %v302_v44  ;;  %v301_v46 = vmul.f32 0.03125, %v299_v45 }
 0x285   :  { %v303_v47 = vadd.f32 1e-05, %v301_v46 }
 0x287   :  { %1157 = vrsqrt.f32 %v303_v47 }
 0x290   :  { %v1156_v48 = vpop.eup %1155 }
 0x291   :  { %v306_v50 = vmul.f32 %v1156_v48, %v290_v33 }
 0x293   :  { %v314_v52 = vmul.f32 %v955_v49, %v306_v50 }
 0x294   :  { %v1158_v53 = vpop.eup %1157 }
 0x295   :  { %v307_v54 = vmul.f32 %v1158_v53, %v291_v32  ;;  %v1402_v55 = vadd.f32 %v956_v51, %v314_v52 }
 0x297   :  { %v315_v56 = vmul.f32 %v955_v49, %v307_v54  ;;  %1058 = vmatprep.mubr.msk.f32.mxu1 %vm279_vm5, %v1402_v55 }
 0x299   :  { %v1406_v57 = vadd.f32 %v956_v51, %v315_v56 }
 0x29b   :  { %1059 = vmatmul.mubr.msk.f32.vlgmr.msra.gmra.mxu1 %vm279_vm5, %v1406_v57 }
 0x29c   :  { %1062 = vmatpush3.msra.mxu1 %v117_v58 }
 0x29d   :  { %1063 = vmatprep.subr.mxu1 %v116_v59 }
 0x29e   :  { %1064 = vmatpush3.msra.mxu1 %v116_v59 }
 0x29f   :  { %1065 = vmatprep.subr.mxu1 %v115_v60 }
 0x2a0   :  { %1066 = vmatpush3.msra.mxu1 %v115_v60 }
 0x2a1   :  { %1067 = vmatprep.subr.mxu1 %v114_v61 }
 0x2a2   :  { %1068 = vmatpush3.msra.mxu1 %v114_v61 }
 0x2a3   :  { %1069 = vmatprep.subr.mxu1 %v113_v62 }
 0x2a4   :  { %1070 = vmatpush3.msra.mxu1 %v113_v62 }
 0x2a5   :  { %1071 = vmatprep.subr.mxu1 %v112_v63 }
 0x2a6   :  { %1072 = vmatpush3.msra.mxu1 %v112_v63  ;;  %v266_v63 = vld [vmem:[%s1663_s27] sm:$0x3] }
 0x2a7   :  { %1073 = vmatprep.subr.mxu1 %v111_v0 }
 0x2a8   :  { %1074 = vmatpush3.msra.mxu1 %v111_v0 }
 0x2a9   :  { %1075 = vmatprep.subr.mxu1 %v110_v1 }
 0x2aa   :  { %1076 = vmatpush3.msra.mxu1 %v110_v1  ;;  %v561_v1 = vrot.slane %v266_v63, %v273_v14 }
 0x2ab   :  { %1077 = vmatprep.subr.mxu1 %v109_v2 }
 0x2ac   :  { %1078 = vmatpush3.msra.mxu1 %v109_v2  ;;  %v961_v2 = vld [vmem:[%s1625_s13] ss:$0 sm:$0xff] }
 0x2ad   :  { %1079 = vmatprep.subr.mxu1 %v108_v3 }
 0x2ae   :  { %1080 = vmatpush3.msra.mxu1 %v108_v3  ;;  %v557_v3 = vrot.slane %v266_v63, %v269_v13  ;;  %v129_v63 = vld [vmem:[%s1629_s17 + $0x8] sm:$0xff] }
 0x2af   :  { %1081 = vmatprep.subr.mxu1 %v107_v4 }
 0x2b0   :  { %1082 = vmatpush3.msra.mxu1 %v107_v4 }
 0x2b1   :  { %1083 = vmatprep.subr.mxu1 %v106_v5 }
 0x2b2   :  { %1084 = vmatpush3.msra.mxu1 %v106_v5  ;;  %v962_v5 = vld [vmem:[%s1624_s12] ss:$0 sm:$0xff] }
 0x2b3   :  { %1085 = vmatprep.subr.mxu1 %v105_v8 }
 0x2b4   :  { %1086 = vmatpush3.msra.mxu1 %v105_v8 }
 0x2b5   :  { %1087 = vmatprep.subr.mxu1 %v104_v9 }
 0x2b6   :  { %1088 = vmatpush3.msra.mxu1 %v104_v9 }
 0x2b7   :  { %1089 = vmatprep.subr.mxu1 %v103_v10 }
 0x2b8   :  { %1090 = vmatpush3.msra.mxu1 %v103_v10  ;;  %v562_v10 = vsel %vm275_vm3, %v557_v3, %v561_v1 }
 0x2b9   :  { %1091 = vmatprep.subr.mxu1 %v102_v11 }
 0x2ba   :  { %1092 = vmatpush3.msra.mxu1 %v102_v11 }
 0x35b   :  { %v1060_v16 = vpop.f32.mrf.mxu1 }
 0x35c   :  { %v408_v17 = vadd.f32 %v1060_v16, %v957_v15 }
 0x35d   :  { %v402_v18 = vpop.f32.mrf.mxu1 }
 0x35e   :  { %v412_v19 = vmul.f32 %v408_v17, %v408_v17  ;;  %v403_v20 = vadd.f32 %v957_v15, %v402_v18 }
 0x360   :  { %v414_v21 = vmul.f32 %v412_v19, %v408_v17  ;;  %v411_v22 = vmul.f32 %v403_v20, %v403_v20 }
 0x362   :  { %v416_v23 = vmul.f32 0.044715, %v414_v21  ;;  %v413_v24 = vmul.f32 %v411_v22, %v403_v20 }
 0x364   :  { %v418_v25 = vadd.f32 %v416_v23, %v408_v17  ;;  %v415_v26 = vmul.f32 0.044715, %v413_v24 }
 0x366   :  { %v420_v27 = vmul.f32 0.7978846, %v418_v25  ;;  %v417_v28 = vadd.f32 %v415_v26, %v403_v20 }
 0x368   :  { %1159 = vtanh.f32 %v420_v27  ;;  %v419_v29 = vmul.f32 0.7978846, %v417_v28 }
 0x36a   :  { %1161 = vtanh.f32 %v419_v29  ;;  %v127_v29 = vld [vmem:[%s1628_s16 + $0x18] sm:$0xff] }
 0x36b   :  { %1096 = vmatprep.subr.mxu0 %v127_v29 }
 0x36c   :  { %1097 = vmatpush3.msra.mxu0 %v127_v29 }
 0x375   :  { %v1160_v30 = vpop.eup %1159 }
 0x376   :  { %v424_v31 = vadd.f32 1.0, %v1160_v30  ;;  %v126_v30 = vld [vmem:[%s1628_s16 + $0x10] sm:$0xff] }
 0x377   :  { %v1162_v32 = vpop.eup %1161  ;;  %1098 = vmatprep.subr.mxu0 %v126_v30 }
 0x378   :  { %v423_v33 = vadd.f32 1.0, %v1162_v32  ;;  %v426_v34 = vmul.f32 0.5, %v424_v31  ;;  %v125_v31 = vld [vmem:[%s1628_s16 + $0x8] sm:$0xff]  ;;  %1099 = vmatpush3.msra.mxu0 %v126_v30  ;;  %v124_v32 = vld [vmem:[%s1628_s16] sm:$0xff]  ;;  %s924_s16 = sld [smem:[#allocation2]] }
 0x379   :  { %1100 = vmatprep.subr.mxu0 %v125_v31 }
 0x37a   :  { %v425_v35 = vmul.f32 0.5, %v423_v33  ;;  %v428_v37 = vmul.f32 %v426_v34, %v408_v17  ;;  %1101 = vmatpush3.msra.mxu0 %v125_v31 }
 0x37b   :  { %1102 = vmatprep.subr.mxu0 %v124_v32 }
 0x37c   :  { %v427_v36 = vmul.f32 %v425_v35, %v403_v20  ;;  %1103 = vmatpush3.msra.mxu0 %v124_v32 }
 0x37e   :  { %1093 = vmatprep.mubr.f32.mxu1 %v427_v36 }
 0x37f   :  { %1094 = vmatmul.mubr.f32.vlgmr.msra.gmra.mxu1 %v428_v37 }
 0x43f   :  { %v1095_v38 = vpop.f32.mrf.mxu1 }
 0x440   :  { %v507_v41 = vadd.f32 %v1095_v38, %v960_v39 }
 0x441   :  { %v501_v40 = vpop.f32.mrf.mxu1 }
 0x442   :  { %v502_v42 = vadd.f32 %v960_v39, %v501_v40  ;;  %v511_v45 = vadd.f32 %v507_v41, %v1406_v57  ;;  %v963_v40 = vld [vmem:[%s1631_s19] ss:$0 sm:$0xff] }
 0x444   :  { %v510_v43 = vadd.f32 %v502_v42, %v1402_v55  ;;  %v515_v46 = vsel %vm283_vm4, %v511_v45, 0.0  ;;  %v964_v42 = vld [vmem:[%s1630_s18] ss:$0 sm:$0xff] }
 0x446   :  { %v512_v44 = vsel %vm279_vm5, %v510_v43, 0.0 }
 0x447   :  { %513 = vadd.xlane.f32.xlu1 %v512_v44 }
 0x44b   :  { %516 = vadd.xlane.f32.xlu1 %v515_v46 }
 0x4d0   :  { %v514_v47 = vpop.xlane.xlu1 %513 }
 0x4d1   :  { %v518_v48 = vmul.f32 0.03125, %v514_v47 }
 0x4d3   :  { %v520_v49 = vsub.f32 %v510_v43, %v518_v48 }
 0x4d4   :  { %v517_v50 = vpop.xlane.xlu1 %516 }
 0x4d5   :  { %v519_v51 = vmul.f32 0.03125, %v517_v50  ;;  %v522_v52 = vmul.f32 %v520_v49, %v520_v49  ;;  %v142_v50 = vld [vmem:[%s1629_s17 + $0x70] sm:$0xff] }
 0x4d7   :  { %v521_v53 = vsub.f32 %v511_v45, %v519_v51  ;;  %v524_v54 = vsel %vm279_vm5, %v522_v52, 0.0  ;;  %v141_v51 = vld [vmem:[%s1629_s17 + $0x68] sm:$0xff]  ;;  %v140_v52 = vld [vmem:[%s1629_s17 + $0x60] sm:$0xff] }
 0x4d8   :  { %525 = vadd.xlane.f32.xlu1 %v524_v54  ;;  %v138_v54 = vld [vmem:[%s1629_s17 + $0x50] sm:$0xff] }
 0x4d9   :  { %v523_v56 = vmul.f32 %v521_v53, %v521_v53 }
 0x4db   :  { %v527_v55 = vsel %vm283_vm4, %v523_v56, 0.0  ;;  %v137_v56 = vld [vmem:[%s1629_s17 + $0x48] sm:$0xff] }
 0x4dc   :  { %528 = vadd.xlane.f32.xlu1 %v527_v55  ;;  %v136_v55 = vld [vmem:[%s1629_s17 + $0x40] sm:$0xff] }
 0x561   :  { %v526_v58 = vpop.xlane.xlu1 %525 }
 0x562   :  { %v530_v57 = vmul.f32 0.03125, %v526_v58  ;;  %v135_v58 = vld [vmem:[%s1629_s17 + $0x38] sm:$0xff] }
 0x564   :  { %v532_v59 = vadd.f32 1e-05, %v530_v57  ;;  %v134_v57 = vld [vmem:[%s1629_s17 + $0x30] sm:$0xff] }
 0x565   :  { %v529_v60 = vpop.xlane.xlu1 %528 }
 0x566   :  { %1163 = vrsqrt.f32 %v532_v59  ;;  %v531_v61 = vmul.f32 0.03125, %v529_v60  ;;  %v133_v59 = vld [vmem:[%s1629_s17 + $0x28] sm:$0xff]  ;;  %v132_v60 = vld [vmem:[%s1629_s17 + $0x20] sm:$0xff] }
 0x568   :  { %v533_v62 = vadd.f32 1e-05, %v531_v61  ;;  %v131_v61 = vld [vmem:[%s1629_s17 + $0x18] sm:$0xff] }
 0x56a   :  { %1165 = vrsqrt.f32 %v533_v62  ;;  %v130_v62 = vld [vmem:[%s1629_s17 + $0x10] sm:$0xff] }
 0x573   :  { %v1164_v0 = vpop.eup %1163 }
 0x574   :  { %v536_v4 = vmul.f32 %v1164_v0, %v520_v49  ;;  %v143_v49 = vld [vmem:[%s1629_s17 + $0x78] sm:$0xff]  ;;  %v128_v0 = vld [vmem:[%s1629_s17] sm:$0xff] }
 0x575   :  { %1107 = vmatprep.subr.mxu0 %v143_v49 }
 0x576   :  { %v544_v8 = vmul.f32 %v961_v2, %v536_v4 }
 0x577   :  { %v1166_v9 = vpop.eup %1165 }
 0x578   :  { %v552_v11 = vadd.f32 %v962_v5, %v544_v8  ;;  %v537_v15 = vmul.f32 %v1166_v9, %v521_v53  ;;  %v139_v53 = vld [vmem:[%s1629_s17 + $0x58] sm:$0xff] }
 0x57a   :  { %v563_v16 = vadd.f32 %v562_v10, %v552_v11  ;;  %v545_v14 = vmul.f32 %v961_v2, %v537_v15 }
 0x57c   :  { %v565_v17 = vsel %vm279_vm5, %v563_v16, 0.0  ;;  %v553_v18 = vadd.f32 %v962_v5, %v545_v14 }
 0x57d   :  { %566 = vadd.xlane.f32.xlu1 %v565_v17 }
 0x57e   :  { %v564_v19 = vadd.f32 %v561_v1, %v553_v18  ;;  %v965_v1 = vld [vmem:[%s1626_s14] ss:$0 sm:$0xff] }
 0x580   :  { %v568_v12 = vsel %vm283_vm4, %v564_v19, 0.0 }
 0x581   :  { %569 = vadd.xlane.f32.xlu1 %v568_v12 }
 0x606   :  { %v567_v13 = vpop.xlane.xlu1 %566 }
 0x607   :  { %v571_v20 = vmul.f32 0.03125, %v567_v13 }
 0x609   :  { %v573_v21 = vsub.f32 %v563_v16, %v571_v20 }
 0x60a   :  { %v570_v22 = vpop.xlane.xlu1 %569 }
 0x60b   :  { %v572_v23 = vmul.f32 0.03125, %v570_v22  ;;  %v575_v24 = vmul.f32 %v573_v21, %v573_v21 }
 0x60d   :  { %v574_v25 = vsub.f32 %v564_v19, %v572_v23  ;;  %v577_v26 = vsel %vm279_vm5, %v575_v24, 0.0 }
 0x60e   :  { %578 = vadd.xlane.f32.xlu0 %v577_v26  ;;  %v968_v26 = vld [vmem:[%s1627_s15] ss:$0 sm:$0xff] }
 0x60f   :  { %v576_v27 = vmul.f32 %v574_v25, %v574_v25 }
 0x611   :  { %v580_v28 = vsel %vm283_vm4, %v576_v27, 0.0 }
 0x612   :  { %581 = vadd.xlane.f32.xlu1 %v580_v28 }
 0x697   :  { %v579_v33 = vpop.xlane.xlu0 %578 }
 0x698   :  { %v583_v34 = vmul.f32 0.03125, %v579_v33 }
 0x69a   :  { %v585_v35 = vadd.f32 1e-05, %v583_v34 }
 0x69b   :  { %v582_v36 = vpop.xlane.xlu1 %581 }
 0x69c   :  { %1167 = vrsqrt.f32 %v585_v35  ;;  %v584_v37 = vmul.f32 0.03125, %v582_v36 }
 0x69e   :  { %v586_v38 = vadd.f32 1e-05, %v584_v37 }
 0x6a0   :  { %1169 = vrsqrt.f32 %v586_v38 }
 0x6a9   :  { %v1168_v39 = vpop.eup %1167 }
 0x6aa   :  { %v589_v41 = vmul.f32 %v1168_v39, %v573_v21 }
 0x6ac   :  { %v597_v43 = vmul.f32 %v963_v40, %v589_v41 }
 0x6ad   :  { %v1170_v44 = vpop.eup %1169 }
 0x6ae   :  { %v590_v45 = vmul.f32 %v1170_v44, %v574_v25  ;;  %v1506_v46 = vadd.f32 %v964_v42, %v597_v43 }
 0x6b0   :  { %v598_v47 = vmul.f32 %v963_v40, %v590_v45  ;;  %1104 = vmatprep.mubr.msk.f32.mxu0 %vm279_vm5, %v1506_v46  ;;  %v158_v45 = vld [vmem:[%s1637_s25 + $0x18] sm:$0xff] }
 0x6b1   :  { %1142 = vmatprep.subr.mxu1 %v158_v45 }
 0x6b2   :  { %v1510_v48 = vadd.f32 %v964_v42, %v598_v47  ;;  %1143 = vmatpush3.msra.mxu1 %v158_v45  ;;  %v156_v47 = vld [vmem:[%s1637_s25 + $0x8] sm:$0xff] }
 0x6b4   :  { %1105 = vmatmul.mubr.msk.f32.vlgmr.msra.gmra.mxu0 %vm279_vm5, %v1510_v48 }
 0x6b5   :  { %1108 = vmatpush3.msra.mxu0 %v143_v49 }
 0x6b6   :  { %1109 = vmatprep.subr.mxu0 %v142_v50 }
 0x6b7   :  { %1110 = vmatpush3.msra.mxu0 %v142_v50 }
 0x6b8   :  { %1111 = vmatprep.subr.mxu0 %v141_v51 }
 0x6b9   :  { %1112 = vmatpush3.msra.mxu0 %v141_v51 }
 0x6ba   :  { %1113 = vmatprep.subr.mxu0 %v140_v52 }
 0x6bb   :  { %1114 = vmatpush3.msra.mxu0 %v140_v52 }
 0x6bc   :  { %1115 = vmatprep.subr.mxu0 %v139_v53 }
 0x6bd   :  { %1116 = vmatpush3.msra.mxu0 %v139_v53 }
 0x6be   :  { %1117 = vmatprep.subr.mxu0 %v138_v54 }
 0x6bf   :  { %1118 = vmatpush3.msra.mxu0 %v138_v54 }
 0x6c0   :  { %1119 = vmatprep.subr.mxu0 %v137_v56 }
 0x6c1   :  { %1120 = vmatpush3.msra.mxu0 %v137_v56 }
 0x6c2   :  { %1121 = vmatprep.subr.mxu0 %v136_v55 }
 0x6c3   :  { %1122 = vmatpush3.msra.mxu0 %v136_v55  ;;  %v969_v55 = vld [vmem:[%s1633_s21] ss:$0 sm:$0xff] }
 0x6c4   :  { %1123 = vmatprep.subr.mxu0 %v135_v58 }
 0x6c5   :  { %1124 = vmatpush3.msra.mxu0 %v135_v58 }
 0x6c6   :  { %1125 = vmatprep.subr.mxu0 %v134_v57 }
 0x6c7   :  { %1126 = vmatpush3.msra.mxu0 %v134_v57 }
 0x6c8   :  { %1127 = vmatprep.subr.mxu0 %v133_v59 }
 0x6c9   :  { %1128 = vmatpush3.msra.mxu0 %v133_v59 }
 0x6ca   :  { %1129 = vmatprep.subr.mxu0 %v132_v60 }
 0x6cb   :  { %1130 = vmatpush3.msra.mxu0 %v132_v60 }
 0x6cc   :  { %1131 = vmatprep.subr.mxu0 %v131_v61 }
 0x6cd   :  { %1132 = vmatpush3.msra.mxu0 %v131_v61  ;;  %v970_v61 = vld [vmem:[%s1632_s20] ss:$0 sm:$0xff]  ;;  %s1664_s20 = sld [smem:[#allocation8_spill]] }
 0x6ce   :  { %1133 = vmatprep.subr.mxu0 %v130_v62 }
 0x6cf   :  { %1134 = vmatpush3.msra.mxu0 %v130_v62 }
 0x6d0   :  { %1135 = vmatprep.subr.mxu0 %v129_v63 }
 0x6d1   :  { %1136 = vmatpush3.msra.mxu0 %v129_v63 }
 0x6d2   :  { %1137 = vmatprep.subr.mxu0 %v128_v0 }
 0x6d3   :  { %1138 = vmatpush3.msra.mxu0 %v128_v0 }
 0x774   :  { %v1106_v2 = vpop.f32.mrf.mxu0 }
 0x775   :  { %v691_v3 = vadd.f32 %v1106_v2, %v965_v1 }
 0x776   :  { %v685_v4 = vpop.f32.mrf.mxu0 }
 0x777   :  { %v695_v5 = vmul.f32 %v691_v3, %v691_v3  ;;  %v686_v8 = vadd.f32 %v965_v1, %v685_v4  ;;  %v971_v1 = vld [vmem:[%s1636_s24] ss:$0 sm:$0xff] }
 0x779   :  { %v697_v9 = vmul.f32 %v695_v5, %v691_v3  ;;  %v694_v10 = vmul.f32 %v686_v8, %v686_v8  ;;  %v936_v5 = vld [vmem:[%s1664_s20 + $0x8] sm:$0x3] }
 0x77b   :  { %v699_v11 = vmul.f32 0.044715, %v697_v9  ;;  %v696_v15 = vmul.f32 %v694_v10, %v686_v8 }
 0x77d   :  { %v701_v16 = vadd.f32 %v699_v11, %v691_v3  ;;  %v698_v14 = vmul.f32 0.044715, %v696_v15  ;;  %v932_v15 = vstv %s924_s16 }
 0x77f   :  { %v703_v17 = vmul.f32 0.7978846, %v701_v16  ;;  %v700_v18 = vadd.f32 %v698_v14, %v686_v8  ;;  %v935_v16 = vld [vmem:[%s1664_s20] sm:$0xff] }
 0x781   :  { %1171 = vtanh.f32 %v703_v17  ;;  %v702_v19 = vmul.f32 0.7978846, %v700_v18 }
 0x783   :  { %1173 = vtanh.f32 %v702_v19 }
 0x78e   :  { %v1172_v12 = vpop.eup %1171 }
 0x78f   :  { %v707_v13 = vadd.f32 1.0, %v1172_v12 }
 0x790   :  { %v1174_v20 = vpop.eup %1173 }
 0x791   :  { %v706_v21 = vadd.f32 1.0, %v1174_v20  ;;  %v709_v22 = vmul.f32 0.5, %v707_v13 }
 0x793   :  { %v708_v23 = vmul.f32 0.5, %v706_v21  ;;  %v711_v25 = vmul.f32 %v709_v22, %v691_v3  ;;  %v927_v3 = vstv %s974_s10 }
 0x795   :  { %v710_v24 = vmul.f32 %v708_v23, %v686_v8  ;;  %v937_v8 = vstv %s975_s5 }
 0x796   :  { %v939_v17 = vmul.f32 %v937_v8, %v936_v5  ;;  %v938_v13 = vmul.f32 %v937_v8, %v935_v16 }
 0x797   :  { %1139 = vmatprep.mubr.f32.mxu0 %v710_v24 }
 0x798   :  { %1140 = vmatmul.mubr.f32.vlgmr.msra.gmra.mxu0 %v711_v25 }
 0x858   :  { %v1141_v27 = vpop.f32.mrf.mxu0 }
 0x859   :  { %v790_v28 = vadd.f32 %v1141_v27, %v968_v26 }
 0x85a   :  { %v784_v29 = vpop.f32.mrf.mxu0 }
 0x85b   :  { %v785_v30 = vadd.f32 %v968_v26, %v784_v29  ;;  %v794_v31 = vadd.f32 %v790_v28, %v1510_v48  ;;  %v155_v48 = vld [vmem:[%s1637_s25] sm:$0xff] }
 0x85d   :  { %v798_v32 = vsel %vm283_vm4, %v794_v31, 0.0  ;;  %v793_v33 = vadd.f32 %v785_v30, %v1506_v46  ;;  %v157_v46 = vld [vmem:[%s1637_s25 + $0x10] sm:$0xff] }
 0x85e   :  { %799 = vadd.xlane.f32.xlu1 %v798_v32  ;;  %1144 = vmatprep.subr.mxu1 %v157_v46 }
 0x85f   :  { %v795_v34 = vsel %vm279_vm5, %v793_v33, 0.0  ;;  %1145 = vmatpush3.msra.mxu1 %v157_v46 }
 0x860   :  { %796 = vadd.xlane.f32.xlu0 %v795_v34  ;;  %1146 = vmatprep.subr.mxu1 %v156_v47 }
 0x861   :  { %1147 = vmatpush3.msra.mxu1 %v156_v47 }
 0x862   :  { %1148 = vmatprep.subr.mxu1 %v155_v48 }
 0x863   :  { %1149 = vmatpush3.msra.mxu1 %v155_v48 }
 0x8e7   :  { %v800_v35 = vpop.xlane.xlu1 %799 }
 0x8e8   :  { %v802_v36 = vmul.f32 0.03125, %v800_v35 }
 0x8e9   :  { %v797_v37 = vpop.xlane.xlu0 %796 }
 0x8ea   :  { %v804_v38 = vsub.f32 %v794_v31, %v802_v36  ;;  %v801_v39 = vmul.f32 0.03125, %v797_v37 }
 0x8ec   :  { %v803_v40 = vsub.f32 %v793_v33, %v801_v39  ;;  %v806_v41 = vmul.f32 %v804_v38, %v804_v38 }
 0x8ee   :  { %v810_v42 = vsel %vm283_vm4, %v806_v41, 0.0  ;;  %v805_v43 = vmul.f32 %v803_v40, %v803_v40 }
 0x8ef   :  { %811 = vadd.xlane.f32.xlu1 %v810_v42 }
 0x8f0   :  { %v807_v44 = vsel %vm279_vm5, %v805_v43, 0.0 }
 0x8f1   :  { %808 = vadd.xlane.f32.xlu0 %v807_v44 }
 0x978   :  { %v812_v49 = vpop.xlane.xlu1 %811 }
 0x979   :  { %v814_v50 = vmul.f32 0.03125, %v812_v49 }
 0x97a   :  { %v809_v51 = vpop.xlane.xlu0 %808 }
 0x97b   :  { %v816_v52 = vadd.f32 1e-05, %v814_v50  ;;  %v813_v53 = vmul.f32 0.03125, %v809_v51 }
 0x97d   :  { %1175 = vrsqrt.f32 %v816_v52  ;;  %v815_v54 = vadd.f32 1e-05, %v813_v53 }
 0x97f   :  { %1177 = vrsqrt.f32 %v815_v54 }
 0x98a   :  { %v1176_v56 = vpop.eup %1175 }
 0x98b   :  { %v820_v58 = vmul.f32 %v1176_v56, %v804_v38 }
 0x98c   :  { %v1178_v57 = vpop.eup %1177 }
 0x98d   :  { %v819_v59 = vmul.f32 %v1178_v57, %v803_v40  ;;  %v828_v60 = vmul.f32 %v969_v55, %v820_v58 }
 0x98f   :  { %v827_v62 = vmul.f32 %v969_v55, %v819_v59  ;;  %v836_v0 = vadd.f32 %v970_v61, %v828_v60 }
 0x991   :  { %v835_v63 = vadd.f32 %v970_v61, %v827_v62 }
 0x993   :  { %1150 = vmatprep.mubr.msk.f32.mxu1 %vm279_vm5, %v835_v63 }
 0x994   :  { %1151 = vmatmul.mubr.msk.f32.vlgmr.msra.gmra.mxu1 %vm279_vm5, %v836_v0 }
 0xa54   :  { %v1152_v2 = vpop.f32.mrf.mxu1 }
 0xa55   :  { %v921_v4 = vadd.f32 %v1152_v2, %v971_v1 }
 0xa56   :  { %v915_v9 = vpop.f32.mrf.mxu1 }
 0xa57   :  { %v929_v10 = vmul.f32 %v927_v3, %v921_v4  ;;  %v916_v11 = vadd.f32 %v971_v1, %v915_v9 }
 0xa59   :  { %v931_v14 = vsub.f32 %v1354_v6, %v929_v10  ;;  %v928_v18 = vmul.f32 %v927_v3, %v916_v11 }
 0xa5b   :  { %v934_v19 = vmul.f32 %v932_v15, %v931_v14  ;;  %v930_v12 = vsub.f32 %v1359_v7, %v928_v18 }
 0xa5d   :  { %v941_v20 = vadd.f32 %v939_v17, %v934_v19  ;;  %v933_v21 = vmul.f32 %v932_v15, %v930_v12 }
 0xa5f   :  { %944 = vst.msk [vmem:[%s1638_s26 + $0x8] sm:$0x3] %vm943_vm6, %v941_v20  ;;  %v940_v22 = vadd.f32 %v938_v13, %v933_v21 }
 0xa61   :  { %942 = vst.msk [vmem:[%s1638_s26] sm:$0xff] %vm170_vm1, %v940_v22 }
 0xa62   :  { %949 = vsyncpa [#allocation3], 1 }

// kernel: tft_forward_influence.3
= control target key start
LH: loop header
LB: loop body
LE: loop exit
PB: predicated region body
PF: predicated region fallthrough
CT: control target
= control target key end

     0   :  { %s10360_s6 = smov 1   ;;  %s10361_s10 = smov 2   ;;  %s11829_s0 = inlined_call_operand.smem [shape: u32[60], index: -1, kind: input, shape index: {}] }
   0x1   :  { %s10482_s5 = sld [smem:[%s11829_s0]]   ;;  %s10362_s14 = smov 3  }
   0x2   :  { %s10487_s9 = sld [smem:[%s11829_s0 + %s10360_s6]]   ;;  %s10363_s18 = smov 4  }
   0x3   :  { %s10492_s13 = sld [smem:[%s11829_s0 + %s10361_s10]]   ;;  %s10364_s22 = smov 5  }
   0x4   :  { %s10497_s17 = sld [smem:[%s11829_s0 + %s10362_s14]]   ;;  %s10365_s26 = smov 6  }
   0x5   :  { %s10502_s21 = sld [smem:[%s11829_s0 + %s10363_s18]]   ;;  %s10366_s30 = smov 7  }
   0x6   :  { %s10507_s25 = sld [smem:[%s11829_s0 + %s10364_s22]]   ;;  %s10367_s4 = smov 8  }
   0x7   :  { %11860 = sst [smem:[#allocation46_spill]] %s10482_s5  ;;  %s10368_s10 = smov 9  }
   0x8   :  { %11861 = sst [smem:[#allocation47_spill]] %s10487_s9  ;;  %s10369_s15 = smov 10  }
   0x9   :  { %11862 = sst [smem:[#allocation48_spill]] %s10492_s13  ;;  %s10370_s20 = smov 11  }
   0xa   :  { %11863 = sst [smem:[#allocation49_spill]] %s10497_s17  ;;  %s10372_s1 = smov 13  }
   0xb   :  { %11864 = sst [smem:[#allocation50_spill]] %s10502_s21  ;;  %s10373_s7 = smov 14  }
   0xc   :  { %11865 = sst [smem:[#allocation51_spill]] %s10507_s25  ;;  %s10375_s22 = smov 16  }
   0xd   :  { %s10512_s29 = sld [smem:[%s11829_s0 + %s10365_s26]]   ;;  %s10371_s26 = smov 12  }
   0xe   :  { %s10517_s3 = sld [smem:[%s11829_s0 + %s10366_s30]]   ;;  %s10376_s28 = smov 17  }
   0xf   :  { %s10522_s8 = sld [smem:[%s11829_s0 + %s10367_s4]]  }
  0x10   :  { %s10527_s14 = sld [smem:[%s11829_s0 + %s10368_s10]]  }
  0x11   :  { %s10532_s19 = sld [smem:[%s11829_s0 + %s10369_s15]]   ;;  %s10374_s15 = smov 15  }
  0x12   :  { %s10537_s24 = sld [smem:[%s11829_s0 + %s10370_s20]]  }
  0x13   :  { %11866 = sst [smem:[#allocation52_spill]] %s10512_s29 }
  0x14   :  { %11867 = sst [smem:[#allocation53_spill]] %s10517_s3 }
  0x15   :  { %11868 = sst [smem:[#allocation54_spill]] %s10522_s8 }
  0x16   :  { %11869 = sst [smem:[#allocation55_spill]] %s10527_s14 }
  0x17   :  { %11870 = sst [smem:[#allocation56_spill]] %s10532_s19 }
  0x18   :  { %11871 = sst [smem:[#allocation57_spill]] %s10537_s24 }
  0x19   :  { %s10542_s30 = sld [smem:[%s11829_s0 + %s10371_s26]]  }
  0x1a   :  { %s10547_s6 = sld [smem:[%s11829_s0 + %s10372_s1]]  }
  0x1b   :  { %s10552_s12 = sld [smem:[%s11829_s0 + %s10373_s7]]   ;;  %s10377_s7 = smov 18  }
  0x1c   :  { %s10557_s20 = sld [smem:[%s11829_s0 + %s10374_s15]]   ;;  %s10378_s15 = smov 19  }
  0x1d   :  { %s10562_s27 = sld [smem:[%s11829_s0 + %s10375_s22]]   ;;  %s10379_s22 = smov 20  }
  0x1e   :  { %s10567_s4 = sld [smem:[%s11829_s0 + %s10376_s28]]   ;;  %s10380_s28 = smov 21  }
  0x1f   :  { %11872 = sst [smem:[#allocation58_spill]] %s10542_s30 }
  0x20   :  { %11873 = sst [smem:[#allocation59_spill]] %s10547_s6 }
  0x21   :  { %11874 = sst [smem:[#allocation60_spill]] %s10552_s12 }
  0x22   :  { %11875 = sst [smem:[#allocation61_spill]] %s10557_s20 }
  0x23   :  { %11876 = sst [smem:[#allocation62_spill]] %s10562_s27 }
  0x24   :  { %11877 = sst [smem:[#allocation63_spill]] %s10567_s4 }
  0x25   :  { %s10572_s21 = sld [smem:[%s11829_s0 + %s10377_s7]]   ;;  %s10381_s7 = smov 22  }
  0x26   :  { %s10577_s29 = sld [smem:[%s11829_s0 + %s10378_s15]]   ;;  %s10382_s15 = smov 23  }
  0x27   :  { %s10582_s17 = sld [smem:[%s11829_s0 + %s10379_s22]]   ;;  %s10383_s22 = smov 24  }
  0x28   :  { %s10587_s8 = sld [smem:[%s11829_s0 + %s10380_s28]]   ;;  %s10384_s28 = smov 25  }
  0x29   :  { %s10592_s19 = sld [smem:[%s11829_s0 + %s10381_s7]]   ;;  %s10385_s7 = smov 26  }
  0x2a   :  { %s10597_s25 = sld [smem:[%s11829_s0 + %s10382_s15]]   ;;  %s10386_s15 = smov 27  }
  0x2b   :  { %11878 = sst [smem:[#allocation64_spill]] %s10572_s21 }
  0x2c   :  { %11879 = sst [smem:[#allocation65_spill]] %s10577_s29 }
  0x2d   :  { %11880 = sst [smem:[#allocation66_spill]] %s10582_s17 }
  0x2e   :  { %11881 = sst [smem:[#allocation67_spill]] %s10587_s8 }
  0x2f   :  { %11882 = sst [smem:[#allocation68_spill]] %s10592_s19 }
  0x30   :  { %11883 = sst [smem:[#allocation69_spill]] %s10597_s25 }
  0x31   :  { %s10602_s3 = sld [smem:[%s11829_s0 + %s10383_s22]]   ;;  %s10387_s22 = smov 28  }
  0x32   :  { %s10607_s9 = sld [smem:[%s11829_s0 + %s10384_s28]]   ;;  %s10388_s28 = smov 29  }
  0x33   :  { %s10612_s14 = sld [smem:[%s11829_s0 + %s10385_s7]]   ;;  %s10389_s7 = smov 30  }
  0x34   :  { %s10617_s13 = sld [smem:[%s11829_s0 + %s10386_s15]]   ;;  %s10390_s15 = smov 31  }
  0x35   :  { %s10622_s24 = sld [smem:[%s11829_s0 + %s10387_s22]]   ;;  %s10391_s22 = smov 32  }
  0x36   :  { %s10627_s6 = sld [smem:[%s11829_s0 + %s10388_s28]]   ;;  %s10392_s28 = smov 33  }
  0x37   :  { %11884 = sst [smem:[#allocation70_spill]] %s10602_s3 }
  0x38   :  { %11885 = sst [smem:[#allocation71_spill]] %s10607_s9 }
  0x39   :  { %11886 = sst [smem:[#allocation72_spill]] %s10612_s14 }
  0x3a   :  { %11887 = sst [smem:[#allocation73_spill]] %s10617_s13 }
  0x3b   :  { %11888 = sst [smem:[#allocation74_spill]] %s10622_s24 }
  0x3c   :  { %s10632_s25 = sld [smem:[%s11829_s0 + %s10389_s7]]   ;;  %s10393_s7 = smov 34  }
  0x3d   :  { %s10637_s13 = sld [smem:[%s11829_s0 + %s10390_s15]]   ;;  %s10394_s15 = smov 35  }
  0x3e   :  { %s10642_s24 = sld [smem:[%s11829_s0 + %s10391_s22]]   ;;  %s10395_s22 = smov 36  }
  0x3f   :  { %s10647_s14 = sld [smem:[%s11829_s0 + %s10392_s28]]   ;;  %s10396_s28 = smov 37  }
  0x40   :  { %s10652_s12 = sld [smem:[%s11829_s0 + %s10393_s7]]   ;;  %s10397_s7 = smov 38  }
  0x41   :  { %s10667_s4 = sld [smem:[%s11829_s0 + %s10396_s28]]   ;;  %s10400_s28 = smov 41  }
  0x42   :  { %s10672_s19 = sld [smem:[%s11829_s0 + %s10397_s7]]   ;;  %s10401_s7 = smov 42  }
  0x43   :  { %11889 = sst [smem:[#allocation75_spill]] %s10637_s13 }
  0x44   :  { %11890 = sst [smem:[#allocation76_spill]] %s10642_s24 }
  0x45   :  { %s10657_s13 = sld [smem:[%s11829_s0 + %s10394_s15]]   ;;  %s10398_s15 = smov 39  }
  0x46   :  { %s10662_s24 = sld [smem:[%s11829_s0 + %s10395_s22]]   ;;  %s10399_s22 = smov 40  }
  0x47   :  { %11891 = sst [smem:[#allocation77_spill]] %s10667_s4 }
  0x48   :  { %11892 = sst [smem:[#allocation78_spill]] %s10672_s19 }
  0x49   :  { %s10677_s9 = sld [smem:[%s11829_s0 + %s10398_s15]]   ;;  %s10402_s15 = smov 43  }
  0x4a   :  { %s10682_s30 = sld [smem:[%s11829_s0 + %s10399_s22]]   ;;  %s10403_s22 = smov 44  }
  0x4b   :  { %s10687_s4 = sld [smem:[%s11829_s0 + %s10400_s28]]   ;;  %s10404_s28 = smov 45  }
  0x4c   :  { %s10692_s19 = sld [smem:[%s11829_s0 + %s10401_s7]]   ;;  %s10405_s7 = smov 46  }
  0x4d   :  { %s10697_s17 = sld [smem:[%s11829_s0 + %s10402_s15]]   ;;  %s10406_s15 = smov 47  }
  0x4e   :  { %s10702_s27 = sld [smem:[%s11829_s0 + %s10403_s22]]   ;;  %s10407_s22 = smov 48  }
  0x4f   :  { %s10707_s8 = sld [smem:[%s11829_s0 + %s10404_s28]]   ;;  %s10408_s28 = smov 49  }
  0x50   :  { %s10712_s3 = sld [smem:[%s11829_s0 + %s10405_s7]]   ;;  %s10409_s7 = smov 50  }
  0x51   :  { %s10727_s29 = sld [smem:[%s11829_s0 + %s10408_s28]]   ;;  %s10412_s28 = smov 53  }
  0x52   :  { %s10732_s20 = sld [smem:[%s11829_s0 + %s10409_s7]]   ;;  %s10413_s7 = smov 54  }
  0x53   :  { %11893 = sst [smem:[#allocation79_spill]] %s10697_s17 }
  0x54   :  { %11894 = sst [smem:[#allocation80_spill]] %s10702_s27 }
  0x55   :  { %s10717_s17 = sld [smem:[%s11829_s0 + %s10406_s15]]   ;;  %s10410_s15 = smov 51  }
  0x56   :  { %s10722_s27 = sld [smem:[%s11829_s0 + %s10407_s22]]   ;;  %s10411_s22 = smov 52  }
  0x57   :  { %11896 = sst [smem:[#allocation82_spill]] %s10727_s29 }
  0x58   :  { %11897 = sst [smem:[#allocation83_spill]] %s10732_s20 }
  0x59   :  { %s10737_s21 = sld [smem:[%s11829_s0 + %s10410_s15]]   ;;  %s10414_s15 = smov 55  }
  0x5a   :  { %s10742_s5 = sld [smem:[%s11829_s0 + %s10411_s22]]   ;;  %s10415_s22 = smov 56  }
  0x5b   :  { %11895 = sst [smem:[#allocation81_spill]] %s10717_s17 }
  0x5c   :  { %s10747_s29 = sld [smem:[%s11829_s0 + %s10412_s28]]   ;;  %s10416_s28 = smov 57  }
  0x5d   :  { %s10752_s20 = sld [smem:[%s11829_s0 + %s10413_s7]]   ;;  %s10417_s7 = smov 58  }
  0x5e   :  { %s10767_s17 = sld [smem:[%s11829_s0 + %s10416_s28]]  }
  0x5f   :  { %11898 = sst [smem:[#allocation84_spill]] %s10737_s21 }
  0x60   :  { %11899 = sst [smem:[#allocation85_spill]] %s10742_s5 }
  0x61   :  { %s10757_s21 = sld [smem:[%s11829_s0 + %s10414_s15]]   ;;  %s10418_s15 = smov 59  }
  0x62   :  { %s10762_s5 = sld [smem:[%s11829_s0 + %s10415_s22]]  }
  0x63   :  { %11900 = sst [smem:[#allocation86_spill]] %s10752_s20 }
  0x64   :  { %s10772_s20 = sld [smem:[%s11829_s0 + %s10417_s7]]  }
  0x67   :  { %11901 = sst [smem:[#allocation87_spill]] %s10757_s21 }
  0x68   :  { %s10777_s21 = sld [smem:[%s11829_s0 + %s10418_s15]]  }
  0x69   :  { %125 = vsyncpa [#allocation3], 0 }
  0x6a   :  { %126 = vsyncpa [#allocation6], 0 }
  0x6b   :  { %127 = vsyncpa [#allocation9], 0 }
  0x6c   :  { %128 = vsyncpa [#allocation12], 0 }
  0x6d   :  { %129 = vsyncpa [#allocation15], 0 }
  0x6e   :  { %130 = vsyncpa [#allocation18], 0 }
  0x6f   :  { %131 = vsyncpa [#allocation21], 0 }
  0x70   :  { %132 = vsyncpa [#allocation24], 0 }
  0x71   :  { %133 = vsyncpa [#allocation27], 0 }
  0x72   :  { %134 = vsyncpa [#allocation30], 0 }
  0x73   :  { %135 = vsyncpa [#allocation4], 0 }
  0x74   :  { %136 = vsyncpa [#allocation33], 0  ;;  %s10419_s22 = smov [#allocation5]   ;;  %s10420_s26 = smov [#allocation8]  }
  0x75   :  { %s211_s23 = sshll.u32 %s10419_s22, 4  ;;  %s235_s28 = sshll.u32 %s10420_s26, 4  ;;  %s212_s23 = int_to_ptr.vmem [resolvable:$true] %s211_s23  ;;  %s236_s28 = int_to_ptr.vmem [resolvable:$true] %s235_s28 }
  0x76   :  { %s9944_s0 = scalar_lea.vmem %s212_s23, 16  ;;  %s9948_s1 = scalar_lea.vmem %s212_s23, 32 }
  0x77   :  { %p9945_p0 = scmp.ne.s32.totalorder %s212_s23, %s9944_s0  ;;  %p9949_p1 = scmp.lt.s32.totalorder %s212_s23, %s212_s23 }
  0x78   :  { %p9950_p2 = scmp.lt.s32.totalorder %s9948_s1, %s9944_s0 }
  0x7a   :  { %p9951_p3 = por %p9950_p2, %p9949_p1 }
  0x7c   :  { %p9952_p4 = pnand %p9951_p3, %p9945_p0 }
  0x7e   :  { %9955 = shalt.err (!%p9952_p4)
}
  0x7f   :  { %214 = dma.hbm_to_vmem [thread:$0]  %s10632_s25, 16, %s212_s23, [#allocation6]  }
  0x80   :  { %s9964_s2 = scalar_lea.vmem %s236_s28, 16  ;;  %s9968_s7 = scalar_lea.vmem %s236_s28, 32 }
  0x81   :  { %p9965_p5 = scmp.ne.s32.totalorder %s236_s28, %s9964_s2  ;;  %p9969_p6 = scmp.lt.s32.totalorder %s236_s28, %s236_s28 }
  0x82   :  { %p9970_p7 = scmp.lt.s32.totalorder %s9968_s7, %s9964_s2 }
  0x84   :  { %p9971_p8 = por %p9970_p7, %p9969_p6 }
  0x86   :  { %p9972_p9 = pnand %p9971_p8, %p9965_p5 }
  0x88   :  { %9975 = shalt.err (!%p9972_p9)
}
  0x89   :  { %238 = dma.hbm_to_vmem [thread:$0]  %s10652_s12, 16, %s236_s28, [#allocation9]  }
  0x8a   :  { %s10421_s10 = smov [#allocation11]   ;;  %s10422_s15 = smov [#allocation14]  }
  0x8b   :  { %s255_s11 = sshll.u32 %s10421_s10, 4  ;;  %s279_s16 = sshll.u32 %s10422_s15, 4  ;;  %s256_s11 = int_to_ptr.vmem [resolvable:$true] %s255_s11  ;;  %s280_s16 = int_to_ptr.vmem [resolvable:$true] %s279_s16 }
  0x8c   :  { %s9984_s18 = scalar_lea.vmem %s256_s11, 16  ;;  %s9988_s22 = scalar_lea.vmem %s256_s11, 32 }
  0x8d   :  { %p9985_p10 = scmp.ne.s32.totalorder %s256_s11, %s9984_s18  ;;  %p9989_p11 = scmp.lt.s32.totalorder %s256_s11, %s256_s11 }
  0x8e   :  { %p9990_p12 = scmp.lt.s32.totalorder %s9988_s22, %s9984_s18 }
  0x90   :  { %p9991_p13 = por %p9990_p12, %p9989_p11 }
  0x92   :  { %p9992_p0 = pnand %p9991_p13, %p9985_p10 }
  0x94   :  { %9995 = shalt.err (!%p9992_p0)
}
  0x95   :  { %258 = dma.hbm_to_vmem [thread:$0]  %s10662_s24, 16, %s256_s11, [#allocation12]  }
  0x96   :  { %s10004_s25 = scalar_lea.vmem %s280_s16, 16  ;;  %s10008_s23 = scalar_lea.vmem %s280_s16, 32 }
  0x97   :  { %p10005_p1 = scmp.ne.s32.totalorder %s280_s16, %s10004_s25  ;;  %p10009_p2 = scmp.lt.s32.totalorder %s280_s16, %s280_s16 }
  0x98   :  { %p10010_p3 = scmp.lt.s32.totalorder %s10008_s23, %s10004_s25 }
  0x9a   :  { %p10011_p4 = por %p10010_p3, %p10009_p2 }
  0x9c   :  { %p10012_p5 = pnand %p10011_p4, %p10005_p1 }
  0x9e   :  { %10015 = shalt.err (!%p10012_p5)
}
  0x9f   :  { %282 = dma.hbm_to_vmem [thread:$0]  %s10682_s30, 16, %s280_s16, [#allocation15]  }
  0xa0   :  { %s10423_s12 = smov [#allocation17]   ;;  %s10424_s28 = smov [#allocation20]  }
  0xa1   :  { %s299_s26 = sshll.u32 %s10423_s12, 4  ;;  %s323_s0 = sshll.u32 %s10424_s28, 4  ;;  %s300_s26 = int_to_ptr.vmem [resolvable:$true] %s299_s26  ;;  %s324_s0 = int_to_ptr.vmem [resolvable:$true] %s323_s0 }
  0xa2   :  { %s10024_s1 = scalar_lea.vmem %s300_s26, 16  ;;  %s10028_s2 = scalar_lea.vmem %s300_s26, 32 }
  0xa3   :  { %p10025_p6 = scmp.ne.s32.totalorder %s300_s26, %s10024_s1  ;;  %p10029_p7 = scmp.lt.s32.totalorder %s300_s26, %s300_s26 }
  0xa4   :  { %p10030_p8 = scmp.lt.s32.totalorder %s10028_s2, %s10024_s1 }
  0xa6   :  { %p10031_p9 = por %p10030_p8, %p10029_p7 }
  0xa8   :  { %p10032_p10 = pnand %p10031_p9, %p10025_p6 }
  0xaa   :  { %10035 = shalt.err (!%p10032_p10)
}
  0xab   :  { %302 = dma.hbm_to_vmem [thread:$0]  %s10692_s19, 16, %s300_s26, [#allocation18]  }
  0xac   :  { %s10044_s24 = scalar_lea.vmem %s324_s0, 16  ;;  %s10048_s7 = scalar_lea.vmem %s324_s0, 32 }
  0xad   :  { %p10045_p11 = scmp.ne.s32.totalorder %s324_s0, %s10044_s24  ;;  %p10049_p12 = scmp.lt.s32.totalorder %s324_s0, %s324_s0 }
  0xae   :  { %p10050_p13 = scmp.lt.s32.totalorder %s10048_s7, %s10044_s24 }
  0xb0   :  { %p10051_p0 = por %p10050_p13, %p10049_p12 }
  0xb2   :  { %p10052_p1 = pnand %p10051_p0, %p10045_p11 }
  0xb4   :  { %10055 = shalt.err (!%p10052_p1)
}
  0xb5   :  { %326 = dma.hbm_to_vmem [thread:$0]  %s10712_s3, 16, %s324_s0, [#allocation21]  }
  0xb6   :  { %s10425_s30 = smov [#allocation23]   ;;  %s10426_s11 = smov [#allocation26]  }
  0xb7   :  { %s343_s10 = sshll.u32 %s10425_s30, 4  ;;  %s369_s15 = sshll.u32 %s10426_s11, 4  ;;  %s344_s10 = int_to_ptr.vmem [resolvable:$true] %s343_s10  ;;  %s370_s15 = int_to_ptr.vmem [resolvable:$true] %s369_s15 }
  0xb8   :  { %s10064_s16 = scalar_lea.vmem %s344_s10, 16  ;;  %s10068_s18 = scalar_lea.vmem %s344_s10, 32 }
  0xb9   :  { %p10065_p2 = scmp.ne.s32.totalorder %s344_s10, %s10064_s16  ;;  %p10069_p3 = scmp.lt.s32.totalorder %s344_s10, %s344_s10 }
  0xba   :  { %p10070_p4 = scmp.lt.s32.totalorder %s10068_s18, %s10064_s16 }
  0xbc   :  { %p10071_p5 = por %p10070_p4, %p10069_p3 }
  0xbe   :  { %p10072_p6 = pnand %p10071_p5, %p10065_p2 }
  0xc0   :  { %10075 = shalt.err (!%p10072_p6)
}
  0xc1   :  { %346 = dma.hbm_to_vmem [thread:$0]  %s10722_s27, 16, %s344_s10, [#allocation24]  }
  0xc2   :  { %s10084_s19 = scalar_lea.vmem %s370_s15, 16  ;;  %s10088_s22 = scalar_lea.vmem %s370_s15, 32 }
  0xc3   :  { %p10085_p7 = scmp.ne.s32.totalorder %s370_s15, %s10084_s19  ;;  %p10089_p8 = scmp.lt.s32.totalorder %s370_s15, %s370_s15 }
  0xc4   :  { %p10090_p9 = scmp.lt.s32.totalorder %s10088_s22, %s10084_s19 }
  0xc6   :  { %p10091_p10 = por %p10090_p9, %p10089_p8 }
  0xc8   :  { %p10092_p11 = pnand %p10091_p10, %p10085_p7 }
  0xca   :  { %10095 = shalt.err (!%p10092_p11)
}
  0xcb   :  { %372 = dma.hbm_to_vmem [thread:$0]  %s10747_s29, 16, %s370_s15, [#allocation27]  }
  0xcc   :  { %s10427_s3 = smov [#allocation2]   ;;  %s10428_s23 = smov [#allocation7]  }
  0xcd   :  { %s201_s25 = sshll.u32 %s10427_s3, 4  ;;  %s225_s12 = sshll.u32 %s10428_s23, 4  ;;  %s202_s25 = int_to_ptr.vmem [resolvable:$true] %s201_s25  ;;  %s226_s12 = int_to_ptr.vmem [resolvable:$true] %s225_s12 }
  0xce   :  { %s10104_s26 = scalar_lea.vmem %s202_s25, 16  ;;  %s10108_s28 = scalar_lea.vmem %s202_s25, 32 }
  0xcf   :  { %p10105_p12 = scmp.ne.s32.totalorder %s202_s25, %s10104_s26  ;;  %p10109_p13 = scmp.lt.s32.totalorder %s202_s25, %s202_s25 }
  0xd0   :  { %p10110_p0 = scmp.lt.s32.totalorder %s10108_s28, %s10104_s26 }
  0xd2   :  { %p10111_p1 = por %p10110_p0, %p10109_p13 }
  0xd4   :  { %p10112_p2 = pnand %p10111_p1, %p10105_p12 }
  0xd6   :  { %10115 = shalt.err (!%p10112_p2)
}
  0xd7   :  { %204 = dma.hbm_to_vmem [thread:$0]  %s10627_s6, 16, %s202_s25, [#allocation3]  }
  0xd8   :  { %s10124_s27 = scalar_lea.vmem %s226_s12, 16  ;;  %s10128_s0 = scalar_lea.vmem %s226_s12, 32 }
  0xd9   :  { %p10125_p3 = scmp.ne.s32.totalorder %s226_s12, %s10124_s27  ;;  %p10129_p4 = scmp.lt.s32.totalorder %s226_s12, %s226_s12 }
  0xda   :  { %p10130_p5 = scmp.lt.s32.totalorder %s10128_s0, %s10124_s27 }
  0xdc   :  { %p10131_p6 = por %p10130_p5, %p10129_p4 }
  0xde   :  { %p10132_p7 = pnand %p10131_p6, %p10125_p3 }
  0xe0   :  { %10135 = shalt.err (!%p10132_p7)
}
  0xe1   :  { %228 = dma.hbm_to_vmem [thread:$0]  %s10647_s14, 16, %s226_s12, [#allocation6]  }
  0xe2   :  { %s10429_s29 = smov [#allocation10]   ;;  %s10430_s2 = smov [#allocation13]  }
  0xe3   :  { %s245_s1 = sshll.u32 %s10429_s29, 4  ;;  %s269_s24 = sshll.u32 %s10430_s2, 4  ;;  %s246_s1 = int_to_ptr.vmem [resolvable:$true] %s245_s1  ;;  %s270_s24 = int_to_ptr.vmem [resolvable:$true] %s269_s24 }
  0xe4   :  { %s10144_s7 = scalar_lea.vmem %s246_s1, 16  ;;  %s10148_s30 = scalar_lea.vmem %s246_s1, 32 }
  0xe5   :  { %p10145_p8 = scmp.ne.s32.totalorder %s246_s1, %s10144_s7  ;;  %p10149_p9 = scmp.lt.s32.totalorder %s246_s1, %s246_s1 }
  0xe6   :  { %p10150_p10 = scmp.lt.s32.totalorder %s10148_s30, %s10144_s7 }
  0xe8   :  { %p10151_p11 = por %p10150_p10, %p10149_p9 }
  0xea   :  { %p10152_p12 = pnand %p10151_p11, %p10145_p8 }
  0xec   :  { %10155 = shalt.err (!%p10152_p12)
}
  0xed   :  { %248 = dma.hbm_to_vmem [thread:$0]  %s10657_s13, 16, %s246_s1, [#allocation9]  }
  0xee   :  { %s10164_s6 = scalar_lea.vmem %s270_s24, 16  ;;  %s10168_s10 = scalar_lea.vmem %s270_s24, 32 }
  0xef   :  { %p10165_p13 = scmp.ne.s32.totalorder %s270_s24, %s10164_s6  ;;  %p10169_p0 = scmp.lt.s32.totalorder %s270_s24, %s270_s24 }
  0xf0   :  { %p10170_p1 = scmp.lt.s32.totalorder %s10168_s10, %s10164_s6 }
  0xf2   :  { %p10171_p2 = por %p10170_p1, %p10169_p0 }
  0xf4   :  { %p10172_p3 = pnand %p10171_p2, %p10165_p13 }
  0xf6   :  { %10175 = shalt.err (!%p10172_p3)
}
  0xf7   :  { %272 = dma.hbm_to_vmem [thread:$0]  %s10677_s9, 16, %s270_s24, [#allocation12]  }
  0xf8   :  { %s10431_s14 = smov [#allocation16]   ;;  %s10432_s15 = smov [#allocation19]  }
  0xf9   :  { %s289_s11 = sshll.u32 %s10431_s14, 4  ;;  %s313_s16 = sshll.u32 %s10432_s15, 4  ;;  %s290_s11 = int_to_ptr.vmem [resolvable:$true] %s289_s11  ;;  %s314_s16 = int_to_ptr.vmem [resolvable:$true] %s313_s16 }
  0xfa   :  { %s10184_s18 = scalar_lea.vmem %s290_s11, 16  ;;  %s10188_s19 = scalar_lea.vmem %s290_s11, 32 }
  0xfb   :  { %p10185_p4 = scmp.ne.s32.totalorder %s290_s11, %s10184_s18  ;;  %p10189_p5 = scmp.lt.s32.totalorder %s290_s11, %s290_s11 }
  0xfc   :  { %p10190_p6 = scmp.lt.s32.totalorder %s10188_s19, %s10184_s18 }
  0xfe   :  { %p10191_p7 = por %p10190_p6, %p10189_p5 }
 0x100   :  { %p10192_p8 = pnand %p10191_p7, %p10185_p4 }
 0x102   :  { %10195 = shalt.err (!%p10192_p8)
}
 0x103   :  { %292 = dma.hbm_to_vmem [thread:$0]  %s10687_s4, 16, %s290_s11, [#allocation15]  }
 0x104   :  { %s10204_s13 = scalar_lea.vmem %s314_s16, 16  ;;  %s10208_s22 = scalar_lea.vmem %s314_s16, 32 }
 0x105   :  { %p10205_p9 = scmp.ne.s32.totalorder %s314_s16, %s10204_s13  ;;  %p10209_p10 = scmp.lt.s32.totalorder %s314_s16, %s314_s16 }
 0x106   :  { %p10210_p11 = scmp.lt.s32.totalorder %s10208_s22, %s10204_s13 }
 0x108   :  { %p10211_p12 = por %p10210_p11, %p10209_p10 }
 0x10a   :  { %p10212_p13 = pnand %p10211_p12, %p10205_p9 }
 0x10c   :  { %10215 = shalt.err (!%p10212_p13)
}
 0x10d   :  { %316 = dma.hbm_to_vmem [thread:$0]  %s10707_s8, 16, %s314_s16, [#allocation18]  }
 0x10e   :  { %s10433_s9 = smov [#allocation22]   ;;  %s10434_s25 = smov [#allocation25]  }
 0x10f   :  { %s333_s3 = sshll.u32 %s10433_s9, 4  ;;  %s359_s23 = sshll.u32 %s10434_s25, 4  ;;  %s334_s3 = int_to_ptr.vmem [resolvable:$true] %s333_s3  ;;  %s360_s23 = int_to_ptr.vmem [resolvable:$true] %s359_s23 }
 0x110   :  { %s10224_s12 = scalar_lea.vmem %s334_s3, 16  ;;  %s10228_s26 = scalar_lea.vmem %s334_s3, 32 }
 0x111   :  { %p10225_p0 = scmp.ne.s32.totalorder %s334_s3, %s10224_s12  ;;  %p10229_p1 = scmp.lt.s32.totalorder %s334_s3, %s334_s3 }
 0x112   :  { %p10230_p2 = scmp.lt.s32.totalorder %s10228_s26, %s10224_s12 }
 0x114   :  { %p10231_p3 = por %p10230_p2, %p10229_p1 }
 0x116   :  { %p10232_p4 = pnand %p10231_p3, %p10225_p0 }
 0x118   :  { %10235 = shalt.err (!%p10232_p4)
}
 0x119   :  { %s11902_s4 = sld [smem:[#allocation81_spill]]  ;;  %s10244_s28 = scalar_lea.vmem %s360_s23, 16 }
 0x11a   :  { %p10245_p5 = scmp.ne.s32.totalorder %s360_s23, %s10244_s28  ;;  %s10248_s27 = scalar_lea.vmem %s360_s23, 32 }
 0x11b   :  { %p10249_p6 = scmp.lt.s32.totalorder %s360_s23, %s360_s23  ;;  %p10250_p7 = scmp.lt.s32.totalorder %s10248_s27, %s10244_s28 }
 0x11d   :  { %p10251_p8 = por %p10250_p7, %p10249_p6 }
 0x11f   :  { %336 = dma.hbm_to_vmem [thread:$0]  %s11902_s4, 16, %s334_s3, [#allocation21]  }
 0x120   :  { %p10252_p9 = pnand %p10251_p8, %p10245_p5 }
 0x122   :  { %10255 = shalt.err (!%p10252_p9)
}
 0x123   :  { %s11903_s8 = sld [smem:[#allocation85_spill]]  ;;  %s10435_s0 = smov [#allocation28]  }
 0x124   :  { %s379_s29 = sshll.u32 %s10435_s0, 4  ;;  %s10436_s1 = smov [#allocation29]   ;;  %s380_s29 = int_to_ptr.vmem [resolvable:$true] %s379_s29 }
 0x125   :  { %s388_s2 = sshll.u32 %s10436_s1, 4  ;;  %s10264_s24 = scalar_lea.vmem %s380_s29, 128  ;;  %s389_s2 = int_to_ptr.vmem [resolvable:$true] %s388_s2 }
 0x126   :  { %p10265_p10 = scmp.ne.s32.totalorder %s380_s29, %s10264_s24  ;;  %p10269_p11 = scmp.lt.s32.totalorder %s380_s29, %s380_s29 }
 0x127   :  { %p10270_p12 = scmp.lt.s32.totalorder %s10264_s24, %s10264_s24 }
 0x129   :  { %362 = dma.hbm_to_vmem [thread:$0]  %s11903_s8, 16, %s360_s23, [#allocation24]  }
 0x12a   :  { %p10271_p13 = por %p10270_p12, %p10269_p11 }
 0x12c   :  { %p10272_p0 = pnand %p10271_p13, %p10265_p10 }
 0x12e   :  { %10275 = shalt.err (!%p10272_p0)
}
 0x12f   :  { %s11904_s7 = sld [smem:[#allocation86_spill]]  ;;  %s10284_s30 = scalar_lea.vmem %s389_s2, 256 }
 0x130   :  { %p10285_p1 = scmp.ne.s32.totalorder %s389_s2, %s10284_s30  ;;  %p10289_p2 = scmp.lt.s32.totalorder %s389_s2, %s389_s2 }
 0x131   :  { %p10290_p3 = scmp.lt.s32.totalorder %s10284_s30, %s10284_s30 }
 0x133   :  { %p10291_p4 = por %p10290_p3, %p10289_p2 }
 0x135   :  { %382 = dma.hbm_to_vmem [thread:$0]  %s11904_s7, 128, %s380_s29, [#allocation27]  }
 0x136   :  { %p10292_p5 = pnand %p10291_p4, %p10285_p1 }
 0x138   :  { %10295 = shalt.err (!%p10292_p5)
}
 0x139   :  { %s10437_s6 = smov 128   ;;  %s11905_s10 = sld [smem:[#allocation87_spill]] }
 0x13a   :  { %s10438_s14 = smov 8  }
 0x13f   :  { %394 = dma.hbm_to_vmem [thread:$0]  %s11905_s10, 256, %s389_s2, [#allocation30], %s10437_s6, %s10437_s6, %s10438_s14  }
 0x140   :  { %10336 = dma.done.wait [#allocation3], 16  }
 0x141   :  { %10337 = vsyncadd [#allocation3], 4294967280 }
 0x142   :  { %10338 = dma.done.wait [#allocation6], 32  }
 0x143   :  { %10339 = vsyncadd [#allocation6], 4294967264 }
 0x144   :  { %10340 = dma.done.wait [#allocation9], 32  }
 0x145   :  { %10341 = vsyncadd [#allocation9], 4294967264 }
 0x146   :  { %10342 = dma.done.wait [#allocation12], 32  }
 0x147   :  { %10343 = vsyncadd [#allocation12], 4294967264 }
 0x148   :  { %10344 = dma.done.wait [#allocation15], 32  }
 0x149   :  { %10345 = vsyncadd [#allocation15], 4294967264 }
 0x14a   :  { %10346 = dma.done.wait [#allocation18], 32  }
 0x14b   :  { %10347 = vsyncadd [#allocation18], 4294967264 }
 0x14c   :  { %10348 = dma.done.wait [#allocation21], 32  }
 0x14d   :  { %10349 = vsyncadd [#allocation21], 4294967264 }
 0x14e   :  { %10350 = dma.done.wait [#allocation24], 32  }
 0x14f   :  { %10351 = vsyncadd [#allocation24], 4294967264 }
 0x150   :  { %10352 = dma.done.wait [#allocation27], 144  }
 0x151   :  { %10353 = vsyncadd [#allocation27], 4294967152 }
 0x152   :  { %10354 = dma.done.wait [#allocation30], 256  }
 0x153   :  { %10355 = vsyncadd [#allocation30], 4294967040  ;;  %s11906_s11 = sld [smem:[#allocation46_spill]]  ;;  %vm599_vm0 = vcmask 1045504   ;;  %vm592_vm1 = vcmask 48128   ;;  %v583_v3 = vld [vmem:[#allocation29 + $0x8] sm:$0xff]  ;;  %v962_v33 = vlaneseq }
 0x154   :  { %s11907_s15 = sld [smem:[#allocation84_spill]]  ;;  %v581_v0 = vld [vmem:[#allocation28] sm:$0x3f]  ;;  %v582_v4 = vld [vmem:[#allocation29] sm:$0xff]  ;;  %vm686_vm2 = vcmask 130048   ;;  %v10439_v7 = vmov 0.0  }
 0x155   :  { %9041 = vmatprep.subr.msk.mxu0 %vm599_vm0, %v581_v0  ;;  %9064 = vmatprep.subr.mxu1 %v10439_v7  ;;  %v8583_v10 = vld [vmem:[#allocation25] ss:$0 sm:$0xff]  ;;  %vm10440_vm3 = vmmov 0   ;;  %v10441_v21 = vmov 1.0   ;;  %v8587_v23 = vld [vmem:[#allocation26] ss:$0 sm:$0xff] }
 0x156   :  { %9042 = vmatpush3.msk.msra.mxu0 %vm599_vm0, %v581_v0  ;;  %9072 = vmatprep.mubr.msk.f32.mxu1 %vm10440_vm3, %v10439_v7  ;;  %v963_v34 = vshrl.u32 %v962_v33, 7  ;;  %vm970_vm4 = vcmask 261120   ;;  %v969_v49 = vand.u32 127, %v962_v33  ;;  %s11908_s16 = sld [smem:[#allocation64_spill]]  ;;  %s10442_s19 = smov 6   ;;  %vm1170_vm11 = vcmask 179200  }
 0x157   :  { %9046 = vmatprep.subr.mxu0 %v583_v3  ;;  %s11909_s18 = sld [smem:[#allocation61_spill]]  ;;  %s10443_s1 = smov 96   ;;  %vm1889_vm12 = vcmask 31744   ;;  %vm2043_vm13 = vcmask 64512   ;;  %vm4602_vm14 = vcmask 97280   ;;  %vm4607_vm15 = vcmask 162816  }
 0x158   :  { %v964_v38 = vsub.s32 0, %v963_v34  ;;  %s11910_s13 = sld [smem:[#allocation65_spill]]  ;;  %s10444_s7 = smov 64  }
 0x159   :  { %v10799_v1 = vld [vmem:[%s11906_s11] sm:$0xff]  ;;  %v10802_v2 = vld [vmem:[%s11906_s11 + $0x8] sm:$0xff]  ;;  %s11911_s22 = sld [smem:[#allocation70_spill]]  ;;  %s10445_s30 = smov 92  }
 0x15a   :  { %9043 = vmatprep.mubr.msk.f32.mxu0 %vm592_vm1, %v10799_v1  ;;  %v578_v5 = vld [vmem:[%s11907_s15 + $0x18] sm:$0xff]  ;;  %v577_v8 = vld [vmem:[%s11907_s15 + $0x10] sm:$0xff]  ;;  %v576_v17 = vld [vmem:[%s11907_s15 + $0x8] sm:$0xff]  ;;  %s11912_s9 = sld [smem:[#allocation67_spill]]  ;;  %s10446_s6 = smov 124  }
 0x15b   :  { %9044 = vmatmul.mubr.msk.f32.vlgmr.msra.gmra.mxu0 %vm592_vm1, %v10802_v2  ;;  %v872_v6 = vmul.f32 %v578_v5, %v578_v5  ;;  %v871_v9 = vmul.f32 %v577_v8, %v577_v8  ;;  %v870_v18 = vmul.f32 %v576_v17, %v576_v17  ;;  %v575_v19 = vld [vmem:[%s11907_s15] sm:$0xff]  ;;  %s11913_s3 = sld [smem:[#allocation62_spill]]  ;;  %s10447_s10 = smov 60  }
 0x15c   :  { %9047 = vmatpush3.msra.mxu0 %v583_v3  ;;  %v869_v20 = vmul.f32 %v575_v19, %v575_v19  ;;  %s11914_s25 = sld [smem:[#allocation66_spill]]  ;;  %s10448_s11 = smov 88  }
 0x15d   :  { %9048 = vmatprep.subr.mxu0 %v582_v4  ;;  %9065 = vmatpush3.xpose.msk.msra.mxu1 %vm686_vm2, %v872_v6  ;;  %v8605_v33 = vld [vmem:[%s11909_s18] ss:$0 sm:$0xff]  ;;  %s11915_s23 = sld [smem:[#allocation58_spill]]  ;;  %s10449_s15 = smov 120  }
 0x15e   :  { %9049 = vmatpush3.msra.mxu0 %v582_v4  ;;  %9066 = vmatprep.subr.mxu1 %v10439_v7  ;;  %s11916_s12 = sld [smem:[#allocation71_spill]]  ;;  %s10451_s18 = smov 84  }
 0x15f   :  { %9053 = vmatprep.subr.msk.mxu0 %vm686_vm2, %v578_v5  ;;  %s11917_s26 = sld [smem:[#allocation68_spill]] }
 0x160   :  { %s11918_s4 = sld [smem:[#allocation63_spill]] }
 0x161   :  { %9067 = vmatpush3.xpose.msk.msra.mxu1 %vm686_vm2, %v871_v9  ;;  %s11919_s28 = sld [smem:[#allocation60_spill]] }
 0x162   :  { %9068 = vmatprep.subr.mxu1 %v10439_v7  ;;  %s11920_s27 = sld [smem:[#allocation72_spill]] }
 0x163   :  { %s11921_s8 = sld [smem:[#allocation69_spill]] }
 0x164   :  { %s11922_s0 = sld [smem:[#allocation59_spill]] }
 0x165   :  { %9069 = vmatpush3.xpose.msk.msra.mxu1 %vm686_vm2, %v870_v18  ;;  %s11923_s29 = sld [smem:[#allocation57_spill]] }
 0x166   :  { %9070 = vmatprep.subr.mxu1 %v10439_v7  ;;  %s11924_s2 = sld [smem:[#allocation78_spill]] }
 0x167   :  { %s11925_s24 = sld [smem:[#allocation74_spill]] }
 0x169   :  { %9071 = vmatpush3.xpose.msk.msra.mxu1 %vm686_vm2, %v869_v20 }
 0x16c   :  { %9073 = vmatmul.mubr.msk.f32.vlgmr.msra.gmra.mxu1 %vm686_vm2, %v10441_v21 }
 0x21b   :  { %v9045_v11 = vpop.f32.mrf.mxu0 }
 0x21c   :  { %v675_v12 = vadd.f32 %v9045_v11, %v8583_v10 }
 0x21d   :  { %v669_v13 = vpop.f32.mrf.mxu0 }
 0x21e   :  { %v670_v14 = vadd.f32 %v8583_v10, %v669_v13  ;;  %v679_v16 = vmax.f32 %v675_v12, 0.0 }
 0x220   :  { %v678_v15 = vmax.f32 %v670_v14, 0.0 }
 0x222   :  { %9050 = vmatprep.mubr.msk.f32.mxu0 %vm686_vm2, %v678_v15 }
 0x223   :  { %9051 = vmatmul.mubr.msk.f32.vlgmr.msra.gmra.mxu0 %vm686_vm2, %v679_v16 }
 0x224   :  { %9054 = vmatpush3.xpose.msk.msra.mxu0 %vm686_vm2, %v578_v5 }
 0x225   :  { %9055 = vmatprep.subr.msk.mxu0 %vm686_vm2, %v577_v8 }
 0x228   :  { %9056 = vmatpush3.xpose.msk.msra.mxu0 %vm686_vm2, %v577_v8 }
 0x229   :  { %9057 = vmatprep.subr.msk.mxu0 %vm686_vm2, %v576_v17 }
 0x22c   :  { %9058 = vmatpush3.xpose.msk.msra.mxu0 %vm686_vm2, %v576_v17  ;;  %v954_v31 = vpop.f32.mrf.mxu1 }
 0x22d   :  { %9059 = vmatprep.subr.msk.mxu0 %vm686_vm2, %v575_v19  ;;  %v965_v44 = vrot.slane %v954_v31, %v964_v38 }
 0x22e   :  { %v9074_v32 = vpop.f32.mrf.mxu1 }
 0x230   :  { %9060 = vmatpush3.xpose.msk.msra.mxu0 %vm686_vm2, %v575_v19 }
 0x231   :  { %9075 = vmatprep.subr.mxu0 %v578_v5 }
 0x2e3   :  { %v9052_v22 = vpop.f32.mrf.mxu0 }
 0x2e4   :  { %v10835_v25 = vadd.f32 %v9052_v22, %v8587_v23  ;;  %v488_v22 = vld [vmem:[%s11908_s16 + $0x10] sm:$0x3f] }
 0x2e5   :  { %v759_v24 = vpop.f32.mrf.mxu0  ;;  %9086 = vmatprep.subr.msk.mxu1 %vm599_vm0, %v488_v22 }
 0x2e6   :  { %v10837_v26 = vadd.f32 %v8587_v23, %v759_v24  ;;  %v862_v29 = vmul.f32 %v10835_v25, %v10835_v25  ;;  %9087 = vmatpush3.msk.msra.mxu1 %vm599_vm0, %v488_v22  ;;  %v487_v23 = vld [vmem:[%s11908_s16 + $0x8] sm:$0xff]  ;;  %v486_v24 = vld [vmem:[%s11908_s16] sm:$0xff]  ;;  %s10450_s16 = smov 56  }
 0x2e7   :  { %9088 = vmatprep.subr.mxu1 %v487_v23 }
 0x2e8   :  { %9061 = vmatprep.mubr.msk.f32.mxu0 %vm686_vm2, %v10837_v26  ;;  %v861_v27 = vmul.f32 %v10837_v26, %v10837_v26  ;;  %v866_v30 = vsel %vm686_vm2, %v862_v29, 0.0  ;;  %9089 = vmatpush3.msra.mxu1 %v487_v23 }
 0x2e9   :  { %9062 = vmatmul.mubr.msk.f32.vlgmr.msra.gmra.mxu0 %vm686_vm2, %v10835_v25  ;;  %9090 = vmatprep.subr.mxu1 %v486_v24 }
 0x2ea   :  { %v863_v28 = vsel %vm686_vm2, %v861_v27, 0.0  ;;  %9076 = vmatpush3.msra.mxu0 %v578_v5  ;;  %9091 = vmatpush3.msra.mxu1 %v486_v24 }
 0x2eb   :  { %864 = vadd.xlane.f32.xlu0 %v863_v28  ;;  %9077 = vmatprep.subr.mxu0 %v577_v8 }
 0x2ec   :  { %9078 = vmatpush3.msra.mxu0 %v577_v8 }
 0x2ed   :  { %9079 = vmatprep.subr.mxu0 %v576_v17 }
 0x2ee   :  { %9080 = vmatpush3.msra.mxu0 %v576_v17 }
 0x2ef   :  { %867 = vadd.xlane.f32.xlu0 %v866_v30  ;;  %9081 = vmatprep.subr.mxu0 %v575_v19 }
 0x2f0   :  { %9082 = vmatpush3.msra.mxu0 %v575_v19 }
 0x374   :  { %v865_v35 = vpop.xlane.xlu0 %864 }
 0x378   :  { %v868_v41 = vpop.xlane.xlu0 %867 }
 0x3a9   :  { %v9063_v36 = vpop.f32.mrf.mxu0 }
 0x3aa   :  { %v959_v37 = vmul.f32 2.0, %v9063_v36 }
 0x3ab   :  { %v852_v39 = vpop.f32.mrf.mxu0 }
 0x3ac   :  { %v958_v40 = vmul.f32 2.0, %v852_v39  ;;  %v961_v42 = vsub.f32 %v868_v41, %v959_v37 }
 0x3ae   :  { %v960_v43 = vsub.f32 %v865_v35, %v958_v40  ;;  %v967_v47 = vadd.f32 %v965_v44, %v961_v42 }
 0x3b0   :  { %v966_v45 = vadd.f32 %v965_v44, %v960_v43  ;;  %v974_v48 = vsel %vm970_vm4, %v967_v47, inf }
 0x3b2   :  { %v971_v46 = vsel %vm970_vm4, %v966_v45, inf }
 0x3b3   :  { %972 = vmin.xlane.f32.xlu1 %v971_v46 }
 0x3b7   :  { %975 = vmin.xlane.f32.xlu1 %v974_v48 }
 0x43c   :  { %v973_v50 = vpop.xlane.xlu1 %972 }
 0x43d   :  { %vm977_vm5 = vcmp.le.f32.partialorder %v966_v45, %v973_v50  ;;  %v492_v50 = vld [vmem:[%s11910_s13 + $0x18] sm:$0xff] }
 0x43e   :  { %v979_v51 = vsel %vm977_vm5, %v969_v49, 32  ;;  %9095 = vmatprep.subr.mxu0 %v492_v50  ;;  %vm1136_vm5 = vcmask 253952  }
 0x43f   :  { %v981_v52 = vsel %vm970_vm4, %v979_v51, 2147483647  ;;  %v491_v51 = vld [vmem:[%s11910_s13 + $0x10] sm:$0xff] }
 0x440   :  { %v976_v53 = vpop.xlane.xlu1 %975  ;;  %v983_v54 = vshra.s32 %v981_v52, 16  ;;  %v982_v60 = vand.u32 65535, %v981_v52  ;;  %v490_v52 = vld [vmem:[%s11910_s13 + $0x8] sm:$0xff] }
 0x441   :  { %vm978_vm6 = vcmp.le.f32.partialorder %v967_v47, %v976_v53  ;;  %v489_v53 = vld [vmem:[%s11910_s13] sm:$0xff]  ;;  %s10453_s13 = smov 52  }
 0x442   :  { %v980_v55 = vsel %vm978_vm6, %v969_v49, 32  ;;  %v985_v56 = vcvt.s32.f32 %v983_v54  ;;  %v984_v62 = vcvt.s32.f32 %v982_v60  ;;  %vm8081_vm6 = vcmask 1040384  }
 0x443   :  { %v996_v57 = vsel %vm970_vm4, %v980_v55, 2147483647 }
 0x444   :  { %986 = vmin.xlane.f32.xlu0 %v985_v56  ;;  %v998_v58 = vshra.s32 %v996_v57, 16  ;;  %v997_v63 = vand.u32 65535, %v996_v57 }
 0x446   :  { %v1000_v59 = vcvt.s32.f32 %v998_v58  ;;  %v999_v4 = vcvt.s32.f32 %v997_v63 }
 0x448   :  { %1001 = vmin.xlane.f32.xlu1 %v1000_v59 }
 0x4cd   :  { %v987_v61 = vpop.xlane.xlu0 %986 }
 0x4ce   :  { %vm988_vm7 = vcmp.eq.f32.partialorder %v985_v56, %v987_v61  ;;  %v993_v6 = vcvt.f32.s32 %v987_v61  ;;  %v8609_v61 = vld [vmem:[%s11911_s22] ss:$0 sm:$0xff]  ;;  %s10454_s22 = smov 80  }
 0x4cf   :  { %v989_v0 = vsel %vm988_vm7, %v984_v62, inf }
 0x4d0   :  { %990 = vmin.xlane.f32.xlu0 %v989_v0  ;;  %v994_v9 = vshll.u32 %v993_v6, 16 }
 0x4d1   :  { %v1002_v3 = vpop.xlane.xlu1 %1001 }
 0x4d2   :  { %vm1003_vm8 = vcmp.eq.f32.partialorder %v1000_v59, %v1002_v3  ;;  %v1008_v10 = vcvt.f32.s32 %v1002_v3 }
 0x4d3   :  { %v1004_v5 = vsel %vm1003_vm8, %v999_v4, inf  ;;  %v8610_v4 = vld [vmem:[%s11912_s9] ss:$0 sm:$0xff]  ;;  %s10455_s9 = smov 112  }
 0x4d4   :  { %1005 = vmin.xlane.f32.xlu1 %v1004_v5  ;;  %v1009_v14 = vshll.u32 %v1008_v10, 16 }
 0x559   :  { %v991_v8 = vpop.xlane.xlu0 %990 }
 0x55a   :  { %v992_v11 = vcvt.f32.s32 %v991_v8 }
 0x55c   :  { %v995_v12 = vadd.s32 %v994_v9, %v992_v11  ;;  %v8611_v9 = vld [vmem:[%s11913_s3] ss:$0 sm:$0xff]  ;;  %s10456_s3 = smov 48  }
 0x55d   :  { %v1006_v13 = vpop.xlane.xlu1 %1005 }
 0x55e   :  { %v1007_v15 = vcvt.f32.s32 %v1006_v13  ;;  %vm1011_vm9 = vcmp.eq.s32.totalorder %v969_v49, %v995_v12 }
 0x55f   :  { %v8601_v16 = vsel %vm1011_vm9, 1.0, %v10439_v7 }
 0x560   :  { %v1010_v17 = vadd.s32 %v1009_v14, %v1007_v15  ;;  %9083 = vmatprep.mubr.msk.f32.mxu0 %vm970_vm4, %v8601_v16  ;;  %v1121_v19 = vsel %vm970_vm4, %v8601_v16, 0.0 }
 0x562   :  { %vm1012_vm10 = vcmp.eq.s32.totalorder %v969_v49, %v1010_v17 }
 0x563   :  { %v8602_v18 = vsel %vm1012_vm10, 1.0, %v10439_v7 }
 0x564   :  { %v1122_v20 = vsel %vm970_vm4, %v8602_v18, 0.0  ;;  %9084 = vmatmul.mubr.msk.f32.vlgmr.msra.gmra.mxu0 %vm970_vm4, %v8602_v18 }
 0x565   :  { %v10859_v21 = vadd.f32 %v1122_v20, %v1121_v19  ;;  %9096 = vmatpush3.msra.mxu0 %v492_v50  ;;  %v8615_v50 = vld [vmem:[%s11917_s26] ss:$0 sm:$0xff]  ;;  %s10460_s26 = smov 72  }
 0x566   :  { %9097 = vmatprep.subr.mxu0 %v491_v51 }
 0x567   :  { %9098 = vmatpush3.msra.mxu0 %v491_v51 }
 0x568   :  { %9099 = vmatprep.subr.mxu0 %v490_v52 }
 0x569   :  { %9100 = vmatpush3.msra.mxu0 %v490_v52 }
 0x56a   :  { %9101 = vmatprep.subr.mxu0 %v489_v53 }
 0x56b   :  { %9102 = vmatpush3.msra.mxu0 %v489_v53 }
 0x624   :  { %v10866_v27 = vpop.f32.mrf.mxu0 }
 0x625   :  { %1158 = vrot.lane.b32.xlu1 %v10866_v27, %s10442_s19 }
 0x626   :  { %v10869_v28 = vpop.f32.mrf.mxu0 }
 0x627   :  { %1156 = vrot.lane.b32.xlu0 %v10869_v28, %s10442_s19  ;;  %s10452_s19 = smov 116  }
 0x697   :  { %v1159_v29 = vpop.permute.xlu1 %1158 }
 0x698   :  { %v10878_v32 = vsel %vm592_vm1, %v10802_v2, %v1159_v29 }
 0x699   :  { %v1157_v30 = vpop.permute.xlu0 %1156 }
 0x69a   :  { %v10874_v31 = vsel %vm592_vm1, %v10799_v1, %v1157_v30  ;;  %vm4610_vm1 = vcmask 195584  }
 0x69b   :  { %9092 = vmatprep.mubr.msk.f32.mxu1 %vm1170_vm11, %v10874_v31 }
 0x69c   :  { %9093 = vmatmul.mubr.msk.f32.vlgmr.msra.gmra.mxu1 %vm1170_vm11, %v10878_v32 }
 0x75c   :  { %v9094_v34 = vpop.f32.mrf.mxu1 }
 0x75d   :  { %v1252_v35 = vadd.f32 %v9094_v34, %v8605_v33 }
 0x75e   :  { %v1246_v36 = vpop.f32.mrf.mxu1 }
 0x75f   :  { %v1256_v37 = vmax.f32 %v1252_v35, 0.0  ;;  %v1247_v38 = vadd.f32 %v8605_v33, %v1246_v36  ;;  %v496_v35 = vld [vmem:[%s11914_s25 + $0x18] sm:$0xff]  ;;  %v495_v36 = vld [vmem:[%s11914_s25 + $0x10] sm:$0xff] }
 0x760   :  { %9106 = vmatprep.subr.mxu1 %v496_v35 }
 0x761   :  { %v1255_v39 = vmax.f32 %v1247_v38, 0.0  ;;  %v1260_v1 = vsel %vm970_vm4, %v1256_v37, 0.0  ;;  %9107 = vmatpush3.msra.mxu1 %v496_v35  ;;  %v493_v38 = vld [vmem:[%s11914_s25] sm:$0xff] }
 0x762   :  { %1261 = vadd.xlane.f32.xlu0 %v1260_v1  ;;  %9108 = vmatprep.subr.mxu1 %v495_v36  ;;  %v8620_v35 = vld [vmem:[%s11921_s8] ss:$0 sm:$0xff]  ;;  %s11850_s8 = smov 100  }
 0x763   :  { %v1257_v2 = vsel %vm970_vm4, %v1255_v39, 0.0  ;;  %9109 = vmatpush3.msra.mxu1 %v495_v36 }
 0x764   :  { %1258 = vadd.xlane.f32.xlu1 %v1257_v2 }
 0x7eb   :  { %v1262_v40 = vpop.xlane.xlu0 %1261 }
 0x7ec   :  { %v1265_v41 = vmul.f32 0.03125, %v1262_v40 }
 0x7ed   :  { %v1259_v42 = vpop.xlane.xlu1 %1258 }
 0x7ee   :  { %v1267_v43 = vsub.f32 %v1256_v37, %v1265_v41  ;;  %v1264_v44 = vmul.f32 0.03125, %v1259_v42  ;;  %v494_v37 = vld [vmem:[%s11914_s25 + $0x8] sm:$0xff]  ;;  %s10457_s25 = smov 76  }
 0x7ef   :  { %9110 = vmatprep.subr.mxu1 %v494_v37 }
 0x7f0   :  { %v1266_v45 = vsub.f32 %v1255_v39, %v1264_v44  ;;  %v1269_v46 = vmul.f32 %v1267_v43, %v1267_v43  ;;  %9111 = vmatpush3.msra.mxu1 %v494_v37  ;;  %v477_v39 = vld [vmem:[%s11915_s23 + $0x10] sm:$0x3f] }
 0x7f1   :  { %9112 = vmatprep.subr.mxu1 %v493_v38 }
 0x7f2   :  { %v1273_v47 = vsel %vm970_vm4, %v1269_v46, 0.0  ;;  %v1268_v48 = vmul.f32 %v1266_v45, %v1266_v45  ;;  %9113 = vmatpush3.msra.mxu1 %v493_v38 }
 0x7f3   :  { %1274 = vadd.xlane.f32.xlu1 %v1273_v47  ;;  %9128 = vmatprep.subr.msk.mxu1 %vm599_vm0, %v477_v39 }
 0x7f4   :  { %v1270_v49 = vsel %vm970_vm4, %v1268_v48, 0.0 }
 0x7f5   :  { %1271 = vadd.xlane.f32.xlu0 %v1270_v49 }
 0x87c   :  { %v1275_v54 = vpop.xlane.xlu1 %1274 }
 0x87d   :  { %v1277_v55 = vmul.f32 0.03125, %v1275_v54  ;;  %v476_v54 = vld [vmem:[%s11915_s23 + $0x8] sm:$0xff] }
 0x87e   :  { %v1272_v56 = vpop.xlane.xlu0 %1271 }
 0x87f   :  { %v1279_v57 = vadd.f32 1e-05, %v1277_v55  ;;  %v1276_v58 = vmul.f32 0.03125, %v1272_v56  ;;  %v475_v55 = vld [vmem:[%s11915_s23] sm:$0xff]  ;;  %s10458_s23 = smov 108  }
 0x880   :  { %v8616_v56 = vld [vmem:[%s11918_s4] ss:$0 sm:$0xff]  ;;  %s10461_s4 = smov 104  }
 0x881   :  { %9768 = vrsqrt.f32 %v1279_v57  ;;  %v1278_v59 = vadd.f32 1e-05, %v1276_v58 }
 0x883   :  { %9770 = vrsqrt.f32 %v1278_v59 }
 0x88e   :  { %v9769_v60 = vpop.eup %9768 }
 0x88f   :  { %v1283_v62 = vmul.f32 %v9769_v60, %v1267_v43 }
 0x890   :  { %v9771_v63 = vpop.eup %9770 }
 0x891   :  { %v1282_v0 = vmul.f32 %v9771_v63, %v1266_v45  ;;  %v1291_v3 = vmul.f32 %v8609_v61, %v1283_v62  ;;  %v8614_v45 = vld [vmem:[%s11916_s12] ss:$0 sm:$0xff]  ;;  %s10459_s12 = smov 44  }
 0x893   :  { %v1290_v5 = vmul.f32 %v8609_v61, %v1282_v0  ;;  %v1299_v8 = vadd.f32 %v8610_v4, %v1291_v3 }
 0x895   :  { %v1298_v6 = vadd.f32 %v8610_v4, %v1290_v5 }
 0x897   :  { %9103 = vmatprep.mubr.msk.f32.mxu0 %vm970_vm4, %v1298_v6 }
 0x898   :  { %9104 = vmatmul.mubr.msk.f32.vlgmr.msra.gmra.mxu0 %vm970_vm4, %v1299_v8 }
 0x958   :  { %v9105_v10 = vpop.f32.mrf.mxu0 }
 0x959   :  { %v1384_v11 = vadd.f32 %v9105_v10, %v8611_v9 }
 0x95a   :  { %v1378_v12 = vpop.f32.mrf.mxu0 }
 0x95b   :  { %v1388_v13 = vmax.f32 %v1384_v11, 0.0  ;;  %v1379_v14 = vadd.f32 %v8611_v9, %v1378_v12  ;;  %v482_v12 = vld [vmem:[%s11919_s28 + $0x18] sm:$0xff] }
 0x95c   :  { %9117 = vmatprep.subr.mxu0 %v482_v12 }
 0x95d   :  { %v1387_v15 = vmax.f32 %v1379_v14, 0.0  ;;  %v1392_v16 = vsel %vm970_vm4, %v1388_v13, 0.0  ;;  %9118 = vmatpush3.msra.mxu0 %v482_v12  ;;  %v480_v14 = vld [vmem:[%s11919_s28 + $0x8] sm:$0xff] }
 0x95e   :  { %1393 = vadd.xlane.f32.xlu1 %v1392_v16  ;;  %v536_v12 = vld [vmem:[%s11924_s2 + $0x8] sm:$0xff] }
 0x95f   :  { %v1389_v17 = vsel %vm970_vm4, %v1387_v15, 0.0 }
 0x960   :  { %1390 = vadd.xlane.f32.xlu0 %v1389_v17 }
 0x9e7   :  { %v1394_v18 = vpop.xlane.xlu1 %1393 }
 0x9e8   :  { %v1396_v19 = vmul.f32 0.03125, %v1394_v18 }
 0x9e9   :  { %v1391_v20 = vpop.xlane.xlu0 %1390 }
 0x9ea   :  { %v1398_v22 = vsub.f32 %v1388_v13, %v1396_v19  ;;  %v1395_v23 = vmul.f32 0.03125, %v1391_v20  ;;  %v481_v13 = vld [vmem:[%s11919_s28 + $0x10] sm:$0xff] }
 0x9eb   :  { %9119 = vmatprep.subr.mxu0 %v481_v13 }
 0x9ec   :  { %v1397_v24 = vsub.f32 %v1387_v15, %v1395_v23  ;;  %v1400_v29 = vmul.f32 %v1398_v22, %v1398_v22  ;;  %9120 = vmatpush3.msra.mxu0 %v481_v13  ;;  %v479_v15 = vld [vmem:[%s11919_s28] sm:$0xff]  ;;  %s10462_s28 = smov 40  }
 0x9ed   :  { %9121 = vmatprep.subr.mxu0 %v480_v14  ;;  %v535_v13 = vld [vmem:[%s11924_s2] sm:$0xff] }
 0x9ee   :  { %v1404_v30 = vsel %vm970_vm4, %v1400_v29, 0.0  ;;  %v1399_v33 = vmul.f32 %v1397_v24, %v1397_v24  ;;  %9122 = vmatpush3.msra.mxu0 %v480_v14 }
 0x9ef   :  { %1405 = vadd.xlane.f32.xlu1 %v1404_v30  ;;  %9123 = vmatprep.subr.mxu0 %v479_v15 }
 0x9f0   :  { %v1401_v34 = vsel %vm970_vm4, %v1399_v33, 0.0  ;;  %9124 = vmatpush3.msra.mxu0 %v479_v15 }
 0x9f1   :  { %1402 = vadd.xlane.f32.xlu0 %v1401_v34  ;;  %9148 = vmatprep.subr.mxu0 %v10439_v7 }
 0xa78   :  { %v1406_v1 = vpop.xlane.xlu1 %1405 }
 0xa79   :  { %v1408_v2 = vmul.f32 0.03125, %v1406_v1 }
 0xa7a   :  { %v1403_v40 = vpop.xlane.xlu0 %1402 }
 0xa7b   :  { %v1410_v41 = vadd.f32 1e-05, %v1408_v2  ;;  %v1407_v42 = vmul.f32 0.03125, %v1403_v40 }
 0xa7d   :  { %9772 = vrsqrt.f32 %v1410_v41  ;;  %v1409_v43 = vadd.f32 1e-05, %v1407_v42 }
 0xa7f   :  { %9774 = vrsqrt.f32 %v1409_v43 }
 0xa8a   :  { %v9773_v44 = vpop.eup %9772 }
 0xa8b   :  { %v1414_v46 = vmul.f32 %v9773_v44, %v1398_v22 }
 0xa8c   :  { %v9775_v47 = vpop.eup %9774 }
 0xa8d   :  { %v1413_v48 = vmul.f32 %v9775_v47, %v1397_v24  ;;  %v1422_v49 = vmul.f32 %v8614_v45, %v1414_v46  ;;  %v8619_v24 = vld [vmem:[%s11920_s27] ss:$0 sm:$0xff]  ;;  %s11852_s27 = smov 68  }
 0xa8f   :  { %v1421_v51 = vmul.f32 %v8614_v45, %v1413_v48  ;;  %v1430_v53 = vadd.f32 %v8615_v50, %v1422_v49  ;;  %v8626_v49 = vld [vmem:[%s11923_s29] ss:$0 sm:$0xff]  ;;  %s11854_s29 = smov 4  }
 0xa91   :  { %v1429_v52 = vadd.f32 %v8615_v50, %v1421_v51 }
 0xa93   :  { %9114 = vmatprep.mubr.msk.f32.mxu1 %vm970_vm4, %v1429_v52 }
 0xa94   :  { %9115 = vmatmul.mubr.msk.f32.vlgmr.msra.gmra.mxu1 %vm970_vm4, %v1430_v53 }
 0xa95   :  { %9129 = vmatpush3.msk.msra.mxu1 %vm599_vm0, %v477_v39  ;;  %9134 = vmatprep.mubr.msk.f32.mxu1 %vm1170_vm11, %v10874_v31  ;;  %v8621_v39 = vld [vmem:[%s11922_s0] ss:$0 sm:$0xff]  ;;  %s10465_s0 = smov 36   ;;  %vm4613_vm0 = vcmask 228352  }
 0xa96   :  { %9130 = vmatprep.subr.mxu1 %v476_v54 }
 0xa97   :  { %9131 = vmatpush3.msra.mxu1 %v476_v54 }
 0xa98   :  { %9132 = vmatprep.subr.mxu1 %v475_v55 }
 0xa99   :  { %9133 = vmatpush3.msra.mxu1 %v475_v55 }
 0xa9a   :  { %9135 = vmatmul.mubr.msk.f32.vlgmr.msra.gmra.mxu1 %vm1170_vm11, %v10878_v32 }
 0xb54   :  { %v9116_v57 = vpop.f32.mrf.mxu1 }
 0xb55   :  { %v1515_v58 = vadd.f32 %v9116_v57, %v8616_v56 }
 0xb56   :  { %v1509_v59 = vpop.f32.mrf.mxu1 }
 0xb57   :  { %v1519_v60 = vmax.f32 %v1515_v58, 0.0  ;;  %v1510_v61 = vadd.f32 %v8616_v56, %v1509_v59 }
 0xb59   :  { %v1518_v62 = vmax.f32 %v1510_v61, 0.0  ;;  %v1523_v63 = vsel %vm970_vm4, %v1519_v60, 0.0 }
 0xb5a   :  { %1524 = vadd.xlane.f32.xlu1 %v1523_v63  ;;  %v9136_v48 = vpop.f32.mrf.mxu1 }
 0xb5b   :  { %v1520_v31 = vsel %vm970_vm4, %v1518_v62, 0.0  ;;  %v1742_v53 = vadd.f32 %v9136_v48, %v8626_v49 }
 0xb5c   :  { %1521 = vadd.xlane.f32.xlu0 %v1520_v31  ;;  %v1736_v51 = vpop.f32.mrf.mxu1 }
 0xb5d   :  { %v1737_v57 = vadd.f32 %v8626_v49, %v1736_v51 }
 0xbe3   :  { %v1525_v0 = vpop.xlane.xlu1 %1524 }
 0xbe4   :  { %v1527_v3 = vmul.f32 0.03125, %v1525_v0 }
 0xbe5   :  { %v1522_v4 = vpop.xlane.xlu0 %1521 }
 0xbe6   :  { %v1529_v32 = vsub.f32 %v1519_v60, %v1527_v3  ;;  %v1526_v5 = vmul.f32 0.03125, %v1522_v4 }
 0xbe8   :  { %v1528_v6 = vsub.f32 %v1518_v62, %v1526_v5  ;;  %v1531_v8 = vmul.f32 %v1529_v32, %v1529_v32 }
 0xbea   :  { %v1535_v9 = vsel %vm970_vm4, %v1531_v8, 0.0  ;;  %v1530_v10 = vmul.f32 %v1528_v6, %v1528_v6 }
 0xbeb   :  { %1536 = vadd.xlane.f32.xlu1 %v1535_v9 }
 0xbec   :  { %v1532_v11 = vsel %vm970_vm4, %v1530_v10, 0.0  ;;  %v538_v10 = vld [vmem:[%s11924_s2 + $0x18] sm:$0xff] }
 0xbed   :  { %1533 = vadd.xlane.f32.xlu0 %v1532_v11  ;;  %v537_v11 = vld [vmem:[%s11924_s2 + $0x10] sm:$0xff]  ;;  %9137 = vmatprep.subr.mxu1 %v538_v10  ;;  %s10467_s2 = smov 12  }
 0xbee   :  { %9138 = vmatpush3.msra.mxu1 %v538_v10 }
 0xbef   :  { %9139 = vmatprep.subr.mxu1 %v537_v11 }
 0xbf0   :  { %9140 = vmatpush3.msra.mxu1 %v537_v11 }
 0xbf1   :  { %9141 = vmatprep.subr.mxu1 %v536_v12 }
 0xbf2   :  { %9142 = vmatpush3.msra.mxu1 %v536_v12 }
 0xbf3   :  { %9143 = vmatprep.subr.mxu1 %v535_v13 }
 0xbf4   :  { %9144 = vmatpush3.msra.mxu1 %v535_v13 }
 0xbf5   :  { %9158 = vmatprep.subr.mxu1 %v10439_v7 }
 0xc74   :  { %v1537_v16 = vpop.xlane.xlu1 %1536 }
 0xc75   :  { %v1539_v17 = vmul.f32 0.03125, %v1537_v16 }
 0xc76   :  { %v1534_v18 = vpop.xlane.xlu0 %1533 }
 0xc77   :  { %v1541_v19 = vadd.f32 1e-05, %v1539_v17  ;;  %v1538_v20 = vmul.f32 0.03125, %v1534_v18 }
 0xc79   :  { %9776 = vrsqrt.f32 %v1541_v19  ;;  %v1540_v22 = vadd.f32 1e-05, %v1538_v20 }
 0xc7b   :  { %9778 = vrsqrt.f32 %v1540_v22  ;;  %v8630_v22 = vld [vmem:[#allocation8] ss:$0 sm:$0xff] }
 0xc86   :  { %v9777_v23 = vpop.eup %9776 }
 0xc87   :  { %v1545_v29 = vmul.f32 %v9777_v23, %v1529_v32 }
 0xc88   :  { %v9779_v30 = vpop.eup %9778 }
 0xc89   :  { %v1544_v33 = vmul.f32 %v9779_v30, %v1528_v6  ;;  %v1553_v34 = vmul.f32 %v8619_v24, %v1545_v29 }
 0xc8b   :  { %v1552_v36 = vmul.f32 %v8619_v24, %v1544_v33  ;;  %v1561_v38 = vadd.f32 %v8620_v35, %v1553_v34  ;;  %v8631_v33 = vld [vmem:[#allocation7] ss:$0 sm:$0xff] }
 0xc8d   :  { %v1560_v37 = vadd.f32 %v8620_v35, %v1552_v36 }
 0xc8f   :  { %9125 = vmatprep.mubr.msk.f32.mxu0 %vm970_vm4, %v1560_v37  ;;  %v8632_v37 = vld [vmem:[%s11925_s24] ss:$0 sm:$0xff]  ;;  %s10468_s24 = smov 16  }
 0xc90   :  { %9126 = vmatmul.mubr.msk.f32.vlgmr.msra.gmra.mxu0 %vm970_vm4, %v1561_v38 }
 0xc91   :  { %9150 = vmatprep.mubr.msk.f32.mxu0 %vm10440_vm3, %v10439_v7 }
 0xd50   :  { %v9127_v1 = vpop.f32.mrf.mxu0 }
 0xd51   :  { %v1646_v2 = vadd.f32 %v9127_v1, %v8621_v39 }
 0xd52   :  { %v1640_v40 = vpop.f32.mrf.mxu0 }
 0xd53   :  { %v1641_v41 = vadd.f32 %v8621_v39, %v1640_v40  ;;  %1749 = vrot.lane.b32.xlu1 %v1646_v2, %s10443_s1  ;;  %v8625_v42 = vmul.f32 -1.442695, %v1646_v2 }
 0xd55   :  { %1747 = vrot.lane.b32.xlu0 %v1641_v41, %s10443_s1  ;;  %v8624_v43 = vmul.f32 -1.442695, %v1641_v41  ;;  %9780 = vpow2.f32 %v8625_v42 }
 0xd57   :  { %9782 = vpow2.f32 %v8624_v43 }
 0xd62   :  { %v9781_v44 = vpop.eup %9780 }
 0xd63   :  { %v1656_v46 = vadd.f32 1.0, %v9781_v44 }
 0xd64   :  { %v9783_v45 = vpop.eup %9782 }
 0xd65   :  { %v1655_v47 = vadd.f32 1.0, %v9783_v45  ;;  %9784 = vrcp.f32 %v1656_v46 }
 0xd67   :  { %9786 = vrcp.f32 %v1655_v47 }
 0xd72   :  { %v9785_v50 = vpop.eup %9784 }
 0xd74   :  { %v9787_v55 = vpop.eup %9786 }
 0xdc5   :  { %v1750_v52 = vpop.permute.xlu1 %1749 }
 0xdc6   :  { %v1754_v54 = vmul.f32 %v9785_v50, %v1750_v52 }
 0xdc7   :  { %v1748_v56 = vpop.permute.xlu0 %1747 }
 0xdc8   :  { %v10939_v58 = vadd.f32 %v1754_v54, %v1742_v53  ;;  %v1753_v59 = vmul.f32 %v9787_v55, %v1748_v56 }
 0xdca   :  { %v10941_v60 = vadd.f32 %v1753_v59, %v1737_v57  ;;  %v1760_v61 = vsel %vm970_vm4, %v10939_v58, 0.0 }
 0xdcb   :  { %1761 = vadd.xlane.f32.xlu0 %v1760_v61 }
 0xdcc   :  { %v1757_v62 = vsel %vm970_vm4, %v10941_v60, 0.0 }
 0xdcd   :  { %1758 = vadd.xlane.f32.xlu1 %v1757_v62 }
 0xe54   :  { %v1762_v63 = vpop.xlane.xlu0 %1761 }
 0xe55   :  { %v1764_v31 = vmul.f32 0.03125, %v1762_v63 }
 0xe56   :  { %v1759_v0 = vpop.xlane.xlu1 %1758 }
 0xe57   :  { %v1766_v3 = vsub.f32 %v10939_v58, %v1764_v31  ;;  %v1763_v4 = vmul.f32 0.03125, %v1759_v0 }
 0xe59   :  { %v1765_v32 = vsub.f32 %v10941_v60, %v1763_v4  ;;  %v1768_v5 = vmul.f32 %v1766_v3, %v1766_v3 }
 0xe5b   :  { %v1772_v6 = vsel %vm970_vm4, %v1768_v5, 0.0  ;;  %v1767_v8 = vmul.f32 %v1765_v32, %v1765_v32 }
 0xe5c   :  { %1773 = vadd.xlane.f32.xlu1 %v1772_v6 }
 0xe5d   :  { %v1769_v9 = vsel %vm970_vm4, %v1767_v8, 0.0 }
 0xe5e   :  { %1770 = vadd.xlane.f32.xlu0 %v1769_v9 }
 0xee5   :  { %v1774_v14 = vpop.xlane.xlu1 %1773 }
 0xee6   :  { %v1776_v15 = vmul.f32 0.03125, %v1774_v14 }
 0xee7   :  { %v1771_v16 = vpop.xlane.xlu0 %1770 }
 0xee8   :  { %v1778_v17 = vadd.f32 1e-05, %v1776_v15  ;;  %v1775_v18 = vmul.f32 0.03125, %v1771_v16 }
 0xeea   :  { %9788 = vrsqrt.f32 %v1778_v17  ;;  %v1777_v19 = vadd.f32 1e-05, %v1775_v18 }
 0xeec   :  { %9790 = vrsqrt.f32 %v1777_v19 }
 0xef7   :  { %v9789_v20 = vpop.eup %9788 }
 0xef8   :  { %v1782_v23 = vmul.f32 %v9789_v20, %v1766_v3 }
 0xef9   :  { %v9791_v24 = vpop.eup %9790 }
 0xefa   :  { %v1781_v29 = vmul.f32 %v9791_v24, %v1765_v32  ;;  %v1790_v30 = vmul.f32 %v8630_v22, %v1782_v23 }
 0xefc   :  { %v1789_v34 = vmul.f32 %v8630_v22, %v1781_v29  ;;  %v1798_v36 = vadd.f32 %v8631_v33, %v1790_v30 }
 0xefe   :  { %v1797_v35 = vadd.f32 %v8631_v33, %v1789_v34 }
 0xf00   :  { %9145 = vmatprep.mubr.msk.f32.mxu1 %vm970_vm4, %v1797_v35 }
 0xf01   :  { %9146 = vmatmul.mubr.msk.f32.vlgmr.msra.gmra.mxu1 %vm970_vm4, %v1798_v36 }
 0xf02   :  { %9160 = vmatprep.mubr.msk.f32.mxu1 %vm10440_vm3, %v10439_v7 }
 0xfc1   :  { %v9147_v38 = vpop.f32.mrf.mxu1 }
 0xfc2   :  { %v10961_v39 = vadd.f32 %v9147_v38, %v8632_v37 }
 0xfc3   :  { %v1877_v1 = vpop.f32.mrf.mxu1 }
 0xfc4   :  { %v10963_v2 = vadd.f32 %v8632_v37, %v1877_v1  ;;  %1965 = vrot.lane.b32.xlu1 %v10961_v39, %s10443_s1 }
 0xfc6   :  { %1887 = vrot.lane.b32.xlu0 %v10963_v2, %s10443_s1 }
0x1036   :  { %v1966_v41 = vpop.permute.xlu1 %1965 }
0x1038   :  { %v1888_v40 = vpop.permute.xlu0 %1887 }
0x1039   :  { %9149 = vmatpush3.xpose.msk.msra.mxu0 %vm1889_vm12, %v1888_v40 }
0x103a   :  { %9153 = vmatprep.subr.mxu0 %v10439_v7 }
0x103c   :  { %9151 = vmatmul.mubr.msk.f32.vlgmr.msra.gmra.mxu0 %vm1889_vm12, %v10963_v2 }
0x103d   :  { %9154 = vmatpush3.xpose.msk.msra.mxu0 %vm1889_vm12, %v1966_v41  ;;  %9155 = vmatprep.mubr.msk.f32.mxu0 %vm10440_vm3, %v10439_v7 }
0x103e   :  { %9163 = vmatprep.subr.mxu0 %v10439_v7 }
0x1040   :  { %9156 = vmatmul.mubr.msk.f32.vlgmr.msra.gmra.mxu0 %vm1889_vm12, %v10961_v39 }
0x1041   :  { %9165 = vmatprep.mubr.msk.f32.mxu0 %vm10440_vm3, %v10439_v7 }
0x10fc   :  { %v1960_v42 = vpop.f32.mrf.mxu0 }
0x10fd   :  { %v2041_v43 = vmul.f32 0.5, %v1960_v42 }
0x10fe   :  { %v9152_v44 = vpop.f32.mrf.mxu0 }
0x10ff   :  { %v2044_v45 = vsel %vm2043_vm13, %v2041_v43, -inf }
0x1100   :  { %2045 = vmax.xlane.f32.xlu1 %v2044_v45  ;;  %v2037_v46 = vpop.f32.mrf.mxu0 }
0x1101   :  { %v2042_v47 = vmul.f32 0.5, %v2037_v46 }
0x1102   :  { %v9157_v48 = vpop.f32.mrf.mxu0 }
0x1103   :  { %v2047_v49 = vsel %vm2043_vm13, %v2042_v47, -inf }
0x1104   :  { %2048 = vmax.xlane.f32.xlu0 %v2047_v49 }
0x1111   :  { %2142 = vrot.lane.b32.xlu1 %v10961_v39, %s10444_s7 }
0x1115   :  { %2220 = vrot.lane.b32.xlu1 %v10963_v2, %s10445_s30 }
0x1119   :  { %2298 = vrot.lane.b32.xlu1 %v10961_v39, %s10445_s30 }
0x1189   :  { %v2046_v50 = vpop.xlane.xlu1 %2045 }
0x118a   :  { %v2050_v51 = vsub.f32 %v2041_v43, %v2046_v50 }
0x118c   :  { %v2052_v52 = vmul.f32 1.442695, %v2050_v51 }
0x118d   :  { %v2143_v53 = vpop.permute.xlu1 %2142  ;;  %v2049_v54 = vpop.xlane.xlu0 %2048 }
0x118e   :  { %9792 = vpow2.f32 %v2052_v52  ;;  %v2051_v55 = vsub.f32 %v2042_v47, %v2049_v54  ;;  %9164 = vmatpush3.msra.mxu0 %v2143_v53 }
0x118f   :  { %9173 = vmatprep.subr.mxu0 %v10439_v7 }
0x1190   :  { %v2054_v56 = vmul.f32 1.442695, %v2051_v55 }
0x1191   :  { %v2221_v63 = vpop.permute.xlu1 %2220 }
0x1192   :  { %9794 = vpow2.f32 %v2054_v56 }
0x1195   :  { %v2299_v31 = vpop.permute.xlu1 %2298 }
0x119b   :  { %v9793_v57 = vpop.eup %9792 }
0x119c   :  { %v2056_v59 = vsel %vm2043_vm13, %v9793_v57, 0.0 }
0x119d   :  { %2057 = vadd.xlane.f32.xlu0 %v2056_v59 }
0x119f   :  { %v9795_v61 = vpop.eup %9794 }
0x11a0   :  { %v2059_v62 = vsel %vm2043_vm13, %v9795_v61, 0.0 }
0x11a1   :  { %2060 = vadd.xlane.f32.xlu1 %v2059_v62 }
0x11b2   :  { %2296 = vrot.lane.b32.xlu1 %v10961_v39, %s10446_s6 }
0x11b3   :  { %2066 = vrot.lane.b32.xlu0 %v10963_v2, %s10444_s7 }
0x11b7   :  { %2218 = vrot.lane.b32.xlu0 %v10963_v2, %s10446_s6 }
0x1226   :  { %v2058_v0 = vpop.xlane.xlu0 %2057 }
0x1227   :  { %9796 = vrcp.f32 %v2058_v0 }
0x122a   :  { %v2061_v3 = vpop.xlane.xlu1 %2060  ;;  %v2067_v4 = vpop.permute.xlu0 %2066 }
0x122b   :  { %9798 = vrcp.f32 %v2061_v3  ;;  %9159 = vmatpush3.msra.mxu1 %v2067_v4 }
0x122c   :  { %9168 = vmatprep.subr.mxu1 %v10439_v7 }
0x122e   :  { %v2219_v9 = vpop.permute.xlu0 %2218  ;;  %v2297_v10 = vpop.permute.xlu1 %2296 }
0x1234   :  { %v9797_v32 = vpop.eup %9796 }
0x1235   :  { %v2064_v5 = vmul.f32 %v9797_v32, %v9793_v57 }
0x1237   :  { %9161 = vmatmul.mubr.msk.f32.vlgmr.msra.gmra.mxu1 %vm2043_vm13, %v2064_v5 }
0x1238   :  { %v9799_v6 = vpop.eup %9798  ;;  %9169 = vmatpush3.xpose.msk.msra.mxu1 %vm1889_vm12, %v2221_v63  ;;  %9170 = vmatprep.mubr.msk.f32.mxu1 %vm10440_vm3, %v10439_v7 }
0x1239   :  { %v2065_v8 = vmul.f32 %v9799_v6, %v9795_v61  ;;  %9178 = vmatprep.subr.mxu1 %v10439_v7 }
0x123b   :  { %9166 = vmatmul.mubr.msk.f32.vlgmr.msra.gmra.mxu0 %vm2043_vm13, %v2065_v8  ;;  %9171 = vmatmul.mubr.msk.f32.vlgmr.msra.gmra.mxu1 %vm1889_vm12, %v2219_v9 }
0x123c   :  { %9174 = vmatpush3.xpose.msk.msra.mxu0 %vm1889_vm12, %v2299_v31  ;;  %9175 = vmatprep.mubr.msk.f32.mxu0 %vm10440_vm3, %v10439_v7 }
0x123d   :  { %9183 = vmatprep.subr.mxu0 %v10439_v7  ;;  %9180 = vmatprep.mubr.msk.f32.mxu1 %vm10440_vm3, %v10439_v7 }
0x123f   :  { %9176 = vmatmul.mubr.msk.f32.vlgmr.msra.gmra.mxu0 %vm1889_vm12, %v2297_v10 }
0x1240   :  { %9185 = vmatprep.mubr.msk.f32.mxu0 %vm10440_vm3, %v10439_v7 }
0x12f7   :  { %v11015_v11 = vpop.f32.mrf.mxu1 }
0x12f9   :  { %v9162_v12 = vpop.f32.mrf.mxu1 }
0x12fb   :  { %v11017_v13 = vpop.f32.mrf.mxu0  ;;  %v2292_v14 = vpop.f32.mrf.mxu1 }
0x12fc   :  { %v2374_v15 = vmul.f32 0.5, %v2292_v14 }
0x12fd   :  { %v9167_v16 = vpop.f32.mrf.mxu0  ;;  %v9172_v17 = vpop.f32.mrf.mxu1 }
0x12fe   :  { %v2376_v18 = vsel %vm2043_vm13, %v2374_v15, -inf }
0x12ff   :  { %2377 = vmax.xlane.f32.xlu0 %v2376_v18  ;;  %v2370_v19 = vpop.f32.mrf.mxu0 }
0x1300   :  { %v2375_v20 = vmul.f32 0.5, %v2370_v19 }
0x1301   :  { %v9177_v22 = vpop.f32.mrf.mxu0 }
0x1302   :  { %v2379_v23 = vsel %vm2043_vm13, %v2375_v20, -inf }
0x1303   :  { %2380 = vmax.xlane.f32.xlu1 %v2379_v23 }
0x1314   :  { %2474 = vrot.lane.b32.xlu1 %v10961_v39, %s10447_s10 }
0x1315   :  { %2398 = vrot.lane.b32.xlu0 %v10963_v2, %s10447_s10 }
0x1318   :  { %2552 = vrot.lane.b32.xlu1 %v10963_v2, %s10448_s11 }
0x131c   :  { %2630 = vrot.lane.b32.xlu1 %v10961_v39, %s10448_s11 }
0x1320   :  { %2628 = vrot.lane.b32.xlu1 %v10961_v39, %s10449_s15 }
0x1388   :  { %v2378_v24 = vpop.xlane.xlu0 %2377 }
0x1389   :  { %v2382_v29 = vsub.f32 %v2374_v15, %v2378_v24 }
0x138b   :  { %v2384_v30 = vmul.f32 1.442695, %v2382_v29 }
0x138c   :  { %v2399_v33 = vpop.permute.xlu0 %2398  ;;  %v2381_v34 = vpop.xlane.xlu1 %2380 }
0x138d   :  { %9800 = vpow2.f32 %v2384_v30  ;;  %v2383_v35 = vsub.f32 %v2375_v20, %v2381_v34  ;;  %9179 = vmatpush3.msra.mxu1 %v2399_v33 }
0x138e   :  { %9188 = vmatprep.subr.mxu1 %v10439_v7 }
0x138f   :  { %v2386_v36 = vmul.f32 1.442695, %v2383_v35 }
0x1390   :  { %v2475_v37 = vpop.permute.xlu1 %2474 }
0x1391   :  { %9802 = vpow2.f32 %v2386_v36  ;;  %9184 = vmatpush3.msra.mxu0 %v2475_v37 }
0x1392   :  { %9193 = vmatprep.subr.mxu0 %v10439_v7 }
0x1394   :  { %v2553_v44 = vpop.permute.xlu1 %2552 }
0x1398   :  { %v2631_v48 = vpop.permute.xlu1 %2630 }
0x139a   :  { %v9801_v38 = vpop.eup %9800 }
0x139b   :  { %v2388_v1 = vsel %vm2043_vm13, %v9801_v38, 0.0 }
0x139c   :  { %2389 = vadd.xlane.f32.xlu0 %v2388_v1  ;;  %v2629_v51 = vpop.permute.xlu1 %2628 }
0x139e   :  { %v9803_v40 = vpop.eup %9802 }
0x139f   :  { %v2391_v41 = vsel %vm2043_vm13, %v9803_v40, 0.0 }
0x13a0   :  { %2392 = vadd.xlane.f32.xlu0 %v2391_v41 }
0x13b6   :  { %2550 = vrot.lane.b32.xlu0 %v10963_v2, %s10449_s15 }
0x1425   :  { %v2390_v42 = vpop.xlane.xlu0 %2389 }
0x1426   :  { %9804 = vrcp.f32 %v2390_v42 }
0x1429   :  { %v2393_v43 = vpop.xlane.xlu0 %2392 }
0x142a   :  { %9806 = vrcp.f32 %v2393_v43 }
0x142d   :  { %v2551_v50 = vpop.permute.xlu0 %2550 }
0x1433   :  { %v9805_v45 = vpop.eup %9804 }
0x1434   :  { %v2396_v46 = vmul.f32 %v9805_v45, %v9801_v38 }
0x1436   :  { %9181 = vmatmul.mubr.msk.f32.vlgmr.msra.gmra.mxu1 %vm2043_vm13, %v2396_v46 }
0x1437   :  { %v9807_v47 = vpop.eup %9806  ;;  %9189 = vmatpush3.xpose.msk.msra.mxu1 %vm1889_vm12, %v2553_v44  ;;  %9190 = vmatprep.mubr.msk.f32.mxu1 %vm10440_vm3, %v10439_v7 }
0x1438   :  { %v2397_v49 = vmul.f32 %v9807_v47, %v9803_v40  ;;  %9198 = vmatprep.subr.mxu1 %v10439_v7 }
0x143a   :  { %9186 = vmatmul.mubr.msk.f32.vlgmr.msra.gmra.mxu0 %vm2043_vm13, %v2397_v49  ;;  %9191 = vmatmul.mubr.msk.f32.vlgmr.msra.gmra.mxu1 %vm1889_vm12, %v2551_v50 }
0x143b   :  { %9194 = vmatpush3.xpose.msk.msra.mxu0 %vm1889_vm12, %v2631_v48  ;;  %9195 = vmatprep.mubr.msk.f32.mxu0 %vm10440_vm3, %v10439_v7 }
0x143c   :  { %9203 = vmatprep.subr.mxu0 %v10439_v7  ;;  %9200 = vmatprep.mubr.msk.f32.mxu1 %vm10440_vm3, %v10439_v7 }
0x143e   :  { %9196 = vmatmul.mubr.msk.f32.vlgmr.msra.gmra.mxu0 %vm1889_vm12, %v2629_v51 }
0x143f   :  { %9205 = vmatprep.mubr.msk.f32.mxu0 %vm10440_vm3, %v10439_v7 }
0x14f6   :  { %v11053_v52 = vpop.f32.mrf.mxu1 }
0x14f8   :  { %v9182_v53 = vpop.f32.mrf.mxu1 }
0x14fa   :  { %v11055_v54 = vpop.f32.mrf.mxu0  ;;  %v2624_v55 = vpop.f32.mrf.mxu1 }
0x14fb   :  { %v2706_v56 = vmul.f32 0.5, %v2624_v55 }
0x14fc   :  { %v9187_v57 = vpop.f32.mrf.mxu0  ;;  %v9192_v59 = vpop.f32.mrf.mxu1 }
0x14fd   :  { %v2708_v61 = vsel %vm2043_vm13, %v2706_v56, -inf }
0x14fe   :  { %2709 = vmax.xlane.f32.xlu0 %v2708_v61  ;;  %v2702_v62 = vpop.f32.mrf.mxu0 }
0x14ff   :  { %v2707_v63 = vmul.f32 0.5, %v2702_v62 }
0x1500   :  { %v9197_v31 = vpop.f32.mrf.mxu0 }
0x1501   :  { %v2711_v0 = vsel %vm2043_vm13, %v2707_v63, -inf }
0x1502   :  { %2712 = vmax.xlane.f32.xlu1 %v2711_v0 }
0x1513   :  { %2806 = vrot.lane.b32.xlu1 %v10961_v39, %s10450_s16 }
0x1514   :  { %2730 = vrot.lane.b32.xlu0 %v10963_v2, %s10450_s16 }
0x1517   :  { %2884 = vrot.lane.b32.xlu1 %v10963_v2, %s10451_s18 }
0x151b   :  { %2962 = vrot.lane.b32.xlu1 %v10961_v39, %s10451_s18 }
0x151f   :  { %2960 = vrot.lane.b32.xlu1 %v10961_v39, %s10452_s19 }
0x1587   :  { %v2710_v3 = vpop.xlane.xlu0 %2709 }
0x1588   :  { %v2714_v4 = vsub.f32 %v2706_v56, %v2710_v3 }
0x158a   :  { %v2716_v32 = vmul.f32 1.442695, %v2714_v4 }
0x158b   :  { %v2731_v5 = vpop.permute.xlu0 %2730  ;;  %v2713_v6 = vpop.xlane.xlu1 %2712 }
0x158c   :  { %9808 = vpow2.f32 %v2716_v32  ;;  %v2715_v8 = vsub.f32 %v2707_v63, %v2713_v6  ;;  %9199 = vmatpush3.msra.mxu1 %v2731_v5 }
0x158d   :  { %9208 = vmatprep.subr.mxu1 %v10439_v7 }
0x158e   :  { %v2718_v9 = vmul.f32 1.442695, %v2715_v8 }
0x158f   :  { %v2807_v10 = vpop.permute.xlu1 %2806 }
0x1590   :  { %9810 = vpow2.f32 %v2718_v9  ;;  %9204 = vmatpush3.msra.mxu0 %v2807_v10 }
0x1591   :  { %9213 = vmatprep.subr.mxu0 %v10439_v7 }
0x1593   :  { %v2885_v19 = vpop.permute.xlu1 %2884 }
0x1597   :  { %v2963_v24 = vpop.permute.xlu1 %2962 }
0x1599   :  { %v9809_v12 = vpop.eup %9808 }
0x159a   :  { %v2720_v14 = vsel %vm2043_vm13, %v9809_v12, 0.0 }
0x159b   :  { %2721 = vadd.xlane.f32.xlu0 %v2720_v14  ;;  %v2961_v33 = vpop.permute.xlu1 %2960 }
0x159d   :  { %v9811_v15 = vpop.eup %9810 }
0x159e   :  { %v2723_v16 = vsel %vm2043_vm13, %v9811_v15, 0.0 }
0x159f   :  { %2724 = vadd.xlane.f32.xlu0 %v2723_v16 }
0x15b5   :  { %2882 = vrot.lane.b32.xlu0 %v10963_v2, %s10452_s19 }
0x1624   :  { %v2722_v17 = vpop.xlane.xlu0 %2721 }
0x1625   :  { %9812 = vrcp.f32 %v2722_v17 }
0x1628   :  { %v2725_v18 = vpop.xlane.xlu0 %2724 }
0x1629   :  { %9814 = vrcp.f32 %v2725_v18 }
0x162c   :  { %v2883_v30 = vpop.permute.xlu0 %2882 }
0x1632   :  { %v9813_v20 = vpop.eup %9812 }
0x1633   :  { %v2728_v22 = vmul.f32 %v9813_v20, %v9809_v12 }
0x1635   :  { %9201 = vmatmul.mubr.msk.f32.vlgmr.msra.gmra.mxu1 %vm2043_vm13, %v2728_v22 }
0x1636   :  { %v9815_v23 = vpop.eup %9814  ;;  %9209 = vmatpush3.xpose.msk.msra.mxu1 %vm1889_vm12, %v2885_v19  ;;  %9210 = vmatprep.mubr.msk.f32.mxu1 %vm10440_vm3, %v10439_v7 }
0x1637   :  { %v2729_v29 = vmul.f32 %v9815_v23, %v9811_v15  ;;  %9218 = vmatprep.subr.mxu1 %v10439_v7 }
0x1639   :  { %9206 = vmatmul.mubr.msk.f32.vlgmr.msra.gmra.mxu0 %vm2043_vm13, %v2729_v29  ;;  %9211 = vmatmul.mubr.msk.f32.vlgmr.msra.gmra.mxu1 %vm1889_vm12, %v2883_v30 }
0x163a   :  { %9214 = vmatpush3.xpose.msk.msra.mxu0 %vm1889_vm12, %v2963_v24  ;;  %9215 = vmatprep.mubr.msk.f32.mxu0 %vm10440_vm3, %v10439_v7 }
0x163b   :  { %9223 = vmatprep.subr.mxu0 %v10439_v7  ;;  %9220 = vmatprep.mubr.msk.f32.mxu1 %vm10440_vm3, %v10439_v7 }
0x163d   :  { %9216 = vmatmul.mubr.msk.f32.vlgmr.msra.gmra.mxu0 %vm1889_vm12, %v2961_v33 }
0x163e   :  { %9225 = vmatprep.mubr.msk.f32.mxu0 %vm10440_vm3, %v10439_v7 }
0x16f5   :  { %v11091_v34 = vpop.f32.mrf.mxu1 }
0x16f7   :  { %v9202_v35 = vpop.f32.mrf.mxu1 }
0x16f9   :  { %v11093_v36 = vpop.f32.mrf.mxu0  ;;  %v2956_v37 = vpop.f32.mrf.mxu1 }
0x16fa   :  { %v3038_v38 = vmul.f32 0.5, %v2956_v37 }
0x16fb   :  { %v9207_v1 = vpop.f32.mrf.mxu0  ;;  %v9212_v40 = vpop.f32.mrf.mxu1 }
0x16fc   :  { %v3040_v41 = vsel %vm2043_vm13, %v3038_v38, -inf }
0x16fd   :  { %3041 = vmax.xlane.f32.xlu0 %v3040_v41  ;;  %v3034_v42 = vpop.f32.mrf.mxu0 }
0x16fe   :  { %v3039_v43 = vmul.f32 0.5, %v3034_v42 }
0x16ff   :  { %v9217_v44 = vpop.f32.mrf.mxu0 }
0x1700   :  { %v3043_v45 = vsel %vm2043_vm13, %v3039_v43, -inf }
0x1701   :  { %3044 = vmax.xlane.f32.xlu1 %v3043_v45 }
0x1712   :  { %3138 = vrot.lane.b32.xlu1 %v10961_v39, %s10453_s13 }
0x1713   :  { %3062 = vrot.lane.b32.xlu0 %v10963_v2, %s10453_s13 }
0x1716   :  { %3216 = vrot.lane.b32.xlu1 %v10963_v2, %s10454_s22 }
0x171a   :  { %3294 = vrot.lane.b32.xlu1 %v10961_v39, %s10454_s22 }
0x171e   :  { %3292 = vrot.lane.b32.xlu1 %v10961_v39, %s10455_s9 }
0x1786   :  { %v3042_v46 = vpop.xlane.xlu0 %3041 }
0x1787   :  { %v3046_v47 = vsub.f32 %v3038_v38, %v3042_v46 }
0x1789   :  { %v3048_v48 = vmul.f32 1.442695, %v3046_v47 }
0x178a   :  { %v3063_v49 = vpop.permute.xlu0 %3062  ;;  %v3045_v50 = vpop.xlane.xlu1 %3044 }
0x178b   :  { %9816 = vpow2.f32 %v3048_v48  ;;  %v3047_v51 = vsub.f32 %v3039_v43, %v3045_v50  ;;  %9219 = vmatpush3.msra.mxu1 %v3063_v49 }
0x178c   :  { %9228 = vmatprep.subr.mxu1 %v10439_v7 }
0x178d   :  { %v3050_v53 = vmul.f32 1.442695, %v3047_v51 }
0x178e   :  { %v3139_v55 = vpop.permute.xlu1 %3138 }
0x178f   :  { %9818 = vpow2.f32 %v3050_v53  ;;  %9224 = vmatpush3.msra.mxu0 %v3139_v55 }
0x1790   :  { %9233 = vmatprep.subr.mxu0 %v10439_v7 }
0x1792   :  { %v3217_v31 = vpop.permute.xlu1 %3216 }
0x1796   :  { %v3295_v32 = vpop.permute.xlu1 %3294 }
0x1798   :  { %v9817_v56 = vpop.eup %9816 }
0x1799   :  { %v3052_v57 = vsel %vm2043_vm13, %v9817_v56, 0.0 }
0x179a   :  { %3053 = vadd.xlane.f32.xlu0 %v3052_v57  ;;  %v3293_v8 = vpop.permute.xlu1 %3292 }
0x179c   :  { %v9819_v59 = vpop.eup %9818 }
0x179d   :  { %v3055_v61 = vsel %vm2043_vm13, %v9819_v59, 0.0 }
0x179e   :  { %3056 = vadd.xlane.f32.xlu0 %v3055_v61 }
0x17b4   :  { %3214 = vrot.lane.b32.xlu0 %v10963_v2, %s10455_s9 }
0x1823   :  { %v3054_v62 = vpop.xlane.xlu0 %3053 }
0x1824   :  { %9820 = vrcp.f32 %v3054_v62 }
0x1827   :  { %v3057_v63 = vpop.xlane.xlu0 %3056 }
0x1828   :  { %9822 = vrcp.f32 %v3057_v63 }
0x182b   :  { %v3215_v6 = vpop.permute.xlu0 %3214 }
0x1831   :  { %v9821_v0 = vpop.eup %9820 }
0x1832   :  { %v3060_v3 = vmul.f32 %v9821_v0, %v9817_v56 }
0x1834   :  { %9221 = vmatmul.mubr.msk.f32.vlgmr.msra.gmra.mxu1 %vm2043_vm13, %v3060_v3 }
0x1835   :  { %v9823_v4 = vpop.eup %9822  ;;  %9229 = vmatpush3.xpose.msk.msra.mxu1 %vm1889_vm12, %v3217_v31  ;;  %9230 = vmatprep.mubr.msk.f32.mxu1 %vm10440_vm3, %v10439_v7 }
0x1836   :  { %v3061_v5 = vmul.f32 %v9823_v4, %v9819_v59  ;;  %9238 = vmatprep.subr.mxu1 %v10439_v7 }
0x1838   :  { %9226 = vmatmul.mubr.msk.f32.vlgmr.msra.gmra.mxu0 %vm2043_vm13, %v3061_v5  ;;  %9231 = vmatmul.mubr.msk.f32.vlgmr.msra.gmra.mxu1 %vm1889_vm12, %v3215_v6 }
0x1839   :  { %9234 = vmatpush3.xpose.msk.msra.mxu0 %vm1889_vm12, %v3295_v32  ;;  %9235 = vmatprep.mubr.msk.f32.mxu0 %vm10440_vm3, %v10439_v7 }
0x183a   :  { %9243 = vmatprep.subr.mxu0 %v10439_v7  ;;  %9240 = vmatprep.mubr.msk.f32.mxu1 %vm10440_vm3, %v10439_v7 }
0x183c   :  { %9236 = vmatmul.mubr.msk.f32.vlgmr.msra.gmra.mxu0 %vm1889_vm12, %v3293_v8 }
0x183d   :  { %9245 = vmatprep.mubr.msk.f32.mxu0 %vm10440_vm3, %v10439_v7 }
0x18f4   :  { %v11129_v9 = vpop.f32.mrf.mxu1 }
0x18f6   :  { %v9222_v10 = vpop.f32.mrf.mxu1 }
0x18f8   :  { %v11131_v12 = vpop.f32.mrf.mxu0  ;;  %v3288_v14 = vpop.f32.mrf.mxu1 }
0x18f9   :  { %v3370_v15 = vmul.f32 0.5, %v3288_v14 }
0x18fa   :  { %v9227_v16 = vpop.f32.mrf.mxu0  ;;  %v9232_v17 = vpop.f32.mrf.mxu1 }
0x18fb   :  { %v3372_v18 = vsel %vm2043_vm13, %v3370_v15, -inf }
0x18fc   :  { %3373 = vmax.xlane.f32.xlu0 %v3372_v18  ;;  %v3366_v19 = vpop.f32.mrf.mxu0 }
0x18fd   :  { %v3371_v20 = vmul.f32 0.5, %v3366_v19 }
0x18fe   :  { %v9237_v22 = vpop.f32.mrf.mxu0 }
0x18ff   :  { %v3375_v23 = vsel %vm2043_vm13, %v3371_v20, -inf }
0x1900   :  { %3376 = vmax.xlane.f32.xlu1 %v3375_v23 }
0x1911   :  { %3470 = vrot.lane.b32.xlu1 %v10961_v39, %s10456_s3 }
0x1912   :  { %3394 = vrot.lane.b32.xlu0 %v10963_v2, %s10456_s3 }
0x1915   :  { %3548 = vrot.lane.b32.xlu1 %v10963_v2, %s10457_s25 }
0x1919   :  { %3626 = vrot.lane.b32.xlu1 %v10961_v39, %s10457_s25 }
0x191d   :  { %3624 = vrot.lane.b32.xlu1 %v10961_v39, %s10458_s23 }
0x1985   :  { %v3374_v24 = vpop.xlane.xlu0 %3373 }
0x1986   :  { %v3378_v29 = vsub.f32 %v3370_v15, %v3374_v24 }
0x1988   :  { %v3380_v30 = vmul.f32 1.442695, %v3378_v29 }
0x1989   :  { %v3395_v33 = vpop.permute.xlu0 %3394  ;;  %v3377_v35 = vpop.xlane.xlu1 %3376 }
0x198a   :  { %9824 = vpow2.f32 %v3380_v30  ;;  %v3379_v37 = vsub.f32 %v3371_v20, %v3377_v35  ;;  %9239 = vmatpush3.msra.mxu1 %v3395_v33 }
0x198b   :  { %9248 = vmatprep.subr.mxu1 %v10439_v7 }
0x198c   :  { %v3382_v38 = vmul.f32 1.442695, %v3379_v37 }
0x198d   :  { %v3471_v1 = vpop.permute.xlu1 %3470 }
0x198e   :  { %9826 = vpow2.f32 %v3382_v38  ;;  %9244 = vmatpush3.msra.mxu0 %v3471_v1 }
0x198f   :  { %9253 = vmatprep.subr.mxu0 %v10439_v7 }
0x1991   :  { %v3549_v46 = vpop.permute.xlu1 %3548 }
0x1995   :  { %v3627_v50 = vpop.permute.xlu1 %3626 }
0x1997   :  { %v9825_v40 = vpop.eup %9824 }
0x1998   :  { %v3384_v41 = vsel %vm2043_vm13, %v9825_v40, 0.0 }
0x1999   :  { %3385 = vadd.xlane.f32.xlu0 %v3384_v41  ;;  %v3625_v55 = vpop.permute.xlu1 %3624 }
0x199b   :  { %v9827_v42 = vpop.eup %9826 }
0x199c   :  { %v3387_v43 = vsel %vm2043_vm13, %v9827_v42, 0.0 }
0x199d   :  { %3388 = vadd.xlane.f32.xlu0 %v3387_v43 }
0x19b3   :  { %3546 = vrot.lane.b32.xlu0 %v10963_v2, %s10458_s23 }
0x1a22   :  { %v3386_v44 = vpop.xlane.xlu0 %3385 }
0x1a23   :  { %9828 = vrcp.f32 %v3386_v44 }
0x1a26   :  { %v3389_v45 = vpop.xlane.xlu0 %3388 }
0x1a27   :  { %9830 = vrcp.f32 %v3389_v45 }
0x1a2a   :  { %v3547_v53 = vpop.permute.xlu0 %3546 }
0x1a30   :  { %v9829_v47 = vpop.eup %9828 }
0x1a31   :  { %v3392_v48 = vmul.f32 %v9829_v47, %v9825_v40 }
0x1a33   :  { %9241 = vmatmul.mubr.msk.f32.vlgmr.msra.gmra.mxu1 %vm2043_vm13, %v3392_v48 }
0x1a34   :  { %v9831_v49 = vpop.eup %9830  ;;  %9249 = vmatpush3.xpose.msk.msra.mxu1 %vm1889_vm12, %v3549_v46  ;;  %9250 = vmatprep.mubr.msk.f32.mxu1 %vm10440_vm3, %v10439_v7 }
0x1a35   :  { %v3393_v51 = vmul.f32 %v9831_v49, %v9827_v42  ;;  %9258 = vmatprep.subr.mxu1 %v10439_v7 }
0x1a37   :  { %9246 = vmatmul.mubr.msk.f32.vlgmr.msra.gmra.mxu0 %vm2043_vm13, %v3393_v51  ;;  %9251 = vmatmul.mubr.msk.f32.vlgmr.msra.gmra.mxu1 %vm1889_vm12, %v3547_v53 }
0x1a38   :  { %9254 = vmatpush3.xpose.msk.msra.mxu0 %vm1889_vm12, %v3627_v50  ;;  %9255 = vmatprep.mubr.msk.f32.mxu0 %vm10440_vm3, %v10439_v7 }
0x1a39   :  { %9263 = vmatprep.subr.mxu0 %v10439_v7  ;;  %9260 = vmatprep.mubr.msk.f32.mxu1 %vm10440_vm3, %v10439_v7 }
0x1a3b   :  { %9256 = vmatmul.mubr.msk.f32.vlgmr.msra.gmra.mxu0 %vm1889_vm12, %v3625_v55 }
0x1a3c   :  { %9265 = vmatprep.mubr.msk.f32.mxu0 %vm10440_vm3, %v10439_v7 }
0x1af3   :  { %v11167_v56 = vpop.f32.mrf.mxu1 }
0x1af5   :  { %v9242_v57 = vpop.f32.mrf.mxu1 }
0x1af7   :  { %v11169_v59 = vpop.f32.mrf.mxu0  ;;  %v3620_v61 = vpop.f32.mrf.mxu1 }
0x1af8   :  { %v3702_v62 = vmul.f32 0.5, %v3620_v61 }
0x1af9   :  { %v9247_v63 = vpop.f32.mrf.mxu0  ;;  %v9252_v31 = vpop.f32.mrf.mxu1 }
0x1afa   :  { %v3704_v0 = vsel %vm2043_vm13, %v3702_v62, -inf }
0x1afb   :  { %3705 = vmax.xlane.f32.xlu0 %v3704_v0  ;;  %v3698_v3 = vpop.f32.mrf.mxu0 }
0x1afc   :  { %v3703_v4 = vmul.f32 0.5, %v3698_v3 }
0x1afd   :  { %v9257_v32 = vpop.f32.mrf.mxu0 }
0x1afe   :  { %v3707_v5 = vsel %vm2043_vm13, %v3703_v4, -inf }
0x1aff   :  { %3708 = vmax.xlane.f32.xlu1 %v3707_v5 }
0x1b10   :  { %3802 = vrot.lane.b32.xlu1 %v10961_v39, %s10459_s12 }
0x1b11   :  { %3726 = vrot.lane.b32.xlu0 %v10963_v2, %s10459_s12 }
0x1b14   :  { %3880 = vrot.lane.b32.xlu1 %v10963_v2, %s10460_s26 }
0x1b18   :  { %3958 = vrot.lane.b32.xlu1 %v10961_v39, %s10460_s26 }
0x1b1c   :  { %3956 = vrot.lane.b32.xlu1 %v10961_v39, %s10461_s4 }
0x1b84   :  { %v3706_v6 = vpop.xlane.xlu0 %3705 }
0x1b85   :  { %v3710_v8 = vsub.f32 %v3702_v62, %v3706_v6 }
0x1b87   :  { %v3712_v10 = vmul.f32 1.442695, %v3710_v8 }
0x1b88   :  { %v3727_v14 = vpop.permute.xlu0 %3726  ;;  %v3709_v15 = vpop.xlane.xlu1 %3708 }
0x1b89   :  { %9832 = vpow2.f32 %v3712_v10  ;;  %v3711_v16 = vsub.f32 %v3703_v4, %v3709_v15  ;;  %9259 = vmatpush3.msra.mxu1 %v3727_v14 }
0x1b8a   :  { %9268 = vmatprep.subr.mxu1 %v10439_v7 }
0x1b8b   :  { %v3714_v17 = vmul.f32 1.442695, %v3711_v16 }
0x1b8c   :  { %v3803_v18 = vpop.permute.xlu1 %3802 }
0x1b8d   :  { %9834 = vpow2.f32 %v3714_v17  ;;  %9264 = vmatpush3.msra.mxu0 %v3803_v18 }
0x1b8e   :  { %9273 = vmatprep.subr.mxu0 %v10439_v7 }
0x1b90   :  { %v3881_v30 = vpop.permute.xlu1 %3880 }
0x1b94   :  { %v3959_v38 = vpop.permute.xlu1 %3958 }
0x1b96   :  { %v9833_v19 = vpop.eup %9832 }
0x1b97   :  { %v3716_v20 = vsel %vm2043_vm13, %v9833_v19, 0.0 }
0x1b98   :  { %3717 = vadd.xlane.f32.xlu0 %v3716_v20  ;;  %v3957_v41 = vpop.permute.xlu1 %3956 }
0x1b9a   :  { %v9835_v22 = vpop.eup %9834 }
0x1b9b   :  { %v3719_v23 = vsel %vm2043_vm13, %v9835_v22, 0.0 }
0x1b9c   :  { %3720 = vadd.xlane.f32.xlu0 %v3719_v23 }
0x1bb2   :  { %3878 = vrot.lane.b32.xlu0 %v10963_v2, %s10461_s4 }
0x1c21   :  { %v3718_v24 = vpop.xlane.xlu0 %3717 }
0x1c22   :  { %9836 = vrcp.f32 %v3718_v24 }
0x1c25   :  { %v3721_v29 = vpop.xlane.xlu0 %3720 }
0x1c26   :  { %9838 = vrcp.f32 %v3721_v29 }
0x1c29   :  { %v3879_v40 = vpop.permute.xlu0 %3878 }
0x1c2f   :  { %v9837_v33 = vpop.eup %9836 }
0x1c30   :  { %v3724_v35 = vmul.f32 %v9837_v33, %v9833_v19 }
0x1c32   :  { %9261 = vmatmul.mubr.msk.f32.vlgmr.msra.gmra.mxu1 %vm2043_vm13, %v3724_v35 }
0x1c33   :  { %v9839_v37 = vpop.eup %9838  ;;  %9269 = vmatpush3.xpose.msk.msra.mxu1 %vm1889_vm12, %v3881_v30  ;;  %9270 = vmatprep.mubr.msk.f32.mxu1 %vm10440_vm3, %v10439_v7 }
0x1c34   :  { %v3725_v1 = vmul.f32 %v9839_v37, %v9835_v22  ;;  %9278 = vmatprep.subr.mxu1 %v10439_v7 }
0x1c36   :  { %9266 = vmatmul.mubr.msk.f32.vlgmr.msra.gmra.mxu0 %vm2043_vm13, %v3725_v1  ;;  %9271 = vmatmul.mubr.msk.f32.vlgmr.msra.gmra.mxu1 %vm1889_vm12, %v3879_v40 }
0x1c37   :  { %9274 = vmatpush3.xpose.msk.msra.mxu0 %vm1889_vm12, %v3959_v38  ;;  %9275 = vmatprep.mubr.msk.f32.mxu0 %vm10440_vm3, %v10439_v7 }
0x1c38   :  { %9283 = vmatprep.subr.mxu0 %v10439_v7  ;;  %9280 = vmatprep.mubr.msk.f32.mxu1 %vm10440_vm3, %v10439_v7 }
0x1c3a   :  { %9276 = vmatmul.mubr.msk.f32.vlgmr.msra.gmra.mxu0 %vm1889_vm12, %v3957_v41 }
0x1c3b   :  { %9285 = vmatprep.mubr.msk.f32.mxu0 %vm10440_vm3, %v10439_v7 }
0x1cf2   :  { %v11205_v42 = vpop.f32.mrf.mxu1 }
0x1cf4   :  { %v9262_v43 = vpop.f32.mrf.mxu1 }
0x1cf6   :  { %v11207_v44 = vpop.f32.mrf.mxu0  ;;  %v3952_v45 = vpop.f32.mrf.mxu1 }
0x1cf7   :  { %v4034_v46 = vmul.f32 0.5, %v3952_v45 }
0x1cf8   :  { %v9267_v47 = vpop.f32.mrf.mxu0  ;;  %v9272_v48 = vpop.f32.mrf.mxu1 }
0x1cf9   :  { %v4036_v49 = vsel %vm2043_vm13, %v4034_v46, -inf }
0x1cfa   :  { %4037 = vmax.xlane.f32.xlu0 %v4036_v49  ;;  %v4030_v50 = vpop.f32.mrf.mxu0 }
0x1cfb   :  { %v4035_v51 = vmul.f32 0.5, %v4030_v50 }
0x1cfc   :  { %v9277_v53 = vpop.f32.mrf.mxu0 }
0x1cfd   :  { %v4039_v55 = vsel %vm2043_vm13, %v4035_v51, -inf }
0x1cfe   :  { %4040 = vmax.xlane.f32.xlu1 %v4039_v55 }
0x1d0f   :  { %4134 = vrot.lane.b32.xlu1 %v10961_v39, %s10462_s28 }
0x1d10   :  { %4058 = vrot.lane.b32.xlu0 %v10963_v2, %s10462_s28 }
0x1d13   :  { %4212 = vrot.lane.b32.xlu1 %v10963_v2, %s11852_s27 }
0x1d17   :  { %4290 = vrot.lane.b32.xlu1 %v10961_v39, %s11852_s27  ;;  %s11856_s27 = smov 24  }
0x1d1b   :  { %4288 = vrot.lane.b32.xlu1 %v10961_v39, %s11850_s8 }
0x1d83   :  { %v4038_v57 = vpop.xlane.xlu0 %4037 }
0x1d84   :  { %v4042_v61 = vsub.f32 %v4034_v46, %v4038_v57 }
0x1d86   :  { %v4044_v62 = vmul.f32 1.442695, %v4042_v61 }
0x1d87   :  { %v4059_v63 = vpop.permute.xlu0 %4058  ;;  %v4041_v31 = vpop.xlane.xlu1 %4040 }
0x1d88   :  { %9840 = vpow2.f32 %v4044_v62  ;;  %v4043_v0 = vsub.f32 %v4035_v51, %v4041_v31  ;;  %9279 = vmatpush3.msra.mxu1 %v4059_v63 }
0x1d89   :  { %9288 = vmatprep.subr.mxu1 %v10439_v7 }
0x1d8a   :  { %v4046_v3 = vmul.f32 1.442695, %v4043_v0 }
0x1d8b   :  { %v4135_v4 = vpop.permute.xlu1 %4134 }
0x1d8c   :  { %9842 = vpow2.f32 %v4046_v3  ;;  %9284 = vmatpush3.msra.mxu0 %v4135_v4 }
0x1d8d   :  { %9293 = vmatprep.subr.mxu0 %v10439_v7 }
0x1d8f   :  { %v4213_v15 = vpop.permute.xlu1 %4212 }
0x1d93   :  { %v4291_v19 = vpop.permute.xlu1 %4290 }
0x1d95   :  { %v9841_v32 = vpop.eup %9840 }
0x1d96   :  { %v4048_v5 = vsel %vm2043_vm13, %v9841_v32, 0.0 }
0x1d97   :  { %4049 = vadd.xlane.f32.xlu0 %v4048_v5  ;;  %v4289_v23 = vpop.permute.xlu1 %4288 }
0x1d99   :  { %v9843_v6 = vpop.eup %9842 }
0x1d9a   :  { %v4051_v8 = vsel %vm2043_vm13, %v9843_v6, 0.0 }
0x1d9b   :  { %4052 = vadd.xlane.f32.xlu0 %v4051_v8 }
0x1db1   :  { %4210 = vrot.lane.b32.xlu0 %v10963_v2, %s11850_s8  ;;  %s10469_s8 = smov 20  }
0x1e20   :  { %v4050_v10 = vpop.xlane.xlu0 %4049 }
0x1e21   :  { %9844 = vrcp.f32 %v4050_v10 }
0x1e24   :  { %v4053_v14 = vpop.xlane.xlu0 %4052 }
0x1e25   :  { %9846 = vrcp.f32 %v4053_v14 }
0x1e28   :  { %v4211_v22 = vpop.permute.xlu0 %4210 }
0x1e2e   :  { %v9845_v16 = vpop.eup %9844 }
0x1e2f   :  { %v4056_v17 = vmul.f32 %v9845_v16, %v9841_v32 }
0x1e31   :  { %9281 = vmatmul.mubr.msk.f32.vlgmr.msra.gmra.mxu1 %vm2043_vm13, %v4056_v17 }
0x1e32   :  { %v9847_v18 = vpop.eup %9846  ;;  %9289 = vmatpush3.xpose.msk.msra.mxu1 %vm1889_vm12, %v4213_v15  ;;  %9290 = vmatprep.mubr.msk.f32.mxu1 %vm10440_vm3, %v10439_v7 }
0x1e33   :  { %v4057_v20 = vmul.f32 %v9847_v18, %v9843_v6  ;;  %9298 = vmatprep.subr.mxu1 %v10439_v7 }
0x1e35   :  { %9286 = vmatmul.mubr.msk.f32.vlgmr.msra.gmra.mxu0 %vm2043_vm13, %v4057_v20  ;;  %9291 = vmatmul.mubr.msk.f32.vlgmr.msra.gmra.mxu1 %vm1889_vm12, %v4211_v22 }
0x1e36   :  { %9294 = vmatpush3.xpose.msk.msra.mxu0 %vm1889_vm12, %v4291_v19  ;;  %9295 = vmatprep.mubr.msk.f32.mxu0 %vm10440_vm3, %v10439_v7 }
0x1e37   :  { %9303 = vmatprep.subr.mxu0 %v10439_v7  ;;  %9300 = vmatprep.mubr.msk.f32.mxu1 %vm10440_vm3, %v10439_v7 }
0x1e39   :  { %9296 = vmatmul.mubr.msk.f32.vlgmr.msra.gmra.mxu0 %vm1889_vm12, %v4289_v23 }
0x1e3a   :  { %9305 = vmatprep.mubr.msk.f32.mxu0 %vm10440_vm3, %v10439_v7 }
0x1ef1   :  { %v4130_v24 = vpop.f32.mrf.mxu1 }
0x1ef3   :  { %v9282_v29 = vpop.f32.mrf.mxu1 }
0x1ef5   :  { %v4206_v30 = vpop.f32.mrf.mxu0  ;;  %v4284_v33 = vpop.f32.mrf.mxu1 }
0x1ef6   :  { %v4366_v35 = vmul.f32 0.5, %v4284_v33 }
0x1ef7   :  { %v9287_v37 = vpop.f32.mrf.mxu0  ;;  %v9292_v38 = vpop.f32.mrf.mxu1 }
0x1ef8   :  { %v4368_v1 = vsel %vm2043_vm13, %v4366_v35, -inf }
0x1ef9   :  { %4369 = vmax.xlane.f32.xlu0 %v4368_v1  ;;  %v4362_v40 = vpop.f32.mrf.mxu0 }
0x1efa   :  { %v4367_v41 = vmul.f32 0.5, %v4362_v40 }
0x1efb   :  { %v9297_v43 = vpop.f32.mrf.mxu0 }
0x1efc   :  { %v4371_v45 = vsel %vm2043_vm13, %v4367_v41, -inf }
0x1efd   :  { %4372 = vmax.xlane.f32.xlu1 %v4371_v45 }
0x1f0e   :  { %4466 = vrot.lane.b32.xlu1 %v10961_v39, %s10465_s0 }
0x1f12   :  { %4544 = vrot.lane.b32.xlu1 %v11053_v52, %s11854_s29 }
0x1f16   :  { %4546 = vrot.lane.b32.xlu1 %v11055_v54, %s11854_s29  ;;  %s11926_s29 = sld [smem:[#allocation77_spill]] }
0x1f1a   :  { %4554 = vrot.lane.b32.xlu1 %v11093_v36, %s10438_s14 }
0x1f1c   :  { %v534_v55 = vld [vmem:[%s11926_s29 + $0x18] sm:$0xff]  ;;  %v532_v57 = vld [vmem:[%s11926_s29 + $0x8] sm:$0xff]  ;;  %v531_v61 = vld [vmem:[%s11926_s29] sm:$0xff] }
0x1f1e   :  { %4562 = vrot.lane.b32.xlu1 %v11131_v12, %s10467_s2 }
0x1f22   :  { %4570 = vrot.lane.b32.xlu1 %v11169_v59, %s10468_s24 }
0x1f26   :  { %4578 = vrot.lane.b32.xlu1 %v11207_v44, %s10469_s8 }
0x1f2a   :  { %4586 = vrot.lane.b32.xlu1 %v4206_v30, %s11856_s27 }
0x1f82   :  { %v4370_v39 = vpop.xlane.xlu0 %4369 }
0x1f83   :  { %v4374_v52 = vsub.f32 %v4366_v35, %v4370_v39 }
0x1f85   :  { %v4376_v54 = vmul.f32 1.442695, %v4374_v52 }
0x1f86   :  { %v4373_v46 = vpop.xlane.xlu1 %4372 }
0x1f87   :  { %9848 = vpow2.f32 %v4376_v54  ;;  %v4375_v36 = vsub.f32 %v4367_v41, %v4373_v46 }
0x1f89   :  { %v4378_v47 = vmul.f32 1.442695, %v4375_v36 }
0x1f8a   :  { %v4467_v48 = vpop.permute.xlu1 %4466 }
0x1f8b   :  { %9850 = vpow2.f32 %v4378_v47  ;;  %9304 = vmatpush3.msra.mxu0 %v4467_v48 }
0x1f8e   :  { %v4545_v3 = vpop.permute.xlu1 %4544 }
0x1f8f   :  { %v4598_v17 = vsel %vm1889_vm12, %v11015_v11, %v4545_v3 }
0x1f92   :  { %v4547_v4 = vpop.permute.xlu1 %4546 }
0x1f93   :  { %v4599_v23 = vsel %vm1889_vm12, %v11017_v13, %v4547_v4 }
0x1f94   :  { %v9849_v12 = vpop.eup %9848 }
0x1f95   :  { %v4380_v59 = vsel %vm2043_vm13, %v9849_v12, 0.0 }
0x1f96   :  { %4381 = vadd.xlane.f32.xlu0 %v4380_v59  ;;  %v4555_v5 = vpop.permute.xlu1 %4554 }
0x1f97   :  { %v4601_v29 = vsel %vm2043_vm13, %v4599_v23, %v4555_v5 }
0x1f98   :  { %v9851_v49 = vpop.eup %9850 }
0x1f99   :  { %v4383_v44 = vsel %vm2043_vm13, %v9851_v49, 0.0 }
0x1f9a   :  { %4384 = vadd.xlane.f32.xlu0 %v4383_v44  ;;  %v4563_v8 = vpop.permute.xlu1 %4562 }
0x1f9b   :  { %v4604_v35 = vsel %vm4602_vm14, %v4601_v29, %v4563_v8 }
0x1f9e   :  { %v4571_v14 = vpop.permute.xlu1 %4570 }
0x1f9f   :  { %v4606_v38 = vsel %vm686_vm2, %v4604_v35, %v4571_v14 }
0x1fa2   :  { %v4579_v16 = vpop.permute.xlu1 %4578 }
0x1fa3   :  { %v4609_v13 = vsel %vm4607_vm15, %v4606_v38, %v4579_v16 }
0x1fa6   :  { %v4587_v11 = vpop.permute.xlu1 %4586 }
0x1fa7   :  { %v4612_v1 = vsel %vm4610_vm1, %v4609_v13, %v4587_v11 }
0x1fb0   :  { %4390 = vrot.lane.b32.xlu0 %v10963_v2, %s10465_s0 }
0x1fb4   :  { %4552 = vrot.lane.b32.xlu0 %v11091_v34, %s10438_s14 }
0x1fb8   :  { %4560 = vrot.lane.b32.xlu0 %v11129_v9, %s10467_s2 }
0x1fbc   :  { %4568 = vrot.lane.b32.xlu0 %v11167_v56, %s10468_s24 }
0x1fc0   :  { %4576 = vrot.lane.b32.xlu0 %v11205_v42, %s10469_s8  ;;  %v533_v42 = vld [vmem:[%s11926_s29 + $0x10] sm:$0xff]  ;;  %s11927_s29 = sld [smem:[#allocation73_spill]] }
0x1fc4   :  { %4584 = vrot.lane.b32.xlu0 %v4130_v24, %s11856_s27  ;;  %s11858_s27 = smov 28  }
0x1fc6   :  { %v8683_v43 = vld [vmem:[%s11927_s29] ss:$0 sm:$0xff]  ;;  %s11929_s29 = sld [smem:[#allocation76_spill]] }
0x1fcc   :  { %v519_v3 = vld [vmem:[%s11929_s29 + $0x40] sm:$0xff]  ;;  %v518_v4 = vld [vmem:[%s11929_s29 + $0x38] sm:$0xff]  ;;  %v516_v5 = vld [vmem:[%s11929_s29 + $0x28] sm:$0xff] }
0x1fcd   :  { %v514_v35 = vld [vmem:[%s11929_s29 + $0x18] sm:$0xff]  ;;  %v512_v38 = vld [vmem:[%s11929_s29 + $0x8] sm:$0xff]  ;;  %v511_v13 = vld [vmem:[%s11929_s29] sm:$0xff] }
0x201f   :  { %v4382_v50 = vpop.xlane.xlu0 %4381 }
0x2020   :  { %9852 = vrcp.f32 %v4382_v50 }
0x2023   :  { %v4385_v51 = vpop.xlane.xlu0 %4384 }
0x2024   :  { %9854 = vrcp.f32 %v4385_v51 }
0x2027   :  { %v4391_v2 = vpop.permute.xlu0 %4390 }
0x2028   :  { %9299 = vmatpush3.msra.mxu1 %v4391_v2 }
0x2029   :  { %9308 = vmatprep.subr.mxu1 %v534_v55 }
0x202b   :  { %v4553_v32 = vpop.permute.xlu0 %4552 }
0x202c   :  { %v4600_v18 = vsel %vm2043_vm13, %v4598_v17, %v4553_v32  ;;  %v517_v32 = vld [vmem:[%s11929_s29 + $0x30] sm:$0xff] }
0x202d   :  { %v9853_v34 = vpop.eup %9852 }
0x202e   :  { %v4388_v9 = vmul.f32 %v9853_v34, %v9849_v12 }
0x202f   :  { %v4561_v6 = vpop.permute.xlu0 %4560 }
0x2030   :  { %9301 = vmatmul.mubr.msk.f32.vlgmr.msra.gmra.mxu1 %vm2043_vm13, %v4388_v9  ;;  %v4603_v20 = vsel %vm4602_vm14, %v4600_v18, %v4561_v6  ;;  %v515_v6 = vld [vmem:[%s11929_s29 + $0x20] sm:$0xff] }
0x2031   :  { %v9855_v53 = vpop.eup %9854  ;;  %9309 = vmatpush3.msra.mxu1 %v534_v55 }
0x2032   :  { %v4389_v56 = vmul.f32 %v9855_v53, %v9851_v49  ;;  %9310 = vmatprep.subr.mxu1 %v533_v42 }
0x2033   :  { %9311 = vmatpush3.msra.mxu1 %v533_v42  ;;  %v4569_v10 = vpop.permute.xlu0 %4568  ;;  %v526_v42 = vld [vmem:[%s11929_s29 + $0x78] sm:$0xff] }
0x2034   :  { %9306 = vmatmul.mubr.msk.f32.vlgmr.msra.gmra.mxu0 %vm2043_vm13, %v4389_v56  ;;  %9312 = vmatprep.subr.mxu1 %v532_v57  ;;  %v4605_v22 = vsel %vm686_vm2, %v4603_v20, %v4569_v10 }
0x2035   :  { %9313 = vmatpush3.msra.mxu1 %v532_v57  ;;  %v525_v57 = vld [vmem:[%s11929_s29 + $0x70] sm:$0xff] }
0x2036   :  { %9314 = vmatprep.subr.mxu1 %v531_v61 }
0x2037   :  { %9315 = vmatpush3.msra.mxu1 %v531_v61  ;;  %v4577_v15 = vpop.permute.xlu0 %4576  ;;  %v524_v61 = vld [vmem:[%s11929_s29 + $0x68] sm:$0xff] }
0x2038   :  { %v4608_v24 = vsel %vm4607_vm15, %v4605_v22, %v4577_v15  ;;  %9330 = vmatprep.subr.mxu1 %v526_v42  ;;  %v8687_v22 = vld [vmem:[#allocation10] ss:$0 sm:$0xff] }
0x203b   :  { %v4585_v19 = vpop.permute.xlu0 %4584 }
0x203c   :  { %v4611_v30 = vsel %vm4610_vm1, %v4608_v24, %v4585_v19  ;;  %v8686_v19 = vld [vmem:[#allocation11] ss:$0 sm:$0xff] }
0x20f0   :  { %v4462_v62 = vpop.f32.mrf.mxu1 }
0x20f1   :  { %4592 = vrot.lane.b32.xlu0 %v4462_v62, %s11858_s27  ;;  %v523_v62 = vld [vmem:[%s11929_s29 + $0x60] sm:$0xff] }
0x20f2   :  { %v9302_v63 = vpop.f32.mrf.mxu1 }
0x20f3   :  { %v522_v63 = vld [vmem:[%s11929_s29 + $0x58] sm:$0xff] }
0x20f4   :  { %v4538_v31 = vpop.f32.mrf.mxu0 }
0x20f5   :  { %4594 = vrot.lane.b32.xlu1 %v4538_v31, %s11858_s27  ;;  %s11928_s27 = sld [smem:[#allocation75_spill]]  ;;  %v521_v31 = vld [vmem:[%s11929_s29 + $0x50] sm:$0xff] }
0x20f6   :  { %v9307_v0 = vpop.f32.mrf.mxu0 }
0x20f7   :  { %v520_v0 = vld [vmem:[%s11929_s29 + $0x48] sm:$0xff] }
0x20fb   :  { %v510_v9 = vld [vmem:[%s11928_s27 + $0x18] sm:$0xff]  ;;  %v509_v53 = vld [vmem:[%s11928_s27 + $0x10] sm:$0xff]  ;;  %v508_v56 = vld [vmem:[%s11928_s27 + $0x8] sm:$0xff] }
0x20fc   :  { %9319 = vmatprep.subr.mxu0 %v510_v9  ;;  %v507_v55 = vld [vmem:[%s11928_s27] sm:$0xff]  ;;  %s11930_s27 = sld [smem:[#allocation83_spill]] }
0x20fd   :  { %9320 = vmatpush3.msra.mxu0 %v510_v9 }
0x20fe   :  { %9321 = vmatprep.subr.mxu0 %v509_v53 }
0x20ff   :  { %9322 = vmatpush3.msra.mxu0 %v509_v53 }
0x2100   :  { %9323 = vmatprep.subr.mxu0 %v508_v56 }
0x2101   :  { %9324 = vmatpush3.msra.mxu0 %v508_v56 }
0x2102   :  { %9325 = vmatprep.subr.mxu0 %v507_v55 }
0x2103   :  { %9326 = vmatpush3.msra.mxu0 %v507_v55 }
0x2163   :  { %v4593_v33 = vpop.permute.xlu0 %4592 }
0x2164   :  { %v4614_v37 = vsel %vm4613_vm0, %v4611_v30, %v4593_v33 }
0x2165   :  { %9316 = vmatprep.mubr.msk.f32.mxu1 %vm970_vm4, %v4614_v37  ;;  %v513_v37 = vld [vmem:[%s11929_s29 + $0x10] sm:$0xff]  ;;  %s10473_s29 = smov [#allocation32]  }
0x2167   :  { %v4595_v40 = vpop.permute.xlu1 %4594 }
0x2168   :  { %v4615_v41 = vsel %vm4613_vm0, %v4612_v1, %v4595_v40  ;;  %v8688_v1 = vld [vmem:[#allocation2] ss:$0 sm:$0xff] }
0x2169   :  { %9317 = vmatmul.mubr.msk.f32.vlgmr.msra.gmra.mxu1 %vm970_vm4, %v4615_v41 }
0x216a   :  { %9331 = vmatpush3.msra.mxu1 %v526_v42  ;;  %v574_v42 = vld [vmem:[%s11930_s27 + $0x18] sm:$0xff] }
0x216b   :  { %9332 = vmatprep.subr.mxu1 %v525_v57  ;;  %9365 = vmatprep.subr.mxu0 %v574_v42 }
0x216c   :  { %9333 = vmatpush3.msra.mxu1 %v525_v57  ;;  %v573_v57 = vld [vmem:[%s11930_s27 + $0x10] sm:$0xff] }
0x216d   :  { %9334 = vmatprep.subr.mxu1 %v524_v61 }
0x216e   :  { %9335 = vmatpush3.msra.mxu1 %v524_v61  ;;  %v572_v61 = vld [vmem:[%s11930_s27 + $0x8] sm:$0xff] }
0x216f   :  { %9336 = vmatprep.subr.mxu1 %v523_v62 }
0x2170   :  { %9337 = vmatpush3.msra.mxu1 %v523_v62  ;;  %v571_v62 = vld [vmem:[%s11930_s27] sm:$0xff]  ;;  %s8498_s27 = sshll.u32 %s10473_s29, 4  ;;  %s8499_s27 = int_to_ptr.vmem [resolvable:$true] %s8498_s27 }
0x2171   :  { %9338 = vmatprep.subr.mxu1 %v522_v63 }
0x2172   :  { %9339 = vmatpush3.msra.mxu1 %v522_v63 }
0x2173   :  { %9340 = vmatprep.subr.mxu1 %v521_v31 }
0x2174   :  { %9341 = vmatpush3.msra.mxu1 %v521_v31 }
0x2175   :  { %9342 = vmatprep.subr.mxu1 %v520_v0 }
0x2176   :  { %9343 = vmatpush3.msra.mxu1 %v520_v0 }
0x2177   :  { %9344 = vmatprep.subr.mxu1 %v519_v3 }
0x2178   :  { %9345 = vmatpush3.msra.mxu1 %v519_v3 }
0x2179   :  { %9346 = vmatprep.subr.mxu1 %v518_v4 }
0x217a   :  { %9347 = vmatpush3.msra.mxu1 %v518_v4 }
0x217b   :  { %9348 = vmatprep.subr.mxu1 %v517_v32 }
0x217c   :  { %9349 = vmatpush3.msra.mxu1 %v517_v32 }
0x217d   :  { %9350 = vmatprep.subr.mxu1 %v516_v5 }
0x217e   :  { %9351 = vmatpush3.msra.mxu1 %v516_v5 }
0x217f   :  { %9352 = vmatprep.subr.mxu1 %v515_v6 }
0x2180   :  { %9353 = vmatpush3.msra.mxu1 %v515_v6  ;;  %v8692_v6 = vld [vmem:[#allocation20] ss:$0 sm:$0xff] }
0x2181   :  { %9354 = vmatprep.subr.mxu1 %v514_v35 }
0x2182   :  { %9355 = vmatpush3.msra.mxu1 %v514_v35 }
0x2183   :  { %9356 = vmatprep.subr.mxu1 %v513_v37 }
0x2184   :  { %9357 = vmatpush3.msra.mxu1 %v513_v37 }
0x2185   :  { %9358 = vmatprep.subr.mxu1 %v512_v38 }
0x2186   :  { %9359 = vmatpush3.msra.mxu1 %v512_v38 }
0x2187   :  { %9360 = vmatprep.subr.mxu1 %v511_v13 }
0x2188   :  { %9361 = vmatpush3.msra.mxu1 %v511_v13 }
0x2189   :  { %9406 = vmatprep.subr.mxu1 %v10439_v7 }
0x2229   :  { %v9318_v45 = vpop.f32.mrf.mxu1 }
0x222a   :  { %v4700_v39 = vadd.f32 %v9318_v45, %v8683_v43 }
0x222b   :  { %v4694_v52 = vpop.f32.mrf.mxu1 }
0x222c   :  { %v11301_v54 = vadd.f32 %v4700_v39, %v10939_v58  ;;  %v4695_v46 = vadd.f32 %v8683_v43, %v4694_v52 }
0x222e   :  { %v11304_v36 = vadd.f32 %v4695_v46, %v10941_v60  ;;  %v4708_v47 = vsel %vm970_vm4, %v11301_v54, 0.0  ;;  %v8691_v46 = vld [vmem:[#allocation5] ss:$0 sm:$0xff] }
0x222f   :  { %4709 = vadd.xlane.f32.xlu1 %v4708_v47 }
0x2230   :  { %v4705_v48 = vsel %vm970_vm4, %v11304_v36, 0.0 }
0x2231   :  { %4706 = vadd.xlane.f32.xlu0 %v4705_v48 }
0x22b8   :  { %v4710_v12 = vpop.xlane.xlu1 %4709 }
0x22b9   :  { %v4712_v59 = vmul.f32 0.03125, %v4710_v12 }
0x22ba   :  { %v4707_v49 = vpop.xlane.xlu0 %4706 }
0x22bb   :  { %v4711_v58 = vmul.f32 0.03125, %v4707_v49  ;;  %v11311_v44 = vsub.f32 %v11301_v54, %v4712_v59 }
0x22bd   :  { %v11314_v60 = vsub.f32 %v11304_v36, %v4711_v58  ;;  %v4716_v2 = vmul.f32 %v11311_v44, %v11311_v44 }
0x22bf   :  { %v4715_v50 = vmul.f32 %v11314_v60, %v11314_v60  ;;  %v4720_v34 = vsel %vm970_vm4, %v4716_v2, 0.0 }
0x22c1   :  { %v4717_v51 = vsel %vm970_vm4, %v4715_v50, 0.0 }
0x22c2   :  { %4718 = vadd.xlane.f32.xlu0 %v4717_v51 }
0x22c6   :  { %4721 = vadd.xlane.f32.xlu0 %v4720_v34 }
0x234b   :  { %v4719_v8 = vpop.xlane.xlu0 %4718 }
0x234c   :  { %v4723_v10 = vmul.f32 0.03125, %v4719_v8 }
0x234e   :  { %v4725_v14 = vadd.f32 1e-05, %v4723_v10 }
0x234f   :  { %v4722_v15 = vpop.xlane.xlu0 %4721 }
0x2350   :  { %9856 = vrsqrt.f32 %v4725_v14  ;;  %v4724_v16 = vmul.f32 0.03125, %v4722_v15 }
0x2352   :  { %v4726_v17 = vadd.f32 1e-05, %v4724_v16  ;;  %v8693_v16 = vld [vmem:[#allocation19] ss:$0 sm:$0xff] }
0x2354   :  { %9858 = vrsqrt.f32 %v4726_v17 }
0x235d   :  { %v9857_v18 = vpop.eup %9856 }
0x235e   :  { %v4729_v20 = vmul.f32 %v9857_v18, %v11314_v60 }
0x2360   :  { %v4737_v23 = vmul.f32 %v8686_v19, %v4729_v20  ;;  %v8694_v20 = vld [vmem:[#allocation14] ss:$0 sm:$0xff] }
0x2361   :  { %v9859_v24 = vpop.eup %9858 }
0x2362   :  { %v4730_v29 = vmul.f32 %v9859_v24, %v11311_v44  ;;  %v4745_v11 = vadd.f32 %v8687_v22, %v4737_v23 }
0x2364   :  { %v4738_v30 = vmul.f32 %v8686_v19, %v4730_v29  ;;  %9327 = vmatprep.mubr.msk.f32.mxu0 %vm970_vm4, %v4745_v11 }
0x2366   :  { %v4746_v33 = vadd.f32 %v8687_v22, %v4738_v30 }
0x2368   :  { %9328 = vmatmul.mubr.msk.f32.vlgmr.msra.gmra.mxu0 %vm970_vm4, %v4746_v33 }
0x2369   :  { %9366 = vmatpush3.msra.mxu0 %v574_v42 }
0x236a   :  { %9367 = vmatprep.subr.mxu0 %v573_v57 }
0x236b   :  { %9368 = vmatpush3.msra.mxu0 %v573_v57 }
0x236c   :  { %9369 = vmatprep.subr.mxu0 %v572_v61 }
0x236d   :  { %9370 = vmatpush3.msra.mxu0 %v572_v61 }
0x236e   :  { %9371 = vmatprep.subr.mxu0 %v571_v62 }
0x236f   :  { %9372 = vmatpush3.msra.mxu0 %v571_v62 }
0x2370   :  { %9376 = vmatprep.subr.mxu0 %v10439_v7 }
0x2428   :  { %v9329_v40 = vpop.f32.mrf.mxu0 }
0x2429   :  { %v4831_v41 = vadd.f32 %v9329_v40, %v8688_v1 }
0x242a   :  { %v4825_v43 = vpop.f32.mrf.mxu0 }
0x242b   :  { %v4826_v45 = vadd.f32 %v8688_v1, %v4825_v43  ;;  %v4835_v52 = vmax.f32 %v4831_v41, 0.0 }
0x242d   :  { %v4834_v39 = vmax.f32 %v4826_v45, 0.0 }
0x242f   :  { %9362 = vmatprep.mubr.f32.mxu1 %v4834_v39 }
0x2430   :  { %9363 = vmatmul.mubr.f32.vlgmr.msra.gmra.mxu1 %v4835_v52 }
0x2431   :  { %9408 = vmatprep.mubr.msk.f32.mxu1 %vm10440_vm3, %v10439_v7 }
0x24f0   :  { %v9364_v47 = vpop.f32.mrf.mxu1 }
0x24f1   :  { %v4914_v48 = vadd.f32 %v9364_v47, %v8691_v46 }
0x24f2   :  { %v4908_v12 = vpop.f32.mrf.mxu1 }
0x24f3   :  { %v11350_v59 = vadd.f32 %v4914_v48, %v11301_v54  ;;  %v4909_v49 = vadd.f32 %v8691_v46, %v4908_v12 }
0x24f5   :  { %v11353_v58 = vadd.f32 %v4909_v49, %v11304_v36  ;;  %v4922_v44 = vsel %vm970_vm4, %v11350_v59, 0.0 }
0x24f6   :  { %4923 = vadd.xlane.f32.xlu1 %v4922_v44 }
0x24f7   :  { %v4919_v60 = vsel %vm970_vm4, %v11353_v58, 0.0 }
0x24f8   :  { %4920 = vadd.xlane.f32.xlu0 %v4919_v60 }
0x257f   :  { %v4924_v50 = vpop.xlane.xlu1 %4923 }
0x2580   :  { %v4926_v51 = vmul.f32 0.03125, %v4924_v50 }
0x2581   :  { %v4921_v2 = vpop.xlane.xlu0 %4920 }
0x2582   :  { %v4928_v54 = vsub.f32 %v11350_v59, %v4926_v51  ;;  %v4925_v34 = vmul.f32 0.03125, %v4921_v2 }
0x2584   :  { %v4927_v36 = vsub.f32 %v11353_v58, %v4925_v34  ;;  %v4930_v9 = vmul.f32 %v4928_v54, %v4928_v54 }
0x2586   :  { %v4934_v53 = vsel %vm970_vm4, %v4930_v9, 0.0  ;;  %v4929_v56 = vmul.f32 %v4927_v36, %v4927_v36 }
0x2587   :  { %4935 = vadd.xlane.f32.xlu1 %v4934_v53 }
0x2588   :  { %v4931_v55 = vsel %vm970_vm4, %v4929_v56, 0.0 }
0x2589   :  { %4932 = vadd.xlane.f32.xlu0 %v4931_v55 }
0x2610   :  { %v4936_v63 = vpop.xlane.xlu1 %4935 }
0x2611   :  { %v4938_v31 = vmul.f32 0.03125, %v4936_v63 }
0x2612   :  { %v4933_v0 = vpop.xlane.xlu0 %4932 }
0x2613   :  { %v4940_v3 = vadd.f32 1e-05, %v4938_v31  ;;  %v4937_v4 = vmul.f32 0.03125, %v4933_v0 }
0x2615   :  { %9860 = vrsqrt.f32 %v4940_v3  ;;  %v4939_v32 = vadd.f32 1e-05, %v4937_v4 }
0x2617   :  { %9862 = vrsqrt.f32 %v4939_v32 }
0x2622   :  { %v9861_v5 = vpop.eup %9860 }
0x2623   :  { %v4944_v8 = vmul.f32 %v9861_v5, %v4928_v54 }
0x2624   :  { %v9863_v10 = vpop.eup %9862 }
0x2625   :  { %v4943_v14 = vmul.f32 %v9863_v10, %v4927_v36  ;;  %v4952_v15 = vmul.f32 %v8692_v6, %v4944_v8 }
0x2627   :  { %v4951_v17 = vmul.f32 %v8692_v6, %v4943_v14  ;;  %v4960_v19 = vadd.f32 %v8693_v16, %v4952_v15 }
0x2629   :  { %v4959_v18 = vadd.f32 %v8693_v16, %v4951_v17 }
0x262b   :  { %9373 = vmatprep.mubr.msk.f32.mxu0 %vm970_vm4, %v4959_v18 }
0x262c   :  { %9374 = vmatmul.mubr.msk.f32.vlgmr.msra.gmra.mxu0 %vm970_vm4, %v4960_v19 }
0x262d   :  { %9378 = vmatprep.mubr.msk.f32.mxu0 %vm10440_vm3, %v10439_v7 }
0x26ec   :  { %v9375_v22 = vpop.f32.mrf.mxu0 }
0x26ed   :  { %v11372_v23 = vadd.f32 %v9375_v22, %v8694_v20 }
0x26ee   :  { %v5039_v24 = vpop.f32.mrf.mxu0 }
0x26ef   :  { %v11374_v29 = vadd.f32 %v8694_v20, %v5039_v24  ;;  %5126 = vrot.lane.b32.xlu1 %v11372_v23, %s10443_s1 }
0x26f1   :  { %5049 = vrot.lane.b32.xlu0 %v11374_v29, %s10443_s1  ;;  %s11931_s1 = smov 68  }
0x2761   :  { %v5127_v30 = vpop.permute.xlu1 %5126 }
0x2763   :  { %v5050_v11 = vpop.permute.xlu0 %5049 }
0x2764   :  { %9377 = vmatpush3.xpose.msk.msra.mxu0 %vm1889_vm12, %v5050_v11 }
0x2765   :  { %9381 = vmatprep.subr.mxu0 %v10439_v7 }
0x2767   :  { %9379 = vmatmul.mubr.msk.f32.vlgmr.msra.gmra.mxu0 %vm1889_vm12, %v11374_v29 }
0x2768   :  { %9382 = vmatpush3.xpose.msk.msra.mxu0 %vm1889_vm12, %v5127_v30  ;;  %9383 = vmatprep.mubr.msk.f32.mxu0 %vm10440_vm3, %v10439_v7 }
0x2769   :  { %9386 = vmatprep.subr.mxu0 %v10439_v7 }
0x276b   :  { %9384 = vmatmul.mubr.msk.f32.vlgmr.msra.gmra.mxu0 %vm1889_vm12, %v11372_v23 }
0x276c   :  { %9388 = vmatprep.mubr.msk.f32.mxu0 %vm10440_vm3, %v10439_v7 }
0x2827   :  { %v5121_v33 = vpop.f32.mrf.mxu0 }
0x2828   :  { %v5202_v35 = vmul.f32 0.5, %v5121_v33 }
0x2829   :  { %v9380_v37 = vpop.f32.mrf.mxu0 }
0x282a   :  { %v5204_v38 = vsel %vm2043_vm13, %v5202_v35, -inf }
0x282b   :  { %5205 = vmax.xlane.f32.xlu1 %v5204_v38  ;;  %v5198_v13 = vpop.f32.mrf.mxu0 }
0x282c   :  { %v5203_v1 = vmul.f32 0.5, %v5198_v13 }
0x282d   :  { %v9385_v40 = vpop.f32.mrf.mxu0 }
0x282e   :  { %v5207_v41 = vsel %vm2043_vm13, %v5203_v1, -inf }
0x282f   :  { %5208 = vmax.xlane.f32.xlu0 %v5207_v41 }
0x283c   :  { %5302 = vrot.lane.b32.xlu1 %v11372_v23, %s10444_s7 }
0x2840   :  { %5380 = vrot.lane.b32.xlu1 %v11374_v29, %s10445_s30 }
0x2844   :  { %5378 = vrot.lane.b32.xlu1 %v11374_v29, %s10446_s6 }
0x28b4   :  { %v5206_v43 = vpop.xlane.xlu1 %5205 }
0x28b5   :  { %v5210_v45 = vsub.f32 %v5202_v35, %v5206_v43 }
0x28b7   :  { %v5212_v39 = vmul.f32 1.442695, %v5210_v45 }
0x28b8   :  { %v5209_v52 = vpop.xlane.xlu0 %5208  ;;  %v5303_v60 = vpop.permute.xlu1 %5302 }
0x28b9   :  { %9864 = vpow2.f32 %v5212_v39  ;;  %v5211_v46 = vsub.f32 %v5203_v1, %v5209_v52 }
0x28bb   :  { %v5214_v47 = vmul.f32 1.442695, %v5211_v46 }
0x28bc   :  { %v5381_v50 = vpop.permute.xlu1 %5380 }
0x28bd   :  { %9866 = vpow2.f32 %v5214_v47 }
0x28c0   :  { %v5379_v51 = vpop.permute.xlu1 %5378 }
0x28c6   :  { %v9865_v48 = vpop.eup %9864 }
0x28c7   :  { %v5216_v12 = vsel %vm2043_vm13, %v9865_v48, 0.0 }
0x28c8   :  { %5217 = vadd.xlane.f32.xlu0 %v5216_v12 }
0x28ca   :  { %v9867_v49 = vpop.eup %9866 }
0x28cb   :  { %v5219_v44 = vsel %vm2043_vm13, %v9867_v49, 0.0 }
0x28cc   :  { %5220 = vadd.xlane.f32.xlu1 %v5219_v44 }
0x28dd   :  { %5456 = vrot.lane.b32.xlu1 %v11372_v23, %s10446_s6  ;;  %s11934_s6 = smov 24  }
0x28de   :  { %5226 = vrot.lane.b32.xlu0 %v11374_v29, %s10444_s7  ;;  %s11932_s7 = smov 100  }
0x28e2   :  { %5458 = vrot.lane.b32.xlu0 %v11372_v23, %s10445_s30  ;;  %s11933_s30 = smov 4  }
0x2951   :  { %v5218_v2 = vpop.xlane.xlu0 %5217 }
0x2952   :  { %9868 = vrcp.f32 %v5218_v2 }
0x2955   :  { %v5221_v54 = vpop.xlane.xlu1 %5220  ;;  %v5227_v34 = vpop.permute.xlu0 %5226 }
0x2956   :  { %9870 = vrcp.f32 %v5221_v54  ;;  %9387 = vmatpush3.msra.mxu0 %v5227_v34 }
0x2957   :  { %9391 = vmatprep.subr.mxu0 %v10439_v7 }
0x2959   :  { %v5459_v55 = vpop.permute.xlu0 %5458  ;;  %v5457_v42 = vpop.permute.xlu1 %5456 }
0x295f   :  { %v9869_v36 = vpop.eup %9868 }
0x2960   :  { %v5224_v9 = vmul.f32 %v9869_v36, %v9865_v48 }
0x2962   :  { %9389 = vmatmul.mubr.msk.f32.vlgmr.msra.gmra.mxu0 %vm2043_vm13, %v5224_v9 }
0x2963   :  { %v9871_v53 = vpop.eup %9870  ;;  %9392 = vmatpush3.msra.mxu0 %v5303_v60  ;;  %9393 = vmatprep.mubr.msk.f32.mxu0 %vm10440_vm3, %v10439_v7 }
0x2964   :  { %9396 = vmatprep.subr.mxu0 %v10439_v7  ;;  %v5225_v56 = vmul.f32 %v9871_v53, %v9867_v49 }
0x2966   :  { %9394 = vmatmul.mubr.msk.f32.vlgmr.msra.gmra.mxu0 %vm2043_vm13, %v5225_v56 }
0x2967   :  { %9397 = vmatpush3.xpose.msk.msra.mxu0 %vm1889_vm12, %v5381_v50  ;;  %9398 = vmatprep.mubr.msk.f32.mxu0 %vm10440_vm3, %v10439_v7 }
0x2968   :  { %9401 = vmatprep.subr.mxu0 %v10439_v7 }
0x296a   :  { %9399 = vmatmul.mubr.msk.f32.vlgmr.msra.gmra.mxu0 %vm1889_vm12, %v5379_v51 }
0x296b   :  { %9402 = vmatpush3.xpose.msk.msra.mxu0 %vm1889_vm12, %v5459_v55  ;;  %9403 = vmatprep.mubr.msk.f32.mxu0 %vm10440_vm3, %v10439_v7 }
0x296c   :  { %9411 = vmatprep.subr.mxu0 %v10439_v7 }
0x296e   :  { %9404 = vmatmul.mubr.msk.f32.vlgmr.msra.gmra.mxu0 %vm1889_vm12, %v5457_v42 }
0x296f   :  { %9413 = vmatprep.mubr.msk.f32.mxu0 %vm10440_vm3, %v10439_v7 }
0x2a22   :  { %v11426_v57 = vpop.f32.mrf.mxu0 }
0x2a24   :  { %v9390_v61 = vpop.f32.mrf.mxu0 }
0x2a26   :  { %v11428_v62 = vpop.f32.mrf.mxu0 }
0x2a28   :  { %v9395_v63 = vpop.f32.mrf.mxu0 }
0x2a2a   :  { %v5452_v31 = vpop.f32.mrf.mxu0 }
0x2a2b   :  { %v5534_v0 = vmul.f32 0.5, %v5452_v31 }
0x2a2c   :  { %v9400_v3 = vpop.f32.mrf.mxu0 }
0x2a2d   :  { %v5536_v4 = vsel %vm2043_vm13, %v5534_v0, -inf }
0x2a2e   :  { %5537 = vmax.xlane.f32.xlu0 %v5536_v4  ;;  %v5530_v32 = vpop.f32.mrf.mxu0 }
0x2a2f   :  { %v5535_v5 = vmul.f32 0.5, %v5530_v32 }
0x2a30   :  { %v9405_v6 = vpop.f32.mrf.mxu0 }
0x2a31   :  { %v5539_v8 = vsel %vm2043_vm13, %v5535_v5, -inf }
0x2a32   :  { %5540 = vmax.xlane.f32.xlu1 %v5539_v8 }
0x2a43   :  { %5634 = vrot.lane.b32.xlu1 %v11372_v23, %s10447_s10 }
0x2a44   :  { %5558 = vrot.lane.b32.xlu0 %v11374_v29, %s10447_s10  ;;  %s11935_s10 = sld [smem:[#allocation82_spill]] }
0x2a47   :  { %5712 = vrot.lane.b32.xlu1 %v11374_v29, %s10448_s11 }
0x2a4b   :  { %5790 = vrot.lane.b32.xlu1 %v11372_v23, %s10448_s11  ;;  %s11937_s11 = sld [smem:[#allocation79_spill]] }
0x2a4f   :  { %5788 = vrot.lane.b32.xlu1 %v11372_v23, %s10449_s15 }
0x2ab7   :  { %v5538_v10 = vpop.xlane.xlu0 %5537 }
0x2ab8   :  { %v5542_v14 = vsub.f32 %v5534_v0, %v5538_v10 }
0x2aba   :  { %v5544_v15 = vmul.f32 1.442695, %v5542_v14 }
0x2abb   :  { %v5559_v16 = vpop.permute.xlu0 %5558  ;;  %v5541_v17 = vpop.xlane.xlu1 %5540 }
0x2abc   :  { %9872 = vpow2.f32 %v5544_v15  ;;  %v5543_v18 = vsub.f32 %v5535_v5, %v5541_v17  ;;  %9407 = vmatpush3.msra.mxu1 %v5559_v16 }
0x2abd   :  { %9416 = vmatprep.subr.mxu1 %v10439_v7 }
0x2abe   :  { %v5546_v19 = vmul.f32 1.442695, %v5543_v18 }
0x2abf   :  { %v5635_v20 = vpop.permute.xlu1 %5634 }
0x2ac0   :  { %9874 = vpow2.f32 %v5546_v19  ;;  %9412 = vmatpush3.msra.mxu0 %v5635_v20 }
0x2ac1   :  { %9421 = vmatprep.subr.mxu0 %v10439_v7 }
0x2ac3   :  { %v5713_v37 = vpop.permute.xlu1 %5712 }
0x2ac7   :  { %v5791_v40 = vpop.permute.xlu1 %5790 }
0x2ac9   :  { %v9873_v22 = vpop.eup %9872 }
0x2aca   :  { %v5548_v24 = vsel %vm2043_vm13, %v9873_v22, 0.0 }
0x2acb   :  { %5549 = vadd.xlane.f32.xlu0 %v5548_v24  ;;  %v5789_v45 = vpop.permute.xlu1 %5788 }
0x2acd   :  { %v9875_v11 = vpop.eup %9874 }
0x2ace   :  { %v5551_v30 = vsel %vm2043_vm13, %v9875_v11, 0.0 }
0x2acf   :  { %5552 = vadd.xlane.f32.xlu0 %v5551_v30 }
0x2ae5   :  { %5710 = vrot.lane.b32.xlu0 %v11374_v29, %s10449_s15  ;;  %s11938_s15 = sld [smem:[#allocation80_spill]] }
0x2b54   :  { %v5550_v33 = vpop.xlane.xlu0 %5549 }
0x2b55   :  { %9876 = vrcp.f32 %v5550_v33 }
0x2b58   :  { %v5553_v35 = vpop.xlane.xlu0 %5552 }
0x2b59   :  { %9878 = vrcp.f32 %v5553_v35 }
0x2b5c   :  { %v5711_v43 = vpop.permute.xlu0 %5710 }
0x2b62   :  { %v9877_v38 = vpop.eup %9876 }
0x2b63   :  { %v5556_v13 = vmul.f32 %v9877_v38, %v9873_v22 }
0x2b65   :  { %9409 = vmatmul.mubr.msk.f32.vlgmr.msra.gmra.mxu1 %vm2043_vm13, %v5556_v13 }
0x2b66   :  { %v9879_v1 = vpop.eup %9878  ;;  %9417 = vmatpush3.xpose.msk.msra.mxu1 %vm1889_vm12, %v5713_v37  ;;  %9418 = vmatprep.mubr.msk.f32.mxu1 %vm10440_vm3, %v10439_v7 }
0x2b67   :  { %v5557_v41 = vmul.f32 %v9879_v1, %v9875_v11  ;;  %9426 = vmatprep.subr.mxu1 %v10439_v7 }
0x2b69   :  { %9414 = vmatmul.mubr.msk.f32.vlgmr.msra.gmra.mxu0 %vm2043_vm13, %v5557_v41  ;;  %9419 = vmatmul.mubr.msk.f32.vlgmr.msra.gmra.mxu1 %vm1889_vm12, %v5711_v43 }
0x2b6a   :  { %9422 = vmatpush3.xpose.msk.msra.mxu0 %vm1889_vm12, %v5791_v40  ;;  %9423 = vmatprep.mubr.msk.f32.mxu0 %vm10440_vm3, %v10439_v7 }
0x2b6b   :  { %9431 = vmatprep.subr.mxu0 %v10439_v7  ;;  %9428 = vmatprep.mubr.msk.f32.mxu1 %vm10440_vm3, %v10439_v7 }
0x2b6d   :  { %9424 = vmatmul.mubr.msk.f32.vlgmr.msra.gmra.mxu0 %vm1889_vm12, %v5789_v45 }
0x2b6e   :  { %9433 = vmatprep.mubr.msk.f32.mxu0 %vm10440_vm3, %v10439_v7 }
0x2c25   :  { %v11464_v39 = vpop.f32.mrf.mxu1 }
0x2c27   :  { %v9410_v52 = vpop.f32.mrf.mxu1 }
0x2c29   :  { %v11466_v46 = vpop.f32.mrf.mxu0  ;;  %v5784_v47 = vpop.f32.mrf.mxu1 }
0x2c2a   :  { %v5866_v48 = vmul.f32 0.5, %v5784_v47 }
0x2c2b   :  { %v9415_v12 = vpop.f32.mrf.mxu0  ;;  %v9420_v49 = vpop.f32.mrf.mxu1 }
0x2c2c   :  { %v5868_v44 = vsel %vm2043_vm13, %v5866_v48, -inf }
0x2c2d   :  { %5869 = vmax.xlane.f32.xlu0 %v5868_v44  ;;  %v5862_v60 = vpop.f32.mrf.mxu0 }
0x2c2e   :  { %v5867_v50 = vmul.f32 0.5, %v5862_v60 }
0x2c2f   :  { %v9425_v51 = vpop.f32.mrf.mxu0 }
0x2c30   :  { %v5871_v2 = vsel %vm2043_vm13, %v5867_v50, -inf }
0x2c31   :  { %5872 = vmax.xlane.f32.xlu1 %v5871_v2 }
0x2c42   :  { %5966 = vrot.lane.b32.xlu1 %v11372_v23, %s10450_s16 }
0x2c43   :  { %5890 = vrot.lane.b32.xlu0 %v11374_v29, %s10450_s16 }
0x2c46   :  { %6044 = vrot.lane.b32.xlu1 %v11374_v29, %s10451_s18 }
0x2c4a   :  { %6122 = vrot.lane.b32.xlu1 %v11372_v23, %s10451_s18 }
0x2c4e   :  { %6120 = vrot.lane.b32.xlu1 %v11372_v23, %s10452_s19 }
0x2cb6   :  { %v5870_v54 = vpop.xlane.xlu0 %5869 }
0x2cb7   :  { %v5874_v34 = vsub.f32 %v5866_v48, %v5870_v54 }
0x2cb9   :  { %v5876_v36 = vmul.f32 1.442695, %v5874_v34 }
0x2cba   :  { %v5891_v9 = vpop.permute.xlu0 %5890  ;;  %v5873_v53 = vpop.xlane.xlu1 %5872 }
0x2cbb   :  { %9880 = vpow2.f32 %v5876_v36  ;;  %v5875_v56 = vsub.f32 %v5867_v50, %v5873_v53  ;;  %9427 = vmatpush3.msra.mxu1 %v5891_v9 }
0x2cbc   :  { %9436 = vmatprep.subr.mxu1 %v10439_v7 }
0x2cbd   :  { %v5878_v55 = vmul.f32 1.442695, %v5875_v56 }
0x2cbe   :  { %v5967_v42 = vpop.permute.xlu1 %5966 }
0x2cbf   :  { %9882 = vpow2.f32 %v5878_v55  ;;  %9432 = vmatpush3.msra.mxu0 %v5967_v42 }
0x2cc0   :  { %9441 = vmatprep.subr.mxu0 %v10439_v7 }
0x2cc2   :  { %v6045_v32 = vpop.permute.xlu1 %6044 }
0x2cc6   :  { %v6123_v10 = vpop.permute.xlu1 %6122 }
0x2cc8   :  { %v9881_v61 = vpop.eup %9880 }
0x2cc9   :  { %v5880_v63 = vsel %vm2043_vm13, %v9881_v61, 0.0 }
0x2cca   :  { %5881 = vadd.xlane.f32.xlu0 %v5880_v63  ;;  %v6121_v16 = vpop.permute.xlu1 %6120 }
0x2ccc   :  { %v9883_v31 = vpop.eup %9882 }
0x2ccd   :  { %v5883_v0 = vsel %vm2043_vm13, %v9883_v31, 0.0 }
0x2cce   :  { %5884 = vadd.xlane.f32.xlu0 %v5883_v0 }
0x2ce4   :  { %6042 = vrot.lane.b32.xlu0 %v11374_v29, %s10452_s19 }
0x2d53   :  { %v5882_v3 = vpop.xlane.xlu0 %5881 }
0x2d54   :  { %9884 = vrcp.f32 %v5882_v3 }
0x2d57   :  { %v5885_v4 = vpop.xlane.xlu0 %5884 }
0x2d58   :  { %9886 = vrcp.f32 %v5885_v4 }
0x2d5b   :  { %v6043_v15 = vpop.permute.xlu0 %6042 }
0x2d61   :  { %v9885_v5 = vpop.eup %9884 }
0x2d62   :  { %v5888_v6 = vmul.f32 %v9885_v5, %v9881_v61 }
0x2d64   :  { %9429 = vmatmul.mubr.msk.f32.vlgmr.msra.gmra.mxu1 %vm2043_vm13, %v5888_v6 }
0x2d65   :  { %v9887_v8 = vpop.eup %9886  ;;  %9437 = vmatpush3.xpose.msk.msra.mxu1 %vm1889_vm12, %v6045_v32  ;;  %9438 = vmatprep.mubr.msk.f32.mxu1 %vm10440_vm3, %v10439_v7 }
0x2d66   :  { %v5889_v14 = vmul.f32 %v9887_v8, %v9883_v31  ;;  %9446 = vmatprep.subr.mxu1 %v10439_v7 }
0x2d68   :  { %9434 = vmatmul.mubr.msk.f32.vlgmr.msra.gmra.mxu0 %vm2043_vm13, %v5889_v14  ;;  %9439 = vmatmul.mubr.msk.f32.vlgmr.msra.gmra.mxu1 %vm1889_vm12, %v6043_v15 }
0x2d69   :  { %9442 = vmatpush3.xpose.msk.msra.mxu0 %vm1889_vm12, %v6123_v10  ;;  %9443 = vmatprep.mubr.msk.f32.mxu0 %vm10440_vm3, %v10439_v7 }
0x2d6a   :  { %9451 = vmatprep.subr.mxu0 %v10439_v7  ;;  %9448 = vmatprep.mubr.msk.f32.mxu1 %vm10440_vm3, %v10439_v7 }
0x2d6c   :  { %9444 = vmatmul.mubr.msk.f32.vlgmr.msra.gmra.mxu0 %vm1889_vm12, %v6121_v16 }
0x2d6d   :  { %9453 = vmatprep.mubr.msk.f32.mxu0 %vm10440_vm3, %v10439_v7 }
0x2e24   :  { %v11502_v17 = vpop.f32.mrf.mxu1 }
0x2e26   :  { %v9430_v18 = vpop.f32.mrf.mxu1 }
0x2e28   :  { %v11504_v19 = vpop.f32.mrf.mxu0  ;;  %v6116_v20 = vpop.f32.mrf.mxu1 }
0x2e29   :  { %v6198_v22 = vmul.f32 0.5, %v6116_v20 }
0x2e2a   :  { %v9435_v24 = vpop.f32.mrf.mxu0  ;;  %v9440_v11 = vpop.f32.mrf.mxu1 }
0x2e2b   :  { %v6200_v30 = vsel %vm2043_vm13, %v6198_v22, -inf }
0x2e2c   :  { %6201 = vmax.xlane.f32.xlu0 %v6200_v30  ;;  %v6194_v33 = vpop.f32.mrf.mxu0 }
0x2e2d   :  { %v6199_v35 = vmul.f32 0.5, %v6194_v33 }
0x2e2e   :  { %v9445_v37 = vpop.f32.mrf.mxu0 }
0x2e2f   :  { %v6203_v38 = vsel %vm2043_vm13, %v6199_v35, -inf }
0x2e30   :  { %6204 = vmax.xlane.f32.xlu1 %v6203_v38 }
0x2e41   :  { %6298 = vrot.lane.b32.xlu1 %v11372_v23, %s10453_s13 }
0x2e42   :  { %6222 = vrot.lane.b32.xlu0 %v11374_v29, %s10453_s13 }
0x2e45   :  { %6376 = vrot.lane.b32.xlu1 %v11374_v29, %s10454_s22 }
0x2e49   :  { %6454 = vrot.lane.b32.xlu1 %v11372_v23, %s10454_s22 }
0x2e4d   :  { %6452 = vrot.lane.b32.xlu1 %v11372_v23, %s10455_s9 }
0x2eb5   :  { %v6202_v13 = vpop.xlane.xlu0 %6201 }
0x2eb6   :  { %v6206_v1 = vsub.f32 %v6198_v22, %v6202_v13 }
0x2eb8   :  { %v6208_v40 = vmul.f32 1.442695, %v6206_v1 }
0x2eb9   :  { %v6223_v41 = vpop.permute.xlu0 %6222  ;;  %v6205_v43 = vpop.xlane.xlu1 %6204 }
0x2eba   :  { %9888 = vpow2.f32 %v6208_v40  ;;  %v6207_v45 = vsub.f32 %v6199_v35, %v6205_v43  ;;  %9447 = vmatpush3.msra.mxu1 %v6223_v41 }
0x2ebb   :  { %9456 = vmatprep.subr.mxu1 %v10439_v7 }
0x2ebc   :  { %v6210_v52 = vmul.f32 1.442695, %v6207_v45 }
0x2ebd   :  { %v6299_v47 = vpop.permute.xlu1 %6298 }
0x2ebe   :  { %9890 = vpow2.f32 %v6210_v52  ;;  %9452 = vmatpush3.msra.mxu0 %v6299_v47 }
0x2ebf   :  { %9461 = vmatprep.subr.mxu0 %v10439_v7 }
0x2ec1   :  { %v6377_v51 = vpop.permute.xlu1 %6376 }
0x2ec5   :  { %v6455_v36 = vpop.permute.xlu1 %6454 }
0x2ec7   :  { %v9889_v48 = vpop.eup %9888 }
0x2ec8   :  { %v6212_v12 = vsel %vm2043_vm13, %v9889_v48, 0.0 }
0x2ec9   :  { %6213 = vadd.xlane.f32.xlu0 %v6212_v12  ;;  %v6453_v56 = vpop.permute.xlu1 %6452 }
0x2ecb   :  { %v9891_v49 = vpop.eup %9890 }
0x2ecc   :  { %v6215_v44 = vsel %vm2043_vm13, %v9891_v49, 0.0 }
0x2ecd   :  { %6216 = vadd.xlane.f32.xlu0 %v6215_v44 }
0x2ee3   :  { %6374 = vrot.lane.b32.xlu0 %v11374_v29, %s10455_s9  ;;  %s11939_s9 = sld [smem:[#allocation48_spill]] }
0x2f52   :  { %v6214_v60 = vpop.xlane.xlu0 %6213 }
0x2f53   :  { %9892 = vrcp.f32 %v6214_v60 }
0x2f56   :  { %v6217_v50 = vpop.xlane.xlu0 %6216 }
0x2f57   :  { %9894 = vrcp.f32 %v6217_v50 }
0x2f5a   :  { %v6375_v53 = vpop.permute.xlu0 %6374 }
0x2f60   :  { %v9893_v2 = vpop.eup %9892 }
0x2f61   :  { %v6220_v54 = vmul.f32 %v9893_v2, %v9889_v48 }
0x2f63   :  { %9449 = vmatmul.mubr.msk.f32.vlgmr.msra.gmra.mxu1 %vm2043_vm13, %v6220_v54 }
0x2f64   :  { %v9895_v34 = vpop.eup %9894  ;;  %9457 = vmatpush3.xpose.msk.msra.mxu1 %vm1889_vm12, %v6377_v51  ;;  %9458 = vmatprep.mubr.msk.f32.mxu1 %vm10440_vm3, %v10439_v7 }
0x2f65   :  { %v6221_v9 = vmul.f32 %v9895_v34, %v9891_v49  ;;  %9466 = vmatprep.subr.mxu1 %v10439_v7 }
0x2f67   :  { %9454 = vmatmul.mubr.msk.f32.vlgmr.msra.gmra.mxu0 %vm2043_vm13, %v6221_v9  ;;  %9459 = vmatmul.mubr.msk.f32.vlgmr.msra.gmra.mxu1 %vm1889_vm12, %v6375_v53 }
0x2f68   :  { %9462 = vmatpush3.xpose.msk.msra.mxu0 %vm1889_vm12, %v6455_v36  ;;  %9463 = vmatprep.mubr.msk.f32.mxu0 %vm10440_vm3, %v10439_v7 }
0x2f69   :  { %9471 = vmatprep.subr.mxu0 %v10439_v7  ;;  %9468 = vmatprep.mubr.msk.f32.mxu1 %vm10440_vm3, %v10439_v7 }
0x2f6b   :  { %9464 = vmatmul.mubr.msk.f32.vlgmr.msra.gmra.mxu0 %vm1889_vm12, %v6453_v56 }
0x2f6c   :  { %9473 = vmatprep.mubr.msk.f32.mxu0 %vm10440_vm3, %v10439_v7 }
0x3023   :  { %v11540_v55 = vpop.f32.mrf.mxu1 }
0x3025   :  { %v9450_v42 = vpop.f32.mrf.mxu1 }
0x3027   :  { %v11542_v61 = vpop.f32.mrf.mxu0  ;;  %v6448_v63 = vpop.f32.mrf.mxu1 }
0x3028   :  { %v6530_v31 = vmul.f32 0.5, %v6448_v63 }
0x3029   :  { %v9455_v0 = vpop.f32.mrf.mxu0  ;;  %v9460_v3 = vpop.f32.mrf.mxu1 }
0x302a   :  { %v6532_v4 = vsel %vm2043_vm13, %v6530_v31, -inf }
0x302b   :  { %6533 = vmax.xlane.f32.xlu0 %v6532_v4  ;;  %v6526_v32 = vpop.f32.mrf.mxu0 }
0x302c   :  { %v6531_v5 = vmul.f32 0.5, %v6526_v32 }
0x302d   :  { %v9465_v6 = vpop.f32.mrf.mxu0 }
0x302e   :  { %v6535_v8 = vsel %vm2043_vm13, %v6531_v5, -inf }
0x302f   :  { %6536 = vmax.xlane.f32.xlu1 %v6535_v8 }
0x3040   :  { %6630 = vrot.lane.b32.xlu1 %v11372_v23, %s10456_s3 }
0x3041   :  { %6554 = vrot.lane.b32.xlu0 %v11374_v29, %s10456_s3 }
0x3044   :  { %6708 = vrot.lane.b32.xlu1 %v11374_v29, %s10457_s25 }
0x3048   :  { %6786 = vrot.lane.b32.xlu1 %v11372_v23, %s10457_s25  ;;  %s11940_s25 = sld [smem:[#allocation55_spill]] }
0x304c   :  { %6784 = vrot.lane.b32.xlu1 %v11372_v23, %s10458_s23 }
0x30b4   :  { %v6534_v10 = vpop.xlane.xlu0 %6533 }
0x30b5   :  { %v6538_v14 = vsub.f32 %v6530_v31, %v6534_v10 }
0x30b7   :  { %v6540_v15 = vmul.f32 1.442695, %v6538_v14 }
0x30b8   :  { %v6555_v16 = vpop.permute.xlu0 %6554  ;;  %v6537_v18 = vpop.xlane.xlu1 %6536 }
0x30b9   :  { %9896 = vpow2.f32 %v6540_v15  ;;  %v6539_v20 = vsub.f32 %v6531_v5, %v6537_v18  ;;  %9467 = vmatpush3.msra.mxu1 %v6555_v16 }
0x30ba   :  { %9476 = vmatprep.subr.mxu1 %v10439_v7 }
0x30bb   :  { %v6542_v22 = vmul.f32 1.442695, %v6539_v20 }
0x30bc   :  { %v6631_v24 = vpop.permute.xlu1 %6630 }
0x30bd   :  { %9898 = vpow2.f32 %v6542_v22  ;;  %9472 = vmatpush3.msra.mxu0 %v6631_v24 }
0x30be   :  { %9481 = vmatprep.subr.mxu0 %v10439_v7 }
0x30c0   :  { %v6709_v13 = vpop.permute.xlu1 %6708 }
0x30c4   :  { %v6787_v43 = vpop.permute.xlu1 %6786 }
0x30c6   :  { %v9897_v11 = vpop.eup %9896 }
0x30c7   :  { %v6544_v30 = vsel %vm2043_vm13, %v9897_v11, 0.0 }
0x30c8   :  { %6545 = vadd.xlane.f32.xlu0 %v6544_v30  ;;  %v6785_v47 = vpop.permute.xlu1 %6784 }
0x30ca   :  { %v9899_v33 = vpop.eup %9898 }
0x30cb   :  { %v6547_v35 = vsel %vm2043_vm13, %v9899_v33, 0.0 }
0x30cc   :  { %6548 = vadd.xlane.f32.xlu0 %v6547_v35 }
0x30e2   :  { %6706 = vrot.lane.b32.xlu0 %v11374_v29, %s10458_s23  ;;  %s11941_s23 = sld [smem:[#allocation47_spill]] }
0x3151   :  { %v6546_v37 = vpop.xlane.xlu0 %6545 }
0x3152   :  { %9900 = vrcp.f32 %v6546_v37 }
0x3155   :  { %v6549_v38 = vpop.xlane.xlu0 %6548 }
0x3156   :  { %9902 = vrcp.f32 %v6549_v38 }
0x3159   :  { %v6707_v52 = vpop.permute.xlu0 %6706 }
0x315f   :  { %v9901_v1 = vpop.eup %9900 }
0x3160   :  { %v6552_v40 = vmul.f32 %v9901_v1, %v9897_v11 }
0x3162   :  { %9469 = vmatmul.mubr.msk.f32.vlgmr.msra.gmra.mxu1 %vm2043_vm13, %v6552_v40 }
0x3163   :  { %v9903_v41 = vpop.eup %9902  ;;  %9477 = vmatpush3.xpose.msk.msra.mxu1 %vm1889_vm12, %v6709_v13  ;;  %9478 = vmatprep.mubr.msk.f32.mxu1 %vm10440_vm3, %v10439_v7 }
0x3164   :  { %v6553_v45 = vmul.f32 %v9903_v41, %v9899_v33  ;;  %9486 = vmatprep.subr.mxu1 %v10439_v7 }
0x3166   :  { %9474 = vmatmul.mubr.msk.f32.vlgmr.msra.gmra.mxu0 %vm2043_vm13, %v6553_v45  ;;  %9479 = vmatmul.mubr.msk.f32.vlgmr.msra.gmra.mxu1 %vm1889_vm12, %v6707_v52 }
0x3167   :  { %9482 = vmatpush3.xpose.msk.msra.mxu0 %vm1889_vm12, %v6787_v43  ;;  %9483 = vmatprep.mubr.msk.f32.mxu0 %vm10440_vm3, %v10439_v7 }
0x3168   :  { %9491 = vmatprep.subr.mxu0 %v10439_v7  ;;  %9488 = vmatprep.mubr.msk.f32.mxu1 %vm10440_vm3, %v10439_v7 }
0x316a   :  { %9484 = vmatmul.mubr.msk.f32.vlgmr.msra.gmra.mxu0 %vm1889_vm12, %v6785_v47 }
0x316b   :  { %9493 = vmatprep.mubr.msk.f32.mxu0 %vm10440_vm3, %v10439_v7 }
0x3222   :  { %v11578_v48 = vpop.f32.mrf.mxu1 }
0x3224   :  { %v9470_v12 = vpop.f32.mrf.mxu1 }
0x3226   :  { %v11580_v49 = vpop.f32.mrf.mxu0  ;;  %v6780_v44 = vpop.f32.mrf.mxu1 }
0x3227   :  { %v6862_v60 = vmul.f32 0.5, %v6780_v44 }
0x3228   :  { %v9475_v50 = vpop.f32.mrf.mxu0  ;;  %v9480_v51 = vpop.f32.mrf.mxu1 }
0x3229   :  { %v6864_v2 = vsel %vm2043_vm13, %v6862_v60, -inf }
0x322a   :  { %6865 = vmax.xlane.f32.xlu0 %v6864_v2  ;;  %v6858_v54 = vpop.f32.mrf.mxu0 }
0x322b   :  { %v6863_v34 = vmul.f32 0.5, %v6858_v54 }
0x322c   :  { %v9485_v36 = vpop.f32.mrf.mxu0 }
0x322d   :  { %v6867_v9 = vsel %vm2043_vm13, %v6863_v34, -inf }
0x322e   :  { %6868 = vmax.xlane.f32.xlu1 %v6867_v9 }
0x323f   :  { %6962 = vrot.lane.b32.xlu1 %v11372_v23, %s10459_s12 }
0x3240   :  { %6886 = vrot.lane.b32.xlu0 %v11374_v29, %s10459_s12  ;;  %s11942_s12 = sld [smem:[#allocation53_spill]] }
0x3243   :  { %7040 = vrot.lane.b32.xlu1 %v11374_v29, %s10460_s26 }
0x3247   :  { %7118 = vrot.lane.b32.xlu1 %v11372_v23, %s10460_s26  ;;  %s11943_s26 = sld [smem:[#allocation51_spill]] }
0x324b   :  { %7116 = vrot.lane.b32.xlu1 %v11372_v23, %s10461_s4 }
0x32b3   :  { %v6866_v53 = vpop.xlane.xlu0 %6865 }
0x32b4   :  { %v6870_v56 = vsub.f32 %v6862_v60, %v6866_v53 }
0x32b6   :  { %v6872_v42 = vmul.f32 1.442695, %v6870_v56 }
0x32b7   :  { %v6887_v63 = vpop.permute.xlu0 %6886  ;;  %v6869_v31 = vpop.xlane.xlu1 %6868 }
0x32b8   :  { %9904 = vpow2.f32 %v6872_v42  ;;  %v6871_v0 = vsub.f32 %v6863_v34, %v6869_v31  ;;  %9487 = vmatpush3.msra.mxu1 %v6887_v63 }
0x32b9   :  { %9496 = vmatprep.subr.mxu1 %v10439_v7 }
0x32ba   :  { %v6874_v3 = vmul.f32 1.442695, %v6871_v0 }
0x32bb   :  { %v6963_v4 = vpop.permute.xlu1 %6962 }
0x32bc   :  { %9906 = vpow2.f32 %v6874_v3  ;;  %9492 = vmatpush3.msra.mxu0 %v6963_v4 }
0x32bd   :  { %9501 = vmatprep.subr.mxu0 %v10439_v7 }
0x32bf   :  { %v7041_v15 = vpop.permute.xlu1 %7040 }
0x32c3   :  { %v7119_v22 = vpop.permute.xlu1 %7118 }
0x32c5   :  { %v9905_v32 = vpop.eup %9904 }
0x32c6   :  { %v6876_v5 = vsel %vm2043_vm13, %v9905_v32, 0.0 }
0x32c7   :  { %6877 = vadd.xlane.f32.xlu0 %v6876_v5  ;;  %v7117_v30 = vpop.permute.xlu1 %7116 }
0x32c9   :  { %v9907_v6 = vpop.eup %9906 }
0x32ca   :  { %v6879_v8 = vsel %vm2043_vm13, %v9907_v6, 0.0 }
0x32cb   :  { %6880 = vadd.xlane.f32.xlu0 %v6879_v8 }
0x32e1   :  { %7038 = vrot.lane.b32.xlu0 %v11374_v29, %s10461_s4  ;;  %s11944_s4 = sld [smem:[#allocation56_spill]] }
0x3350   :  { %v6878_v10 = vpop.xlane.xlu0 %6877 }
0x3351   :  { %9908 = vrcp.f32 %v6878_v10 }
0x3354   :  { %v6881_v14 = vpop.xlane.xlu0 %6880 }
0x3355   :  { %9910 = vrcp.f32 %v6881_v14 }
0x3358   :  { %v7039_v11 = vpop.permute.xlu0 %7038 }
0x335e   :  { %v9909_v16 = vpop.eup %9908 }
0x335f   :  { %v6884_v18 = vmul.f32 %v9909_v16, %v9905_v32 }
0x3361   :  { %9489 = vmatmul.mubr.msk.f32.vlgmr.msra.gmra.mxu1 %vm2043_vm13, %v6884_v18 }
0x3362   :  { %v9911_v20 = vpop.eup %9910  ;;  %9497 = vmatpush3.xpose.msk.msra.mxu1 %vm1889_vm12, %v7041_v15  ;;  %9498 = vmatprep.mubr.msk.f32.mxu1 %vm10440_vm3, %v10439_v7 }
0x3363   :  { %v6885_v24 = vmul.f32 %v9911_v20, %v9907_v6  ;;  %9506 = vmatprep.subr.mxu1 %v10439_v7 }
0x3365   :  { %9494 = vmatmul.mubr.msk.f32.vlgmr.msra.gmra.mxu0 %vm2043_vm13, %v6885_v24  ;;  %9499 = vmatmul.mubr.msk.f32.vlgmr.msra.gmra.mxu1 %vm1889_vm12, %v7039_v11 }
0x3366   :  { %9502 = vmatpush3.xpose.msk.msra.mxu0 %vm1889_vm12, %v7119_v22  ;;  %9503 = vmatprep.mubr.msk.f32.mxu0 %vm10440_vm3, %v10439_v7 }
0x3367   :  { %9511 = vmatprep.subr.mxu0 %v10439_v7  ;;  %9508 = vmatprep.mubr.msk.f32.mxu1 %vm10440_vm3, %v10439_v7 }
0x3369   :  { %9504 = vmatmul.mubr.msk.f32.vlgmr.msra.gmra.mxu0 %vm1889_vm12, %v7117_v30 }
0x336a   :  { %9513 = vmatprep.mubr.msk.f32.mxu0 %vm10440_vm3, %v10439_v7 }
0x3421   :  { %v11616_v33 = vpop.f32.mrf.mxu1 }
0x3423   :  { %v9490_v35 = vpop.f32.mrf.mxu1 }
0x3425   :  { %v11618_v37 = vpop.f32.mrf.mxu0  ;;  %v7112_v38 = vpop.f32.mrf.mxu1 }
0x3426   :  { %v7194_v13 = vmul.f32 0.5, %v7112_v38 }
0x3427   :  { %v9495_v1 = vpop.f32.mrf.mxu0  ;;  %v9500_v40 = vpop.f32.mrf.mxu1 }
0x3428   :  { %v7196_v41 = vsel %vm2043_vm13, %v7194_v13, -inf }
0x3429   :  { %7197 = vmax.xlane.f32.xlu0 %v7196_v41  ;;  %v7190_v43 = vpop.f32.mrf.mxu0 }
0x342a   :  { %v7195_v45 = vmul.f32 0.5, %v7190_v43 }
0x342b   :  { %v9505_v52 = vpop.f32.mrf.mxu0 }
0x342c   :  { %v7199_v47 = vsel %vm2043_vm13, %v7195_v45, -inf }
0x342d   :  { %7200 = vmax.xlane.f32.xlu1 %v7199_v47  ;;  %v570_v47 = vld [vmem:[%s11935_s10 + $0x18] sm:$0xff] }
0x343e   :  { %7294 = vrot.lane.b32.xlu1 %v11372_v23, %s10462_s28 }
0x343f   :  { %7218 = vrot.lane.b32.xlu0 %v11374_v29, %s10462_s28  ;;  %s11945_s28 = sld [smem:[#allocation54_spill]] }
0x3442   :  { %7372 = vrot.lane.b32.xlu1 %v11374_v29, %s11931_s1 }
0x3446   :  { %7450 = vrot.lane.b32.xlu1 %v11372_v23, %s11931_s1 }
0x344a   :  { %7448 = vrot.lane.b32.xlu1 %v11372_v23, %s11932_s7 }
0x34b2   :  { %v7198_v12 = vpop.xlane.xlu0 %7197 }
0x34b3   :  { %v7202_v44 = vsub.f32 %v7194_v13, %v7198_v12  ;;  %v568_v12 = vld [vmem:[%s11935_s10 + $0x8] sm:$0xff] }
0x34b5   :  { %v7204_v60 = vmul.f32 1.442695, %v7202_v44  ;;  %v567_v44 = vld [vmem:[%s11935_s10] sm:$0xff] }
0x34b6   :  { %v7219_v50 = vpop.permute.xlu0 %7218  ;;  %v7201_v51 = vpop.xlane.xlu1 %7200 }
0x34b7   :  { %9912 = vpow2.f32 %v7204_v60  ;;  %v7203_v2 = vsub.f32 %v7195_v45, %v7201_v51  ;;  %9507 = vmatpush3.msra.mxu1 %v7219_v50 }
0x34b8   :  { %9516 = vmatprep.subr.mxu1 %v10439_v7 }
0x34b9   :  { %v7206_v54 = vmul.f32 1.442695, %v7203_v2 }
0x34ba   :  { %v7295_v34 = vpop.permute.xlu1 %7294 }
0x34bb   :  { %9914 = vpow2.f32 %v7206_v54  ;;  %9512 = vmatpush3.msra.mxu0 %v7295_v34 }
0x34bc   :  { %9521 = vmatprep.subr.mxu0 %v10439_v7 }
0x34be   :  { %v7373_v31 = vpop.permute.xlu1 %7372 }
0x34c2   :  { %v7451_v32 = vpop.permute.xlu1 %7450 }
0x34c4   :  { %v9913_v36 = vpop.eup %9912 }
0x34c5   :  { %v7208_v9 = vsel %vm2043_vm13, %v9913_v36, 0.0 }
0x34c6   :  { %7209 = vadd.xlane.f32.xlu0 %v7208_v9  ;;  %v7449_v8 = vpop.permute.xlu1 %7448 }
0x34c8   :  { %v9915_v53 = vpop.eup %9914 }
0x34c9   :  { %v7211_v56 = vsel %vm2043_vm13, %v9915_v53, 0.0 }
0x34ca   :  { %7212 = vadd.xlane.f32.xlu0 %v7211_v56 }
0x34e0   :  { %7370 = vrot.lane.b32.xlu0 %v11374_v29, %s11932_s7 }
0x354f   :  { %v7210_v42 = vpop.xlane.xlu0 %7209 }
0x3550   :  { %9916 = vrcp.f32 %v7210_v42 }
0x3553   :  { %v7213_v63 = vpop.xlane.xlu0 %7212 }
0x3554   :  { %9918 = vrcp.f32 %v7213_v63 }
0x3557   :  { %v7371_v6 = vpop.permute.xlu0 %7370 }
0x355d   :  { %v9917_v0 = vpop.eup %9916 }
0x355e   :  { %v7216_v3 = vmul.f32 %v9917_v0, %v9913_v36 }
0x3560   :  { %9509 = vmatmul.mubr.msk.f32.vlgmr.msra.gmra.mxu1 %vm2043_vm13, %v7216_v3 }
0x3561   :  { %v9919_v4 = vpop.eup %9918  ;;  %9517 = vmatpush3.xpose.msk.msra.mxu1 %vm1889_vm12, %v7373_v31  ;;  %9518 = vmatprep.mubr.msk.f32.mxu1 %vm10440_vm3, %v10439_v7 }
0x3562   :  { %v7217_v5 = vmul.f32 %v9919_v4, %v9915_v53  ;;  %9526 = vmatprep.subr.mxu1 %v10439_v7 }
0x3564   :  { %9514 = vmatmul.mubr.msk.f32.vlgmr.msra.gmra.mxu0 %vm2043_vm13, %v7217_v5  ;;  %9519 = vmatmul.mubr.msk.f32.vlgmr.msra.gmra.mxu1 %vm1889_vm12, %v7371_v6 }
0x3565   :  { %9522 = vmatpush3.xpose.msk.msra.mxu0 %vm1889_vm12, %v7451_v32  ;;  %9523 = vmatprep.mubr.msk.f32.mxu0 %vm10440_vm3, %v10439_v7 }
0x3566   :  { %9531 = vmatprep.subr.mxu0 %v10439_v7  ;;  %9528 = vmatprep.mubr.msk.f32.mxu1 %vm10440_vm3, %v10439_v7 }
0x3568   :  { %9524 = vmatmul.mubr.msk.f32.vlgmr.msra.gmra.mxu0 %vm1889_vm12, %v7449_v8 }
0x3569   :  { %9533 = vmatprep.mubr.msk.f32.mxu0 %vm10440_vm3, %v10439_v7 }
0x3620   :  { %v7290_v10 = vpop.f32.mrf.mxu1 }
0x3622   :  { %v9510_v14 = vpop.f32.mrf.mxu1 }
0x3624   :  { %v7366_v15 = vpop.f32.mrf.mxu0  ;;  %v7444_v16 = vpop.f32.mrf.mxu1 }
0x3625   :  { %v7526_v18 = vmul.f32 0.5, %v7444_v16 }
0x3626   :  { %v9515_v20 = vpop.f32.mrf.mxu0  ;;  %v9520_v22 = vpop.f32.mrf.mxu1 }
0x3627   :  { %v7528_v24 = vsel %vm2043_vm13, %v7526_v18, -inf }
0x3628   :  { %7529 = vmax.xlane.f32.xlu0 %v7528_v24  ;;  %v7522_v11 = vpop.f32.mrf.mxu0 }
0x3629   :  { %v7527_v30 = vmul.f32 0.5, %v7522_v11 }
0x362a   :  { %v9525_v35 = vpop.f32.mrf.mxu0 }
0x362b   :  { %v7531_v38 = vsel %vm2043_vm13, %v7527_v30, -inf  ;;  %v1124_v35 = vrot.slane %v10859_v21, 4 }
0x362c   :  { %7532 = vmax.xlane.f32.xlu1 %v7531_v38 }
0x362d   :  { %v1125_v38 = vadd.f32 %v1124_v35, %v10859_v21  ;;  %v559_v35 = vld [vmem:[%s11938_s15 + $0x60] sm:$0xff] }
0x363d   :  { %7626 = vrot.lane.b32.xlu1 %v11372_v23, %s10465_s0 }
0x3641   :  { %7704 = vrot.lane.b32.xlu1 %v11464_v39, %s11933_s30 }
0x3645   :  { %7706 = vrot.lane.b32.xlu1 %v11466_v46, %s11933_s30 }
0x3649   :  { %7714 = vrot.lane.b32.xlu1 %v11504_v19, %s10438_s14 }
0x364d   :  { %7722 = vrot.lane.b32.xlu1 %v11542_v61, %s10467_s2 }
0x3651   :  { %7730 = vrot.lane.b32.xlu1 %v11580_v49, %s10468_s24 }
0x3655   :  { %7738 = vrot.lane.b32.xlu1 %v11618_v37, %s10469_s8 }
0x3659   :  { %7746 = vrot.lane.b32.xlu1 %v7366_v15, %s11934_s6 }
0x36b1   :  { %v7530_v23 = vpop.xlane.xlu0 %7529 }
0x36b2   :  { %v7534_v13 = vsub.f32 %v7526_v18, %v7530_v23  ;;  %v1126_v23 = vrot.slane %v1125_v38, 2 }
0x36b4   :  { %v7536_v39 = vmul.f32 1.442695, %v7534_v13  ;;  %v1127_v13 = vadd.f32 %v1126_v23, %v1125_v38  ;;  %v8748_v23 = vld [vmem:[#allocation23] ss:$0 sm:$0xff] }
0x36b5   :  { %v7533_v1 = vpop.xlane.xlu1 %7532 }
0x36b6   :  { %9920 = vpow2.f32 %v7536_v39  ;;  %v7535_v46 = vsub.f32 %v7527_v30, %v7533_v1  ;;  %v1128_v39 = vrot.slane %v1127_v13, 1 }
0x36b8   :  { %v7538_v40 = vmul.f32 1.442695, %v7535_v46  ;;  %v1129_v1 = vadd.f32 %v1128_v39, %v1127_v13 }
0x36b9   :  { %v7627_v41 = vpop.permute.xlu1 %7626 }
0x36ba   :  { %9922 = vpow2.f32 %v7538_v40  ;;  %9532 = vmatpush3.msra.mxu0 %v7627_v41  ;;  %v1131_v46 = vmul.f32 0.0625, %v1129_v1  ;;  %v558_v1 = vld [vmem:[%s11938_s15 + $0x58] sm:$0xff] }
0x36bc   :  { %v1132_v40 = vadd.f32 1e-10, %v1131_v46 }
0x36bd   :  { %v7705_v54 = vpop.permute.xlu1 %7704 }
0x36be   :  { %v7758_v3 = vsel %vm1889_vm12, %v11426_v57, %v7705_v54 }
0x36c1   :  { %v7707_v34 = vpop.permute.xlu1 %7706 }
0x36c2   :  { %v7759_v8 = vsel %vm1889_vm12, %v11428_v62, %v7707_v34 }
0x36c3   :  { %v9921_v19 = vpop.eup %9920 }
0x36c4   :  { %v7540_v61 = vsel %vm2043_vm13, %v9921_v19, 0.0 }
0x36c5   :  { %7541 = vadd.xlane.f32.xlu0 %v7540_v61  ;;  %v7715_v9 = vpop.permute.xlu1 %7714 }
0x36c6   :  { %v7761_v14 = vsel %vm2043_vm13, %v7759_v8, %v7715_v9 }
0x36c7   :  { %v9923_v49 = vpop.eup %9922 }
0x36c8   :  { %v7543_v43 = vsel %vm2043_vm13, %v9923_v49, 0.0 }
0x36c9   :  { %7544 = vadd.xlane.f32.xlu0 %v7543_v43  ;;  %v7723_v56 = vpop.permute.xlu1 %7722 }
0x36ca   :  { %v7763_v57 = vsel %vm4602_vm14, %v7761_v14, %v7723_v56  ;;  %v544_v56 = vld [vmem:[%s11937_s11 + $0x8] sm:$0xff] }
0x36cd   :  { %v7731_v63 = vpop.permute.xlu1 %7730 }
0x36ce   :  { %v7765_v22 = vsel %vm686_vm2, %v7763_v57, %v7731_v63 }
0x36d1   :  { %v7739_v0 = vpop.permute.xlu1 %7738 }
0x36d2   :  { %v7767_v24 = vsel %vm4607_vm15, %v7765_v22, %v7739_v0  ;;  %v561_v22 = vld [vmem:[%s11938_s15 + $0x70] sm:$0xff] }
0x36d5   :  { %v7747_v15 = vpop.permute.xlu1 %7746 }
0x36d6   :  { %v7769_v62 = vsel %vm4610_vm1, %v7767_v24, %v7747_v15 }
0x36df   :  { %7550 = vrot.lane.b32.xlu0 %v11374_v29, %s10465_s0  ;;  %s11947_s0 = sld [smem:[#allocation52_spill]] }
0x36e3   :  { %7712 = vrot.lane.b32.xlu0 %v11502_v17, %s10438_s14  ;;  %s11936_s14 = smov 28  }
0x36e7   :  { %7720 = vrot.lane.b32.xlu0 %v11540_v55, %s10467_s2  ;;  %s10472_s2 = smov [#allocation31]  }
0x36eb   :  { %7728 = vrot.lane.b32.xlu0 %v11578_v48, %s10468_s24  ;;  %s8488_s24 = sshll.u32 %s10472_s2, 4  ;;  %s8489_s24 = int_to_ptr.vmem [resolvable:$true] %s8488_s24 }
0x36ec   :  { %s10296_s1 = scalar_lea.vmem %s8489_s24, 16  ;;  %s10300_s7 = scalar_lea.vmem %s8489_s24, 32 }
0x36ed   :  { %p10297_p6 = scmp.ne.s32.totalorder %s8489_s24, %s10296_s1  ;;  %p10301_p7 = scmp.lt.s32.totalorder %s8489_s24, %s8489_s24 }
0x36ee   :  { %p10302_p8 = scmp.lt.s32.totalorder %s10300_s7, %s10296_s1 }
0x36ef   :  { %7736 = vrot.lane.b32.xlu0 %v11616_v33, %s10469_s8  ;;  %v569_v33 = vld [vmem:[%s11935_s10 + $0x10] sm:$0xff]  ;;  %s11946_s8 = sld [smem:[#allocation49_spill]] }
0x36f0   :  { %p10303_p9 = por %p10302_p8, %p10301_p7 }
0x36f2   :  { %p10304_p10 = pnand %p10303_p9, %p10297_p6 }
0x36f3   :  { %7744 = vrot.lane.b32.xlu0 %v7290_v10, %s11934_s6 }
0x374e   :  { %v7542_v37 = vpop.xlane.xlu0 %7541 }
0x374f   :  { %9924 = vrcp.f32 %v7542_v37 }
0x3752   :  { %v7545_v45 = vpop.xlane.xlu0 %7544 }
0x3753   :  { %9926 = vrcp.f32 %v7545_v45 }
0x3754   :  { %9928 = vlog2.f32 %v1132_v40  ;;  %v8749_v40 = vld [vmem:[#allocation22] ss:$0 sm:$0xff] }
0x3756   :  { %v7551_v29 = vpop.permute.xlu0 %7550 }
0x3757   :  { %9527 = vmatpush3.msra.mxu1 %v7551_v29 }
0x3758   :  { %9536 = vmatprep.subr.mxu1 %v570_v47 }
0x375a   :  { %v7713_v36 = vpop.permute.xlu0 %7712 }
0x375b   :  { %v7760_v4 = vsel %vm2043_vm13, %v7758_v3, %v7713_v36 }
0x375c   :  { %v9925_v17 = vpop.eup %9924 }
0x375d   :  { %v7548_v55 = vmul.f32 %v9925_v17, %v9921_v19  ;;  %v8745_v19 = vld [vmem:[#allocation13] ss:$0 sm:$0xff] }
0x375e   :  { %v7721_v53 = vpop.permute.xlu0 %7720 }
0x375f   :  { %9529 = vmatmul.mubr.msk.f32.vlgmr.msra.gmra.mxu1 %vm2043_vm13, %v7548_v55  ;;  %v7762_v5 = vsel %vm4602_vm14, %v7760_v4, %v7721_v53 }
0x3760   :  { %v9927_v52 = vpop.eup %9926  ;;  %9537 = vmatpush3.msra.mxu1 %v570_v47 }
0x3761   :  { %v7549_v48 = vmul.f32 %v9927_v52, %v9923_v49  ;;  %9538 = vmatprep.subr.mxu1 %v569_v33  ;;  %v9929_v41 = vpop.eup %9928 }
0x3762   :  { %9539 = vmatpush3.msra.mxu1 %v569_v33  ;;  %v7729_v42 = vpop.permute.xlu0 %7728  ;;  %v1134_v43 = vmul.f32 0.6931472, %v9929_v41 }
0x3763   :  { %9534 = vmatmul.mubr.msk.f32.vlgmr.msra.gmra.mxu0 %vm2043_vm13, %v7549_v48  ;;  %9540 = vmatprep.subr.mxu1 %v568_v12  ;;  %v7764_v6 = vsel %vm686_vm2, %v7762_v5, %v7729_v42  ;;  %v543_v42 = vld [vmem:[%s11937_s11] sm:$0xff] }
0x3764   :  { %9541 = vmatpush3.msra.mxu1 %v568_v12  ;;  %v1135_v55 = vmul.f32 %v1134_v43, %v1131_v46 }
0x3765   :  { %9542 = vmatprep.subr.mxu1 %v567_v44 }
0x3766   :  { %9543 = vmatpush3.msra.mxu1 %v567_v44  ;;  %v7737_v31 = vpop.permute.xlu0 %7736  ;;  %v1137_v48 = vsel %vm1136_vm5, %v1135_v55, 0.0 }
0x3767   :  { %v7766_v10 = vsel %vm4607_vm15, %v7764_v6, %v7737_v31 }
0x376a   :  { %v7745_v32 = vpop.permute.xlu0 %7744 }
0x376b   :  { %v7768_v16 = vsel %vm4610_vm1, %v7766_v10, %v7745_v32 }
0x381f   :  { %v7622_v60 = vpop.f32.mrf.mxu1 }
0x3820   :  { %7752 = vrot.lane.b32.xlu0 %v7622_v60, %s11936_s14 }
0x3821   :  { %v9530_v50 = vpop.f32.mrf.mxu1 }
0x3822   :  { %v1099_v50 = vsub.f32 %v10866_v27, %v10835_v25  ;;  %v546_v25 = vld [vmem:[%s11937_s11 + $0x18] sm:$0xff]  ;;  %v545_v27 = vld [vmem:[%s11937_s11 + $0x10] sm:$0xff] }
0x3823   :  { %v7698_v51 = vpop.f32.mrf.mxu0  ;;  %9547 = vmatprep.subr.mxu0 %v546_v25 }
0x3824   :  { %7754 = vrot.lane.b32.xlu1 %v7698_v51, %s11936_s14  ;;  %9548 = vmatpush3.msra.mxu0 %v546_v25 }
0x3825   :  { %v9535_v2 = vpop.f32.mrf.mxu0  ;;  %9549 = vmatprep.subr.mxu0 %v545_v27 }
0x3826   :  { %9550 = vmatpush3.msra.mxu0 %v545_v27  ;;  %v453_v27 = vld [vmem:[%s11939_s9 + $0x18] sm:$0xff] }
0x3827   :  { %9551 = vmatprep.subr.mxu0 %v544_v56 }
0x3828   :  { %9552 = vmatpush3.msra.mxu0 %v544_v56  ;;  %v452_v56 = vld [vmem:[%s11939_s9 + $0x10] sm:$0xff] }
0x3829   :  { %9553 = vmatprep.subr.mxu0 %v543_v42 }
0x382a   :  { %9554 = vmatpush3.msra.mxu0 %v543_v42  ;;  %v451_v42 = vld [vmem:[%s11939_s9 + $0x8] sm:$0xff] }
0x382b   :  { %9593 = vmatprep.subr.mxu0 %v10439_v7 }
0x3892   :  { %v7753_v18 = vpop.permute.xlu0 %7752 }
0x3893   :  { %v7770_v20 = vsel %vm4613_vm0, %v7768_v16, %v7753_v18 }
0x3894   :  { %9544 = vmatprep.mubr.msk.f32.mxu1 %vm970_vm4, %v7770_v20  ;;  %v562_v20 = vld [vmem:[%s11938_s15 + $0x78] sm:$0xff] }
0x3895   :  { %9558 = vmatprep.subr.mxu1 %v562_v20 }
0x3896   :  { %v7755_v11 = vpop.permute.xlu1 %7754 }
0x3897   :  { %v7771_v30 = vsel %vm4613_vm0, %v7769_v62, %v7755_v11  ;;  %v560_v62 = vld [vmem:[%s11938_s15 + $0x68] sm:$0xff] }
0x3898   :  { %9545 = vmatmul.mubr.msk.f32.vlgmr.msra.gmra.mxu1 %vm970_vm4, %v7771_v30 }
0x3899   :  { %9559 = vmatpush3.msra.mxu1 %v562_v20 }
0x389a   :  { %9560 = vmatprep.subr.mxu1 %v561_v22 }
0x389b   :  { %9561 = vmatpush3.msra.mxu1 %v561_v22  ;;  %v461_v22 = vld [vmem:[%s11942_s12 + $0x18] sm:$0xff] }
0x389c   :  { %9562 = vmatprep.subr.mxu1 %v560_v62 }
0x389d   :  { %9563 = vmatpush3.msra.mxu1 %v560_v62  ;;  %v460_v62 = vld [vmem:[%s11942_s12 + $0x10] sm:$0xff] }
0x389e   :  { %9564 = vmatprep.subr.mxu1 %v559_v35 }
0x389f   :  { %9565 = vmatpush3.msra.mxu1 %v559_v35  ;;  %v8756_v35 = vld [vmem:[%s11943_s26] ss:$0 sm:$0xff] }
0x38a0   :  { %9566 = vmatprep.subr.mxu1 %v558_v1 }
0x38a1   :  { %9567 = vmatpush3.msra.mxu1 %v558_v1  ;;  %v472_v1 = vld [vmem:[%s11944_s4 + $0x10] sm:$0xff] }
0x3958   :  { %v9546_v61 = vpop.f32.mrf.mxu1 }
0x3959   :  { %v7856_v49 = vadd.f32 %v9546_v61, %v8745_v19 }
0x395a   :  { %v7850_v37 = vpop.f32.mrf.mxu1 }
0x395b   :  { %v11713_v45 = vadd.f32 %v7856_v49, %v11350_v59  ;;  %v7851_v29 = vadd.f32 %v8745_v19, %v7850_v37  ;;  %v557_v19 = vld [vmem:[%s11938_s15 + $0x50] sm:$0xff]  ;;  %v556_v37 = vld [vmem:[%s11938_s15 + $0x48] sm:$0xff] }
0x395c   :  { %9568 = vmatprep.subr.mxu1 %v557_v19 }
0x395d   :  { %v11716_v17 = vadd.f32 %v7851_v29, %v11353_v58  ;;  %v7864_v21 = vsel %vm970_vm4, %v11713_v45, 0.0  ;;  %v1098_v58 = vsub.f32 %v10869_v28, %v10837_v26  ;;  %v1101_v26 = vmul.f32 %v1099_v50, %v1099_v50  ;;  %9569 = vmatpush3.msra.mxu1 %v557_v19  ;;  %v549_v50 = vld [vmem:[%s11938_s15 + $0x10] sm:$0xff] }
0x395e   :  { %7865 = vadd.xlane.f32.xlu1 %v7864_v21  ;;  %v555_v21 = vld [vmem:[%s11938_s15 + $0x40] sm:$0xff]  ;;  %9570 = vmatprep.subr.mxu1 %v556_v37  ;;  %v464_v19 = vld [vmem:[%s11945_s28 + $0x10] sm:$0xff] }
0x395f   :  { %v7861_v52 = vsel %vm970_vm4, %v11716_v17, 0.0  ;;  %v1100_v2 = vmul.f32 %v1098_v58, %v1098_v58  ;;  %v1103_v9 = vsel %vm686_vm2, %v1101_v26, 0.0  ;;  %9571 = vmatpush3.msra.mxu1 %v556_v37 }
0x3960   :  { %7862 = vadd.xlane.f32.xlu0 %v7861_v52  ;;  %v554_v52 = vld [vmem:[%s11938_s15 + $0x38] sm:$0xff]  ;;  %9572 = vmatprep.subr.mxu1 %v555_v21 }
0x3961   :  { %v1102_v28 = vsel %vm686_vm2, %v1100_v2, 0.0  ;;  %9573 = vmatpush3.msra.mxu1 %v555_v21  ;;  %vm1119_vm2 = vcmask 0   ;;  %v547_v2 = vld [vmem:[%s11938_s15] sm:$0xff] }
0x3962   :  { %1138 = vadd.xlane.f32.xlu1 %v1137_v48  ;;  %v1104_v53 = vadd.f32 %v1103_v9, %v1102_v28  ;;  %v553_v48 = vld [vmem:[%s11938_s15 + $0x30] sm:$0xff]  ;;  %9574 = vmatprep.subr.mxu1 %v554_v52 }
0x3963   :  { %9575 = vmatpush3.msra.mxu1 %v554_v52 }
0x3964   :  { %9576 = vmatprep.subr.mxu1 %v553_v48 }
0x3965   :  { %9577 = vmatpush3.msra.mxu1 %v553_v48 }
0x39e7   :  { %v7866_v47 = vpop.xlane.xlu1 %7865 }
0x39e8   :  { %v7868_v33 = vmul.f32 0.03125, %v7866_v47  ;;  %v552_v47 = vld [vmem:[%s11938_s15 + $0x28] sm:$0xff] }
0x39e9   :  { %v7863_v59 = vpop.xlane.xlu0 %7862  ;;  %9578 = vmatprep.subr.mxu1 %v552_v47 }
0x39ea   :  { %v7867_v12 = vmul.f32 0.03125, %v7863_v59  ;;  %v11725_v44 = vsub.f32 %v11713_v45, %v7868_v33  ;;  %v551_v33 = vld [vmem:[%s11938_s15 + $0x20] sm:$0xff]  ;;  %9579 = vmatpush3.msra.mxu1 %v552_v47 }
0x39eb   :  { %v1139_v63 = vpop.xlane.xlu1 %1138  ;;  %9580 = vmatprep.subr.mxu1 %v551_v33 }
0x39ec   :  { %v7869_v60 = vsub.f32 %v11716_v17, %v7867_v12  ;;  %v7872_v34 = vmul.f32 %v11725_v44, %v11725_v44  ;;  %v1140_v31 = vrot.slane %v1139_v63, 4  ;;  %9581 = vmatpush3.msra.mxu1 %v551_v33 }
0x39ee   :  { %v7871_v51 = vmul.f32 %v7869_v60, %v7869_v60  ;;  %v7876_v36 = vsel %vm970_vm4, %v7872_v34, 0.0  ;;  %v1141_v32 = vadd.f32 %v1140_v31, %v1139_v63  ;;  %v8750_v34 = vld [vmem:[#allocation16] ss:$0 sm:$0xff]  ;;  %v450_v63 = vld [vmem:[%s11939_s9] sm:$0xff]  ;;  %v8753_v31 = vld [vmem:[#allocation17] ss:$0 sm:$0xff] }
0x39f0   :  { %v7873_v54 = vsel %vm970_vm4, %v7871_v51, 0.0  ;;  %v1142_v10 = vrot.slane %v1141_v32, 2  ;;  %v548_v51 = vld [vmem:[%s11938_s15 + $0x8] sm:$0xff] }
0x39f1   :  { %7874 = vadd.xlane.f32.xlu0 %v7873_v54 }
0x39f2   :  { %v1143_v18 = vadd.f32 %v1142_v10, %v1141_v32 }
0x39f4   :  { %v1144_v11 = vrot.slane %v1143_v18, 1 }
0x39f5   :  { %7877 = vadd.xlane.f32.xlu0 %v7876_v36 }
0x39f6   :  { %v1145_v46 = vadd.f32 %v1144_v11, %v1143_v18  ;;  %v8754_v18 = vld [vmem:[%s11941_s23] ss:$0 sm:$0xff]  ;;  %v459_v11 = vld [vmem:[%s11942_s12 + $0x8] sm:$0xff] }
0x39f9   :  { %1105 = vadd.xlane.f32.xlu0 %v1104_v53 }
0x3a7a   :  { %v7875_v0 = vpop.xlane.xlu0 %7874 }
0x3a7b   :  { %v7879_v3 = vmul.f32 0.03125, %v7875_v0 }
0x3a7d   :  { %v7881_v4 = vadd.f32 1e-05, %v7879_v3 }
0x3a7e   :  { %v7878_v5 = vpop.xlane.xlu0 %7877 }
0x3a7f   :  { %9930 = vrsqrt.f32 %v7881_v4  ;;  %v7880_v6 = vmul.f32 0.03125, %v7878_v5 }
0x3a81   :  { %v7882_v8 = vadd.f32 1e-05, %v7880_v6 }
0x3a82   :  { %v1106_v14 = vpop.xlane.xlu0 %1105 }
0x3a83   :  { %9932 = vrsqrt.f32 %v7882_v8  ;;  %v1107_v15 = vrot.slane %v1106_v14, 4 }
0x3a85   :  { %v1108_v16 = vadd.f32 %v1107_v15, %v1106_v14  ;;  %v469_v14 = vld [vmem:[%s11940_s25 + $0x18] sm:$0xff] }
0x3a87   :  { %v1109_v57 = vrot.slane %v1108_v16, 2 }
0x3a89   :  { %v1110_v24 = vadd.f32 %v1109_v57, %v1108_v16  ;;  %v468_v16 = vld [vmem:[%s11940_s25 + $0x10] sm:$0xff] }
0x3a8b   :  { %v1111_v30 = vrot.slane %v1110_v24, 1 }
0x3a8c   :  { %v9931_v38 = vpop.eup %9930 }
0x3a8d   :  { %v1112_v13 = vadd.f32 %v1111_v30, %v1110_v24  ;;  %v7885_v39 = vmul.f32 %v9931_v38, %v7869_v60  ;;  %v550_v60 = vld [vmem:[%s11938_s15 + $0x18] sm:$0xff]  ;;  %v458_v30 = vld [vmem:[%s11942_s12] sm:$0xff] }
0x3a8e   :  { %9582 = vmatprep.subr.mxu1 %v550_v60 }
0x3a8f   :  { %9648 = vpush %v1112_v13  ;;  %v7893_v41 = vmul.f32 %v8748_v23, %v7885_v39  ;;  %9583 = vmatpush3.msra.mxu1 %v550_v60  ;;  %v473_v13 = vld [vmem:[%s11944_s4 + $0x18] sm:$0xff] }
0x3a90   :  { %v9933_v61 = vpop.eup %9932  ;;  %9650 = vpush %v1145_v46  ;;  %9584 = vmatprep.subr.mxu1 %v549_v50  ;;  %v471_v46 = vld [vmem:[%s11944_s4 + $0x8] sm:$0xff] }
0x3a91   :  { %v7886_v49 = vmul.f32 %v9933_v61, %v11725_v44  ;;  %v7901_v43 = vadd.f32 %v8749_v40, %v7893_v41  ;;  %9585 = vmatpush3.msra.mxu1 %v549_v50  ;;  %v465_v41 = vld [vmem:[%s11945_s28 + $0x18] sm:$0xff]  ;;  %v463_v61 = vld [vmem:[%s11945_s28 + $0x8] sm:$0xff] }
0x3a92   :  { %9586 = vmatprep.subr.mxu1 %v548_v51 }
0x3a93   :  { %v7894_v29 = vmul.f32 %v8748_v23, %v7886_v49  ;;  %9555 = vmatprep.mubr.msk.f32.mxu0 %vm970_vm4, %v7901_v43  ;;  %9587 = vmatpush3.msra.mxu1 %v548_v51  ;;  %v462_v49 = vld [vmem:[%s11945_s28] sm:$0xff] }
0x3a94   :  { %9588 = vmatprep.subr.mxu1 %v547_v2  ;;  %v8758_v43 = vld [vmem:[%s11946_s8] ss:$0 sm:$0xff] }
0x3a95   :  { %v7902_v55 = vadd.f32 %v8749_v40, %v7894_v29  ;;  %9589 = vmatpush3.msra.mxu1 %v547_v2  ;;  %v470_v40 = vld [vmem:[%s11944_s4] sm:$0xff] }
0x3a96   :  { %9637 = vmatprep.subr.mxu1 %v10439_v7 }
0x3a97   :  { %9556 = vmatmul.mubr.msk.f32.vlgmr.msra.gmra.mxu0 %vm970_vm4, %v7902_v55  ;;  %v8760_v55 = vld [vmem:[%s11947_s0] ss:$0 sm:$0xff] }
0x3a98   :  { %9601 = vmatprep.mubr.msk.f32.mxu0 %vm10440_vm3, %v10439_v7  ;;  %9594 = vmatpush3.msra.mxu0 %v453_v27 }
0x3a99   :  { %9595 = vmatprep.subr.mxu0 %v10439_v7 }
0x3a9a   :  { %9596 = vmatpush3.msra.mxu0 %v452_v56 }
0x3a9b   :  { %9597 = vmatprep.subr.mxu0 %v10439_v7 }
0x3a9c   :  { %9598 = vmatpush3.msra.mxu0 %v451_v42 }
0x3a9d   :  { %9599 = vmatprep.subr.mxu0 %v10439_v7 }
0x3a9e   :  { %9600 = vmatpush3.msra.mxu0 %v450_v63 }
0x3a9f   :  { %9604 = vmatprep.subr.mxu0 %v10439_v7 }
0x3ac0   :  { %s9649_s16 = spop %9648 }
0x3ac1   :  { %s1116_s18 = smul.f32 0.00390625, %s9649_s16  ;;  %s9651_s19 = spop %9650 }
0x3ac2   :  { %s1147_s13 = ssub.f32 0.0, %s9651_s19 }
0x3ac3   :  { %s1117_s22 = smul.f32 1.25, %s1116_s18 }
0x3ac4   :  { %v1148_v59 = vstv %s1147_s13 }
0x3ac5   :  { %v1118_v12 = vstv %s1117_s22  ;;  %v1149_v58 = vmul.f32 1.442695, %v1148_v59 }
0x3ac6   :  { %1120 = vst.msk [vmem:[#allocation31] sm:$0x1] %vm1119_vm2, %v1118_v12 }
0x3ac7   :  { %9934 = vpow2.f32 %v1149_v58 }
0x3ad4   :  { %v9935_v44 = vpop.eup %9934 }
0x3ad5   :  { %9652 = vpush %v9935_v44 }
0x3b06   :  { %s9653_s3 = spop %9652 }
0x3b07   :  { %v1152_v54 = vstv %s9653_s3 }
0x3b08   :  { %1153 = vst.msk [vmem:[#allocation32] sm:$0x1] %vm1119_vm2, %v1152_v54 }
0x3b57   :  { %v9557_v26 = vpop.f32.mrf.mxu0 }
0x3b58   :  { %v7987_v28 = vadd.f32 %v9557_v26, %v8750_v34 }
0x3b59   :  { %v7981_v36 = vpop.f32.mrf.mxu0 }
0x3b5a   :  { %v7982_v9 = vadd.f32 %v8750_v34, %v7981_v36  ;;  %v7991_v25 = vmax.f32 %v7987_v28, 0.0 }
0x3b5c   :  { %v7990_v53 = vmax.f32 %v7982_v9, 0.0 }
0x3b5e   :  { %9590 = vmatprep.mubr.f32.mxu1 %v7990_v53 }
0x3b5f   :  { %9591 = vmatmul.mubr.f32.vlgmr.msra.gmra.mxu1 %v7991_v25 }
0x3b60   :  { %9645 = vmatprep.mubr.msk.f32.mxu1 %vm10440_vm3, %v10439_v7  ;;  %9638 = vmatpush3.msra.mxu1 %v465_v41 }
0x3b61   :  { %9639 = vmatprep.subr.mxu1 %v10439_v7 }
0x3b62   :  { %9640 = vmatpush3.msra.mxu1 %v464_v19 }
0x3b63   :  { %9641 = vmatprep.subr.mxu1 %v10439_v7 }
0x3b64   :  { %9642 = vmatpush3.msra.mxu1 %v463_v61 }
0x3b65   :  { %9643 = vmatprep.subr.mxu1 %v10439_v7 }
0x3b66   :  { %9644 = vmatpush3.msra.mxu1 %v462_v49 }
0x3c1f   :  { %v9592_v0 = vpop.f32.mrf.mxu1 }
0x3c20   :  { %v8070_v3 = vadd.f32 %v9592_v0, %v8753_v31 }
0x3c21   :  { %v8064_v4 = vpop.f32.mrf.mxu1 }
0x3c22   :  { %v8074_v32 = vadd.f32 %v8070_v3, %v11713_v45  ;;  %v8065_v5 = vadd.f32 %v8753_v31, %v8064_v4  ;;  %v467_v45 = vld [vmem:[%s11940_s25 + $0x8] sm:$0xff] }
0x3c24   :  { %v8073_v6 = vadd.f32 %v8065_v5, %v11716_v17  ;;  %v8079_v8 = vrot.slane %v8074_v32, 6  ;;  %v466_v17 = vld [vmem:[%s11940_s25] sm:$0xff] }
0x3c26   :  { %v8076_v10 = vrot.slane %v8073_v6, 7 }
0x3c28   :  { %v8082_v15 = vsel %vm8081_vm6, %v8076_v10, %v8079_v8 }
0x3c29   :  { %9602 = vmatmul.mubr.msk.f32.vlgmr.msra.gmra.mxu0 %vm970_vm4, %v8082_v15 }
0x3c2a   :  { %9605 = vmatpush3.msra.mxu0 %v469_v14  ;;  %9612 = vmatprep.mubr.msk.f32.mxu0 %vm10440_vm3, %v10439_v7 }
0x3c2b   :  { %9606 = vmatprep.subr.mxu0 %v10439_v7 }
0x3c2c   :  { %9607 = vmatpush3.msra.mxu0 %v468_v16 }
0x3c2d   :  { %9608 = vmatprep.subr.mxu0 %v10439_v7 }
0x3c2e   :  { %9609 = vmatpush3.msra.mxu0 %v467_v45 }
0x3c2f   :  { %9610 = vmatprep.subr.mxu0 %v10439_v7 }
0x3c30   :  { %9611 = vmatpush3.msra.mxu0 %v466_v17 }
0x3c31   :  { %9615 = vmatprep.subr.mxu0 %v10439_v7 }
0x3ce9   :  { %v8158_v57 = vpop.f32.mrf.mxu0 }
0x3cea   :  { %v8159_v20 = vadd.f32 %v8754_v18, %v8158_v57 }
0x3ceb   :  { %v9603_v24 = vpop.f32.mrf.mxu0 }
0x3cec   :  { %9613 = vmatmul.mubr.msk.f32.vlgmr.msra.gmra.mxu0 %vm970_vm4, %v8159_v20 }
0x3ced   :  { %9616 = vmatpush3.msra.mxu0 %v461_v22  ;;  %9623 = vmatprep.mubr.msk.f32.mxu0 %vm10440_vm3, %v10439_v7 }
0x3cee   :  { %9617 = vmatprep.subr.mxu0 %v10439_v7 }
0x3cef   :  { %9618 = vmatpush3.msra.mxu0 %v460_v62 }
0x3cf0   :  { %9619 = vmatprep.subr.mxu0 %v10439_v7 }
0x3cf1   :  { %9620 = vmatpush3.msra.mxu0 %v459_v11 }
0x3cf2   :  { %9621 = vmatprep.subr.mxu0 %v10439_v7 }
0x3cf3   :  { %9622 = vmatpush3.msra.mxu0 %v458_v30 }
0x3cf4   :  { %9626 = vmatprep.subr.mxu0 %v10439_v7 }
0x3dac   :  { %v8237_v38 = vpop.f32.mrf.mxu0 }
0x3dad   :  { %v8238_v23 = vadd.f32 %v8756_v35, %v8237_v38 }
0x3dae   :  { %v9614_v39 = vpop.f32.mrf.mxu0 }
0x3daf   :  { %9624 = vmatmul.mubr.msk.f32.vlgmr.msra.gmra.mxu0 %vm970_vm4, %v8238_v23 }
0x3db0   :  { %9627 = vmatpush3.msra.mxu0 %v473_v13  ;;  %9634 = vmatprep.mubr.msk.f32.mxu0 %vm10440_vm3, %v10439_v7  ;;  %vm8320_vm3 = vcmask 254976  }
0x3db1   :  { %9628 = vmatprep.subr.mxu0 %v10439_v7 }
0x3db2   :  { %9629 = vmatpush3.msra.mxu0 %v472_v1 }
0x3db3   :  { %9630 = vmatprep.subr.mxu0 %v10439_v7 }
0x3db4   :  { %9631 = vmatpush3.msra.mxu0 %v471_v46 }
0x3db5   :  { %9632 = vmatprep.subr.mxu0 %v10439_v7 }
0x3db6   :  { %9633 = vmatpush3.msra.mxu0 %v470_v40 }
0x3db7   :  { %9635 = vmatmul.mubr.msk.f32.vlgmr.msra.gmra.mxu0 %vm970_vm4, %v8159_v20 }
0x3e6f   :  { %v8316_v37 = vpop.f32.mrf.mxu0 }
0x3e70   :  { %v8317_v29 = vadd.f32 %v8758_v43, %v8316_v37 }
0x3e71   :  { %v9625_v21 = vpop.f32.mrf.mxu0 }
0x3e72   :  { %8321 = vst.msk [vmem:[%s10762_s5] sm:$0x3] %vm8320_vm3, %v8317_v29 }
0x3e77   :  { %v8394_v52 = vpop.f32.mrf.mxu0 }
0x3e78   :  { %v8395_v48 = vadd.f32 %v8760_v55, %v8394_v52 }
0x3e79   :  { %v9636_v47 = vpop.f32.mrf.mxu0 }
0x3e7a   :  { %9646 = vmatmul.mubr.msk.f32.vlgmr.msra.gmra.mxu1 %vm970_vm4, %v8395_v48 }
0x3e7b   :  { %10307 = shalt.err (!%p10304_p10)
}
0x3e7c   :  { %8491 = dma.vmem_to_hbm [thread:$0]  %s8489_s24, 16, %s10772_s20, [#allocation4]  }
0x3e7d   :  { %s10316_s5 = scalar_lea.vmem %s8499_s27, 16  ;;  %s10320_s30 = scalar_lea.vmem %s8499_s27, 32 }
0x3e7e   :  { %p10317_p11 = scmp.ne.s32.totalorder %s8499_s27, %s10316_s5  ;;  %p10321_p12 = scmp.lt.s32.totalorder %s8499_s27, %s8499_s27 }
0x3e7f   :  { %p10322_p13 = scmp.lt.s32.totalorder %s10320_s30, %s10316_s5 }
0x3e81   :  { %p10323_p0 = por %p10322_p13, %p10321_p12 }
0x3e83   :  { %p10324_p1 = pnand %p10323_p0, %p10317_p11 }
0x3e85   :  { %10327 = shalt.err (!%p10324_p1)
}
0x3e86   :  { %s11948_s6 = sld [smem:[#allocation50_spill]] }
0x3e87   :  { %8501 = dma.vmem_to_hbm [thread:$0]  %s8499_s27, 16, %s10777_s21, [#allocation33]  }
0x3e8c   :  { %v8762_v7 = vld [vmem:[%s11948_s6] ss:$0 sm:$0xff] }
0x3f3a   :  { %v8473_v33 = vpop.f32.mrf.mxu1 }
0x3f3b   :  { %v8474_v59 = vadd.f32 %v8762_v7, %v8473_v33 }
0x3f3c   :  { %v9647_v12 = vpop.f32.mrf.mxu1 }
0x3f3d   :  { %8477 = vst.msk [vmem:[%s10767_s17] sm:$0x3] %vm8320_vm3, %v8474_v59 }
0x3f3e   :  { %10356 = dma.done.wait [#allocation4], 16  }
0x3f3f   :  { %10357 = vsyncadd [#allocation4], 4294967280 }
0x3f40   :  { %10358 = dma.done.wait [#allocation33], 16  }
0x3f41   :  { %10359 = vsyncadd [#allocation33], 4294967280 }
0x3f42   :  { %8512 = vsyncpa [#allocation3], 1 }
0x3f43   :  { %8513 = vsyncpa [#allocation6], 1 }
0x3f44   :  { %8514 = vsyncpa [#allocation9], 1 }
0x3f45   :  { %8515 = vsyncpa [#allocation12], 1 }
0x3f46   :  { %8516 = vsyncpa [#allocation15], 1 }
0x3f47   :  { %8517 = vsyncpa [#allocation18], 1 }
0x3f48   :  { %8518 = vsyncpa [#allocation21], 1 }
0x3f49   :  { %8519 = vsyncpa [#allocation24], 1 }
0x3f4a   :  { %8520 = vsyncpa [#allocation27], 1 }
0x3f4b   :  { %8521 = vsyncpa [#allocation30], 1 }
0x3f4c   :  { %8522 = vsyncpa [#allocation4], 1 }
0x3f4d   :  { %8523 = vsyncpa [#allocation33], 1 }

</bundles_post_ra>
